<compile_context>
chip_gen: v7x
topology: tpu7x:2x2x1
jax: 0.10.0
libtpu: 0.0.40
codegen_flags: <defaults>
</compile_context>

<pallas_src>
import functools

import jax
import jax.numpy as jnp
from jax.experimental import pallas as pl
from jax.experimental.pallas import tpu as pltpu

MXU_DTYPE = jnp.bfloat16            # matmul-operand / activation dtype

_VMEM_LIMIT_CACHE = None


def _vmem_limit():
    """3/4 of physical VMEM (96 MiB on v5e/v6e, 48 MiB on v7x)."""
    global _VMEM_LIMIT_CACHE
    if _VMEM_LIMIT_CACHE is None:
        cap = 64 * 1024 * 1024
        try:
            info = pltpu.get_tpu_info()
            for name in ("vmem_capacity_bytes", "vmem_bytes", "vmem_size_bytes"):
                val = getattr(info, name, None)
                if val:
                    cap = int(val)
                    break
        except Exception:
            pass
        _VMEM_LIMIT_CACHE = min((cap * 3) // 4, 112 * 1024 * 1024)
    return _VMEM_LIMIT_CACHE


def _cparams(*sem):
    return pltpu.CompilerParams(dimension_semantics=tuple(sem),
                                vmem_limit_bytes=_vmem_limit())


def _pick_band(H, target):
    """Largest even divisor of H that is <= target (whole image if none)."""
    best = None
    d = 2
    top = min(target, H)
    while d <= top:
        if H % d == 0:
            best = d
        d += 2
    return best if best is not None else H


def _pick_tile_m(M, target):
    t = min(target, M)
    t -= t % 8
    while t >= 8:
        if M % t == 0:
            return t
        t -= 8
    return M


def _pack_taps(val, C):
    """(R, W, C) -> (R, W, 3C): slot dj holds val shifted by dj-1 along W with
    zero padding, i.e. the three horizontal 3x3-conv taps packed on lanes."""
    R, W, _ = val.shape
    z = jnp.zeros((R, 1, C), val.dtype)
    left = jnp.concatenate([z, val[:, :W - 1, :]], axis=1)     # x[:, w-1, :]
    right = jnp.concatenate([val[:, 1:, :], z], axis=1)        # x[:, w+1, :]
    return jnp.concatenate([left, val, right], axis=-1)


# ----------------------------------------------------------------------------
# Fused Residual_Block: relu(conv2(relu(conv1(x))) + x), row-band tiled with a
# 2-row input halo (the intermediate needs a 1-row overlap for conv2).
# ----------------------------------------------------------------------------
def _make_residual_kernel(TH, W, C):
    rows1 = TH + 2

    def kernel(x_ref, top_ref, bot_ref, w1_ref, b1_ref, w2_ref, b2_ref,
               o_ref, xcat, mcat):
        b = pl.program_id(1)
        nb = pl.num_programs(1)
        zero2 = jnp.zeros((2, W, 3 * C), MXU_DTYPE)

        # ---- pack input band (+ 2-row halos) into the 3-tap buffer ----
        xcat[0:2] = zero2                       # stays zero when b == 0
        xcat[TH + 2:TH + 4] = zero2             # stays zero when b == nb - 1
        xcat[2:TH + 2] = _pack_taps(x_ref[0], C)

        @pl.when(b > 0)
        def _():
            xcat[0:2] = _pack_taps(top_ref[0], C)

        @pl.when(b < nb - 1)
        def _():
            xcat[TH + 2:TH + 4] = _pack_taps(bot_ref[0], C)

        # ---- conv1 + ReLU over band rows plus a 1-row overlap each side ----
        acc1 = jnp.dot(xcat[0:rows1].reshape(rows1 * W, 3 * C), w1_ref[0],
                       preferred_element_type=jnp.float32)
        for di in (1, 2):
            acc1 = acc1 + jnp.dot(
                xcat[di:di + rows1].reshape(rows1 * W, 3 * C), w1_ref[di],
                preferred_element_type=jnp.float32)
        mid = jnp.maximum(acc1 + b1_ref[...], 0.0)
        mid = mid.reshape(rows1, W, C).astype(MXU_DTYPE)

        # ---- pack intermediate; overlap rows outside the image are conv2's
        #      zero padding, so force them to zero -----------------------------
        mcat[0:rows1] = _pack_taps(mid, C)

        @pl.when(b == 0)
        def _():
            mcat[0:1] = jnp.zeros((1, W, 3 * C), MXU_DTYPE)

        @pl.when(b == nb - 1)
        def _():
            mcat[TH + 1:TH + 2] = jnp.zeros((1, W, 3 * C), MXU_DTYPE)

        # ---- conv2 + residual + ReLU ----
        acc2 = jnp.dot(mcat[0:TH].reshape(TH * W, 3 * C), w2_ref[0],
                       preferred_element_type=jnp.float32)
        for di in (1, 2):
            acc2 = acc2 + jnp.dot(
                mcat[di:di + TH].reshape(TH * W, 3 * C), w2_ref[di],
                preferred_element_type=jnp.float32)
        res = x_ref[0].astype(jnp.float32).reshape(TH * W, C)
        out = jnp.maximum(acc2 + b2_ref[...] + res, 0.0)
        o_ref[0] = out.reshape(TH, W, C).astype(o_ref.dtype)

    return kernel


def residual_block(x, rp, band_rows=32):
    N, H, W, C = x.shape
    assert W % 8 == 0, "W must be a multiple of 8 (lane/sublane tiling)"
    TH = _pick_band(H, band_rows)
    nb = H // TH
    TH2 = TH // 2
    H2M1 = max(H // 2 - 1, 0)
    (w1, b1), (w2, b2) = rp["conv1"], rp["conv2"]
    w1r = w1.reshape(3, 3 * C, C).astype(MXU_DTYPE)
    w2r = w2.reshape(3, 3 * C, C).astype(MXU_DTYPE)
    xin = x.astype(MXU_DTYPE)
    return pl.pallas_call(
        _make_residual_kernel(TH, W, C),
        out_shape=jax.ShapeDtypeStruct((N, H, W, C), MXU_DTYPE),
        grid=(N, nb),
        in_specs=[
            pl.BlockSpec((1, TH, W, C), lambda n, b: (n, b, 0, 0)),
            # 2-row top halo (x rows b*TH-2, b*TH-1); clamped + masked at b==0
            pl.BlockSpec((1, 2, W, C),
                         lambda n, b: (n, jnp.maximum(b * TH2 - 1, 0), 0, 0)),
            # 2-row bottom halo (x rows (b+1)*TH, +1); clamped + masked at end
            pl.BlockSpec((1, 2, W, C),
                         lambda n, b: (n, jnp.minimum((b + 1) * TH2, H2M1), 0, 0)),
            pl.BlockSpec((3, 3 * C, C), lambda n, b: (0, 0, 0)),
            pl.BlockSpec((1, C), lambda n, b: (0, 0)),
            pl.BlockSpec((3, 3 * C, C), lambda n, b: (0, 0, 0)),
            pl.BlockSpec((1, C), lambda n, b: (0, 0)),
        ],
        out_specs=pl.BlockSpec((1, TH, W, C), lambda n, b: (n, b, 0, 0)),
        scratch_shapes=[pltpu.VMEM((TH + 4, W, 3 * C), MXU_DTYPE),
                        pltpu.VMEM((TH + 2, W, 3 * C), MXU_DTYPE)],
        compiler_params=_cparams("parallel", "parallel"),
    )(xin, xin, xin, w1r, b1.reshape(1, C).astype(jnp.float32),
      w2r, b2.reshape(1, C).astype(jnp.float32))


# ----------------------------------------------------------------------------
# Standalone 3x3 conv (used for the exit conv, Cout=1), row-band tiled with a
# 1-row halo.
# ----------------------------------------------------------------------------
def _make_conv3x3_kernel(TH, W, Cin, Cout):
    def kernel(x_ref, top_ref, bot_ref, w_ref, b_ref, o_ref, xcat):
        b = pl.program_id(1)
        nb = pl.num_programs(1)
        zero1 = jnp.zeros((1, W, 3 * Cin), MXU_DTYPE)

        xcat[0:1] = zero1                       # stays zero when b == 0
        xcat[TH + 1:TH + 2] = zero1             # stays zero when b == nb - 1
        xcat[1:TH + 1] = _pack_taps(x_ref[0], Cin)

        @pl.when(b > 0)
        def _():
            xcat[0:1] = _pack_taps(top_ref[0], Cin)

        @pl.when(b < nb - 1)
        def _():
            xcat[TH + 1:TH + 2] = _pack_taps(bot_ref[0], Cin)

        acc = jnp.dot(xcat[0:TH].reshape(TH * W, 3 * Cin), w_ref[0],
                      preferred_element_type=jnp.float32)
        for di in (1, 2):
            acc = acc + jnp.dot(
                xcat[di:di + TH].reshape(TH * W, 3 * Cin), w_ref[di],
                preferred_element_type=jnp.float32)
        out = acc + b_ref[...]
        o_ref[0] = out.reshape(TH, W, Cout).astype(o_ref.dtype)

    return kernel


def conv3x3(x, w, b, band_rows=32, out_dtype=MXU_DTYPE):
    N, H, W, Cin = x.shape
    Cout = w.shape[-1]
    assert W % 8 == 0, "W must be a multiple of 8 (lane/sublane tiling)"
    TH = _pick_band(H, band_rows)
    nb = H // TH
    w3 = w.reshape(3, 3 * Cin, Cout).astype(MXU_DTYPE)
    xin = x.astype(MXU_DTYPE)
    return pl.pallas_call(
        _make_conv3x3_kernel(TH, W, Cin, Cout),
        out_shape=jax.ShapeDtypeStruct((N, H, W, Cout), out_dtype),
        grid=(N, nb),
        in_specs=[
            pl.BlockSpec((1, TH, W, Cin), lambda n, b: (n, b, 0, 0)),
            pl.BlockSpec((1, 1, W, Cin),
                         lambda n, b: (n, jnp.maximum(b * TH - 1, 0), 0, 0)),
            pl.BlockSpec((1, 1, W, Cin),
                         lambda n, b: (n, jnp.minimum((b + 1) * TH, H - 1), 0, 0)),
            pl.BlockSpec((3, 3 * Cin, Cout), lambda n, b: (0, 0, 0)),
            pl.BlockSpec((1, Cout), lambda n, b: (0, 0)),
        ],
        out_specs=pl.BlockSpec((1, TH, W, Cout), lambda n, b: (n, b, 0, 0)),
        scratch_shapes=[pltpu.VMEM((TH + 2, W, 3 * Cin), MXU_DTYPE)],
        compiler_params=_cparams("parallel", "parallel"),
    )(xin, xin, xin, w3, b.reshape(1, Cout).astype(jnp.float32))


# ----------------------------------------------------------------------------
# 1x1 conv over a (virtual) channel concat, tiled over M = N*H*W.  The concat
# is never materialized: each piece gets its own ref and weight slab, partial
# matmuls accumulate into a VMEM f32 scratch.
# ----------------------------------------------------------------------------
def _make_conv1x1_kernel(K):
    def kernel(*refs):
        pieces = refs[:K]
        wrefs = refs[K:2 * K]
        b_ref = refs[2 * K]
        o_ref = refs[2 * K + 1]
        acc_ref = refs[2 * K + 2]
        acc_ref[...] = jnp.dot(pieces[0][...], wrefs[0][...],
                               preferred_element_type=jnp.float32)
        for k in range(1, K):
            acc_ref[...] += jnp.dot(pieces[k][...], wrefs[k][...],
                                    preferred_element_type=jnp.float32)
        o_ref[...] = (acc_ref[...] + b_ref[...]).astype(o_ref.dtype)

    return kernel


def conv1x1_concat(pieces, w, bias, tile_m=512, out_dtype=MXU_DTYPE):
    """1x1 conv of concat(pieces, axis=channel) without building the concat.

    pieces: list of (N,H,W,Ck) arrays (channel counts may differ per piece).
    w: (1,1,sum(Ck),Cout) or (sum(Ck),Cout); bias: (Cout,).
    """
    if w.ndim == 4:
        w = w[0, 0]
    N, H, W = pieces[0].shape[:3]
    M = N * H * W
    K = len(pieces)
    Cout = w.shape[-1]

    slabs = []
    off = 0
    for p in pieces:
        ck = p.shape[-1]
        slabs.append(w[off:off + ck].astype(MXU_DTYPE))
        off += ck
    assert off == w.shape[0], "weight rows must match total concat channels"

    TM = _pick_tile_m(M, tile_m)
    flat = [p.reshape(M, p.shape[-1]).astype(MXU_DTYPE) for p in pieces]

    in_specs = []
    for p in pieces:
        ck = p.shape[-1]
        in_specs.append(pl.BlockSpec((TM, ck), lambda i: (i, 0)))
    for s in slabs:
        in_specs.append(pl.BlockSpec(s.shape, lambda i: (0, 0)))
    in_specs.append(pl.BlockSpec((1, Cout), lambda i: (0, 0)))

    out = pl.pallas_call(
        _make_conv1x1_kernel(K),
        out_shape=jax.ShapeDtypeStruct((M, Cout), out_dtype),
        grid=(M // TM,),
        in_specs=in_specs,
        out_specs=pl.BlockSpec((TM, Cout), lambda i: (i, 0)),
        scratch_shapes=[pltpu.VMEM((TM, Cout), jnp.float32)],
        compiler_params=_cparams("parallel"),
    )(*flat, *slabs, bias.reshape(1, Cout).astype(jnp.float32))
    return out.reshape(N, H, W, Cout)


# ----------------------------------------------------------------------------
# Entry conv (Cin=1): tiny XLA im2col -> (M, 9) patches -> one Pallas matmul.
# ----------------------------------------------------------------------------
def _entry_patches(x_nhwc1):
    N, H, W, _ = x_nhwc1.shape
    xp = jnp.pad(x_nhwc1[..., 0], ((0, 0), (1, 1), (1, 1)))
    taps = [xp[:, di:di + H, dj:dj + W] for di in range(3) for dj in range(3)]
    return jnp.stack(taps, axis=-1).astype(MXU_DTYPE)      # (N, H, W, 9)


# ----------------------------------------------------------------------------
# Parameter initialization (deterministic, PyTorch-like uniform fan-in init)
# ----------------------------------------------------------------------------
def _init_conv(key, kh, kw, cin, cout):
    kw_key, kb_key = jax.random.split(key)
    fan_in = cin * kh * kw
    bound = 1.0 / (fan_in ** 0.5)
    w = jax.random.uniform(kw_key, (kh, kw, cin, cout), jnp.float32,
                           -bound, bound)
    b = jax.random.uniform(kb_key, (cout,), jnp.float32, -bound, bound)
    return w, b


def init_params(key, C):
    keys = iter(jax.random.split(key, 256))

    def nxt():
        return next(keys)

    def init_res():
        return {"conv1": _init_conv(nxt(), 3, 3, C, C),
                "conv2": _init_conv(nxt(), 3, 3, C, C)}

    def init_cb():
        return {"r1": init_res(), "r2": init_res(), "r3": init_res(),
                "c1": _init_conv(nxt(), 1, 1, 2 * C, C),
                "c2": _init_conv(nxt(), 1, 1, 3 * C, C),
                "c3": _init_conv(nxt(), 1, 1, 4 * C, C)}

    return {
        "entry": _init_conv(nxt(), 3, 3, 1, C),
        "cb": [init_cb() for _ in range(5)],
        "cv": [_init_conv(nxt(), 1, 1, (i + 2) * C, C) for i in range(5)],
        "exit": _init_conv(nxt(), 3, 3, C, 1),
    }


# ----------------------------------------------------------------------------
# Forward pass (matches ScUnicorn.forward; the repeated cb_i(o)/r_i(o) calls in
# the PyTorch code are pure and therefore computed once).
# ----------------------------------------------------------------------------
def cascading_block(x, cp, band_rows, tile_m):
    pieces = [x]
    o = x
    for r_name, c_name in (("r1", "c1"), ("r2", "c2"), ("r3", "c3")):
        pieces.append(residual_block(o, cp[r_name], band_rows))
        w, b = cp[c_name]
        o = conv1x1_concat(pieces, w, b, tile_m=tile_m)
    return o


def scunicorn_forward(params, x_nchw, band_rows=32, tile_m=512):
    # x_nchw: (N, 1, H, W) float32
    x = jnp.transpose(x_nchw, (0, 2, 3, 1))                  # -> NHWC (N,H,W,1)
    we, be = params["entry"]
    C = we.shape[-1]
    patches = _entry_patches(x)                              # (N, H, W, 9) bf16
    x0 = conv1x1_concat([patches], we.reshape(9, C), be, tile_m=tile_m)

    pieces = [x0]
    o = x0
    for i in range(5):
        pieces.append(cascading_block(o, params["cb"][i], band_rows, tile_m))
        wv, bv = params["cv"][i]
        o = conv1x1_concat(pieces, wv, bv, tile_m=tile_m)

    wx, bx = params["exit"]
    out = conv3x3(o, wx, bx, band_rows=band_rows, out_dtype=jnp.float32)
    return jnp.transpose(out, (0, 3, 1, 2))                  # back to NCHW


if __name__ == "__main__":
    # Small, module-consistent shapes: batch=2, 1 input channel, 16x16 spatial,
    # num_channels=16 (ScUnicorn default is 64; reduced for a small test).
    # band_rows=8 gives 2 row bands (exercises both halo branches); tile_m=256
    # gives a 2-step grid for the 1x1 kernels.
    N, H, W = 2, 16, 16
    NUM_CHANNELS = 16

    key = jax.random.PRNGKey(0)
    k_params, k_x = jax.random.split(key)
    params = init_params(k_params, NUM_CHANNELS)
    x = jax.random.normal(k_x, (N, 1, H, W), jnp.float32)

    fwd = jax.jit(functools.partial(scunicorn_forward, band_rows=8, tile_m=256))
    out = jax.block_until_ready(fwd(params, x))
    assert out.shape == (N, 1, H, W), out.shape
    assert out.dtype == jnp.float32
    assert bool(jnp.isfinite(out).all())
    print("KERNEL_OK")
</pallas_src>

<mosaic_0001>
module attributes {stable_mosaic.version = 11 : i64} {
  func.func @kernel(%arg0: i32, %arg1: memref<256x9xbf16, #tpu.memory_space<vmem>>, %arg2: memref<9x16xbf16, #tpu.memory_space<vmem>>, %arg3: memref<1x16xf32, #tpu.memory_space<vmem>>, %arg4: memref<256x16xbf16, #tpu.memory_space<vmem>>, %arg5: memref<256x16xf32, #tpu.memory_space<vmem>>) attributes {dimension_semantics = [#tpu.dimension_semantics<parallel>], iteration_bounds = array<i64: 2>, scalar_prefetch = 0 : i64, scratch_operands = 1 : i64, tpu.core_type = #tpu.core_type<tc>, window_params = [{transform_indices = @transform_0, window_bounds = array<i64: 256, 9>}, {pipeline_mode = #tpu.pipeline_mode<synchronous>, transform_indices = @transform_1, window_bounds = array<i64: 9, 16>}, {pipeline_mode = #tpu.pipeline_mode<synchronous>, transform_indices = @transform_2, window_bounds = array<i64: 1, 16>}, {transform_indices = @transform_3, window_bounds = array<i64: 256, 16>}]} {
    %c0 = arith.constant 0 : index
    %c0_0 = arith.constant 0 : index
    %0 = vector.load %arg1[%c0, %c0_0] : memref<256x9xbf16, #tpu.memory_space<vmem>>, vector<256x9xbf16>
    %c0_1 = arith.constant 0 : index
    %c0_2 = arith.constant 0 : index
    %1 = vector.load %arg2[%c0_1, %c0_2] : memref<9x16xbf16, #tpu.memory_space<vmem>>, vector<9x16xbf16>
    %cst = arith.constant dense<0.000000e+00> : vector<256x16xf32>
    %2 = tpu.matmul %0, %1, %cst {dimension_numbers = #tpu.dot_dimension_numbers<[1], [0], [0], [1], [0, 0, 1, 1], [], []>} : vector<256x9xbf16>, vector<9x16xbf16>, vector<256x16xf32> -> vector<256x16xf32>
    %c0_3 = arith.constant 0 : index
    %c0_4 = arith.constant 0 : index
    %3 = vector.load %arg5[%c0_3, %c0_4] : memref<256x16xf32, #tpu.memory_space<vmem>>, vector<256x16xf32>
    tpu.vector_store %arg5[%c0_3, %c0_4], %2 {strides = array<i32>} : memref<256x16xf32, #tpu.memory_space<vmem>>, vector<256x16xf32>,
    %c0_5 = arith.constant 0 : index
    %c0_6 = arith.constant 0 : index
    %4 = vector.load %arg5[%c0_5, %c0_6] : memref<256x16xf32, #tpu.memory_space<vmem>>, vector<256x16xf32>
    %c0_7 = arith.constant 0 : index
    %c0_8 = arith.constant 0 : index
    %5 = vector.load %arg3[%c0_7, %c0_8] : memref<1x16xf32, #tpu.memory_space<vmem>>, vector<1x16xf32>
    %6 = vector.broadcast %5 : vector<1x16xf32> to vector<256x16xf32>
    %7 = arith.addf %4, %6 : vector<256x16xf32>
    %8 = arith.truncf %7 : vector<256x16xf32> to vector<256x16xbf16>
    %c0_9 = arith.constant 0 : index
    %c0_10 = arith.constant 0 : index
    %9 = vector.load %arg4[%c0_9, %c0_10] : memref<256x16xbf16, #tpu.memory_space<vmem>>, vector<256x16xbf16>
    tpu.vector_store %arg4[%c0_9, %c0_10], %8 {strides = array<i32>} : memref<256x16xbf16, #tpu.memory_space<vmem>>, vector<256x16xbf16>,
    return
  }
  func.func @transform_0(%arg0: i32) -> (i32, i32) {
    %c0_i32 = arith.constant 0 : i32
    %c0_i32_0 = arith.constant 0 : i32
    return %arg0, %c0_i32 : i32, i32
  }
  func.func @transform_1(%arg0: i32) -> (i32, i32) {
    %c0_i32 = arith.constant 0 : i32
    %c0_i32_0 = arith.constant 0 : i32
    %c0_i32_1 = arith.constant 0 : i32
    return %c0_i32, %c0_i32_0 : i32, i32
  }
  func.func @transform_2(%arg0: i32) -> (i32, i32) {
    %c0_i32 = arith.constant 0 : i32
    %c0_i32_0 = arith.constant 0 : i32
    %c0_i32_1 = arith.constant 0 : i32
    return %c0_i32, %c0_i32_0 : i32, i32
  }
  func.func @transform_3(%arg0: i32) -> (i32, i32) {
    %c0_i32 = arith.constant 0 : i32
    %c0_i32_0 = arith.constant 0 : i32
    return %arg0, %c0_i32 : i32, i32
  }
}

module attributes {stable_mosaic.version = 11 : i64} {
  func.func @kernel(%arg0: i32, %arg1: i32, %arg2: memref<1x8x16x16xbf16, #tpu.memory_space<vmem>>, %arg3: memref<1x2x16x16xbf16, #tpu.memory_space<vmem>>, %arg4: memref<1x2x16x16xbf16, #tpu.memory_space<vmem>>, %arg5: memref<3x48x16xbf16, #tpu.memory_space<vmem>>, %arg6: memref<1x16xf32, #tpu.memory_space<vmem>>, %arg7: memref<3x48x16xbf16, #tpu.memory_space<vmem>>, %arg8: memref<1x16xf32, #tpu.memory_space<vmem>>, %arg9: memref<1x8x16x16xbf16, #tpu.memory_space<vmem>>, %arg10: memref<12x16x48xbf16, #tpu.memory_space<vmem>>, %arg11: memref<10x16x48xbf16, #tpu.memory_space<vmem>>) attributes {dimension_semantics = [#tpu.dimension_semantics<parallel>, #tpu.dimension_semantics<parallel>], iteration_bounds = array<i64: 2, 2>, scalar_prefetch = 0 : i64, scratch_operands = 2 : i64, tpu.core_type = #tpu.core_type<tc>, window_params = [{transform_indices = @transform_0, window_bounds = array<i64: 1, 8, 16, 16>}, {transform_indices = @transform_1, window_bounds = array<i64: 1, 2, 16, 16>}, {transform_indices = @transform_2, window_bounds = array<i64: 1, 2, 16, 16>}, {pipeline_mode = #tpu.pipeline_mode<synchronous>, transform_indices = @transform_3, window_bounds = array<i64: 3, 48, 16>}, {pipeline_mode = #tpu.pipeline_mode<synchronous>, transform_indices = @transform_4, window_bounds = array<i64: 1, 16>}, {pipeline_mode = #tpu.pipeline_mode<synchronous>, transform_indices = @transform_5, window_bounds = array<i64: 3, 48, 16>}, {pipeline_mode = #tpu.pipeline_mode<synchronous>, transform_indices = @transform_6, window_bounds = array<i64: 1, 16>}, {transform_indices = @transform_7, window_bounds = array<i64: 1, 8, 16, 16>}]} {
    %cst = arith.constant 0.000000e+00 : bf16
    %0 = vector.broadcast %cst : bf16 to vector<2x16x48xbf16>
    %c0 = arith.constant 0 : index
    %c0_0 = arith.constant 0 : index
    %c0_1 = arith.constant 0 : index
    %1 = vector.load %arg10[%c0, %c0_0, %c0_1] : memref<12x16x48xbf16, #tpu.memory_space<vmem>>, vector<2x16x48xbf16>
    tpu.vector_store %arg10[%c0, %c0_0, %c0_1], %0 {strides = array<i32>} : memref<12x16x48xbf16, #tpu.memory_space<vmem>>, vector<2x16x48xbf16>,
    %c10 = arith.constant 10 : index
    %c0_2 = arith.constant 0 : index
    %c0_3 = arith.constant 0 : index
    %2 = vector.load %arg10[%c10, %c0_2, %c0_3] : memref<12x16x48xbf16, #tpu.memory_space<vmem>>, vector<2x16x48xbf16>
    tpu.vector_store %arg10[%c10, %c0_2, %c0_3], %0 {strides = array<i32>} : memref<12x16x48xbf16, #tpu.memory_space<vmem>>, vector<2x16x48xbf16>,
    %c0_4 = arith.constant 0 : index
    %c0_5 = arith.constant 0 : index
    %c0_6 = arith.constant 0 : index
    %c0_7 = arith.constant 0 : index
    %3 = vector.load %arg2[%c0_4, %c0_5, %c0_6, %c0_7] : memref<1x8x16x16xbf16, #tpu.memory_space<vmem>>, vector<1x8x16x16xbf16>
    %4 = vector.shape_cast %3 : vector<1x8x16x16xbf16> to vector<8x16x16xbf16>
    %cst_8 = arith.constant 0.000000e+00 : bf16
    %5 = vector.broadcast %cst_8 : bf16 to vector<8x1x16xbf16>
    %6 = vector.extract_strided_slice %4 {offsets = [0, 0, 0], sizes = [8, 15, 16], strides = [1, 1, 1]} : vector<8x16x16xbf16> to vector<8x15x16xbf16>
    %7 = tpu.concatenate %5, %6 in 1 : vector<8x1x16xbf16>, vector<8x15x16xbf16> -> vector<8x16x16xbf16>
    %8 = vector.extract_strided_slice %4 {offsets = [0, 1, 0], sizes = [8, 15, 16], strides = [1, 1, 1]} : vector<8x16x16xbf16> to vector<8x15x16xbf16>
    %9 = tpu.concatenate %8, %5 in 1 : vector<8x15x16xbf16>, vector<8x1x16xbf16> -> vector<8x16x16xbf16>
    %10 = tpu.concatenate %7, %4, %9 in 2 : vector<8x16x16xbf16>, vector<8x16x16xbf16>, vector<8x16x16xbf16> -> vector<8x16x48xbf16>
    %c2 = arith.constant 2 : index
    %c0_9 = arith.constant 0 : index
    %c0_10 = arith.constant 0 : index
    %11 = vector.load %arg10[%c2, %c0_9, %c0_10] : memref<12x16x48xbf16, #tpu.memory_space<vmem>>, vector<8x16x48xbf16>
    tpu.vector_store %arg10[%c2, %c0_9, %c0_10], %10 {strides = array<i32>} : memref<12x16x48xbf16, #tpu.memory_space<vmem>>, vector<8x16x48xbf16>,
    %c0_i32 = arith.constant 0 : i32
    %12 = arith.cmpi sgt, %arg1, %c0_i32 : i32
    %13 = arith.extui %12 : i1 to i32
    %c0_i32_11 = arith.constant 0 : i32
    %14 = arith.cmpi ne, %13, %c0_i32_11 : i32
    scf.if %14 {
      %c0_76 = arith.constant 0 : index
      %c0_77 = arith.constant 0 : index
      %c0_78 = arith.constant 0 : index
      %c0_79 = arith.constant 0 : index
      %87 = vector.load %arg3[%c0_76, %c0_77, %c0_78, %c0_79] : memref<1x2x16x16xbf16, #tpu.memory_space<vmem>>, vector<1x2x16x16xbf16>
      %88 = vector.shape_cast %87 : vector<1x2x16x16xbf16> to vector<2x16x16xbf16>
      %cst_80 = arith.constant 0.000000e+00 : bf16
      %89 = vector.broadcast %cst_80 : bf16 to vector<2x1x16xbf16>
      %90 = vector.extract_strided_slice %88 {offsets = [0, 0, 0], sizes = [2, 15, 16], strides = [1, 1, 1]} : vector<2x16x16xbf16> to vector<2x15x16xbf16>
      %91 = tpu.concatenate %89, %90 in 1 : vector<2x1x16xbf16>, vector<2x15x16xbf16> -> vector<2x16x16xbf16>
      %92 = vector.extract_strided_slice %88 {offsets = [0, 1, 0], sizes = [2, 15, 16], strides = [1, 1, 1]} : vector<2x16x16xbf16> to vector<2x15x16xbf16>
      %93 = tpu.concatenate %92, %89 in 1 : vector<2x15x16xbf16>, vector<2x1x16xbf16> -> vector<2x16x16xbf16>
      %94 = tpu.concatenate %91, %88, %93 in 2 : vector<2x16x16xbf16>, vector<2x16x16xbf16>, vector<2x16x16xbf16> -> vector<2x16x48xbf16>
      %c0_81 = arith.constant 0 : index
      %c0_82 = arith.constant 0 : index
      %c0_83 = arith.constant 0 : index
      %95 = vector.load %arg10[%c0_81, %c0_82, %c0_83] : memref<12x16x48xbf16, #tpu.memory_space<vmem>>, vector<2x16x48xbf16>
      tpu.vector_store %arg10[%c0_81, %c0_82, %c0_83], %94 {strides = array<i32>} : memref<12x16x48xbf16, #tpu.memory_space<vmem>>, vector<2x16x48xbf16>,
    } else {
    }
    %c1_i32 = arith.constant 1 : i32
    %15 = arith.cmpi slt, %arg1, %c1_i32 : i32
    %16 = arith.extui %15 : i1 to i32
    %c0_i32_12 = arith.constant 0 : i32
    %17 = arith.cmpi ne, %16, %c0_i32_12 : i32
    scf.if %17 {
      %c0_76 = arith.constant 0 : index
      %c0_77 = arith.constant 0 : index
      %c0_78 = arith.constant 0 : index
      %c0_79 = arith.constant 0 : index
      %87 = vector.load %arg4[%c0_76, %c0_77, %c0_78, %c0_79] : memref<1x2x16x16xbf16, #tpu.memory_space<vmem>>, vector<1x2x16x16xbf16>
      %88 = vector.shape_cast %87 : vector<1x2x16x16xbf16> to vector<2x16x16xbf16>
      %cst_80 = arith.constant 0.000000e+00 : bf16
      %89 = vector.broadcast %cst_80 : bf16 to vector<2x1x16xbf16>
      %90 = vector.extract_strided_slice %88 {offsets = [0, 0, 0], sizes = [2, 15, 16], strides = [1, 1, 1]} : vector<2x16x16xbf16> to vector<2x15x16xbf16>
      %91 = tpu.concatenate %89, %90 in 1 : vector<2x1x16xbf16>, vector<2x15x16xbf16> -> vector<2x16x16xbf16>
      %92 = vector.extract_strided_slice %88 {offsets = [0, 1, 0], sizes = [2, 15, 16], strides = [1, 1, 1]} : vector<2x16x16xbf16> to vector<2x15x16xbf16>
      %93 = tpu.concatenate %92, %89 in 1 : vector<2x15x16xbf16>, vector<2x1x16xbf16> -> vector<2x16x16xbf16>
      %94 = tpu.concatenate %91, %88, %93 in 2 : vector<2x16x16xbf16>, vector<2x16x16xbf16>, vector<2x16x16xbf16> -> vector<2x16x48xbf16>
      %c10_81 = arith.constant 10 : index
      %c0_82 = arith.constant 0 : index
      %c0_83 = arith.constant 0 : index
      %95 = vector.load %arg10[%c10_81, %c0_82, %c0_83] : memref<12x16x48xbf16, #tpu.memory_space<vmem>>, vector<2x16x48xbf16>
      tpu.vector_store %arg10[%c10_81, %c0_82, %c0_83], %94 {strides = array<i32>} : memref<12x16x48xbf16, #tpu.memory_space<vmem>>, vector<2x16x48xbf16>,
    } else {
    }
    %c0_13 = arith.constant 0 : index
    %c0_14 = arith.constant 0 : index
    %c0_15 = arith.constant 0 : index
    %18 = vector.load %arg10[%c0_13, %c0_14, %c0_15] : memref<12x16x48xbf16, #tpu.memory_space<vmem>>, vector<10x16x48xbf16>
    %19 = vector.shape_cast %18 : vector<10x16x48xbf16> to vector<160x48xbf16>
    %c0_16 = arith.constant 0 : index
    %c0_17 = arith.constant 0 : index
    %c0_18 = arith.constant 0 : index
    %20 = vector.load %arg5[%c0_16, %c0_17, %c0_18] : memref<3x48x16xbf16, #tpu.memory_space<vmem>>, vector<1x48x16xbf16>
    %21 = vector.shape_cast %20 : vector<1x48x16xbf16> to vector<48x16xbf16>
    %cst_19 = arith.constant dense<0.000000e+00> : vector<160x16xf32>
    %22 = tpu.matmul %19, %21, %cst_19 {dimension_numbers = #tpu.dot_dimension_numbers<[1], [0], [0], [1], [0, 0, 1, 1], [], []>} : vector<160x48xbf16>, vector<48x16xbf16>, vector<160x16xf32> -> vector<160x16xf32>
    %c1 = arith.constant 1 : index
    %c0_20 = arith.constant 0 : index
    %c0_21 = arith.constant 0 : index
    %23 = vector.load %arg10[%c1, %c0_20, %c0_21] : memref<12x16x48xbf16, #tpu.memory_space<vmem>>, vector<10x16x48xbf16>
    %24 = vector.shape_cast %23 : vector<10x16x48xbf16> to vector<160x48xbf16>
    %c1_22 = arith.constant 1 : index
    %c0_23 = arith.constant 0 : index
    %c0_24 = arith.constant 0 : index
    %25 = vector.load %arg5[%c1_22, %c0_23, %c0_24] : memref<3x48x16xbf16, #tpu.memory_space<vmem>>, vector<1x48x16xbf16>
    %26 = vector.shape_cast %25 : vector<1x48x16xbf16> to vector<48x16xbf16>
    %cst_25 = arith.constant dense<0.000000e+00> : vector<160x16xf32>
    %27 = tpu.matmul %24, %26, %cst_25 {dimension_numbers = #tpu.dot_dimension_numbers<[1], [0], [0], [1], [0, 0, 1, 1], [], []>} : vector<160x48xbf16>, vector<48x16xbf16>, vector<160x16xf32> -> vector<160x16xf32>
    %28 = arith.addf %22, %27 : vector<160x16xf32>
    %c2_26 = arith.constant 2 : index
    %c0_27 = arith.constant 0 : index
    %c0_28 = arith.constant 0 : index
    %29 = vector.load %arg10[%c2_26, %c0_27, %c0_28] : memref<12x16x48xbf16, #tpu.memory_space<vmem>>, vector<10x16x48xbf16>
    %30 = vector.shape_cast %29 : vector<10x16x48xbf16> to vector<160x48xbf16>
    %c2_29 = arith.constant 2 : index
    %c0_30 = arith.constant 0 : index
    %c0_31 = arith.constant 0 : index
    %31 = vector.load %arg5[%c2_29, %c0_30, %c0_31] : memref<3x48x16xbf16, #tpu.memory_space<vmem>>, vector<1x48x16xbf16>
    %32 = vector.shape_cast %31 : vector<1x48x16xbf16> to vector<48x16xbf16>
    %cst_32 = arith.constant dense<0.000000e+00> : vector<160x16xf32>
    %33 = tpu.matmul %30, %32, %cst_32 {dimension_numbers = #tpu.dot_dimension_numbers<[1], [0], [0], [1], [0, 0, 1, 1], [], []>} : vector<160x48xbf16>, vector<48x16xbf16>, vector<160x16xf32> -> vector<160x16xf32>
    %34 = arith.addf %28, %33 : vector<160x16xf32>
    %c0_33 = arith.constant 0 : index
    %c0_34 = arith.constant 0 : index
    %35 = vector.load %arg6[%c0_33, %c0_34] : memref<1x16xf32, #tpu.memory_space<vmem>>, vector<1x16xf32>
    %36 = vector.broadcast %35 : vector<1x16xf32> to vector<160x16xf32>
    %37 = arith.addf %34, %36 : vector<160x16xf32>
    %cst_35 = arith.constant 0.000000e+00 : f32
    %38 = vector.broadcast %cst_35 : f32 to vector<160x16xf32>
    %39 = arith.maximumf %37, %38 : vector<160x16xf32>
    %40 = vector.shape_cast %39 : vector<160x16xf32> to vector<10x16x16xf32>
    %41 = arith.truncf %40 : vector<10x16x16xf32> to vector<10x16x16xbf16>
    %cst_36 = arith.constant 0.000000e+00 : bf16
    %42 = vector.broadcast %cst_36 : bf16 to vector<10x1x16xbf16>
    %43 = vector.extract_strided_slice %41 {offsets = [0, 0, 0], sizes = [10, 15, 16], strides = [1, 1, 1]} : vector<10x16x16xbf16> to vector<10x15x16xbf16>
    %44 = tpu.concatenate %42, %43 in 1 : vector<10x1x16xbf16>, vector<10x15x16xbf16> -> vector<10x16x16xbf16>
    %45 = vector.extract_strided_slice %41 {offsets = [0, 1, 0], sizes = [10, 15, 16], strides = [1, 1, 1]} : vector<10x16x16xbf16> to vector<10x15x16xbf16>
    %46 = tpu.concatenate %45, %42 in 1 : vector<10x15x16xbf16>, vector<10x1x16xbf16> -> vector<10x16x16xbf16>
    %47 = tpu.concatenate %44, %41, %46 in 2 : vector<10x16x16xbf16>, vector<10x16x16xbf16>, vector<10x16x16xbf16> -> vector<10x16x48xbf16>
    %c0_37 = arith.constant 0 : index
    %c0_38 = arith.constant 0 : index
    %c0_39 = arith.constant 0 : index
    %48 = vector.load %arg11[%c0_37, %c0_38, %c0_39] : memref<10x16x48xbf16, #tpu.memory_space<vmem>>, vector<10x16x48xbf16>
    tpu.vector_store %arg11[%c0_37, %c0_38, %c0_39], %47 {strides = array<i32>} : memref<10x16x48xbf16, #tpu.memory_space<vmem>>, vector<10x16x48xbf16>,
    %c0_i32_40 = arith.constant 0 : i32
    %49 = arith.cmpi eq, %arg1, %c0_i32_40 : i32
    %50 = arith.extui %49 : i1 to i32
    %c0_i32_41 = arith.constant 0 : i32
    %51 = arith.cmpi ne, %50, %c0_i32_41 : i32
    scf.if %51 {
      %cst_76 = arith.constant 0.000000e+00 : bf16
      %87 = vector.broadcast %cst_76 : bf16 to vector<1x16x48xbf16>
      %c0_77 = arith.constant 0 : index
      %c0_78 = arith.constant 0 : index
      %c0_79 = arith.constant 0 : index
      %88 = vector.load %arg11[%c0_77, %c0_78, %c0_79] : memref<10x16x48xbf16, #tpu.memory_space<vmem>>, vector<1x16x48xbf16>
      tpu.vector_store %arg11[%c0_77, %c0_78, %c0_79], %87 {strides = array<i32>} : memref<10x16x48xbf16, #tpu.memory_space<vmem>>, vector<1x16x48xbf16>,
    } else {
    }
    %c1_i32_42 = arith.constant 1 : i32
    %52 = arith.cmpi eq, %arg1, %c1_i32_42 : i32
    %53 = arith.extui %52 : i1 to i32
    %c0_i32_43 = arith.constant 0 : i32
    %54 = arith.cmpi ne, %53, %c0_i32_43 : i32
    scf.if %54 {
      %cst_76 = arith.constant 0.000000e+00 : bf16
      %87 = vector.broadcast %cst_76 : bf16 to vector<1x16x48xbf16>
      %c9 = arith.constant 9 : index
      %c0_77 = arith.constant 0 : index
      %c0_78 = arith.constant 0 : index
      %88 = vector.load %arg11[%c9, %c0_77, %c0_78] : memref<10x16x48xbf16, #tpu.memory_space<vmem>>, vector<1x16x48xbf16>
      tpu.vector_store %arg11[%c9, %c0_77, %c0_78], %87 {strides = array<i32>} : memref<10x16x48xbf16, #tpu.memory_space<vmem>>, vector<1x16x48xbf16>,
    } else {
    }
    %c0_44 = arith.constant 0 : index
    %c0_45 = arith.constant 0 : index
    %c0_46 = arith.constant 0 : index
    %55 = vector.load %arg11[%c0_44, %c0_45, %c0_46] : memref<10x16x48xbf16, #tpu.memory_space<vmem>>, vector<8x16x48xbf16>
    %56 = vector.shape_cast %55 : vector<8x16x48xbf16> to vector<128x48xbf16>
    %c0_47 = arith.constant 0 : index
    %c0_48 = arith.constant 0 : index
    %c0_49 = arith.constant 0 : index
    %57 = vector.load %arg7[%c0_47, %c0_48, %c0_49] : memref<3x48x16xbf16, #tpu.memory_space<vmem>>, vector<1x48x16xbf16>
    %58 = vector.shape_cast %57 : vector<1x48x16xbf16> to vector<48x16xbf16>
    %cst_50 = arith.constant dense<0.000000e+00> : vector<128x16xf32>
    %59 = tpu.matmul %56, %58, %cst_50 {dimension_numbers = #tpu.dot_dimension_numbers<[1], [0], [0], [1], [0, 0, 1, 1], [], []>} : vector<128x48xbf16>, vector<48x16xbf16>, vector<128x16xf32> -> vector<128x16xf32>
    %c1_51 = arith.constant 1 : index
    %c0_52 = arith.constant 0 : index
    %c0_53 = arith.constant 0 : index
    %60 = vector.load %arg11[%c1_51, %c0_52, %c0_53] : memref<10x16x48xbf16, #tpu.memory_space<vmem>>, vector<8x16x48xbf16>
    %61 = vector.shape_cast %60 : vector<8x16x48xbf16> to vector<128x48xbf16>
    %c1_54 = arith.constant 1 : index
    %c0_55 = arith.constant 0 : index
    %c0_56 = arith.constant 0 : index
    %62 = vector.load %arg7[%c1_54, %c0_55, %c0_56] : memref<3x48x16xbf16, #tpu.memory_space<vmem>>, vector<1x48x16xbf16>
    %63 = vector.shape_cast %62 : vector<1x48x16xbf16> to vector<48x16xbf16>
    %cst_57 = arith.constant dense<0.000000e+00> : vector<128x16xf32>
    %64 = tpu.matmul %61, %63, %cst_57 {dimension_numbers = #tpu.dot_dimension_numbers<[1], [0], [0], [1], [0, 0, 1, 1], [], []>} : vector<128x48xbf16>, vector<48x16xbf16>, vector<128x16xf32> -> vector<128x16xf32>
    %65 = arith.addf %59, %64 : vector<128x16xf32>
    %c2_58 = arith.constant 2 : index
    %c0_59 = arith.constant 0 : index
    %c0_60 = arith.constant 0 : index
    %66 = vector.load %arg11[%c2_58, %c0_59, %c0_60] : memref<10x16x48xbf16, #tpu.memory_space<vmem>>, vector<8x16x48xbf16>
    %67 = vector.shape_cast %66 : vector<8x16x48xbf16> to vector<128x48xbf16>
    %c2_61 = arith.constant 2 : index
    %c0_62 = arith.constant 0 : index
    %c0_63 = arith.constant 0 : index
    %68 = vector.load %arg7[%c2_61, %c0_62, %c0_63] : memref<3x48x16xbf16, #tpu.memory_space<vmem>>, vector<1x48x16xbf16>
    %69 = vector.shape_cast %68 : vector<1x48x16xbf16> to vector<48x16xbf16>
    %cst_64 = arith.constant dense<0.000000e+00> : vector<128x16xf32>
    %70 = tpu.matmul %67, %69, %cst_64 {dimension_numbers = #tpu.dot_dimension_numbers<[1], [0], [0], [1], [0, 0, 1, 1], [], []>} : vector<128x48xbf16>, vector<48x16xbf16>, vector<128x16xf32> -> vector<128x16xf32>
    %71 = arith.addf %65, %70 : vector<128x16xf32>
    %c0_65 = arith.constant 0 : index
    %c0_66 = arith.constant 0 : index
    %c0_67 = arith.constant 0 : index
    %c0_68 = arith.constant 0 : index
    %72 = vector.load %arg2[%c0_65, %c0_66, %c0_67, %c0_68] : memref<1x8x16x16xbf16, #tpu.memory_space<vmem>>, vector<1x8x16x16xbf16>
    %73 = vector.shape_cast %72 : vector<1x8x16x16xbf16> to vector<8x16x16xbf16>
    %74 = arith.extf %73 : vector<8x16x16xbf16> to vector<8x16x16xf32>
    %75 = vector.shape_cast %74 : vector<8x16x16xf32> to vector<128x16xf32>
    %c0_69 = arith.constant 0 : index
    %c0_70 = arith.constant 0 : index
    %76 = vector.load %arg8[%c0_69, %c0_70] : memref<1x16xf32, #tpu.memory_space<vmem>>, vector<1x16xf32>
    %77 = vector.broadcast %76 : vector<1x16xf32> to vector<128x16xf32>
    %78 = arith.addf %71, %77 : vector<128x16xf32>
    %79 = arith.addf %78, %75 : vector<128x16xf32>
    %cst_71 = arith.constant 0.000000e+00 : f32
    %80 = vector.broadcast %cst_71 : f32 to vector<128x16xf32>
    %81 = arith.maximumf %79, %80 : vector<128x16xf32>
    %82 = vector.shape_cast %81 : vector<128x16xf32> to vector<8x16x16xf32>
    %83 = arith.truncf %82 : vector<8x16x16xf32> to vector<8x16x16xbf16>
    %c0_72 = arith.constant 0 : index
    %c0_73 = arith.constant 0 : index
    %c0_74 = arith.constant 0 : index
    %c0_75 = arith.constant 0 : index
    %84 = vector.load %arg9[%c0_72, %c0_73, %c0_74, %c0_75] : memref<1x8x16x16xbf16, #tpu.memory_space<vmem>>, vector<1x8x16x16xbf16>
    %85 = vector.shape_cast %84 : vector<1x8x16x16xbf16> to vector<8x16x16xbf16>
    %86 = vector.shape_cast %83 : vector<8x16x16xbf16> to vector<1x8x16x16xbf16>
    tpu.vector_store %arg9[%c0_72, %c0_73, %c0_74, %c0_75], %86 {strides = array<i32>} : memref<1x8x16x16xbf16, #tpu.memory_space<vmem>>, vector<1x8x16x16xbf16>,
    return
  }
  func.func @transform_0(%arg0: i32, %arg1: i32) -> (i32, i32, i32, i32) {
    %c0_i32 = arith.constant 0 : i32
    %c0_i32_0 = arith.constant 0 : i32
    %c0_i32_1 = arith.constant 0 : i32
    return %arg0, %arg1, %c0_i32, %c0_i32_0 : i32, i32, i32, i32
  }
  func.func @transform_1(%arg0: i32, %arg1: i32) -> (i32, i32, i32, i32) {
    %c4_i32 = arith.constant 4 : i32
    %0 = arith.muli %arg1, %c4_i32 : i32
    %c1_i32 = arith.constant 1 : i32
    %1 = arith.subi %0, %c1_i32 : i32
    %c0_i32 = arith.constant 0 : i32
    %2 = arith.maxsi %1, %c0_i32 : i32
    %c0_i32_0 = arith.constant 0 : i32
    %c0_i32_1 = arith.constant 0 : i32
    %c0_i32_2 = arith.constant 0 : i32
    return %arg0, %2, %c0_i32_0, %c0_i32_1 : i32, i32, i32, i32
  }
  func.func @transform_2(%arg0: i32, %arg1: i32) -> (i32, i32, i32, i32) {
    %c1_i32 = arith.constant 1 : i32
    %0 = arith.addi %arg1, %c1_i32 : i32
    %c4_i32 = arith.constant 4 : i32
    %1 = arith.muli %0, %c4_i32 : i32
    %c7_i32 = arith.constant 7 : i32
    %2 = arith.minsi %1, %c7_i32 : i32
    %c0_i32 = arith.constant 0 : i32
    %c0_i32_0 = arith.constant 0 : i32
    %c0_i32_1 = arith.constant 0 : i32
    return %arg0, %2, %c0_i32, %c0_i32_0 : i32, i32, i32, i32
  }
  func.func @transform_3(%arg0: i32, %arg1: i32) -> (i32, i32, i32) {
    %c0_i32 = arith.constant 0 : i32
    %c0_i32_0 = arith.constant 0 : i32
    %c0_i32_1 = arith.constant 0 : i32
    %c0_i32_2 = arith.constant 0 : i32
    return %c0_i32, %c0_i32_0, %c0_i32_1 : i32, i32, i32
  }
  func.func @transform_4(%arg0: i32, %arg1: i32) -> (i32, i32) {
    %c0_i32 = arith.constant 0 : i32
    %c0_i32_0 = arith.constant 0 : i32
    %c0_i32_1 = arith.constant 0 : i32
    return %c0_i32, %c0_i32_0 : i32, i32
  }
  func.func @transform_5(%arg0: i32, %arg1: i32) -> (i32, i32, i32) {
    %c0_i32 = arith.constant 0 : i32
    %c0_i32_0 = arith.constant 0 : i32
    %c0_i32_1 = arith.constant 0 : i32
    %c0_i32_2 = arith.constant 0 : i32
    return %c0_i32, %c0_i32_0, %c0_i32_1 : i32, i32, i32
  }
  func.func @transform_6(%arg0: i32, %arg1: i32) -> (i32, i32) {
    %c0_i32 = arith.constant 0 : i32
    %c0_i32_0 = arith.constant 0 : i32
    %c0_i32_1 = arith.constant 0 : i32
    return %c0_i32, %c0_i32_0 : i32, i32
  }
  func.func @transform_7(%arg0: i32, %arg1: i32) -> (i32, i32, i32, i32) {
    %c0_i32 = arith.constant 0 : i32
    %c0_i32_0 = arith.constant 0 : i32
    %c0_i32_1 = arith.constant 0 : i32
    return %arg0, %arg1, %c0_i32, %c0_i32_0 : i32, i32, i32, i32
  }
}

module attributes {stable_mosaic.version = 11 : i64} {
  func.func @kernel(%arg0: i32, %arg1: memref<256x16xbf16, #tpu.memory_space<vmem>>, %arg2: memref<256x16xbf16, #tpu.memory_space<vmem>>, %arg3: memref<16x16xbf16, #tpu.memory_space<vmem>>, %arg4: memref<16x16xbf16, #tpu.memory_space<vmem>>, %arg5: memref<1x16xf32, #tpu.memory_space<vmem>>, %arg6: memref<256x16xbf16, #tpu.memory_space<vmem>>, %arg7: memref<256x16xf32, #tpu.memory_space<vmem>>) attributes {dimension_semantics = [#tpu.dimension_semantics<parallel>], iteration_bounds = array<i64: 2>, scalar_prefetch = 0 : i64, scratch_operands = 1 : i64, tpu.core_type = #tpu.core_type<tc>, window_params = [{transform_indices = @transform_0, window_bounds = array<i64: 256, 16>}, {transform_indices = @transform_1, window_bounds = array<i64: 256, 16>}, {pipeline_mode = #tpu.pipeline_mode<synchronous>, transform_indices = @transform_2, window_bounds = array<i64: 16, 16>}, {pipeline_mode = #tpu.pipeline_mode<synchronous>, transform_indices = @transform_3, window_bounds = array<i64: 16, 16>}, {pipeline_mode = #tpu.pipeline_mode<synchronous>, transform_indices = @transform_4, window_bounds = array<i64: 1, 16>}, {transform_indices = @transform_5, window_bounds = array<i64: 256, 16>}]} {
    %c0 = arith.constant 0 : index
    %c0_0 = arith.constant 0 : index
    %0 = vector.load %arg1[%c0, %c0_0] : memref<256x16xbf16, #tpu.memory_space<vmem>>, vector<256x16xbf16>
    %c0_1 = arith.constant 0 : index
    %c0_2 = arith.constant 0 : index
    %1 = vector.load %arg3[%c0_1, %c0_2] : memref<16x16xbf16, #tpu.memory_space<vmem>>, vector<16x16xbf16>
    %cst = arith.constant dense<0.000000e+00> : vector<256x16xf32>
    %2 = tpu.matmul %0, %1, %cst {dimension_numbers = #tpu.dot_dimension_numbers<[1], [0], [0], [1], [0, 0, 1, 1], [], []>} : vector<256x16xbf16>, vector<16x16xbf16>, vector<256x16xf32> -> vector<256x16xf32>
    %c0_3 = arith.constant 0 : index
    %c0_4 = arith.constant 0 : index
    %3 = vector.load %arg7[%c0_3, %c0_4] : memref<256x16xf32, #tpu.memory_space<vmem>>, vector<256x16xf32>
    tpu.vector_store %arg7[%c0_3, %c0_4], %2 {strides = array<i32>} : memref<256x16xf32, #tpu.memory_space<vmem>>, vector<256x16xf32>,
    %c0_5 = arith.constant 0 : index
    %c0_6 = arith.constant 0 : index
    %4 = vector.load %arg7[%c0_5, %c0_6] : memref<256x16xf32, #tpu.memory_space<vmem>>, vector<256x16xf32>
    %c0_7 = arith.constant 0 : index
    %c0_8 = arith.constant 0 : index
    %5 = vector.load %arg2[%c0_7, %c0_8] : memref<256x16xbf16, #tpu.memory_space<vmem>>, vector<256x16xbf16>
    %c0_9 = arith.constant 0 : index
    %c0_10 = arith.constant 0 : index
    %6 = vector.load %arg4[%c0_9, %c0_10] : memref<16x16xbf16, #tpu.memory_space<vmem>>, vector<16x16xbf16>
    %cst_11 = arith.constant dense<0.000000e+00> : vector<256x16xf32>
    %7 = tpu.matmul %5, %6, %cst_11 {dimension_numbers = #tpu.dot_dimension_numbers<[1], [0], [0], [1], [0, 0, 1, 1], [], []>} : vector<256x16xbf16>, vector<16x16xbf16>, vector<256x16xf32> -> vector<256x16xf32>
    %8 = arith.addf %4, %7 : vector<256x16xf32>
    %c0_12 = arith.constant 0 : index
    %c0_13 = arith.constant 0 : index
    %9 = vector.load %arg7[%c0_12, %c0_13] : memref<256x16xf32, #tpu.memory_space<vmem>>, vector<256x16xf32>
    tpu.vector_store %arg7[%c0_12, %c0_13], %8 {strides = array<i32>} : memref<256x16xf32, #tpu.memory_space<vmem>>, vector<256x16xf32>,
    %c0_14 = arith.constant 0 : index
    %c0_15 = arith.constant 0 : index
    %10 = vector.load %arg7[%c0_14, %c0_15] : memref<256x16xf32, #tpu.memory_space<vmem>>, vector<256x16xf32>
    %c0_16 = arith.constant 0 : index
    %c0_17 = arith.constant 0 : index
    %11 = vector.load %arg5[%c0_16, %c0_17] : memref<1x16xf32, #tpu.memory_space<vmem>>, vector<1x16xf32>
    %12 = vector.broadcast %11 : vector<1x16xf32> to vector<256x16xf32>
    %13 = arith.addf %10, %12 : vector<256x16xf32>
    %14 = arith.truncf %13 : vector<256x16xf32> to vector<256x16xbf16>
    %c0_18 = arith.constant 0 : index
    %c0_19 = arith.constant 0 : index
    %15 = vector.load %arg6[%c0_18, %c0_19] : memref<256x16xbf16, #tpu.memory_space<vmem>>, vector<256x16xbf16>
    tpu.vector_store %arg6[%c0_18, %c0_19], %14 {strides = array<i32>} : memref<256x16xbf16, #tpu.memory_space<vmem>>, vector<256x16xbf16>,
    return
  }
  func.func @transform_0(%arg0: i32) -> (i32, i32) {
    %c0_i32 = arith.constant 0 : i32
    %c0_i32_0 = arith.constant 0 : i32
    return %arg0, %c0_i32 : i32, i32
  }
  func.func @transform_1(%arg0: i32) -> (i32, i32) {
    %c0_i32 = arith.constant 0 : i32
    %c0_i32_0 = arith.constant 0 : i32
    return %arg0, %c0_i32 : i32, i32
  }
  func.func @transform_2(%arg0: i32) -> (i32, i32) {
    %c0_i32 = arith.constant 0 : i32
    %c0_i32_0 = arith.constant 0 : i32
    %c0_i32_1 = arith.constant 0 : i32
    return %c0_i32, %c0_i32_0 : i32, i32
  }
  func.func @transform_3(%arg0: i32) -> (i32, i32) {
    %c0_i32 = arith.constant 0 : i32
    %c0_i32_0 = arith.constant 0 : i32
    %c0_i32_1 = arith.constant 0 : i32
    return %c0_i32, %c0_i32_0 : i32, i32
  }
  func.func @transform_4(%arg0: i32) -> (i32, i32) {
    %c0_i32 = arith.constant 0 : i32
    %c0_i32_0 = arith.constant 0 : i32
    %c0_i32_1 = arith.constant 0 : i32
    return %c0_i32, %c0_i32_0 : i32, i32
  }
  func.func @transform_5(%arg0: i32) -> (i32, i32) {
    %c0_i32 = arith.constant 0 : i32
    %c0_i32_0 = arith.constant 0 : i32
    return %arg0, %c0_i32 : i32, i32
  }
}

module attributes {stable_mosaic.version = 11 : i64} {
  func.func @kernel(%arg0: i32, %arg1: memref<256x16xbf16, #tpu.memory_space<vmem>>, %arg2: memref<256x16xbf16, #tpu.memory_space<vmem>>, %arg3: memref<256x16xbf16, #tpu.memory_space<vmem>>, %arg4: memref<16x16xbf16, #tpu.memory_space<vmem>>, %arg5: memref<16x16xbf16, #tpu.memory_space<vmem>>, %arg6: memref<16x16xbf16, #tpu.memory_space<vmem>>, %arg7: memref<1x16xf32, #tpu.memory_space<vmem>>, %arg8: memref<256x16xbf16, #tpu.memory_space<vmem>>, %arg9: memref<256x16xf32, #tpu.memory_space<vmem>>) attributes {dimension_semantics = [#tpu.dimension_semantics<parallel>], iteration_bounds = array<i64: 2>, scalar_prefetch = 0 : i64, scratch_operands = 1 : i64, tpu.core_type = #tpu.core_type<tc>, window_params = [{transform_indices = @transform_0, window_bounds = array<i64: 256, 16>}, {transform_indices = @transform_1, window_bounds = array<i64: 256, 16>}, {transform_indices = @transform_2, window_bounds = array<i64: 256, 16>}, {pipeline_mode = #tpu.pipeline_mode<synchronous>, transform_indices = @transform_3, window_bounds = array<i64: 16, 16>}, {pipeline_mode = #tpu.pipeline_mode<synchronous>, transform_indices = @transform_4, window_bounds = array<i64: 16, 16>}, {pipeline_mode = #tpu.pipeline_mode<synchronous>, transform_indices = @transform_5, window_bounds = array<i64: 16, 16>}, {pipeline_mode = #tpu.pipeline_mode<synchronous>, transform_indices = @transform_6, window_bounds = array<i64: 1, 16>}, {transform_indices = @transform_7, window_bounds = array<i64: 256, 16>}]} {
    %c0 = arith.constant 0 : index
    %c0_0 = arith.constant 0 : index
    %0 = vector.load %arg1[%c0, %c0_0] : memref<256x16xbf16, #tpu.memory_space<vmem>>, vector<256x16xbf16>
    %c0_1 = arith.constant 0 : index
    %c0_2 = arith.constant 0 : index
    %1 = vector.load %arg4[%c0_1, %c0_2] : memref<16x16xbf16, #tpu.memory_space<vmem>>, vector<16x16xbf16>
    %cst = arith.constant dense<0.000000e+00> : vector<256x16xf32>
    %2 = tpu.matmul %0, %1, %cst {dimension_numbers = #tpu.dot_dimension_numbers<[1], [0], [0], [1], [0, 0, 1, 1], [], []>} : vector<256x16xbf16>, vector<16x16xbf16>, vector<256x16xf32> -> vector<256x16xf32>
    %c0_3 = arith.constant 0 : index
    %c0_4 = arith.constant 0 : index
    %3 = vector.load %arg9[%c0_3, %c0_4] : memref<256x16xf32, #tpu.memory_space<vmem>>, vector<256x16xf32>
    tpu.vector_store %arg9[%c0_3, %c0_4], %2 {strides = array<i32>} : memref<256x16xf32, #tpu.memory_space<vmem>>, vector<256x16xf32>,
    %c0_5 = arith.constant 0 : index
    %c0_6 = arith.constant 0 : index
    %4 = vector.load %arg9[%c0_5, %c0_6] : memref<256x16xf32, #tpu.memory_space<vmem>>, vector<256x16xf32>
    %c0_7 = arith.constant 0 : index
    %c0_8 = arith.constant 0 : index
    %5 = vector.load %arg2[%c0_7, %c0_8] : memref<256x16xbf16, #tpu.memory_space<vmem>>, vector<256x16xbf16>
    %c0_9 = arith.constant 0 : index
    %c0_10 = arith.constant 0 : index
    %6 = vector.load %arg5[%c0_9, %c0_10] : memref<16x16xbf16, #tpu.memory_space<vmem>>, vector<16x16xbf16>
    %cst_11 = arith.constant dense<0.000000e+00> : vector<256x16xf32>
    %7 = tpu.matmul %5, %6, %cst_11 {dimension_numbers = #tpu.dot_dimension_numbers<[1], [0], [0], [1], [0, 0, 1, 1], [], []>} : vector<256x16xbf16>, vector<16x16xbf16>, vector<256x16xf32> -> vector<256x16xf32>
    %8 = arith.addf %4, %7 : vector<256x16xf32>
    %c0_12 = arith.constant 0 : index
    %c0_13 = arith.constant 0 : index
    %9 = vector.load %arg9[%c0_12, %c0_13] : memref<256x16xf32, #tpu.memory_space<vmem>>, vector<256x16xf32>
    tpu.vector_store %arg9[%c0_12, %c0_13], %8 {strides = array<i32>} : memref<256x16xf32, #tpu.memory_space<vmem>>, vector<256x16xf32>,
    %c0_14 = arith.constant 0 : index
    %c0_15 = arith.constant 0 : index
    %10 = vector.load %arg9[%c0_14, %c0_15] : memref<256x16xf32, #tpu.memory_space<vmem>>, vector<256x16xf32>
    %c0_16 = arith.constant 0 : index
    %c0_17 = arith.constant 0 : index
    %11 = vector.load %arg3[%c0_16, %c0_17] : memref<256x16xbf16, #tpu.memory_space<vmem>>, vector<256x16xbf16>
    %c0_18 = arith.constant 0 : index
    %c0_19 = arith.constant 0 : index
    %12 = vector.load %arg6[%c0_18, %c0_19] : memref<16x16xbf16, #tpu.memory_space<vmem>>, vector<16x16xbf16>
    %cst_20 = arith.constant dense<0.000000e+00> : vector<256x16xf32>
    %13 = tpu.matmul %11, %12, %cst_20 {dimension_numbers = #tpu.dot_dimension_numbers<[1], [0], [0], [1], [0, 0, 1, 1], [], []>} : vector<256x16xbf16>, vector<16x16xbf16>, vector<256x16xf32> -> vector<256x16xf32>
    %14 = arith.addf %10, %13 : vector<256x16xf32>
    %c0_21 = arith.constant 0 : index
    %c0_22 = arith.constant 0 : index
    %15 = vector.load %arg9[%c0_21, %c0_22] : memref<256x16xf32, #tpu.memory_space<vmem>>, vector<256x16xf32>
    tpu.vector_store %arg9[%c0_21, %c0_22], %14 {strides = array<i32>} : memref<256x16xf32, #tpu.memory_space<vmem>>, vector<256x16xf32>,
    %c0_23 = arith.constant 0 : index
    %c0_24 = arith.constant 0 : index
    %16 = vector.load %arg9[%c0_23, %c0_24] : memref<256x16xf32, #tpu.memory_space<vmem>>, vector<256x16xf32>
    %c0_25 = arith.constant 0 : index
    %c0_26 = arith.constant 0 : index
    %17 = vector.load %arg7[%c0_25, %c0_26] : memref<1x16xf32, #tpu.memory_space<vmem>>, vector<1x16xf32>
    %18 = vector.broadcast %17 : vector<1x16xf32> to vector<256x16xf32>
    %19 = arith.addf %16, %18 : vector<256x16xf32>
    %20 = arith.truncf %19 : vector<256x16xf32> to vector<256x16xbf16>
    %c0_27 = arith.constant 0 : index
    %c0_28 = arith.constant 0 : index
    %21 = vector.load %arg8[%c0_27, %c0_28] : memref<256x16xbf16, #tpu.memory_space<vmem>>, vector<256x16xbf16>
    tpu.vector_store %arg8[%c0_27, %c0_28], %20 {strides = array<i32>} : memref<256x16xbf16, #tpu.memory_space<vmem>>, vector<256x16xbf16>,
    return
  }
  func.func @transform_0(%arg0: i32) -> (i32, i32) {
    %c0_i32 = arith.constant 0 : i32
    %c0_i32_0 = arith.constant 0 : i32
    return %arg0, %c0_i32 : i32, i32
  }
  func.func @transform_1(%arg0: i32) -> (i32, i32) {
    %c0_i32 = arith.constant 0 : i32
    %c0_i32_0 = arith.constant 0 : i32
    return %arg0, %c0_i32 : i32, i32
  }
  func.func @transform_2(%arg0: i32) -> (i32, i32) {
    %c0_i32 = arith.constant 0 : i32
    %c0_i32_0 = arith.constant 0 : i32
    return %arg0, %c0_i32 : i32, i32
  }
  func.func @transform_3(%arg0: i32) -> (i32, i32) {
    %c0_i32 = arith.constant 0 : i32
    %c0_i32_0 = arith.constant 0 : i32
    %c0_i32_1 = arith.constant 0 : i32
    return %c0_i32, %c0_i32_0 : i32, i32
  }
  func.func @transform_4(%arg0: i32) -> (i32, i32) {
    %c0_i32 = arith.constant 0 : i32
    %c0_i32_0 = arith.constant 0 : i32
    %c0_i32_1 = arith.constant 0 : i32
    return %c0_i32, %c0_i32_0 : i32, i32
  }
  func.func @transform_5(%arg0: i32) -> (i32, i32) {
    %c0_i32 = arith.constant 0 : i32
    %c0_i32_0 = arith.constant 0 : i32
    %c0_i32_1 = arith.constant 0 : i32
    return %c0_i32, %c0_i32_0 : i32, i32
  }
  func.func @transform_6(%arg0: i32) -> (i32, i32) {
    %c0_i32 = arith.constant 0 : i32
    %c0_i32_0 = arith.constant 0 : i32
    %c0_i32_1 = arith.constant 0 : i32
    return %c0_i32, %c0_i32_0 : i32, i32
  }
  func.func @transform_7(%arg0: i32) -> (i32, i32) {
    %c0_i32 = arith.constant 0 : i32
    %c0_i32_0 = arith.constant 0 : i32
    return %arg0, %c0_i32 : i32, i32
  }
}

module attributes {stable_mosaic.version = 11 : i64} {
  func.func @kernel(%arg0: i32, %arg1: memref<256x16xbf16, #tpu.memory_space<vmem>>, %arg2: memref<256x16xbf16, #tpu.memory_space<vmem>>, %arg3: memref<256x16xbf16, #tpu.memory_space<vmem>>, %arg4: memref<256x16xbf16, #tpu.memory_space<vmem>>, %arg5: memref<256x16xbf16, #tpu.memory_space<vmem>>, %arg6: memref<16x16xbf16, #tpu.memory_space<vmem>>, %arg7: memref<16x16xbf16, #tpu.memory_space<vmem>>, %arg8: memref<16x16xbf16, #tpu.memory_space<vmem>>, %arg9: memref<16x16xbf16, #tpu.memory_space<vmem>>, %arg10: memref<16x16xbf16, #tpu.memory_space<vmem>>, %arg11: memref<1x16xf32, #tpu.memory_space<vmem>>, %arg12: memref<256x16xbf16, #tpu.memory_space<vmem>>, %arg13: memref<256x16xf32, #tpu.memory_space<vmem>>) attributes {dimension_semantics = [#tpu.dimension_semantics<parallel>], iteration_bounds = array<i64: 2>, scalar_prefetch = 0 : i64, scratch_operands = 1 : i64, tpu.core_type = #tpu.core_type<tc>, window_params = [{transform_indices = @transform_0, window_bounds = array<i64: 256, 16>}, {transform_indices = @transform_1, window_bounds = array<i64: 256, 16>}, {transform_indices = @transform_2, window_bounds = array<i64: 256, 16>}, {transform_indices = @transform_3, window_bounds = array<i64: 256, 16>}, {transform_indices = @transform_4, window_bounds = array<i64: 256, 16>}, {pipeline_mode = #tpu.pipeline_mode<synchronous>, transform_indices = @transform_5, window_bounds = array<i64: 16, 16>}, {pipeline_mode = #tpu.pipeline_mode<synchronous>, transform_indices = @transform_6, window_bounds = array<i64: 16, 16>}, {pipeline_mode = #tpu.pipeline_mode<synchronous>, transform_indices = @transform_7, window_bounds = array<i64: 16, 16>}, {pipeline_mode = #tpu.pipeline_mode<synchronous>, transform_indices = @transform_8, window_bounds = array<i64: 16, 16>}, {pipeline_mode = #tpu.pipeline_mode<synchronous>, transform_indices = @transform_9, window_bounds = array<i64: 16, 16>}, {pipeline_mode = #tpu.pipeline_mode<synchronous>, transform_indices = @transform_10, window_bounds = array<i64: 1, 16>}, {transform_indices = @transform_11, window_bounds = array<i64: 256, 16>}]} {
    %c0 = arith.constant 0 : index
    %c0_0 = arith.constant 0 : index
    %0 = vector.load %arg1[%c0, %c0_0] : memref<256x16xbf16, #tpu.memory_space<vmem>>, vector<256x16xbf16>
    %c0_1 = arith.constant 0 : index
    %c0_2 = arith.constant 0 : index
    %1 = vector.load %arg6[%c0_1, %c0_2] : memref<16x16xbf16, #tpu.memory_space<vmem>>, vector<16x16xbf16>
    %cst = arith.constant dense<0.000000e+00> : vector<256x16xf32>
    %2 = tpu.matmul %0, %1, %cst {dimension_numbers = #tpu.dot_dimension_numbers<[1], [0], [0], [1], [0, 0, 1, 1], [], []>} : vector<256x16xbf16>, vector<16x16xbf16>, vector<256x16xf32> -> vector<256x16xf32>
    %c0_3 = arith.constant 0 : index
    %c0_4 = arith.constant 0 : index
    %3 = vector.load %arg13[%c0_3, %c0_4] : memref<256x16xf32, #tpu.memory_space<vmem>>, vector<256x16xf32>
    tpu.vector_store %arg13[%c0_3, %c0_4], %2 {strides = array<i32>} : memref<256x16xf32, #tpu.memory_space<vmem>>, vector<256x16xf32>,
    %c0_5 = arith.constant 0 : index
    %c0_6 = arith.constant 0 : index
    %4 = vector.load %arg13[%c0_5, %c0_6] : memref<256x16xf32, #tpu.memory_space<vmem>>, vector<256x16xf32>
    %c0_7 = arith.constant 0 : index
    %c0_8 = arith.constant 0 : index
    %5 = vector.load %arg2[%c0_7, %c0_8] : memref<256x16xbf16, #tpu.memory_space<vmem>>, vector<256x16xbf16>
    %c0_9 = arith.constant 0 : index
    %c0_10 = arith.constant 0 : index
    %6 = vector.load %arg7[%c0_9, %c0_10] : memref<16x16xbf16, #tpu.memory_space<vmem>>, vector<16x16xbf16>
    %cst_11 = arith.constant dense<0.000000e+00> : vector<256x16xf32>
    %7 = tpu.matmul %5, %6, %cst_11 {dimension_numbers = #tpu.dot_dimension_numbers<[1], [0], [0], [1], [0, 0, 1, 1], [], []>} : vector<256x16xbf16>, vector<16x16xbf16>, vector<256x16xf32> -> vector<256x16xf32>
    %8 = arith.addf %4, %7 : vector<256x16xf32>
    %c0_12 = arith.constant 0 : index
    %c0_13 = arith.constant 0 : index
    %9 = vector.load %arg13[%c0_12, %c0_13] : memref<256x16xf32, #tpu.memory_space<vmem>>, vector<256x16xf32>
    tpu.vector_store %arg13[%c0_12, %c0_13], %8 {strides = array<i32>} : memref<256x16xf32, #tpu.memory_space<vmem>>, vector<256x16xf32>,
    %c0_14 = arith.constant 0 : index
    %c0_15 = arith.constant 0 : index
    %10 = vector.load %arg13[%c0_14, %c0_15] : memref<256x16xf32, #tpu.memory_space<vmem>>, vector<256x16xf32>
    %c0_16 = arith.constant 0 : index
    %c0_17 = arith.constant 0 : index
    %11 = vector.load %arg3[%c0_16, %c0_17] : memref<256x16xbf16, #tpu.memory_space<vmem>>, vector<256x16xbf16>
    %c0_18 = arith.constant 0 : index
    %c0_19 = arith.constant 0 : index
    %12 = vector.load %arg8[%c0_18, %c0_19] : memref<16x16xbf16, #tpu.memory_space<vmem>>, vector<16x16xbf16>
    %cst_20 = arith.constant dense<0.000000e+00> : vector<256x16xf32>
    %13 = tpu.matmul %11, %12, %cst_20 {dimension_numbers = #tpu.dot_dimension_numbers<[1], [0], [0], [1], [0, 0, 1, 1], [], []>} : vector<256x16xbf16>, vector<16x16xbf16>, vector<256x16xf32> -> vector<256x16xf32>
    %14 = arith.addf %10, %13 : vector<256x16xf32>
    %c0_21 = arith.constant 0 : index
    %c0_22 = arith.constant 0 : index
    %15 = vector.load %arg13[%c0_21, %c0_22] : memref<256x16xf32, #tpu.memory_space<vmem>>, vector<256x16xf32>
    tpu.vector_store %arg13[%c0_21, %c0_22], %14 {strides = array<i32>} : memref<256x16xf32, #tpu.memory_space<vmem>>, vector<256x16xf32>,
    %c0_23 = arith.constant 0 : index
    %c0_24 = arith.constant 0 : index
    %16 = vector.load %arg13[%c0_23, %c0_24] : memref<256x16xf32, #tpu.memory_space<vmem>>, vector<256x16xf32>
    %c0_25 = arith.constant 0 : index
    %c0_26 = arith.constant 0 : index
    %17 = vector.load %arg4[%c0_25, %c0_26] : memref<256x16xbf16, #tpu.memory_space<vmem>>, vector<256x16xbf16>
    %c0_27 = arith.constant 0 : index
    %c0_28 = arith.constant 0 : index
    %18 = vector.load %arg9[%c0_27, %c0_28] : memref<16x16xbf16, #tpu.memory_space<vmem>>, vector<16x16xbf16>
    %cst_29 = arith.constant dense<0.000000e+00> : vector<256x16xf32>
    %19 = tpu.matmul %17, %18, %cst_29 {dimension_numbers = #tpu.dot_dimension_numbers<[1], [0], [0], [1], [0, 0, 1, 1], [], []>} : vector<256x16xbf16>, vector<16x16xbf16>, vector<256x16xf32> -> vector<256x16xf32>
    %20 = arith.addf %16, %19 : vector<256x16xf32>
    %c0_30 = arith.constant 0 : index
    %c0_31 = arith.constant 0 : index
    %21 = vector.load %arg13[%c0_30, %c0_31] : memref<256x16xf32, #tpu.memory_space<vmem>>, vector<256x16xf32>
    tpu.vector_store %arg13[%c0_30, %c0_31], %20 {strides = array<i32>} : memref<256x16xf32, #tpu.memory_space<vmem>>, vector<256x16xf32>,
    %c0_32 = arith.constant 0 : index
    %c0_33 = arith.constant 0 : index
    %22 = vector.load %arg13[%c0_32, %c0_33] : memref<256x16xf32, #tpu.memory_space<vmem>>, vector<256x16xf32>
    %c0_34 = arith.constant 0 : index
    %c0_35 = arith.constant 0 : index
    %23 = vector.load %arg5[%c0_34, %c0_35] : memref<256x16xbf16, #tpu.memory_space<vmem>>, vector<256x16xbf16>
    %c0_36 = arith.constant 0 : index
    %c0_37 = arith.constant 0 : index
    %24 = vector.load %arg10[%c0_36, %c0_37] : memref<16x16xbf16, #tpu.memory_space<vmem>>, vector<16x16xbf16>
    %cst_38 = arith.constant dense<0.000000e+00> : vector<256x16xf32>
    %25 = tpu.matmul %23, %24, %cst_38 {dimension_numbers = #tpu.dot_dimension_numbers<[1], [0], [0], [1], [0, 0, 1, 1], [], []>} : vector<256x16xbf16>, vector<16x16xbf16>, vector<256x16xf32> -> vector<256x16xf32>
    %26 = arith.addf %22, %25 : vector<256x16xf32>
    %c0_39 = arith.constant 0 : index
    %c0_40 = arith.constant 0 : index
    %27 = vector.load %arg13[%c0_39, %c0_40] : memref<256x16xf32, #tpu.memory_space<vmem>>, vector<256x16xf32>
    tpu.vector_store %arg13[%c0_39, %c0_40], %26 {strides = array<i32>} : memref<256x16xf32, #tpu.memory_space<vmem>>, vector<256x16xf32>,
    %c0_41 = arith.constant 0 : index
    %c0_42 = arith.constant 0 : index
    %28 = vector.load %arg13[%c0_41, %c0_42] : memref<256x16xf32, #tpu.memory_space<vmem>>, vector<256x16xf32>
    %c0_43 = arith.constant 0 : index
    %c0_44 = arith.constant 0 : index
    %29 = vector.load %arg11[%c0_43, %c0_44] : memref<1x16xf32, #tpu.memory_space<vmem>>, vector<1x16xf32>
    %30 = vector.broadcast %29 : vector<1x16xf32> to vector<256x16xf32>
    %31 = arith.addf %28, %30 : vector<256x16xf32>
    %32 = arith.truncf %31 : vector<256x16xf32> to vector<256x16xbf16>
    %c0_45 = arith.constant 0 : index
    %c0_46 = arith.constant 0 : index
    %33 = vector.load %arg12[%c0_45, %c0_46] : memref<256x16xbf16, #tpu.memory_space<vmem>>, vector<256x16xbf16>
    tpu.vector_store %arg12[%c0_45, %c0_46], %32 {strides = array<i32>} : memref<256x16xbf16, #tpu.memory_space<vmem>>, vector<256x16xbf16>,
    return
  }
  func.func @transform_0(%arg0: i32) -> (i32, i32) {
    %c0_i32 = arith.constant 0 : i32
    %c0_i32_0 = arith.constant 0 : i32
    return %arg0, %c0_i32 : i32, i32
  }
  func.func @transform_1(%arg0: i32) -> (i32, i32) {
    %c0_i32 = arith.constant 0 : i32
    %c0_i32_0 = arith.constant 0 : i32
    return %arg0, %c0_i32 : i32, i32
  }
  func.func @transform_2(%arg0: i32) -> (i32, i32) {
    %c0_i32 = arith.constant 0 : i32
    %c0_i32_0 = arith.constant 0 : i32
    return %arg0, %c0_i32 : i32, i32
  }
  func.func @transform_3(%arg0: i32) -> (i32, i32) {
    %c0_i32 = arith.constant 0 : i32
    %c0_i32_0 = arith.constant 0 : i32
    return %arg0, %c0_i32 : i32, i32
  }
  func.func @transform_4(%arg0: i32) -> (i32, i32) {
    %c0_i32 = arith.constant 0 : i32
    %c0_i32_0 = arith.constant 0 : i32
    return %arg0, %c0_i32 : i32, i32
  }
  func.func @transform_5(%arg0: i32) -> (i32, i32) {
    %c0_i32 = arith.constant 0 : i32
    %c0_i32_0 = arith.constant 0 : i32
    %c0_i32_1 = arith.constant 0 : i32
    return %c0_i32, %c0_i32_0 : i32, i32
  }
  func.func @transform_6(%arg0: i32) -> (i32, i32) {
    %c0_i32 = arith.constant 0 : i32
    %c0_i32_0 = arith.constant 0 : i32
    %c0_i32_1 = arith.constant 0 : i32
    return %c0_i32, %c0_i32_0 : i32, i32
  }
  func.func @transform_7(%arg0: i32) -> (i32, i32) {
    %c0_i32 = arith.constant 0 : i32
    %c0_i32_0 = arith.constant 0 : i32
    %c0_i32_1 = arith.constant 0 : i32
    return %c0_i32, %c0_i32_0 : i32, i32
  }
  func.func @transform_8(%arg0: i32) -> (i32, i32) {
    %c0_i32 = arith.constant 0 : i32
    %c0_i32_0 = arith.constant 0 : i32
    %c0_i32_1 = arith.constant 0 : i32
    return %c0_i32, %c0_i32_0 : i32, i32
  }
  func.func @transform_9(%arg0: i32) -> (i32, i32) {
    %c0_i32 = arith.constant 0 : i32
    %c0_i32_0 = arith.constant 0 : i32
    %c0_i32_1 = arith.constant 0 : i32
    return %c0_i32, %c0_i32_0 : i32, i32
  }
  func.func @transform_10(%arg0: i32) -> (i32, i32) {
    %c0_i32 = arith.constant 0 : i32
    %c0_i32_0 = arith.constant 0 : i32
    %c0_i32_1 = arith.constant 0 : i32
    return %c0_i32, %c0_i32_0 : i32, i32
  }
  func.func @transform_11(%arg0: i32) -> (i32, i32) {
    %c0_i32 = arith.constant 0 : i32
    %c0_i32_0 = arith.constant 0 : i32
    return %arg0, %c0_i32 : i32, i32
  }
}

module attributes {stable_mosaic.version = 11 : i64} {
  func.func @kernel(%arg0: i32, %arg1: memref<256x16xbf16, #tpu.memory_space<vmem>>, %arg2: memref<256x16xbf16, #tpu.memory_space<vmem>>, %arg3: memref<256x16xbf16, #tpu.memory_space<vmem>>, %arg4: memref<256x16xbf16, #tpu.memory_space<vmem>>, %arg5: memref<16x16xbf16, #tpu.memory_space<vmem>>, %arg6: memref<16x16xbf16, #tpu.memory_space<vmem>>, %arg7: memref<16x16xbf16, #tpu.memory_space<vmem>>, %arg8: memref<16x16xbf16, #tpu.memory_space<vmem>>, %arg9: memref<1x16xf32, #tpu.memory_space<vmem>>, %arg10: memref<256x16xbf16, #tpu.memory_space<vmem>>, %arg11: memref<256x16xf32, #tpu.memory_space<vmem>>) attributes {dimension_semantics = [#tpu.dimension_semantics<parallel>], iteration_bounds = array<i64: 2>, scalar_prefetch = 0 : i64, scratch_operands = 1 : i64, tpu.core_type = #tpu.core_type<tc>, window_params = [{transform_indices = @transform_0, window_bounds = array<i64: 256, 16>}, {transform_indices = @transform_1, window_bounds = array<i64: 256, 16>}, {transform_indices = @transform_2, window_bounds = array<i64: 256, 16>}, {transform_indices = @transform_3, window_bounds = array<i64: 256, 16>}, {pipeline_mode = #tpu.pipeline_mode<synchronous>, transform_indices = @transform_4, window_bounds = array<i64: 16, 16>}, {pipeline_mode = #tpu.pipeline_mode<synchronous>, transform_indices = @transform_5, window_bounds = array<i64: 16, 16>}, {pipeline_mode = #tpu.pipeline_mode<synchronous>, transform_indices = @transform_6, window_bounds = array<i64: 16, 16>}, {pipeline_mode = #tpu.pipeline_mode<synchronous>, transform_indices = @transform_7, window_bounds = array<i64: 16, 16>}, {pipeline_mode = #tpu.pipeline_mode<synchronous>, transform_indices = @transform_8, window_bounds = array<i64: 1, 16>}, {transform_indices = @transform_9, window_bounds = array<i64: 256, 16>}]} {
    %c0 = arith.constant 0 : index
    %c0_0 = arith.constant 0 : index
    %0 = vector.load %arg1[%c0, %c0_0] : memref<256x16xbf16, #tpu.memory_space<vmem>>, vector<256x16xbf16>
    %c0_1 = arith.constant 0 : index
    %c0_2 = arith.constant 0 : index
    %1 = vector.load %arg5[%c0_1, %c0_2] : memref<16x16xbf16, #tpu.memory_space<vmem>>, vector<16x16xbf16>
    %cst = arith.constant dense<0.000000e+00> : vector<256x16xf32>
    %2 = tpu.matmul %0, %1, %cst {dimension_numbers = #tpu.dot_dimension_numbers<[1], [0], [0], [1], [0, 0, 1, 1], [], []>} : vector<256x16xbf16>, vector<16x16xbf16>, vector<256x16xf32> -> vector<256x16xf32>
    %c0_3 = arith.constant 0 : index
    %c0_4 = arith.constant 0 : index
    %3 = vector.load %arg11[%c0_3, %c0_4] : memref<256x16xf32, #tpu.memory_space<vmem>>, vector<256x16xf32>
    tpu.vector_store %arg11[%c0_3, %c0_4], %2 {strides = array<i32>} : memref<256x16xf32, #tpu.memory_space<vmem>>, vector<256x16xf32>,
    %c0_5 = arith.constant 0 : index
    %c0_6 = arith.constant 0 : index
    %4 = vector.load %arg11[%c0_5, %c0_6] : memref<256x16xf32, #tpu.memory_space<vmem>>, vector<256x16xf32>
    %c0_7 = arith.constant 0 : index
    %c0_8 = arith.constant 0 : index
    %5 = vector.load %arg2[%c0_7, %c0_8] : memref<256x16xbf16, #tpu.memory_space<vmem>>, vector<256x16xbf16>
    %c0_9 = arith.constant 0 : index
    %c0_10 = arith.constant 0 : index
    %6 = vector.load %arg6[%c0_9, %c0_10] : memref<16x16xbf16, #tpu.memory_space<vmem>>, vector<16x16xbf16>
    %cst_11 = arith.constant dense<0.000000e+00> : vector<256x16xf32>
    %7 = tpu.matmul %5, %6, %cst_11 {dimension_numbers = #tpu.dot_dimension_numbers<[1], [0], [0], [1], [0, 0, 1, 1], [], []>} : vector<256x16xbf16>, vector<16x16xbf16>, vector<256x16xf32> -> vector<256x16xf32>
    %8 = arith.addf %4, %7 : vector<256x16xf32>
    %c0_12 = arith.constant 0 : index
    %c0_13 = arith.constant 0 : index
    %9 = vector.load %arg11[%c0_12, %c0_13] : memref<256x16xf32, #tpu.memory_space<vmem>>, vector<256x16xf32>
    tpu.vector_store %arg11[%c0_12, %c0_13], %8 {strides = array<i32>} : memref<256x16xf32, #tpu.memory_space<vmem>>, vector<256x16xf32>,
    %c0_14 = arith.constant 0 : index
    %c0_15 = arith.constant 0 : index
    %10 = vector.load %arg11[%c0_14, %c0_15] : memref<256x16xf32, #tpu.memory_space<vmem>>, vector<256x16xf32>
    %c0_16 = arith.constant 0 : index
    %c0_17 = arith.constant 0 : index
    %11 = vector.load %arg3[%c0_16, %c0_17] : memref<256x16xbf16, #tpu.memory_space<vmem>>, vector<256x16xbf16>
    %c0_18 = arith.constant 0 : index
    %c0_19 = arith.constant 0 : index
    %12 = vector.load %arg7[%c0_18, %c0_19] : memref<16x16xbf16, #tpu.memory_space<vmem>>, vector<16x16xbf16>
    %cst_20 = arith.constant dense<0.000000e+00> : vector<256x16xf32>
    %13 = tpu.matmul %11, %12, %cst_20 {dimension_numbers = #tpu.dot_dimension_numbers<[1], [0], [0], [1], [0, 0, 1, 1], [], []>} : vector<256x16xbf16>, vector<16x16xbf16>, vector<256x16xf32> -> vector<256x16xf32>
    %14 = arith.addf %10, %13 : vector<256x16xf32>
    %c0_21 = arith.constant 0 : index
    %c0_22 = arith.constant 0 : index
    %15 = vector.load %arg11[%c0_21, %c0_22] : memref<256x16xf32, #tpu.memory_space<vmem>>, vector<256x16xf32>
    tpu.vector_store %arg11[%c0_21, %c0_22], %14 {strides = array<i32>} : memref<256x16xf32, #tpu.memory_space<vmem>>, vector<256x16xf32>,
    %c0_23 = arith.constant 0 : index
    %c0_24 = arith.constant 0 : index
    %16 = vector.load %arg11[%c0_23, %c0_24] : memref<256x16xf32, #tpu.memory_space<vmem>>, vector<256x16xf32>
    %c0_25 = arith.constant 0 : index
    %c0_26 = arith.constant 0 : index
    %17 = vector.load %arg4[%c0_25, %c0_26] : memref<256x16xbf16, #tpu.memory_space<vmem>>, vector<256x16xbf16>
    %c0_27 = arith.constant 0 : index
    %c0_28 = arith.constant 0 : index
    %18 = vector.load %arg8[%c0_27, %c0_28] : memref<16x16xbf16, #tpu.memory_space<vmem>>, vector<16x16xbf16>
    %cst_29 = arith.constant dense<0.000000e+00> : vector<256x16xf32>
    %19 = tpu.matmul %17, %18, %cst_29 {dimension_numbers = #tpu.dot_dimension_numbers<[1], [0], [0], [1], [0, 0, 1, 1], [], []>} : vector<256x16xbf16>, vector<16x16xbf16>, vector<256x16xf32> -> vector<256x16xf32>
    %20 = arith.addf %16, %19 : vector<256x16xf32>
    %c0_30 = arith.constant 0 : index
    %c0_31 = arith.constant 0 : index
    %21 = vector.load %arg11[%c0_30, %c0_31] : memref<256x16xf32, #tpu.memory_space<vmem>>, vector<256x16xf32>
    tpu.vector_store %arg11[%c0_30, %c0_31], %20 {strides = array<i32>} : memref<256x16xf32, #tpu.memory_space<vmem>>, vector<256x16xf32>,
    %c0_32 = arith.constant 0 : index
    %c0_33 = arith.constant 0 : index
    %22 = vector.load %arg11[%c0_32, %c0_33] : memref<256x16xf32, #tpu.memory_space<vmem>>, vector<256x16xf32>
    %c0_34 = arith.constant 0 : index
    %c0_35 = arith.constant 0 : index
    %23 = vector.load %arg9[%c0_34, %c0_35] : memref<1x16xf32, #tpu.memory_space<vmem>>, vector<1x16xf32>
    %24 = vector.broadcast %23 : vector<1x16xf32> to vector<256x16xf32>
    %25 = arith.addf %22, %24 : vector<256x16xf32>
    %26 = arith.truncf %25 : vector<256x16xf32> to vector<256x16xbf16>
    %c0_36 = arith.constant 0 : index
    %c0_37 = arith.constant 0 : index
    %27 = vector.load %arg10[%c0_36, %c0_37] : memref<256x16xbf16, #tpu.memory_space<vmem>>, vector<256x16xbf16>
    tpu.vector_store %arg10[%c0_36, %c0_37], %26 {strides = array<i32>} : memref<256x16xbf16, #tpu.memory_space<vmem>>, vector<256x16xbf16>,
    return
  }
  func.func @transform_0(%arg0: i32) -> (i32, i32) {
    %c0_i32 = arith.constant 0 : i32
    %c0_i32_0 = arith.constant 0 : i32
    return %arg0, %c0_i32 : i32, i32
  }
  func.func @transform_1(%arg0: i32) -> (i32, i32) {
    %c0_i32 = arith.constant 0 : i32
    %c0_i32_0 = arith.constant 0 : i32
    return %arg0, %c0_i32 : i32, i32
  }
  func.func @transform_2(%arg0: i32) -> (i32, i32) {
    %c0_i32 = arith.constant 0 : i32
    %c0_i32_0 = arith.constant 0 : i32
    return %arg0, %c0_i32 : i32, i32
  }
  func.func @transform_3(%arg0: i32) -> (i32, i32) {
    %c0_i32 = arith.constant 0 : i32
    %c0_i32_0 = arith.constant 0 : i32
    return %arg0, %c0_i32 : i32, i32
  }
  func.func @transform_4(%arg0: i32) -> (i32, i32) {
    %c0_i32 = arith.constant 0 : i32
    %c0_i32_0 = arith.constant 0 : i32
    %c0_i32_1 = arith.constant 0 : i32
    return %c0_i32, %c0_i32_0 : i32, i32
  }
  func.func @transform_5(%arg0: i32) -> (i32, i32) {
    %c0_i32 = arith.constant 0 : i32
    %c0_i32_0 = arith.constant 0 : i32
    %c0_i32_1 = arith.constant 0 : i32
    return %c0_i32, %c0_i32_0 : i32, i32
  }
  func.func @transform_6(%arg0: i32) -> (i32, i32) {
    %c0_i32 = arith.constant 0 : i32
    %c0_i32_0 = arith.constant 0 : i32
    %c0_i32_1 = arith.constant 0 : i32
    return %c0_i32, %c0_i32_0 : i32, i32
  }
  func.func @transform_7(%arg0: i32) -> (i32, i32) {
    %c0_i32 = arith.constant 0 : i32
    %c0_i32_0 = arith.constant 0 : i32
    %c0_i32_1 = arith.constant 0 : i32
    return %c0_i32, %c0_i32_0 : i32, i32
  }
  func.func @transform_8(%arg0: i32) -> (i32, i32) {
    %c0_i32 = arith.constant 0 : i32
    %c0_i32_0 = arith.constant 0 : i32
    %c0_i32_1 = arith.constant 0 : i32
    return %c0_i32, %c0_i32_0 : i32, i32
  }
  func.func @transform_9(%arg0: i32) -> (i32, i32) {
    %c0_i32 = arith.constant 0 : i32
    %c0_i32_0 = arith.constant 0 : i32
    return %arg0, %c0_i32 : i32, i32
  }
}

module attributes {stable_mosaic.version = 11 : i64} {
  func.func @kernel(%arg0: i32, %arg1: memref<256x16xbf16, #tpu.memory_space<vmem>>, %arg2: memref<256x16xbf16, #tpu.memory_space<vmem>>, %arg3: memref<256x16xbf16, #tpu.memory_space<vmem>>, %arg4: memref<256x16xbf16, #tpu.memory_space<vmem>>, %arg5: memref<256x16xbf16, #tpu.memory_space<vmem>>, %arg6: memref<256x16xbf16, #tpu.memory_space<vmem>>, %arg7: memref<16x16xbf16, #tpu.memory_space<vmem>>, %arg8: memref<16x16xbf16, #tpu.memory_space<vmem>>, %arg9: memref<16x16xbf16, #tpu.memory_space<vmem>>, %arg10: memref<16x16xbf16, #tpu.memory_space<vmem>>, %arg11: memref<16x16xbf16, #tpu.memory_space<vmem>>, %arg12: memref<16x16xbf16, #tpu.memory_space<vmem>>, %arg13: memref<1x16xf32, #tpu.memory_space<vmem>>, %arg14: memref<256x16xbf16, #tpu.memory_space<vmem>>, %arg15: memref<256x16xf32, #tpu.memory_space<vmem>>) attributes {dimension_semantics = [#tpu.dimension_semantics<parallel>], iteration_bounds = array<i64: 2>, scalar_prefetch = 0 : i64, scratch_operands = 1 : i64, tpu.core_type = #tpu.core_type<tc>, window_params = [{transform_indices = @transform_0, window_bounds = array<i64: 256, 16>}, {transform_indices = @transform_1, window_bounds = array<i64: 256, 16>}, {transform_indices = @transform_2, window_bounds = array<i64: 256, 16>}, {transform_indices = @transform_3, window_bounds = array<i64: 256, 16>}, {transform_indices = @transform_4, window_bounds = array<i64: 256, 16>}, {transform_indices = @transform_5, window_bounds = array<i64: 256, 16>}, {pipeline_mode = #tpu.pipeline_mode<synchronous>, transform_indices = @transform_6, window_bounds = array<i64: 16, 16>}, {pipeline_mode = #tpu.pipeline_mode<synchronous>, transform_indices = @transform_7, window_bounds = array<i64: 16, 16>}, {pipeline_mode = #tpu.pipeline_mode<synchronous>, transform_indices = @transform_8, window_bounds = array<i64: 16, 16>}, {pipeline_mode = #tpu.pipeline_mode<synchronous>, transform_indices = @transform_9, window_bounds = array<i64: 16, 16>}, {pipeline_mode = #tpu.pipeline_mode<synchronous>, transform_indices = @transform_10, window_bounds = array<i64: 16, 16>}, {pipeline_mode = #tpu.pipeline_mode<synchronous>, transform_indices = @transform_11, window_bounds = array<i64: 16, 16>}, {pipeline_mode = #tpu.pipeline_mode<synchronous>, transform_indices = @transform_12, window_bounds = array<i64: 1, 16>}, {transform_indices = @transform_13, window_bounds = array<i64: 256, 16>}]} {
    %c0 = arith.constant 0 : index
    %c0_0 = arith.constant 0 : index
    %0 = vector.load %arg1[%c0, %c0_0] : memref<256x16xbf16, #tpu.memory_space<vmem>>, vector<256x16xbf16>
    %c0_1 = arith.constant 0 : index
    %c0_2 = arith.constant 0 : index
    %1 = vector.load %arg7[%c0_1, %c0_2] : memref<16x16xbf16, #tpu.memory_space<vmem>>, vector<16x16xbf16>
    %cst = arith.constant dense<0.000000e+00> : vector<256x16xf32>
    %2 = tpu.matmul %0, %1, %cst {dimension_numbers = #tpu.dot_dimension_numbers<[1], [0], [0], [1], [0, 0, 1, 1], [], []>} : vector<256x16xbf16>, vector<16x16xbf16>, vector<256x16xf32> -> vector<256x16xf32>
    %c0_3 = arith.constant 0 : index
    %c0_4 = arith.constant 0 : index
    %3 = vector.load %arg15[%c0_3, %c0_4] : memref<256x16xf32, #tpu.memory_space<vmem>>, vector<256x16xf32>
    tpu.vector_store %arg15[%c0_3, %c0_4], %2 {strides = array<i32>} : memref<256x16xf32, #tpu.memory_space<vmem>>, vector<256x16xf32>,
    %c0_5 = arith.constant 0 : index
    %c0_6 = arith.constant 0 : index
    %4 = vector.load %arg15[%c0_5, %c0_6] : memref<256x16xf32, #tpu.memory_space<vmem>>, vector<256x16xf32>
    %c0_7 = arith.constant 0 : index
    %c0_8 = arith.constant 0 : index
    %5 = vector.load %arg2[%c0_7, %c0_8] : memref<256x16xbf16, #tpu.memory_space<vmem>>, vector<256x16xbf16>
    %c0_9 = arith.constant 0 : index
    %c0_10 = arith.constant 0 : index
    %6 = vector.load %arg8[%c0_9, %c0_10] : memref<16x16xbf16, #tpu.memory_space<vmem>>, vector<16x16xbf16>
    %cst_11 = arith.constant dense<0.000000e+00> : vector<256x16xf32>
    %7 = tpu.matmul %5, %6, %cst_11 {dimension_numbers = #tpu.dot_dimension_numbers<[1], [0], [0], [1], [0, 0, 1, 1], [], []>} : vector<256x16xbf16>, vector<16x16xbf16>, vector<256x16xf32> -> vector<256x16xf32>
    %8 = arith.addf %4, %7 : vector<256x16xf32>
    %c0_12 = arith.constant 0 : index
    %c0_13 = arith.constant 0 : index
    %9 = vector.load %arg15[%c0_12, %c0_13] : memref<256x16xf32, #tpu.memory_space<vmem>>, vector<256x16xf32>
    tpu.vector_store %arg15[%c0_12, %c0_13], %8 {strides = array<i32>} : memref<256x16xf32, #tpu.memory_space<vmem>>, vector<256x16xf32>,
    %c0_14 = arith.constant 0 : index
    %c0_15 = arith.constant 0 : index
    %10 = vector.load %arg15[%c0_14, %c0_15] : memref<256x16xf32, #tpu.memory_space<vmem>>, vector<256x16xf32>
    %c0_16 = arith.constant 0 : index
    %c0_17 = arith.constant 0 : index
    %11 = vector.load %arg3[%c0_16, %c0_17] : memref<256x16xbf16, #tpu.memory_space<vmem>>, vector<256x16xbf16>
    %c0_18 = arith.constant 0 : index
    %c0_19 = arith.constant 0 : index
    %12 = vector.load %arg9[%c0_18, %c0_19] : memref<16x16xbf16, #tpu.memory_space<vmem>>, vector<16x16xbf16>
    %cst_20 = arith.constant dense<0.000000e+00> : vector<256x16xf32>
    %13 = tpu.matmul %11, %12, %cst_20 {dimension_numbers = #tpu.dot_dimension_numbers<[1], [0], [0], [1], [0, 0, 1, 1], [], []>} : vector<256x16xbf16>, vector<16x16xbf16>, vector<256x16xf32> -> vector<256x16xf32>
    %14 = arith.addf %10, %13 : vector<256x16xf32>
    %c0_21 = arith.constant 0 : index
    %c0_22 = arith.constant 0 : index
    %15 = vector.load %arg15[%c0_21, %c0_22] : memref<256x16xf32, #tpu.memory_space<vmem>>, vector<256x16xf32>
    tpu.vector_store %arg15[%c0_21, %c0_22], %14 {strides = array<i32>} : memref<256x16xf32, #tpu.memory_space<vmem>>, vector<256x16xf32>,
    %c0_23 = arith.constant 0 : index
    %c0_24 = arith.constant 0 : index
    %16 = vector.load %arg15[%c0_23, %c0_24] : memref<256x16xf32, #tpu.memory_space<vmem>>, vector<256x16xf32>
    %c0_25 = arith.constant 0 : index
    %c0_26 = arith.constant 0 : index
    %17 = vector.load %arg4[%c0_25, %c0_26] : memref<256x16xbf16, #tpu.memory_space<vmem>>, vector<256x16xbf16>
    %c0_27 = arith.constant 0 : index
    %c0_28 = arith.constant 0 : index
    %18 = vector.load %arg10[%c0_27, %c0_28] : memref<16x16xbf16, #tpu.memory_space<vmem>>, vector<16x16xbf16>
    %cst_29 = arith.constant dense<0.000000e+00> : vector<256x16xf32>
    %19 = tpu.matmul %17, %18, %cst_29 {dimension_numbers = #tpu.dot_dimension_numbers<[1], [0], [0], [1], [0, 0, 1, 1], [], []>} : vector<256x16xbf16>, vector<16x16xbf16>, vector<256x16xf32> -> vector<256x16xf32>
    %20 = arith.addf %16, %19 : vector<256x16xf32>
    %c0_30 = arith.constant 0 : index
    %c0_31 = arith.constant 0 : index
    %21 = vector.load %arg15[%c0_30, %c0_31] : memref<256x16xf32, #tpu.memory_space<vmem>>, vector<256x16xf32>
    tpu.vector_store %arg15[%c0_30, %c0_31], %20 {strides = array<i32>} : memref<256x16xf32, #tpu.memory_space<vmem>>, vector<256x16xf32>,
    %c0_32 = arith.constant 0 : index
    %c0_33 = arith.constant 0 : index
    %22 = vector.load %arg15[%c0_32, %c0_33] : memref<256x16xf32, #tpu.memory_space<vmem>>, vector<256x16xf32>
    %c0_34 = arith.constant 0 : index
    %c0_35 = arith.constant 0 : index
    %23 = vector.load %arg5[%c0_34, %c0_35] : memref<256x16xbf16, #tpu.memory_space<vmem>>, vector<256x16xbf16>
    %c0_36 = arith.constant 0 : index
    %c0_37 = arith.constant 0 : index
    %24 = vector.load %arg11[%c0_36, %c0_37] : memref<16x16xbf16, #tpu.memory_space<vmem>>, vector<16x16xbf16>
    %cst_38 = arith.constant dense<0.000000e+00> : vector<256x16xf32>
    %25 = tpu.matmul %23, %24, %cst_38 {dimension_numbers = #tpu.dot_dimension_numbers<[1], [0], [0], [1], [0, 0, 1, 1], [], []>} : vector<256x16xbf16>, vector<16x16xbf16>, vector<256x16xf32> -> vector<256x16xf32>
    %26 = arith.addf %22, %25 : vector<256x16xf32>
    %c0_39 = arith.constant 0 : index
    %c0_40 = arith.constant 0 : index
    %27 = vector.load %arg15[%c0_39, %c0_40] : memref<256x16xf32, #tpu.memory_space<vmem>>, vector<256x16xf32>
    tpu.vector_store %arg15[%c0_39, %c0_40], %26 {strides = array<i32>} : memref<256x16xf32, #tpu.memory_space<vmem>>, vector<256x16xf32>,
    %c0_41 = arith.constant 0 : index
    %c0_42 = arith.constant 0 : index
    %28 = vector.load %arg15[%c0_41, %c0_42] : memref<256x16xf32, #tpu.memory_space<vmem>>, vector<256x16xf32>
    %c0_43 = arith.constant 0 : index
    %c0_44 = arith.constant 0 : index
    %29 = vector.load %arg6[%c0_43, %c0_44] : memref<256x16xbf16, #tpu.memory_space<vmem>>, vector<256x16xbf16>
    %c0_45 = arith.constant 0 : index
    %c0_46 = arith.constant 0 : index
    %30 = vector.load %arg12[%c0_45, %c0_46] : memref<16x16xbf16, #tpu.memory_space<vmem>>, vector<16x16xbf16>
    %cst_47 = arith.constant dense<0.000000e+00> : vector<256x16xf32>
    %31 = tpu.matmul %29, %30, %cst_47 {dimension_numbers = #tpu.dot_dimension_numbers<[1], [0], [0], [1], [0, 0, 1, 1], [], []>} : vector<256x16xbf16>, vector<16x16xbf16>, vector<256x16xf32> -> vector<256x16xf32>
    %32 = arith.addf %28, %31 : vector<256x16xf32>
    %c0_48 = arith.constant 0 : index
    %c0_49 = arith.constant 0 : index
    %33 = vector.load %arg15[%c0_48, %c0_49] : memref<256x16xf32, #tpu.memory_space<vmem>>, vector<256x16xf32>
    tpu.vector_store %arg15[%c0_48, %c0_49], %32 {strides = array<i32>} : memref<256x16xf32, #tpu.memory_space<vmem>>, vector<256x16xf32>,
    %c0_50 = arith.constant 0 : index
    %c0_51 = arith.constant 0 : index
    %34 = vector.load %arg15[%c0_50, %c0_51] : memref<256x16xf32, #tpu.memory_space<vmem>>, vector<256x16xf32>
    %c0_52 = arith.constant 0 : index
    %c0_53 = arith.constant 0 : index
    %35 = vector.load %arg13[%c0_52, %c0_53] : memref<1x16xf32, #tpu.memory_space<vmem>>, vector<1x16xf32>
    %36 = vector.broadcast %35 : vector<1x16xf32> to vector<256x16xf32>
    %37 = arith.addf %34, %36 : vector<256x16xf32>
    %38 = arith.truncf %37 : vector<256x16xf32> to vector<256x16xbf16>
    %c0_54 = arith.constant 0 : index
    %c0_55 = arith.constant 0 : index
    %39 = vector.load %arg14[%c0_54, %c0_55] : memref<256x16xbf16, #tpu.memory_space<vmem>>, vector<256x16xbf16>
    tpu.vector_store %arg14[%c0_54, %c0_55], %38 {strides = array<i32>} : memref<256x16xbf16, #tpu.memory_space<vmem>>, vector<256x16xbf16>,
    return
  }
  func.func @transform_0(%arg0: i32) -> (i32, i32) {
    %c0_i32 = arith.constant 0 : i32
    %c0_i32_0 = arith.constant 0 : i32
    return %arg0, %c0_i32 : i32, i32
  }
  func.func @transform_1(%arg0: i32) -> (i32, i32) {
    %c0_i32 = arith.constant 0 : i32
    %c0_i32_0 = arith.constant 0 : i32
    return %arg0, %c0_i32 : i32, i32
  }
  func.func @transform_2(%arg0: i32) -> (i32, i32) {
    %c0_i32 = arith.constant 0 : i32
    %c0_i32_0 = arith.constant 0 : i32
    return %arg0, %c0_i32 : i32, i32
  }
  func.func @transform_3(%arg0: i32) -> (i32, i32) {
    %c0_i32 = arith.constant 0 : i32
    %c0_i32_0 = arith.constant 0 : i32
    return %arg0, %c0_i32 : i32, i32
  }
  func.func @transform_4(%arg0: i32) -> (i32, i32) {
    %c0_i32 = arith.constant 0 : i32
    %c0_i32_0 = arith.constant 0 : i32
    return %arg0, %c0_i32 : i32, i32
  }
  func.func @transform_5(%arg0: i32) -> (i32, i32) {
    %c0_i32 = arith.constant 0 : i32
    %c0_i32_0 = arith.constant 0 : i32
    return %arg0, %c0_i32 : i32, i32
  }
  func.func @transform_6(%arg0: i32) -> (i32, i32) {
    %c0_i32 = arith.constant 0 : i32
    %c0_i32_0 = arith.constant 0 : i32
    %c0_i32_1 = arith.constant 0 : i32
    return %c0_i32, %c0_i32_0 : i32, i32
  }
  func.func @transform_7(%arg0: i32) -> (i32, i32) {
    %c0_i32 = arith.constant 0 : i32
    %c0_i32_0 = arith.constant 0 : i32
    %c0_i32_1 = arith.constant 0 : i32
    return %c0_i32, %c0_i32_0 : i32, i32
  }
  func.func @transform_8(%arg0: i32) -> (i32, i32) {
    %c0_i32 = arith.constant 0 : i32
    %c0_i32_0 = arith.constant 0 : i32
    %c0_i32_1 = arith.constant 0 : i32
    return %c0_i32, %c0_i32_0 : i32, i32
  }
  func.func @transform_9(%arg0: i32) -> (i32, i32) {
    %c0_i32 = arith.constant 0 : i32
    %c0_i32_0 = arith.constant 0 : i32
    %c0_i32_1 = arith.constant 0 : i32
    return %c0_i32, %c0_i32_0 : i32, i32
  }
  func.func @transform_10(%arg0: i32) -> (i32, i32) {
    %c0_i32 = arith.constant 0 : i32
    %c0_i32_0 = arith.constant 0 : i32
    %c0_i32_1 = arith.constant 0 : i32
    return %c0_i32, %c0_i32_0 : i32, i32
  }
  func.func @transform_11(%arg0: i32) -> (i32, i32) {
    %c0_i32 = arith.constant 0 : i32
    %c0_i32_0 = arith.constant 0 : i32
    %c0_i32_1 = arith.constant 0 : i32
    return %c0_i32, %c0_i32_0 : i32, i32
  }
  func.func @transform_12(%arg0: i32) -> (i32, i32) {
    %c0_i32 = arith.constant 0 : i32
    %c0_i32_0 = arith.constant 0 : i32
    %c0_i32_1 = arith.constant 0 : i32
    return %c0_i32, %c0_i32_0 : i32, i32
  }
  func.func @transform_13(%arg0: i32) -> (i32, i32) {
    %c0_i32 = arith.constant 0 : i32
    %c0_i32_0 = arith.constant 0 : i32
    return %arg0, %c0_i32 : i32, i32
  }
}

module attributes {stable_mosaic.version = 11 : i64} {
  func.func @kernel(%arg0: i32, %arg1: i32, %arg2: memref<1x8x16x16xbf16, #tpu.memory_space<vmem>>, %arg3: memref<1x1x16x16xbf16, #tpu.memory_space<vmem>>, %arg4: memref<1x1x16x16xbf16, #tpu.memory_space<vmem>>, %arg5: memref<3x48x1xbf16, #tpu.memory_space<vmem>>, %arg6: memref<1x1xf32, #tpu.memory_space<vmem>>, %arg7: memref<1x8x16x1xf32, #tpu.memory_space<vmem>>, %arg8: memref<10x16x48xbf16, #tpu.memory_space<vmem>>) attributes {dimension_semantics = [#tpu.dimension_semantics<parallel>, #tpu.dimension_semantics<parallel>], iteration_bounds = array<i64: 2, 2>, scalar_prefetch = 0 : i64, scratch_operands = 1 : i64, tpu.core_type = #tpu.core_type<tc>, window_params = [{transform_indices = @transform_0, window_bounds = array<i64: 1, 8, 16, 16>}, {transform_indices = @transform_1, window_bounds = array<i64: 1, 1, 16, 16>}, {transform_indices = @transform_2, window_bounds = array<i64: 1, 1, 16, 16>}, {pipeline_mode = #tpu.pipeline_mode<synchronous>, transform_indices = @transform_3, window_bounds = array<i64: 3, 48, 1>}, {pipeline_mode = #tpu.pipeline_mode<synchronous>, transform_indices = @transform_4, window_bounds = array<i64: 1, 1>}, {transform_indices = @transform_5, window_bounds = array<i64: 1, 8, 16, 1>}]} {
    %cst = arith.constant 0.000000e+00 : bf16
    %0 = vector.broadcast %cst : bf16 to vector<1x16x48xbf16>
    %c0 = arith.constant 0 : index
    %c0_0 = arith.constant 0 : index
    %c0_1 = arith.constant 0 : index
    %1 = vector.load %arg8[%c0, %c0_0, %c0_1] : memref<10x16x48xbf16, #tpu.memory_space<vmem>>, vector<1x16x48xbf16>
    tpu.vector_store %arg8[%c0, %c0_0, %c0_1], %0 {strides = array<i32>} : memref<10x16x48xbf16, #tpu.memory_space<vmem>>, vector<1x16x48xbf16>,
    %c9 = arith.constant 9 : index
    %c0_2 = arith.constant 0 : index
    %c0_3 = arith.constant 0 : index
    %2 = vector.load %arg8[%c9, %c0_2, %c0_3] : memref<10x16x48xbf16, #tpu.memory_space<vmem>>, vector<1x16x48xbf16>
    tpu.vector_store %arg8[%c9, %c0_2, %c0_3], %0 {strides = array<i32>} : memref<10x16x48xbf16, #tpu.memory_space<vmem>>, vector<1x16x48xbf16>,
    %c0_4 = arith.constant 0 : index
    %c0_5 = arith.constant 0 : index
    %c0_6 = arith.constant 0 : index
    %c0_7 = arith.constant 0 : index
    %3 = vector.load %arg2[%c0_4, %c0_5, %c0_6, %c0_7] : memref<1x8x16x16xbf16, #tpu.memory_space<vmem>>, vector<1x8x16x16xbf16>
    %4 = vector.shape_cast %3 : vector<1x8x16x16xbf16> to vector<8x16x16xbf16>
    %cst_8 = arith.constant 0.000000e+00 : bf16
    %5 = vector.broadcast %cst_8 : bf16 to vector<8x1x16xbf16>
    %6 = vector.extract_strided_slice %4 {offsets = [0, 0, 0], sizes = [8, 15, 16], strides = [1, 1, 1]} : vector<8x16x16xbf16> to vector<8x15x16xbf16>
    %7 = tpu.concatenate %5, %6 in 1 : vector<8x1x16xbf16>, vector<8x15x16xbf16> -> vector<8x16x16xbf16>
    %8 = vector.extract_strided_slice %4 {offsets = [0, 1, 0], sizes = [8, 15, 16], strides = [1, 1, 1]} : vector<8x16x16xbf16> to vector<8x15x16xbf16>
    %9 = tpu.concatenate %8, %5 in 1 : vector<8x15x16xbf16>, vector<8x1x16xbf16> -> vector<8x16x16xbf16>
    %10 = tpu.concatenate %7, %4, %9 in 2 : vector<8x16x16xbf16>, vector<8x16x16xbf16>, vector<8x16x16xbf16> -> vector<8x16x48xbf16>
    %c1 = arith.constant 1 : index
    %c0_9 = arith.constant 0 : index
    %c0_10 = arith.constant 0 : index
    %11 = vector.load %arg8[%c1, %c0_9, %c0_10] : memref<10x16x48xbf16, #tpu.memory_space<vmem>>, vector<8x16x48xbf16>
    tpu.vector_store %arg8[%c1, %c0_9, %c0_10], %10 {strides = array<i32>} : memref<10x16x48xbf16, #tpu.memory_space<vmem>>, vector<8x16x48xbf16>,
    %c0_i32 = arith.constant 0 : i32
    %12 = arith.cmpi sgt, %arg1, %c0_i32 : i32
    %13 = arith.extui %12 : i1 to i32
    %c0_i32_11 = arith.constant 0 : i32
    %14 = arith.cmpi ne, %13, %c0_i32_11 : i32
    scf.if %14 {
      %c0_39 = arith.constant 0 : index
      %c0_40 = arith.constant 0 : index
      %c0_41 = arith.constant 0 : index
      %c0_42 = arith.constant 0 : index
      %42 = vector.load %arg3[%c0_39, %c0_40, %c0_41, %c0_42] : memref<1x1x16x16xbf16, #tpu.memory_space<vmem>>, vector<1x1x16x16xbf16>
      %43 = vector.shape_cast %42 : vector<1x1x16x16xbf16> to vector<1x16x16xbf16>
      %cst_43 = arith.constant 0.000000e+00 : bf16
      %44 = vector.broadcast %cst_43 : bf16 to vector<1x1x16xbf16>
      %45 = vector.extract_strided_slice %43 {offsets = [0, 0, 0], sizes = [1, 15, 16], strides = [1, 1, 1]} : vector<1x16x16xbf16> to vector<1x15x16xbf16>
      %46 = tpu.concatenate %44, %45 in 1 : vector<1x1x16xbf16>, vector<1x15x16xbf16> -> vector<1x16x16xbf16>
      %47 = vector.extract_strided_slice %43 {offsets = [0, 1, 0], sizes = [1, 15, 16], strides = [1, 1, 1]} : vector<1x16x16xbf16> to vector<1x15x16xbf16>
      %48 = tpu.concatenate %47, %44 in 1 : vector<1x15x16xbf16>, vector<1x1x16xbf16> -> vector<1x16x16xbf16>
      %49 = tpu.concatenate %46, %43, %48 in 2 : vector<1x16x16xbf16>, vector<1x16x16xbf16>, vector<1x16x16xbf16> -> vector<1x16x48xbf16>
      %c0_44 = arith.constant 0 : index
      %c0_45 = arith.constant 0 : index
      %c0_46 = arith.constant 0 : index
      %50 = vector.load %arg8[%c0_44, %c0_45, %c0_46] : memref<10x16x48xbf16, #tpu.memory_space<vmem>>, vector<1x16x48xbf16>
      tpu.vector_store %arg8[%c0_44, %c0_45, %c0_46], %49 {strides = array<i32>} : memref<10x16x48xbf16, #tpu.memory_space<vmem>>, vector<1x16x48xbf16>,
    } else {
    }
    %c1_i32 = arith.constant 1 : i32
    %15 = arith.cmpi slt, %arg1, %c1_i32 : i32
    %16 = arith.extui %15 : i1 to i32
    %c0_i32_12 = arith.constant 0 : i32
    %17 = arith.cmpi ne, %16, %c0_i32_12 : i32
    scf.if %17 {
      %c0_39 = arith.constant 0 : index
      %c0_40 = arith.constant 0 : index
      %c0_41 = arith.constant 0 : index
      %c0_42 = arith.constant 0 : index
      %42 = vector.load %arg4[%c0_39, %c0_40, %c0_41, %c0_42] : memref<1x1x16x16xbf16, #tpu.memory_space<vmem>>, vector<1x1x16x16xbf16>
      %43 = vector.shape_cast %42 : vector<1x1x16x16xbf16> to vector<1x16x16xbf16>
      %cst_43 = arith.constant 0.000000e+00 : bf16
      %44 = vector.broadcast %cst_43 : bf16 to vector<1x1x16xbf16>
      %45 = vector.extract_strided_slice %43 {offsets = [0, 0, 0], sizes = [1, 15, 16], strides = [1, 1, 1]} : vector<1x16x16xbf16> to vector<1x15x16xbf16>
      %46 = tpu.concatenate %44, %45 in 1 : vector<1x1x16xbf16>, vector<1x15x16xbf16> -> vector<1x16x16xbf16>
      %47 = vector.extract_strided_slice %43 {offsets = [0, 1, 0], sizes = [1, 15, 16], strides = [1, 1, 1]} : vector<1x16x16xbf16> to vector<1x15x16xbf16>
      %48 = tpu.concatenate %47, %44 in 1 : vector<1x15x16xbf16>, vector<1x1x16xbf16> -> vector<1x16x16xbf16>
      %49 = tpu.concatenate %46, %43, %48 in 2 : vector<1x16x16xbf16>, vector<1x16x16xbf16>, vector<1x16x16xbf16> -> vector<1x16x48xbf16>
      %c9_44 = arith.constant 9 : index
      %c0_45 = arith.constant 0 : index
      %c0_46 = arith.constant 0 : index
      %50 = vector.load %arg8[%c9_44, %c0_45, %c0_46] : memref<10x16x48xbf16, #tpu.memory_space<vmem>>, vector<1x16x48xbf16>
      tpu.vector_store %arg8[%c9_44, %c0_45, %c0_46], %49 {strides = array<i32>} : memref<10x16x48xbf16, #tpu.memory_space<vmem>>, vector<1x16x48xbf16>,
    } else {
    }
    %c0_13 = arith.constant 0 : index
    %c0_14 = arith.constant 0 : index
    %c0_15 = arith.constant 0 : index
    %18 = vector.load %arg8[%c0_13, %c0_14, %c0_15] : memref<10x16x48xbf16, #tpu.memory_space<vmem>>, vector<8x16x48xbf16>
    %19 = vector.shape_cast %18 : vector<8x16x48xbf16> to vector<128x48xbf16>
    %c0_16 = arith.constant 0 : index
    %c0_17 = arith.constant 0 : index
    %c0_18 = arith.constant 0 : index
    %20 = vector.load %arg5[%c0_16, %c0_17, %c0_18] : memref<3x48x1xbf16, #tpu.memory_space<vmem>>, vector<1x48x1xbf16>
    %21 = vector.shape_cast %20 : vector<1x48x1xbf16> to vector<48x1xbf16>
    %cst_19 = arith.constant dense<0.000000e+00> : vector<128x1xf32>
    %22 = tpu.matmul %19, %21, %cst_19 {dimension_numbers = #tpu.dot_dimension_numbers<[1], [0], [0], [1], [0, 0, 1, 1], [], []>} : vector<128x48xbf16>, vector<48x1xbf16>, vector<128x1xf32> -> vector<128x1xf32>
    %c1_20 = arith.constant 1 : index
    %c0_21 = arith.constant 0 : index
    %c0_22 = arith.constant 0 : index
    %23 = vector.load %arg8[%c1_20, %c0_21, %c0_22] : memref<10x16x48xbf16, #tpu.memory_space<vmem>>, vector<8x16x48xbf16>
    %24 = vector.shape_cast %23 : vector<8x16x48xbf16> to vector<128x48xbf16>
    %c1_23 = arith.constant 1 : index
    %c0_24 = arith.constant 0 : index
    %c0_25 = arith.constant 0 : index
    %25 = vector.load %arg5[%c1_23, %c0_24, %c0_25] : memref<3x48x1xbf16, #tpu.memory_space<vmem>>, vector<1x48x1xbf16>
    %26 = vector.shape_cast %25 : vector<1x48x1xbf16> to vector<48x1xbf16>
    %cst_26 = arith.constant dense<0.000000e+00> : vector<128x1xf32>
    %27 = tpu.matmul %24, %26, %cst_26 {dimension_numbers = #tpu.dot_dimension_numbers<[1], [0], [0], [1], [0, 0, 1, 1], [], []>} : vector<128x48xbf16>, vector<48x1xbf16>, vector<128x1xf32> -> vector<128x1xf32>
    %28 = arith.addf %22, %27 : vector<128x1xf32>
    %c2 = arith.constant 2 : index
    %c0_27 = arith.constant 0 : index
    %c0_28 = arith.constant 0 : index
    %29 = vector.load %arg8[%c2, %c0_27, %c0_28] : memref<10x16x48xbf16, #tpu.memory_space<vmem>>, vector<8x16x48xbf16>
    %30 = vector.shape_cast %29 : vector<8x16x48xbf16> to vector<128x48xbf16>
    %c2_29 = arith.constant 2 : index
    %c0_30 = arith.constant 0 : index
    %c0_31 = arith.constant 0 : index
    %31 = vector.load %arg5[%c2_29, %c0_30, %c0_31] : memref<3x48x1xbf16, #tpu.memory_space<vmem>>, vector<1x48x1xbf16>
    %32 = vector.shape_cast %31 : vector<1x48x1xbf16> to vector<48x1xbf16>
    %cst_32 = arith.constant dense<0.000000e+00> : vector<128x1xf32>
    %33 = tpu.matmul %30, %32, %cst_32 {dimension_numbers = #tpu.dot_dimension_numbers<[1], [0], [0], [1], [0, 0, 1, 1], [], []>} : vector<128x48xbf16>, vector<48x1xbf16>, vector<128x1xf32> -> vector<128x1xf32>
    %34 = arith.addf %28, %33 : vector<128x1xf32>
    %c0_33 = arith.constant 0 : index
    %c0_34 = arith.constant 0 : index
    %35 = vector.load %arg6[%c0_33, %c0_34] : memref<1x1xf32, #tpu.memory_space<vmem>>, vector<1x1xf32>
    %36 = vector.broadcast %35 : vector<1x1xf32> to vector<128x1xf32>
    %37 = arith.addf %34, %36 : vector<128x1xf32>
    %38 = vector.shape_cast %37 : vector<128x1xf32> to vector<8x16x1xf32>
    %c0_35 = arith.constant 0 : index
    %c0_36 = arith.constant 0 : index
    %c0_37 = arith.constant 0 : index
    %c0_38 = arith.constant 0 : index
    %39 = vector.load %arg7[%c0_35, %c0_36, %c0_37, %c0_38] : memref<1x8x16x1xf32, #tpu.memory_space<vmem>>, vector<1x8x16x1xf32>
    %40 = vector.shape_cast %39 : vector<1x8x16x1xf32> to vector<8x16x1xf32>
    %41 = vector.shape_cast %38 : vector<8x16x1xf32> to vector<1x8x16x1xf32>
    tpu.vector_store %arg7[%c0_35, %c0_36, %c0_37, %c0_38], %41 {strides = array<i32>} : memref<1x8x16x1xf32, #tpu.memory_space<vmem>>, vector<1x8x16x1xf32>,
    return
  }
  func.func @transform_0(%arg0: i32, %arg1: i32) -> (i32, i32, i32, i32) {
    %c0_i32 = arith.constant 0 : i32
    %c0_i32_0 = arith.constant 0 : i32
    %c0_i32_1 = arith.constant 0 : i32
    return %arg0, %arg1, %c0_i32, %c0_i32_0 : i32, i32, i32, i32
  }
  func.func @transform_1(%arg0: i32, %arg1: i32) -> (i32, i32, i32, i32) {
    %c8_i32 = arith.constant 8 : i32
    %0 = arith.muli %arg1, %c8_i32 : i32
    %c1_i32 = arith.constant 1 : i32
    %1 = arith.subi %0, %c1_i32 : i32
    %c0_i32 = arith.constant 0 : i32
    %2 = arith.maxsi %1, %c0_i32 : i32
    %c0_i32_0 = arith.constant 0 : i32
    %c0_i32_1 = arith.constant 0 : i32
    %c0_i32_2 = arith.constant 0 : i32
    return %arg0, %2, %c0_i32_0, %c0_i32_1 : i32, i32, i32, i32
  }
  func.func @transform_2(%arg0: i32, %arg1: i32) -> (i32, i32, i32, i32) {
    %c1_i32 = arith.constant 1 : i32
    %0 = arith.addi %arg1, %c1_i32 : i32
    %c8_i32 = arith.constant 8 : i32
    %1 = arith.muli %0, %c8_i32 : i32
    %c15_i32 = arith.constant 15 : i32
    %2 = arith.minsi %1, %c15_i32 : i32
    %c0_i32 = arith.constant 0 : i32
    %c0_i32_0 = arith.constant 0 : i32
    %c0_i32_1 = arith.constant 0 : i32
    return %arg0, %2, %c0_i32, %c0_i32_0 : i32, i32, i32, i32
  }
  func.func @transform_3(%arg0: i32, %arg1: i32) -> (i32, i32, i32) {
    %c0_i32 = arith.constant 0 : i32
    %c0_i32_0 = arith.constant 0 : i32
    %c0_i32_1 = arith.constant 0 : i32
    %c0_i32_2 = arith.constant 0 : i32
    return %c0_i32, %c0_i32_0, %c0_i32_1 : i32, i32, i32
  }
  func.func @transform_4(%arg0: i32, %arg1: i32) -> (i32, i32) {
    %c0_i32 = arith.constant 0 : i32
    %c0_i32_0 = arith.constant 0 : i32
    %c0_i32_1 = arith.constant 0 : i32
    return %c0_i32, %c0_i32_0 : i32, i32
  }
  func.func @transform_5(%arg0: i32, %arg1: i32) -> (i32, i32, i32, i32) {
    %c0_i32 = arith.constant 0 : i32
    %c0_i32_0 = arith.constant 0 : i32
    %c0_i32_1 = arith.constant 0 : i32
    return %arg0, %arg1, %c0_i32, %c0_i32_0 : i32, i32, i32, i32
  }
}

</mosaic_0001>

<bundles_post_ra>
// kernel: scunicorn_forward.37
= control target key start
LH: loop header
LB: loop body
LE: loop exit
PB: predicated region body
PF: predicated region fallthrough
CT: control target
= control target key end

     0   :  { %s1049_s12 = smov 0   ;;  %s1245_s0 = inlined_call_operand.vmem [shape: bf16[512,9], index: 0, kind: input, shape index: {}]   ;;  %s1246_s1 = inlined_call_operand.vmem [shape: bf16[9,16], index: 1, kind: input, shape index: {}]   ;;  %s1247_s2 = inlined_call_operand.vmem [shape: f32[1,16], index: 2, kind: input, shape index: {}]   ;;  %s1248_s3 = inlined_call_operand.vmem [shape: bf16[512,16], index: 3, kind: output, shape index: {}]  }
   0x1 LB: > { %s832_s13 = sadd.s32 4294967295, %s1026_s12   ;;  %p836_p0 = scmp.ge.s32.totalorder %s1026_s12, 1  ;;  %s1026_s12 = sphi %s1049_s12, %s13_s12  }
   0x2   : > { %p138_p1 = scmp.lt.s32.totalorder %s1026_s12, 3 }
   0x4   : > { %p139_p2 = pnand %p836_p0, %p138_p1 }
   0x5   : > { %v1003_v0 = vld [vmem:[%s1246_s1] sm:$0x1f] (!%p139_p2)   ;;  %vm343_vm0 = vcmask (!%p139_p2), 1043456   ;;  %vm344_vm1 = vcmask (!%p139_p2), 1044480   ;;  %s837_s16 = sshll.u32 (!%p139_p2), %s832_s13, 5  ;;  %v1028_v1 = vmov (!%p139_p2), 65535  }
   0x6   : > { %142 = sbr.rel (%p139_p2) target bundleno = 274 (0x112), region = 32  ;;  %v345_v2 = vsel (!%p139_p2), %vm343_vm0, 4294967295, %v1028_v1  ;;  %p163_p3 = scmp.lt.s32.totalorder (!%p139_p2), %s837_s16, 63  ;;  %vm294_vm2 = vcmask (!%p139_p2), 72704   ;;  %vm511_vm3 = vcmask (!%p139_p2), 130048   ;;  %vm743_vm4 = vcmask (!%p139_p2), 125952  }
   0x7   : > { %v346_v3 = vsel (!%p139_p2), %vm344_vm1, %v345_v2, 0  ;;  %v1113_v29 = vld [vmem:[%s1247_s2] ss:$0 sm:$0xff] (!%p139_p2) }
   0x8   : > { %v348_v4 = vand.u32 (!%p139_p2), %v1003_v0, %v346_v3 }
   0xa   : > { %958 = vmatprep.subr.bf16.mxu0 (!%p139_p2), %v348_v4  ;;  %992 = vmatprep.subr.bf16.mxu1 (!%p139_p2), %v348_v4 }
   0xb   : > { %959 = vmatpush3.bf16.msra.mxu0 (!%p139_p2), %v348_v4  ;;  %993 = vmatpush3.bf16.msra.mxu1 (!%p139_p2), %v348_v4 }
   0xd   : > { %s1250_s16 = smov (!%p163_p3, %s837_s16), 63 }
   0xe   : > { %s838_s17 = sshll.u32 %s1250_s16, 2 }
   0xf   : > { %s1068_s20 = scalar_lea.vmem %s1245_s0, %s838_s17  ;;  %s1122_s25 = scalar_lea.vmem %s1248_s3, %s838_s17 }
  0x10   : > { %v1004_v5 = vld [vmem:[%s1068_s20] sm:$0xff]   ;;  %v1006_v7 = vld [vmem:[%s1068_s20 + $0x8] sm:$0xff]   ;;  %v1008_v9 = vld [vmem:[%s1068_s20 + $0x10] sm:$0xff]  }
  0x11   : > { %v1005_v6 = vld [vmem:[%s1068_s20 + $0x40] sm:$0xff]   ;;  %960 = vmatprep.mubr.msk.bf16.mxu0 %vm294_vm2, %v1004_v5  ;;  %v1007_v8 = vld [vmem:[%s1068_s20 + $0x48] sm:$0xff]   ;;  %v1009_v10 = vld [vmem:[%s1068_s20 + $0x50] sm:$0xff]  }
  0x12   : > { %976 = vmatprep.mubr.msk.bf16.mxu1 %vm294_vm2, %v1005_v6  ;;  %961 = vmatmul.mubr.msk.bf16.vlgmr.msra.gmra.mrb[0].mxu0 %vm294_vm2, %v1006_v7  ;;  %v1010_v11 = vld [vmem:[%s1068_s20 + $0x18] sm:$0xff]   ;;  %v1012_v13 = vld [vmem:[%s1068_s20 + $0x20] sm:$0xff]   ;;  %v1014_v15 = vld [vmem:[%s1068_s20 + $0x28] sm:$0xff]  }
  0x13   : > { %977 = vmatmul.mubr.msk.bf16.vlgmr.msra.gmra.mrb[0].mxu1 %vm294_vm2, %v1007_v8  ;;  %964 = vmatprep.mubr.msk.bf16.mxu0 %vm294_vm2, %v1008_v9  ;;  %v1011_v12 = vld [vmem:[%s1068_s20 + $0x58] sm:$0xff]   ;;  %v1013_v14 = vld [vmem:[%s1068_s20 + $0x60] sm:$0xff]   ;;  %v1015_v16 = vld [vmem:[%s1068_s20 + $0x68] sm:$0xff]  }
  0x14   : > { %980 = vmatprep.mubr.msk.bf16.mxu1 %vm294_vm2, %v1009_v10  ;;  %v1016_v17 = vld [vmem:[%s1068_s20 + $0x30] sm:$0xff]   ;;  %v1018_v19 = vld [vmem:[%s1068_s20 + $0x38] sm:$0xff]  }
  0x15   : > { %v1017_v18 = vld [vmem:[%s1068_s20 + $0x70] sm:$0xff]   ;;  %v1019_v20 = vld [vmem:[%s1068_s20 + $0x78] sm:$0xff]  }
  0x1a   : > { %965 = vmatmul.mubr.msk.bf16.gmra.mrb[4].mxu0 %vm294_vm2, %v1010_v11 }
  0x1b   : > { %981 = vmatmul.mubr.msk.bf16.gmra.mrb[4].mxu1 %vm294_vm2, %v1011_v12  ;;  %968 = vmatprep.mubr.msk.bf16.mxu0 %vm294_vm2, %v1012_v13 }
  0x1c   : > { %984 = vmatprep.mubr.msk.bf16.mxu1 %vm294_vm2, %v1013_v14 }
  0x22   : > { %969 = vmatmul.mubr.msk.bf16.gmra.mrb[8].mxu0 %vm294_vm2, %v1014_v15 }
  0x23   : > { %985 = vmatmul.mubr.msk.bf16.gmra.mrb[8].mxu1 %vm294_vm2, %v1015_v16  ;;  %972 = vmatprep.mubr.msk.bf16.mxu0 %vm294_vm2, %v1016_v17 }
  0x24   : > { %988 = vmatprep.mubr.msk.bf16.mxu1 %vm294_vm2, %v1017_v18 }
  0x2a   : > { %973 = vmatmul.mubr.msk.bf16.gmra.mrb[12].mxu0 %vm294_vm2, %v1018_v19 }
  0x2b   : > { %989 = vmatmul.mubr.msk.bf16.gmra.mrb[12].mxu1 %vm294_vm2, %v1019_v20 }
  0xe5   : > { %v962_v21 = vpop.f32.mrb[0].mxu0 }
  0xe6   : > { %514 = vst.msk [vmem:[#allocation2 + $0x10] sm:$0xff] %vm511_vm3, %v962_v21  ;;  %v978_v22 = vpop.f32.mrb[0].mxu1  ;;  %v384_v23 = vpop.f32.mrb[1].mxu0 }
  0xe7   : > { %530 = vst.msk [vmem:[#allocation2 + $0x90] sm:$0xff] %vm511_vm3, %v978_v22  ;;  %512 = vst.msk [vmem:[#allocation2] sm:$0xff] %vm511_vm3, %v384_v23  ;;  %v448_v24 = vpop.f32.mrb[1].mxu1  ;;  %v963_v25 = vpop.f32.mrb[2].mxu0 }
  0xe8   : > { %528 = vst.msk [vmem:[#allocation2 + $0x80] sm:$0xff] %vm511_vm3, %v448_v24  ;;  %515 = vst.msk [vmem:[#allocation2 + $0x18] sm:$0xff] %vm511_vm3, %v963_v25  ;;  %v979_v26 = vpop.f32.mrb[2].mxu1  ;;  %v387_v27 = vpop.f32.mrb[3].mxu0 }
  0xe9   : > { %531 = vst.msk [vmem:[#allocation2 + $0x98] sm:$0xff] %vm511_vm3, %v979_v26  ;;  %513 = vst.msk [vmem:[#allocation2 + $0x8] sm:$0xff] %vm511_vm3, %v387_v27  ;;  %v451_v28 = vpop.f32.mrb[3].mxu1 }
  0xea   : > { %529 = vst.msk [vmem:[#allocation2 + $0x88] sm:$0xff] %vm511_vm3, %v451_v28 }
  0xed   : > { %v546_v30 = vld [vmem:[#allocation2 + $0x10] sm:$0xff]  ;;  %v966_v31 = vpop.f32.mrb[4].mxu0 }
  0xee   : > { %v585_v32 = vadd.f32 %v1113_v29, %v546_v30  ;;  %v562_v33 = vld [vmem:[#allocation2 + $0x90] sm:$0xff]  ;;  %v544_v34 = vld [vmem:[#allocation2] sm:$0xff]  ;;  %518 = vst.msk [vmem:[#allocation2 + $0x30] sm:$0xff] %vm511_vm3, %v966_v31  ;;  %v982_v35 = vpop.f32.mrb[4].mxu1  ;;  %v400_v36 = vpop.f32.mrb[5].mxu0 }
  0xef   : > { %v601_v37 = vadd.f32 %v1113_v29, %v562_v33  ;;  %v583_v38 = vadd.f32 %v1113_v29, %v544_v34  ;;  %v560_v39 = vld [vmem:[#allocation2 + $0x80] sm:$0xff]  ;;  %v547_v40 = vld [vmem:[#allocation2 + $0x18] sm:$0xff]  ;;  %534 = vst.msk [vmem:[#allocation2 + $0xb0] sm:$0xff] %vm511_vm3, %v982_v35  ;;  %516 = vst.msk [vmem:[#allocation2 + $0x20] sm:$0xff] %vm511_vm3, %v400_v36  ;;  %v464_v41 = vpop.f32.mrb[5].mxu1  ;;  %v967_v42 = vpop.f32.mrb[6].mxu0 }
  0xf0   : > { %v911_v43 = vpack.c.bf16 %v585_v32, %v585_v32  ;;  %v599_v44 = vadd.f32 %v1113_v29, %v560_v39  ;;  %v586_v45 = vadd.f32 %v1113_v29, %v547_v40  ;;  %v563_v46 = vld [vmem:[#allocation2 + $0x98] sm:$0xff]  ;;  %v545_v47 = vld [vmem:[#allocation2 + $0x8] sm:$0xff]  ;;  %532 = vst.msk [vmem:[#allocation2 + $0xa0] sm:$0xff] %vm511_vm3, %v464_v41  ;;  %519 = vst.msk [vmem:[#allocation2 + $0x38] sm:$0xff] %vm511_vm3, %v967_v42  ;;  %v983_v48 = vpop.f32.mrb[6].mxu1  ;;  %v403_v49 = vpop.f32.mrb[7].mxu0 }
  0xf1   : > { %v927_v50 = vpack.c.bf16 %v601_v37, %v601_v37  ;;  %v909_v51 = vpack.c.bf16 %v583_v38, %v583_v38  ;;  %v602_v52 = vadd.f32 %v1113_v29, %v563_v46  ;;  %v584_v53 = vadd.f32 %v1113_v29, %v545_v47  ;;  %v561_v54 = vld [vmem:[#allocation2 + $0x88] sm:$0xff]  ;;  %535 = vst.msk [vmem:[#allocation2 + $0xb8] sm:$0xff] %vm511_vm3, %v983_v48  ;;  %v467_v55 = vpop.f32.mrb[7].mxu1 }
  0xf2   : > { %517 = vst.msk [vmem:[#allocation2 + $0x28] sm:$0xff] %vm511_vm3, %v403_v49  ;;  %v925_v56 = vpack.c.bf16 %v599_v44, %v599_v44  ;;  %v912_v57 = vpack.c.bf16 %v586_v45, %v586_v45  ;;  %v600_v58 = vadd.f32 %v1113_v29, %v561_v54  ;;  %533 = vst.msk [vmem:[#allocation2 + $0xa8] sm:$0xff] %vm511_vm3, %v467_v55 }
  0xf3   : > { %746 = vst.msk [vmem:[%s1122_s25 + $0x8] sm:$0xf] %vm743_vm4, %v911_v43  ;;  %762 = vst.msk [vmem:[%s1122_s25 + $0x48] sm:$0xf] %vm743_vm4, %v927_v50  ;;  %v928_v59 = vpack.c.bf16 %v602_v52, %v602_v52  ;;  %v910_v60 = vpack.c.bf16 %v584_v53, %v584_v53 }
  0xf4   : > { %744 = vst.msk [vmem:[%s1122_s25] sm:$0xf] %vm743_vm4, %v909_v51  ;;  %760 = vst.msk [vmem:[%s1122_s25 + $0x40] sm:$0xf] %vm743_vm4, %v925_v56  ;;  %v926_v61 = vpack.c.bf16 %v600_v58, %v600_v58 }
  0xf5   : > { %747 = vst.msk [vmem:[%s1122_s25 + $0xc] sm:$0xf] %vm743_vm4, %v912_v57  ;;  %763 = vst.msk [vmem:[%s1122_s25 + $0x4c] sm:$0xf] %vm743_vm4, %v928_v59  ;;  %v550_v62 = vld [vmem:[#allocation2 + $0x30] sm:$0xff]  ;;  %v970_v63 = vpop.f32.mrb[8].mxu0 }
  0xf6   : > { %745 = vst.msk [vmem:[%s1122_s25 + $0x4] sm:$0xf] %vm743_vm4, %v910_v60  ;;  %761 = vst.msk [vmem:[%s1122_s25 + $0x44] sm:$0xf] %vm743_vm4, %v926_v61  ;;  %v589_v0 = vadd.f32 %v1113_v29, %v550_v62  ;;  %v566_v1 = vld [vmem:[#allocation2 + $0xb0] sm:$0xff]  ;;  %v548_v2 = vld [vmem:[#allocation2 + $0x20] sm:$0xff] }
  0xf7   : > { %522 = vst.msk [vmem:[#allocation2 + $0x50] sm:$0xff] %vm511_vm3, %v970_v63  ;;  %v986_v3 = vpop.f32.mrb[8].mxu1  ;;  %v416_v4 = vpop.f32.mrb[9].mxu0  ;;  %v605_v5 = vadd.f32 %v1113_v29, %v566_v1  ;;  %v587_v6 = vadd.f32 %v1113_v29, %v548_v2  ;;  %v564_v7 = vld [vmem:[#allocation2 + $0xa0] sm:$0xff]  ;;  %v551_v8 = vld [vmem:[#allocation2 + $0x38] sm:$0xff] }
  0xf8   : > { %538 = vst.msk [vmem:[#allocation2 + $0xd0] sm:$0xff] %vm511_vm3, %v986_v3  ;;  %520 = vst.msk [vmem:[#allocation2 + $0x40] sm:$0xff] %vm511_vm3, %v416_v4  ;;  %v480_v9 = vpop.f32.mrb[9].mxu1  ;;  %v971_v10 = vpop.f32.mrb[10].mxu0  ;;  %v915_v11 = vpack.c.bf16 %v589_v0, %v589_v0  ;;  %v603_v12 = vadd.f32 %v1113_v29, %v564_v7  ;;  %v590_v13 = vadd.f32 %v1113_v29, %v551_v8  ;;  %v567_v14 = vld [vmem:[#allocation2 + $0xb8] sm:$0xff] }
  0xf9   : > { %v549_v15 = vld [vmem:[#allocation2 + $0x28] sm:$0xff]  ;;  %536 = vst.msk [vmem:[#allocation2 + $0xc0] sm:$0xff] %vm511_vm3, %v480_v9  ;;  %523 = vst.msk [vmem:[#allocation2 + $0x58] sm:$0xff] %vm511_vm3, %v971_v10  ;;  %v987_v16 = vpop.f32.mrb[10].mxu1  ;;  %v419_v17 = vpop.f32.mrb[11].mxu0  ;;  %v931_v18 = vpack.c.bf16 %v605_v5, %v605_v5  ;;  %v913_v19 = vpack.c.bf16 %v587_v6, %v587_v6  ;;  %v606_v20 = vadd.f32 %v1113_v29, %v567_v14 }
  0xfa   : > { %v588_v21 = vadd.f32 %v1113_v29, %v549_v15  ;;  %v565_v22 = vld [vmem:[#allocation2 + $0xa8] sm:$0xff]  ;;  %539 = vst.msk [vmem:[#allocation2 + $0xd8] sm:$0xff] %vm511_vm3, %v987_v16  ;;  %521 = vst.msk [vmem:[#allocation2 + $0x48] sm:$0xff] %vm511_vm3, %v419_v17  ;;  %v483_v23 = vpop.f32.mrb[11].mxu1  ;;  %v929_v24 = vpack.c.bf16 %v603_v12, %v603_v12  ;;  %v916_v25 = vpack.c.bf16 %v590_v13, %v590_v13 }
  0xfb   : > { %750 = vst.msk [vmem:[%s1122_s25 + $0x18] sm:$0xf] %vm743_vm4, %v915_v11  ;;  %v604_v26 = vadd.f32 %v1113_v29, %v565_v22  ;;  %766 = vst.msk [vmem:[%s1122_s25 + $0x58] sm:$0xf] %vm743_vm4, %v931_v18  ;;  %v932_v27 = vpack.c.bf16 %v606_v20, %v606_v20 }
  0xfc   : > { %537 = vst.msk [vmem:[#allocation2 + $0xc8] sm:$0xff] %vm511_vm3, %v483_v23  ;;  %v914_v28 = vpack.c.bf16 %v588_v21, %v588_v21 }
  0xfd   : > { %748 = vst.msk [vmem:[%s1122_s25 + $0x10] sm:$0xf] %vm743_vm4, %v913_v19  ;;  %764 = vst.msk [vmem:[%s1122_s25 + $0x50] sm:$0xf] %vm743_vm4, %v929_v24  ;;  %v930_v30 = vpack.c.bf16 %v604_v26, %v604_v26  ;;  %v974_v32 = vpop.f32.mrb[12].mxu0 }
  0xfe   : > { %751 = vst.msk [vmem:[%s1122_s25 + $0x1c] sm:$0xf] %vm743_vm4, %v916_v25  ;;  %767 = vst.msk [vmem:[%s1122_s25 + $0x5c] sm:$0xf] %vm743_vm4, %v932_v27  ;;  %v554_v31 = vld [vmem:[#allocation2 + $0x50] sm:$0xff]  ;;  %v990_v36 = vpop.f32.mrb[12].mxu1 }
  0xff   : > { %749 = vst.msk [vmem:[%s1122_s25 + $0x14] sm:$0xf] %vm743_vm4, %v914_v28  ;;  %765 = vst.msk [vmem:[%s1122_s25 + $0x54] sm:$0xf] %vm743_vm4, %v930_v30  ;;  %v593_v33 = vadd.f32 %v1113_v29, %v554_v31  ;;  %v570_v34 = vld [vmem:[#allocation2 + $0xd0] sm:$0xff]  ;;  %v552_v35 = vld [vmem:[#allocation2 + $0x40] sm:$0xff] }
 0x100   : > { %526 = vst.msk [vmem:[#allocation2 + $0x70] sm:$0xff] %vm511_vm3, %v974_v32  ;;  %v432_v37 = vpop.f32.mrb[13].mxu0  ;;  %v609_v38 = vadd.f32 %v1113_v29, %v570_v34  ;;  %v591_v39 = vadd.f32 %v1113_v29, %v552_v35  ;;  %v568_v40 = vld [vmem:[#allocation2 + $0xc0] sm:$0xff]  ;;  %v555_v41 = vld [vmem:[#allocation2 + $0x58] sm:$0xff]  ;;  %542 = vst.msk [vmem:[#allocation2 + $0xf0] sm:$0xff] %vm511_vm3, %v990_v36  ;;  %v496_v42 = vpop.f32.mrb[13].mxu1 }
 0x101   : > { %524 = vst.msk [vmem:[#allocation2 + $0x60] sm:$0xff] %vm511_vm3, %v432_v37  ;;  %v975_v43 = vpop.f32.mrb[14].mxu0  ;;  %v919_v44 = vpack.c.bf16 %v593_v33, %v593_v33  ;;  %v607_v45 = vadd.f32 %v1113_v29, %v568_v40  ;;  %v594_v46 = vadd.f32 %v1113_v29, %v555_v41  ;;  %v571_v47 = vld [vmem:[#allocation2 + $0xd8] sm:$0xff]  ;;  %v553_v48 = vld [vmem:[#allocation2 + $0x48] sm:$0xff]  ;;  %540 = vst.msk [vmem:[#allocation2 + $0xe0] sm:$0xff] %vm511_vm3, %v496_v42  ;;  %v991_v49 = vpop.f32.mrb[14].mxu1 }
 0x102   : > { %527 = vst.msk [vmem:[#allocation2 + $0x78] sm:$0xff] %vm511_vm3, %v975_v43  ;;  %v435_v50 = vpop.f32.mrb[15].mxu0  ;;  %v935_v51 = vpack.c.bf16 %v609_v38, %v609_v38  ;;  %v917_v52 = vpack.c.bf16 %v591_v39, %v591_v39  ;;  %v610_v53 = vadd.f32 %v1113_v29, %v571_v47  ;;  %v592_v54 = vadd.f32 %v1113_v29, %v553_v48  ;;  %v499_v56 = vpop.f32.mrb[15].mxu1 }
 0x103   : > { %v569_v55 = vld [vmem:[#allocation2 + $0xc8] sm:$0xff]  ;;  %543 = vst.msk [vmem:[#allocation2 + $0xf8] sm:$0xff] %vm511_vm3, %v991_v49  ;;  %525 = vst.msk [vmem:[#allocation2 + $0x68] sm:$0xff] %vm511_vm3, %v435_v50  ;;  %v933_v57 = vpack.c.bf16 %v607_v45, %v607_v45  ;;  %v920_v58 = vpack.c.bf16 %v594_v46, %v594_v46 }
 0x104   : > { %754 = vst.msk [vmem:[%s1122_s25 + $0x28] sm:$0xf] %vm743_vm4, %v919_v44  ;;  %v608_v59 = vadd.f32 %v1113_v29, %v569_v55  ;;  %770 = vst.msk [vmem:[%s1122_s25 + $0x68] sm:$0xf] %vm743_vm4, %v935_v51  ;;  %v936_v60 = vpack.c.bf16 %v610_v53, %v610_v53  ;;  %v918_v61 = vpack.c.bf16 %v592_v54, %v592_v54 }
 0x105   : > { %541 = vst.msk [vmem:[#allocation2 + $0xe8] sm:$0xff] %vm511_vm3, %v499_v56 }
 0x106   : > { %752 = vst.msk [vmem:[%s1122_s25 + $0x20] sm:$0xf] %vm743_vm4, %v917_v52  ;;  %768 = vst.msk [vmem:[%s1122_s25 + $0x60] sm:$0xf] %vm743_vm4, %v933_v57  ;;  %v934_v62 = vpack.c.bf16 %v608_v59, %v608_v59 }
 0x107   : > { %755 = vst.msk [vmem:[%s1122_s25 + $0x2c] sm:$0xf] %vm743_vm4, %v920_v58  ;;  %771 = vst.msk [vmem:[%s1122_s25 + $0x6c] sm:$0xf] %vm743_vm4, %v936_v60  ;;  %v558_v63 = vld [vmem:[#allocation2 + $0x70] sm:$0xff] }
 0x108   : > { %753 = vst.msk [vmem:[%s1122_s25 + $0x24] sm:$0xf] %vm743_vm4, %v918_v61  ;;  %769 = vst.msk [vmem:[%s1122_s25 + $0x64] sm:$0xf] %vm743_vm4, %v934_v62  ;;  %v597_v0 = vadd.f32 %v1113_v29, %v558_v63  ;;  %v574_v1 = vld [vmem:[#allocation2 + $0xf0] sm:$0xff]  ;;  %v556_v2 = vld [vmem:[#allocation2 + $0x60] sm:$0xff] }
 0x109   : > { %v613_v3 = vadd.f32 %v1113_v29, %v574_v1  ;;  %v595_v4 = vadd.f32 %v1113_v29, %v556_v2  ;;  %v572_v5 = vld [vmem:[#allocation2 + $0xe0] sm:$0xff]  ;;  %v559_v6 = vld [vmem:[#allocation2 + $0x78] sm:$0xff] }
 0x10a   : > { %v923_v7 = vpack.c.bf16 %v597_v0, %v597_v0  ;;  %v611_v8 = vadd.f32 %v1113_v29, %v572_v5  ;;  %v598_v9 = vadd.f32 %v1113_v29, %v559_v6  ;;  %v575_v10 = vld [vmem:[#allocation2 + $0xf8] sm:$0xff]  ;;  %v557_v11 = vld [vmem:[#allocation2 + $0x68] sm:$0xff] }
 0x10b   : > { %v939_v12 = vpack.c.bf16 %v613_v3, %v613_v3  ;;  %v921_v13 = vpack.c.bf16 %v595_v4, %v595_v4  ;;  %v614_v14 = vadd.f32 %v1113_v29, %v575_v10  ;;  %v596_v15 = vadd.f32 %v1113_v29, %v557_v11 }
 0x10c   : > { %v573_v16 = vld [vmem:[#allocation2 + $0xe8] sm:$0xff]  ;;  %758 = vst.msk [vmem:[%s1122_s25 + $0x38] sm:$0xf] %vm743_vm4, %v923_v7  ;;  %v937_v17 = vpack.c.bf16 %v611_v8, %v611_v8  ;;  %v924_v18 = vpack.c.bf16 %v598_v9, %v598_v9 }
 0x10d   : > { %v612_v19 = vadd.f32 %v1113_v29, %v573_v16  ;;  %774 = vst.msk [vmem:[%s1122_s25 + $0x78] sm:$0xf] %vm743_vm4, %v939_v12  ;;  %756 = vst.msk [vmem:[%s1122_s25 + $0x30] sm:$0xf] %vm743_vm4, %v921_v13  ;;  %v940_v20 = vpack.c.bf16 %v614_v14, %v614_v14  ;;  %v922_v21 = vpack.c.bf16 %v596_v15, %v596_v15 }
 0x10e   : > { %772 = vst.msk [vmem:[%s1122_s25 + $0x70] sm:$0xf] %vm743_vm4, %v937_v17  ;;  %759 = vst.msk [vmem:[%s1122_s25 + $0x3c] sm:$0xf] %vm743_vm4, %v924_v18 }
 0x10f   : > { %v938_v22 = vpack.c.bf16 %v612_v19, %v612_v19  ;;  %775 = vst.msk [vmem:[%s1122_s25 + $0x7c] sm:$0xf] %vm743_vm4, %v940_v20  ;;  %757 = vst.msk [vmem:[%s1122_s25 + $0x34] sm:$0xf] %vm743_vm4, %v922_v21 }
 0x111   : > { %773 = vst.msk [vmem:[%s1122_s25 + $0x74] sm:$0xf] %vm743_vm4, %v938_v22 }
 0x112 PF: > { %s13_s12 = sadd.s32 1, %s1026_s12  }
 0x113   : > { %p10_p4 = scmp.ge.s32.totalorder %s13_s12, 4  }
 0x115   :  { %12 = sbr.rel (!%p10_p4) target bundleno = 1 (0x1), region = 62 }

// kernel: scunicorn_forward.39
= control target key start
LH: loop header
LB: loop body
LE: loop exit
PB: predicated region body
PF: predicated region fallthrough
CT: control target
= control target key end

     0   :  { %s1664_s18 = smov 0   ;;  %s1930_s0 = inlined_call_operand.vmem [shape: bf16[512,16], index: 0, kind: input, shape index: {}]   ;;  %s1931_s1 = inlined_call_operand.vmem [shape: bf16[512,16], index: 1, kind: input, shape index: {}]   ;;  %s1932_s2 = inlined_call_operand.vmem [shape: bf16[16,16], index: 2, kind: input, shape index: {}]   ;;  %s1933_s3 = inlined_call_operand.vmem [shape: bf16[16,16], index: 3, kind: input, shape index: {}]   ;;  %s1934_s4 = inlined_call_operand.vmem [shape: f32[1,16], index: 4, kind: input, shape index: {}]   ;;  %s1935_s5 = inlined_call_operand.vmem [shape: bf16[512,16], index: 5, kind: output, shape index: {}]  }
   0x1 LB: > { %s1338_s19 = sadd.s32 4294967295, %s1632_s18   ;;  %p1342_p0 = scmp.ge.s32.totalorder %s1632_s18, 1  ;;  %s1632_s18 = sphi %s1664_s18, %s15_s18  }
   0x2   : > { %p199_p1 = scmp.lt.s32.totalorder %s1632_s18, 3 }
   0x4   : > { %p200_p2 = pnand %p1342_p0, %p199_p1 }
   0x5   : > { %v1592_v0 = vld [vmem:[%s1932_s2] sm:$0xff] (!%p200_p2)   ;;  %s1343_s22 = sshll.u32 (!%p200_p2), %s1338_s19, 5  ;;  %vm371_vm0 = vcmask (!%p200_p2), 130048   ;;  %vm1237_vm1 = vcmask (!%p200_p2), 125952  }
   0x6   : > { %203 = sbr.rel (%p200_p2) target bundleno = 314 (0x13a), region = 40  ;;  %p233_p3 = scmp.lt.s32.totalorder (!%p200_p2), %s1343_s22, 63  ;;  %1516 = vmatprep.subr.bf16.mxu0 (!%p200_p2), %v1592_v0  ;;  %v1595_v1 = vld [vmem:[%s1933_s3] sm:$0xff] (!%p200_p2)  }
   0x7   : > { %1517 = vmatpush3.bf16.msra.mxu0 (!%p200_p2), %v1592_v0  ;;  %1550 = vmatprep.subr.bf16.mxu1 (!%p200_p2), %v1595_v1  ;;  %v1771_v58 = vld [vmem:[%s1934_s4] ss:$0 sm:$0xff] (!%p200_p2) }
   0x8   : > { %1551 = vmatpush3.bf16.msra.mxu1 (!%p200_p2), %v1595_v1 }
   0xd   : > { %s1937_s22 = smov (!%p233_p3, %s1343_s22), 63 }
   0xe   : > { %s1678_s25 = sshll.u32 %s1937_s22, 2 }
   0xf   : > { %s1684_s28 = scalar_lea.vmem %s1930_s0, %s1678_s25  ;;  %s1691_s6 = scalar_lea.vmem %s1931_s1, %s1678_s25 }
  0x10   : > { %v1593_v2 = vld [vmem:[%s1684_s28] sm:$0xff]   ;;  %v1594_v3 = vld [vmem:[%s1684_s28 + $0x8] sm:$0xff]   ;;  %v1598_v6 = vld [vmem:[%s1684_s28 + $0x10] sm:$0xff]   ;;  %s1782_s11 = scalar_lea.vmem %s1935_s5, %s1678_s25 }
  0x11   : > { %1518 = vmatprep.mubr.msk.bf16.mxu0 %vm371_vm0, %v1593_v2  ;;  %v1596_v4 = vld [vmem:[%s1691_s6] sm:$0xff]   ;;  %v1597_v5 = vld [vmem:[%s1691_s6 + $0x8] sm:$0xff]   ;;  %v1600_v7 = vld [vmem:[%s1691_s6 + $0x10] sm:$0xff]  }
  0x12   : > { %1519 = vmatmul.mubr.msk.bf16.vlgmr.msra.gmra.mrb[0].mxu0 %vm371_vm0, %v1594_v3  ;;  %1552 = vmatprep.mubr.msk.bf16.mxu1 %vm371_vm0, %v1596_v4  ;;  %v1599_v8 = vld [vmem:[%s1684_s28 + $0x18] sm:$0xff]   ;;  %v1602_v9 = vld [vmem:[%s1684_s28 + $0x20] sm:$0xff]   ;;  %v1603_v12 = vld [vmem:[%s1684_s28 + $0x28] sm:$0xff]  }
  0x13   : > { %1553 = vmatmul.mubr.msk.bf16.vlgmr.msra.gmra.mrb[0].mxu1 %vm371_vm0, %v1597_v5  ;;  %1522 = vmatprep.mubr.msk.bf16.mxu0 %vm371_vm0, %v1598_v6  ;;  %v1601_v10 = vld [vmem:[%s1691_s6 + $0x18] sm:$0xff]   ;;  %v1604_v11 = vld [vmem:[%s1691_s6 + $0x20] sm:$0xff]   ;;  %v1606_v13 = vld [vmem:[%s1684_s28 + $0x30] sm:$0xff]  }
  0x14   : > { %1556 = vmatprep.mubr.msk.bf16.mxu1 %vm371_vm0, %v1600_v7  ;;  %v1605_v14 = vld [vmem:[%s1691_s6 + $0x28] sm:$0xff]   ;;  %v1608_v15 = vld [vmem:[%s1691_s6 + $0x30] sm:$0xff]   ;;  %v1607_v16 = vld [vmem:[%s1684_s28 + $0x38] sm:$0xff]  }
  0x15   : > { %v1610_v17 = vld [vmem:[%s1684_s28 + $0x40] sm:$0xff]   ;;  %v1609_v18 = vld [vmem:[%s1691_s6 + $0x38] sm:$0xff]   ;;  %v1611_v20 = vld [vmem:[%s1684_s28 + $0x48] sm:$0xff]  }
  0x16   : > { %v1612_v19 = vld [vmem:[%s1691_s6 + $0x40] sm:$0xff]   ;;  %v1614_v21 = vld [vmem:[%s1684_s28 + $0x50] sm:$0xff]   ;;  %v1613_v22 = vld [vmem:[%s1691_s6 + $0x48] sm:$0xff]  }
  0x17   : > { %v1616_v23 = vld [vmem:[%s1691_s6 + $0x50] sm:$0xff]   ;;  %v1615_v24 = vld [vmem:[%s1684_s28 + $0x58] sm:$0xff]   ;;  %v1618_v25 = vld [vmem:[%s1684_s28 + $0x60] sm:$0xff]  }
  0x18   : > { %v1617_v26 = vld [vmem:[%s1691_s6 + $0x58] sm:$0xff]   ;;  %v1620_v27 = vld [vmem:[%s1691_s6 + $0x60] sm:$0xff]   ;;  %v1619_v28 = vld [vmem:[%s1684_s28 + $0x68] sm:$0xff]  }
  0x19   : > { %v1622_v29 = vld [vmem:[%s1684_s28 + $0x70] sm:$0xff]   ;;  %v1621_v30 = vld [vmem:[%s1691_s6 + $0x68] sm:$0xff]   ;;  %v1623_v32 = vld [vmem:[%s1684_s28 + $0x78] sm:$0xff]  }
  0x1a   : > { %1523 = vmatmul.mubr.msk.bf16.gmra.mrb[4].mxu0 %vm371_vm0, %v1599_v8  ;;  %v1624_v31 = vld [vmem:[%s1691_s6 + $0x70] sm:$0xff]   ;;  %v1625_v33 = vld [vmem:[%s1691_s6 + $0x78] sm:$0xff]  }
  0x1b   : > { %1526 = vmatprep.mubr.msk.bf16.mxu0 %vm371_vm0, %v1602_v9  ;;  %1557 = vmatmul.mubr.msk.bf16.gmra.mrb[4].mxu1 %vm371_vm0, %v1601_v10 }
  0x1c   : > { %1560 = vmatprep.mubr.msk.bf16.mxu1 %vm371_vm0, %v1604_v11 }
  0x22   : > { %1527 = vmatmul.mubr.msk.bf16.gmra.mrb[8].mxu0 %vm371_vm0, %v1603_v12 }
  0x23   : > { %1530 = vmatprep.mubr.msk.bf16.mxu0 %vm371_vm0, %v1606_v13  ;;  %1561 = vmatmul.mubr.msk.bf16.gmra.mrb[8].mxu1 %vm371_vm0, %v1605_v14 }
  0x24   : > { %1564 = vmatprep.mubr.msk.bf16.mxu1 %vm371_vm0, %v1608_v15 }
  0x2a   : > { %1531 = vmatmul.mubr.msk.bf16.gmra.mrb[12].mxu0 %vm371_vm0, %v1607_v16 }
  0x2b   : > { %1534 = vmatprep.mubr.msk.bf16.mxu0 %vm371_vm0, %v1610_v17  ;;  %1565 = vmatmul.mubr.msk.bf16.gmra.mrb[12].mxu1 %vm371_vm0, %v1609_v18 }
  0x2c   : > { %1568 = vmatprep.mubr.msk.bf16.mxu1 %vm371_vm0, %v1612_v19 }
  0x32   : > { %1535 = vmatmul.mubr.msk.bf16.gmra.mrb[16].mxu0 %vm371_vm0, %v1611_v20 }
  0x33   : > { %1538 = vmatprep.mubr.msk.bf16.mxu0 %vm371_vm0, %v1614_v21  ;;  %1569 = vmatmul.mubr.msk.bf16.gmra.mrb[16].mxu1 %vm371_vm0, %v1613_v22 }
  0x34   : > { %1572 = vmatprep.mubr.msk.bf16.mxu1 %vm371_vm0, %v1616_v23 }
  0x3a   : > { %1539 = vmatmul.mubr.msk.bf16.gmra.mrb[20].mxu0 %vm371_vm0, %v1615_v24 }
  0x3b   : > { %1542 = vmatprep.mubr.msk.bf16.mxu0 %vm371_vm0, %v1618_v25  ;;  %1573 = vmatmul.mubr.msk.bf16.gmra.mrb[20].mxu1 %vm371_vm0, %v1617_v26 }
  0x3c   : > { %1576 = vmatprep.mubr.msk.bf16.mxu1 %vm371_vm0, %v1620_v27 }
  0x42   : > { %1543 = vmatmul.mubr.msk.bf16.gmra.mrb[24].mxu0 %vm371_vm0, %v1619_v28 }
  0x43   : > { %1546 = vmatprep.mubr.msk.bf16.mxu0 %vm371_vm0, %v1622_v29  ;;  %1577 = vmatmul.mubr.msk.bf16.gmra.mrb[24].mxu1 %vm371_vm0, %v1621_v30 }
  0x44   : > { %1580 = vmatprep.mubr.msk.bf16.mxu1 %vm371_vm0, %v1624_v31 }
  0x4a   : > { %1547 = vmatmul.mubr.msk.bf16.gmra.mrb[28].mxu0 %vm371_vm0, %v1623_v32 }
  0x4b   : > { %1581 = vmatmul.mubr.msk.bf16.gmra.mrb[28].mxu1 %vm371_vm0, %v1625_v33 }
  0xe5   : > { %v1520_v34 = vpop.f32.mrb[0].mxu0 }
  0xe6   : > { %583 = vst.msk [vmem:[#allocation2 + $0x10] sm:$0xff] %vm371_vm0, %v1520_v34  ;;  %v454_v35 = vpop.f32.mrb[1].mxu0  ;;  %v1554_v37 = vpop.f32.mrb[0].mxu1 }
  0xe7   : > { %581 = vst.msk [vmem:[#allocation2] sm:$0xff] %vm371_vm0, %v454_v35  ;;  %v1521_v36 = vpop.f32.mrb[2].mxu0  ;;  %v847_v39 = vpop.f32.mrb[1].mxu1 }
  0xe8   : > { %584 = vst.msk [vmem:[#allocation2 + $0x18] sm:$0xff] %vm371_vm0, %v1521_v36  ;;  %v457_v38 = vpop.f32.mrb[3].mxu0  ;;  %v1555_v40 = vpop.f32.mrb[2].mxu1 }
  0xe9   : > { %582 = vst.msk [vmem:[#allocation2 + $0x8] sm:$0xff] %vm371_vm0, %v457_v38  ;;  %v850_v41 = vpop.f32.mrb[3].mxu1 }
  0xed   : > { %v615_v42 = vld [vmem:[#allocation2 + $0x10] sm:$0xff]  ;;  %v1524_v43 = vpop.f32.mrb[4].mxu0 }
  0xee   : > { %v976_v44 = vadd.f32 %v1554_v37, %v615_v42  ;;  %v613_v45 = vld [vmem:[#allocation2] sm:$0xff]  ;;  %587 = vst.msk [vmem:[#allocation2 + $0x30] sm:$0xff] %vm371_vm0, %v1524_v43  ;;  %v470_v46 = vpop.f32.mrb[5].mxu0  ;;  %v1558_v50 = vpop.f32.mrb[4].mxu1 }
  0xef   : > { %v974_v47 = vadd.f32 %v847_v39, %v613_v45  ;;  %v616_v48 = vld [vmem:[#allocation2 + $0x18] sm:$0xff]  ;;  %585 = vst.msk [vmem:[#allocation2 + $0x20] sm:$0xff] %vm371_vm0, %v470_v46  ;;  %v1525_v49 = vpop.f32.mrb[6].mxu0  ;;  %v863_v54 = vpop.f32.mrb[5].mxu1 }
  0xf0   : > { %1008 = vst.msk [vmem:[#allocation2 + $0x10] sm:$0xff] %vm371_vm0, %v976_v44  ;;  %v977_v51 = vadd.f32 %v1555_v40, %v616_v48  ;;  %v614_v52 = vld [vmem:[#allocation2 + $0x8] sm:$0xff]  ;;  %588 = vst.msk [vmem:[#allocation2 + $0x38] sm:$0xff] %vm371_vm0, %v1525_v49  ;;  %v473_v53 = vpop.f32.mrb[7].mxu0  ;;  %v1559_v56 = vpop.f32.mrb[6].mxu1 }
  0xf1   : > { %1006 = vst.msk [vmem:[#allocation2] sm:$0xff] %vm371_vm0, %v974_v47  ;;  %v975_v55 = vadd.f32 %v850_v41, %v614_v52  ;;  %586 = vst.msk [vmem:[#allocation2 + $0x28] sm:$0xff] %vm371_vm0, %v473_v53  ;;  %v866_v57 = vpop.f32.mrb[7].mxu1 }
  0xf2   : > { %1009 = vst.msk [vmem:[#allocation2 + $0x18] sm:$0xff] %vm371_vm0, %v977_v51 }
  0xf3   : > { %1007 = vst.msk [vmem:[#allocation2 + $0x8] sm:$0xff] %vm371_vm0, %v975_v55 }
  0xf5   : > { %v619_v59 = vld [vmem:[#allocation2 + $0x30] sm:$0xff]  ;;  %v1528_v60 = vpop.f32.mrb[8].mxu0 }
  0xf6   : > { %v980_v61 = vadd.f32 %v1558_v50, %v619_v59  ;;  %v617_v62 = vld [vmem:[#allocation2 + $0x20] sm:$0xff]  ;;  %591 = vst.msk [vmem:[#allocation2 + $0x50] sm:$0xff] %vm371_vm0, %v1528_v60  ;;  %v486_v63 = vpop.f32.mrb[9].mxu0  ;;  %v1562_v4 = vpop.f32.mrb[8].mxu1 }
  0xf7   : > { %v1040_v0 = vld [vmem:[#allocation2 + $0x10] sm:$0xff]  ;;  %v978_v1 = vadd.f32 %v863_v54, %v617_v62  ;;  %v620_v2 = vld [vmem:[#allocation2 + $0x38] sm:$0xff]  ;;  %589 = vst.msk [vmem:[#allocation2 + $0x40] sm:$0xff] %vm371_vm0, %v486_v63  ;;  %v1529_v3 = vpop.f32.mrb[10].mxu0  ;;  %v879_v10 = vpop.f32.mrb[9].mxu1 }
  0xf8   : > { %v1079_v5 = vadd.f32 %v1771_v58, %v1040_v0  ;;  %v1038_v6 = vld [vmem:[#allocation2] sm:$0xff]  ;;  %1012 = vst.msk [vmem:[#allocation2 + $0x30] sm:$0xff] %vm371_vm0, %v980_v61  ;;  %v981_v7 = vadd.f32 %v1559_v56, %v620_v2  ;;  %v618_v8 = vld [vmem:[#allocation2 + $0x28] sm:$0xff]  ;;  %592 = vst.msk [vmem:[#allocation2 + $0x58] sm:$0xff] %vm371_vm0, %v1529_v3  ;;  %v489_v9 = vpop.f32.mrb[11].mxu0  ;;  %v1563_v14 = vpop.f32.mrb[10].mxu1 }
  0xf9   : > { %v1077_v11 = vadd.f32 %v1771_v58, %v1038_v6  ;;  %v1041_v12 = vld [vmem:[#allocation2 + $0x18] sm:$0xff]  ;;  %1010 = vst.msk [vmem:[#allocation2 + $0x20] sm:$0xff] %vm371_vm0, %v978_v1  ;;  %v979_v13 = vadd.f32 %v866_v57, %v618_v8  ;;  %590 = vst.msk [vmem:[#allocation2 + $0x48] sm:$0xff] %vm371_vm0, %v489_v9  ;;  %v882_v18 = vpop.f32.mrb[11].mxu1 }
  0xfa   : > { %v1452_v15 = vpack.c.bf16 %v1079_v5, %v1079_v5  ;;  %v1080_v16 = vadd.f32 %v1771_v58, %v1041_v12  ;;  %v1039_v17 = vld [vmem:[#allocation2 + $0x8] sm:$0xff]  ;;  %1013 = vst.msk [vmem:[#allocation2 + $0x38] sm:$0xff] %vm371_vm0, %v981_v7 }
  0xfb   : > { %v1450_v19 = vpack.c.bf16 %v1077_v11, %v1077_v11  ;;  %v1078_v20 = vadd.f32 %v1771_v58, %v1039_v17  ;;  %1011 = vst.msk [vmem:[#allocation2 + $0x28] sm:$0xff] %vm371_vm0, %v979_v13 }
  0xfc   : > { %1240 = vst.msk [vmem:[%s1782_s11 + $0x8] sm:$0xf] %vm1237_vm1, %v1452_v15  ;;  %v1453_v21 = vpack.c.bf16 %v1080_v16, %v1080_v16 }
  0xfd   : > { %1238 = vst.msk [vmem:[%s1782_s11] sm:$0xf] %vm1237_vm1, %v1450_v19  ;;  %v1451_v22 = vpack.c.bf16 %v1078_v20, %v1078_v20  ;;  %v623_v23 = vld [vmem:[#allocation2 + $0x50] sm:$0xff]  ;;  %v1532_v24 = vpop.f32.mrb[12].mxu0 }
  0xfe   : > { %1241 = vst.msk [vmem:[%s1782_s11 + $0xc] sm:$0xf] %vm1237_vm1, %v1453_v21  ;;  %v984_v25 = vadd.f32 %v1562_v4, %v623_v23  ;;  %v621_v26 = vld [vmem:[#allocation2 + $0x40] sm:$0xff]  ;;  %v502_v27 = vpop.f32.mrb[13].mxu0  ;;  %v1566_v32 = vpop.f32.mrb[12].mxu1 }
  0xff   : > { %595 = vst.msk [vmem:[#allocation2 + $0x70] sm:$0xff] %vm371_vm0, %v1532_v24  ;;  %v1044_v28 = vld [vmem:[#allocation2 + $0x30] sm:$0xff]  ;;  %v982_v29 = vadd.f32 %v879_v10, %v621_v26  ;;  %v624_v30 = vld [vmem:[#allocation2 + $0x58] sm:$0xff]  ;;  %593 = vst.msk [vmem:[#allocation2 + $0x60] sm:$0xff] %vm371_vm0, %v502_v27  ;;  %v1533_v31 = vpop.f32.mrb[14].mxu0  ;;  %v895_v38 = vpop.f32.mrb[13].mxu1 }
 0x100   : > { %1239 = vst.msk [vmem:[%s1782_s11 + $0x4] sm:$0xf] %vm1237_vm1, %v1451_v22  ;;  %v1083_v33 = vadd.f32 %v1771_v58, %v1044_v28  ;;  %v1042_v34 = vld [vmem:[#allocation2 + $0x20] sm:$0xff]  ;;  %v985_v35 = vadd.f32 %v1563_v14, %v624_v30  ;;  %v622_v36 = vld [vmem:[#allocation2 + $0x48] sm:$0xff]  ;;  %v505_v37 = vpop.f32.mrb[15].mxu0  ;;  %v1567_v42 = vpop.f32.mrb[14].mxu1 }
 0x101   : > { %1016 = vst.msk [vmem:[#allocation2 + $0x50] sm:$0xff] %vm371_vm0, %v984_v25  ;;  %596 = vst.msk [vmem:[#allocation2 + $0x78] sm:$0xff] %vm371_vm0, %v1533_v31  ;;  %v1081_v39 = vadd.f32 %v1771_v58, %v1042_v34  ;;  %v1045_v40 = vld [vmem:[#allocation2 + $0x38] sm:$0xff]  ;;  %v983_v41 = vadd.f32 %v882_v18, %v622_v36  ;;  %v898_v46 = vpop.f32.mrb[15].mxu1 }
 0x102   : > { %1014 = vst.msk [vmem:[#allocation2 + $0x40] sm:$0xff] %vm371_vm0, %v982_v29  ;;  %594 = vst.msk [vmem:[#allocation2 + $0x68] sm:$0xff] %vm371_vm0, %v505_v37  ;;  %v1456_v43 = vpack.c.bf16 %v1083_v33, %v1083_v33  ;;  %v1084_v44 = vadd.f32 %v1771_v58, %v1045_v40  ;;  %v1043_v45 = vld [vmem:[#allocation2 + $0x28] sm:$0xff] }
 0x103   : > { %1017 = vst.msk [vmem:[#allocation2 + $0x58] sm:$0xff] %vm371_vm0, %v985_v35  ;;  %v1454_v47 = vpack.c.bf16 %v1081_v39, %v1081_v39  ;;  %v1082_v48 = vadd.f32 %v1771_v58, %v1043_v45  ;;  %1015 = vst.msk [vmem:[#allocation2 + $0x48] sm:$0xff] %vm371_vm0, %v983_v41 }
 0x104   : > { %1244 = vst.msk [vmem:[%s1782_s11 + $0x18] sm:$0xf] %vm1237_vm1, %v1456_v43  ;;  %v1457_v49 = vpack.c.bf16 %v1084_v44, %v1084_v44 }
 0x105   : > { %1242 = vst.msk [vmem:[%s1782_s11 + $0x10] sm:$0xf] %vm1237_vm1, %v1454_v47  ;;  %v1455_v50 = vpack.c.bf16 %v1082_v48, %v1082_v48  ;;  %v1536_v52 = vpop.f32.mrb[16].mxu0 }
 0x106   : > { %v627_v51 = vld [vmem:[#allocation2 + $0x70] sm:$0xff]  ;;  %1245 = vst.msk [vmem:[%s1782_s11 + $0x1c] sm:$0xf] %vm1237_vm1, %v1457_v49  ;;  %v625_v54 = vld [vmem:[#allocation2 + $0x60] sm:$0xff]  ;;  %v518_v55 = vpop.f32.mrb[17].mxu0  ;;  %v1570_v61 = vpop.f32.mrb[16].mxu1 }
 0x107   : > { %v988_v53 = vadd.f32 %v1566_v32, %v627_v51  ;;  %599 = vst.msk [vmem:[#allocation2 + $0x90] sm:$0xff] %vm371_vm0, %v1536_v52  ;;  %v986_v57 = vadd.f32 %v895_v38, %v625_v54  ;;  %597 = vst.msk [vmem:[#allocation2 + $0x80] sm:$0xff] %vm371_vm0, %v518_v55  ;;  %v1537_v60 = vpop.f32.mrb[18].mxu0  ;;  %v911_v3 = vpop.f32.mrb[17].mxu1 }
 0x108   : > { %1243 = vst.msk [vmem:[%s1782_s11 + $0x14] sm:$0xf] %vm1237_vm1, %v1455_v50  ;;  %v1048_v56 = vld [vmem:[#allocation2 + $0x50] sm:$0xff]  ;;  %v628_v59 = vld [vmem:[#allocation2 + $0x78] sm:$0xff]  ;;  %v521_v2 = vpop.f32.mrb[19].mxu0  ;;  %v1571_v7 = vpop.f32.mrb[18].mxu1 }
 0x109   : > { %v1087_v62 = vadd.f32 %v1771_v58, %v1048_v56  ;;  %v1046_v63 = vld [vmem:[#allocation2 + $0x40] sm:$0xff]  ;;  %1020 = vst.msk [vmem:[#allocation2 + $0x70] sm:$0xff] %vm371_vm0, %v988_v53  ;;  %v989_v0 = vadd.f32 %v1567_v42, %v628_v59  ;;  %v626_v1 = vld [vmem:[#allocation2 + $0x68] sm:$0xff]  ;;  %600 = vst.msk [vmem:[#allocation2 + $0x98] sm:$0xff] %vm371_vm0, %v1537_v60  ;;  %v914_v11 = vpop.f32.mrb[19].mxu1 }
 0x10a   : > { %v1085_v4 = vadd.f32 %v1771_v58, %v1046_v63  ;;  %v1049_v5 = vld [vmem:[#allocation2 + $0x58] sm:$0xff]  ;;  %1018 = vst.msk [vmem:[#allocation2 + $0x60] sm:$0xff] %vm371_vm0, %v986_v57  ;;  %v987_v6 = vadd.f32 %v898_v46, %v626_v1  ;;  %598 = vst.msk [vmem:[#allocation2 + $0x88] sm:$0xff] %vm371_vm0, %v521_v2  ;;  %v1047_v10 = vld [vmem:[#allocation2 + $0x48] sm:$0xff] }
 0x10b   : > { %v1460_v8 = vpack.c.bf16 %v1087_v62, %v1087_v62  ;;  %v1088_v9 = vadd.f32 %v1771_v58, %v1049_v5  ;;  %1021 = vst.msk [vmem:[#allocation2 + $0x78] sm:$0xff] %vm371_vm0, %v989_v0  ;;  %v1086_v13 = vadd.f32 %v1771_v58, %v1047_v10 }
 0x10c   : > { %v1458_v12 = vpack.c.bf16 %v1085_v4, %v1085_v4  ;;  %1019 = vst.msk [vmem:[#allocation2 + $0x68] sm:$0xff] %vm371_vm0, %v987_v6 }
 0x10d   : > { %1248 = vst.msk [vmem:[%s1782_s11 + $0x28] sm:$0xf] %vm1237_vm1, %v1460_v8  ;;  %v1461_v14 = vpack.c.bf16 %v1088_v9, %v1088_v9  ;;  %v1459_v15 = vpack.c.bf16 %v1086_v13, %v1086_v13  ;;  %v1540_v17 = vpop.f32.mrb[20].mxu0 }
 0x10e   : > { %1246 = vst.msk [vmem:[%s1782_s11 + $0x20] sm:$0xf] %vm1237_vm1, %v1458_v12  ;;  %v631_v16 = vld [vmem:[#allocation2 + $0x90] sm:$0xff]  ;;  %v629_v19 = vld [vmem:[#allocation2 + $0x80] sm:$0xff]  ;;  %v534_v20 = vpop.f32.mrb[21].mxu0  ;;  %v1574_v25 = vpop.f32.mrb[20].mxu1 }
 0x10f   : > { %1249 = vst.msk [vmem:[%s1782_s11 + $0x2c] sm:$0xf] %vm1237_vm1, %v1461_v14  ;;  %v992_v18 = vadd.f32 %v1570_v61, %v631_v16  ;;  %1247 = vst.msk [vmem:[%s1782_s11 + $0x24] sm:$0xf] %vm1237_vm1, %v1459_v15  ;;  %v990_v22 = vadd.f32 %v911_v3, %v629_v19  ;;  %v1541_v24 = vpop.f32.mrb[22].mxu0  ;;  %v927_v31 = vpop.f32.mrb[21].mxu1 }
 0x110   : > { %603 = vst.msk [vmem:[#allocation2 + $0xb0] sm:$0xff] %vm371_vm0, %v1540_v17  ;;  %v1052_v21 = vld [vmem:[#allocation2 + $0x70] sm:$0xff]  ;;  %v632_v23 = vld [vmem:[#allocation2 + $0x98] sm:$0xff]  ;;  %601 = vst.msk [vmem:[#allocation2 + $0xa0] sm:$0xff] %vm371_vm0, %v534_v20  ;;  %v537_v30 = vpop.f32.mrb[23].mxu0  ;;  %v1575_v35 = vpop.f32.mrb[22].mxu1 }
 0x111   : > { %v1091_v26 = vadd.f32 %v1771_v58, %v1052_v21  ;;  %v1050_v27 = vld [vmem:[#allocation2 + $0x60] sm:$0xff]  ;;  %1024 = vst.msk [vmem:[#allocation2 + $0x90] sm:$0xff] %vm371_vm0, %v992_v18  ;;  %v993_v28 = vadd.f32 %v1571_v7, %v632_v23  ;;  %v630_v29 = vld [vmem:[#allocation2 + $0x88] sm:$0xff]  ;;  %604 = vst.msk [vmem:[#allocation2 + $0xb8] sm:$0xff] %vm371_vm0, %v1541_v24  ;;  %v930_v39 = vpop.f32.mrb[23].mxu1 }
 0x112   : > { %v1089_v32 = vadd.f32 %v1771_v58, %v1050_v27  ;;  %v1053_v33 = vld [vmem:[#allocation2 + $0x78] sm:$0xff]  ;;  %1022 = vst.msk [vmem:[#allocation2 + $0x80] sm:$0xff] %vm371_vm0, %v990_v22  ;;  %v991_v34 = vadd.f32 %v914_v11, %v630_v29  ;;  %602 = vst.msk [vmem:[#allocation2 + $0xa8] sm:$0xff] %vm371_vm0, %v537_v30 }
 0x113   : > { %v1464_v36 = vpack.c.bf16 %v1091_v26, %v1091_v26  ;;  %v1092_v37 = vadd.f32 %v1771_v58, %v1053_v33  ;;  %v1051_v38 = vld [vmem:[#allocation2 + $0x68] sm:$0xff]  ;;  %1025 = vst.msk [vmem:[#allocation2 + $0x98] sm:$0xff] %vm371_vm0, %v993_v28 }
 0x114   : > { %v1462_v40 = vpack.c.bf16 %v1089_v32, %v1089_v32  ;;  %v1090_v41 = vadd.f32 %v1771_v58, %v1051_v38  ;;  %1023 = vst.msk [vmem:[#allocation2 + $0x88] sm:$0xff] %vm371_vm0, %v991_v34 }
 0x115   : > { %1252 = vst.msk [vmem:[%s1782_s11 + $0x38] sm:$0xf] %vm1237_vm1, %v1464_v36  ;;  %v1465_v42 = vpack.c.bf16 %v1092_v37, %v1092_v37  ;;  %v1544_v45 = vpop.f32.mrb[24].mxu0 }
 0x116   : > { %1250 = vst.msk [vmem:[%s1782_s11 + $0x30] sm:$0xf] %vm1237_vm1, %v1462_v40  ;;  %v1463_v43 = vpack.c.bf16 %v1090_v41, %v1090_v41  ;;  %v550_v48 = vpop.f32.mrb[25].mxu0  ;;  %v1578_v53 = vpop.f32.mrb[24].mxu1 }
 0x117   : > { %v635_v44 = vld [vmem:[#allocation2 + $0xb0] sm:$0xff]  ;;  %1253 = vst.msk [vmem:[%s1782_s11 + $0x3c] sm:$0xf] %vm1237_vm1, %v1465_v42  ;;  %v633_v47 = vld [vmem:[#allocation2 + $0xa0] sm:$0xff]  ;;  %v1545_v52 = vpop.f32.mrb[26].mxu0  ;;  %v943_v60 = vpop.f32.mrb[25].mxu1 }
 0x118   : > { %v996_v46 = vadd.f32 %v1574_v25, %v635_v44  ;;  %607 = vst.msk [vmem:[#allocation2 + $0xd0] sm:$0xff] %vm371_vm0, %v1544_v45  ;;  %v1056_v49 = vld [vmem:[#allocation2 + $0x90] sm:$0xff]  ;;  %v994_v50 = vadd.f32 %v927_v31, %v633_v47  ;;  %v636_v51 = vld [vmem:[#allocation2 + $0xb8] sm:$0xff]  ;;  %605 = vst.msk [vmem:[#allocation2 + $0xc0] sm:$0xff] %vm371_vm0, %v550_v48  ;;  %v553_v59 = vpop.f32.mrb[27].mxu0  ;;  %v1579_v0 = vpop.f32.mrb[26].mxu1 }
 0x119   : > { %1251 = vst.msk [vmem:[%s1782_s11 + $0x34] sm:$0xf] %vm1237_vm1, %v1463_v43  ;;  %v1095_v54 = vadd.f32 %v1771_v58, %v1056_v49  ;;  %v1054_v55 = vld [vmem:[#allocation2 + $0x80] sm:$0xff]  ;;  %v997_v56 = vadd.f32 %v1575_v35, %v636_v51  ;;  %v634_v57 = vld [vmem:[#allocation2 + $0xa8] sm:$0xff]  ;;  %v946_v4 = vpop.f32.mrb[27].mxu1 }
 0x11a   : > { %1028 = vst.msk [vmem:[#allocation2 + $0xb0] sm:$0xff] %vm371_vm0, %v996_v46  ;;  %608 = vst.msk [vmem:[#allocation2 + $0xd8] sm:$0xff] %vm371_vm0, %v1545_v52  ;;  %v1093_v61 = vadd.f32 %v1771_v58, %v1054_v55  ;;  %v1057_v62 = vld [vmem:[#allocation2 + $0x98] sm:$0xff]  ;;  %v995_v63 = vadd.f32 %v930_v39, %v634_v57 }
 0x11b   : > { %1026 = vst.msk [vmem:[#allocation2 + $0xa0] sm:$0xff] %vm371_vm0, %v994_v50  ;;  %606 = vst.msk [vmem:[#allocation2 + $0xc8] sm:$0xff] %vm371_vm0, %v553_v59  ;;  %v1468_v1 = vpack.c.bf16 %v1095_v54, %v1095_v54  ;;  %v1096_v2 = vadd.f32 %v1771_v58, %v1057_v62  ;;  %v1055_v3 = vld [vmem:[#allocation2 + $0x88] sm:$0xff] }
 0x11c   : > { %1029 = vst.msk [vmem:[#allocation2 + $0xb8] sm:$0xff] %vm371_vm0, %v997_v56  ;;  %v1466_v5 = vpack.c.bf16 %v1093_v61, %v1093_v61  ;;  %v1094_v6 = vadd.f32 %v1771_v58, %v1055_v3  ;;  %1027 = vst.msk [vmem:[#allocation2 + $0xa8] sm:$0xff] %vm371_vm0, %v995_v63 }
 0x11d   : > { %1256 = vst.msk [vmem:[%s1782_s11 + $0x48] sm:$0xf] %vm1237_vm1, %v1468_v1  ;;  %v1469_v7 = vpack.c.bf16 %v1096_v2, %v1096_v2  ;;  %v1548_v10 = vpop.f32.mrb[28].mxu0 }
 0x11e   : > { %1254 = vst.msk [vmem:[%s1782_s11 + $0x40] sm:$0xf] %vm1237_vm1, %v1466_v5  ;;  %v1467_v8 = vpack.c.bf16 %v1094_v6, %v1094_v6  ;;  %v566_v13 = vpop.f32.mrb[29].mxu0  ;;  %v1582_v18 = vpop.f32.mrb[28].mxu1 }
 0x11f   : > { %v639_v9 = vld [vmem:[#allocation2 + $0xd0] sm:$0xff]  ;;  %1257 = vst.msk [vmem:[%s1782_s11 + $0x4c] sm:$0xf] %vm1237_vm1, %v1469_v7  ;;  %v637_v12 = vld [vmem:[#allocation2 + $0xc0] sm:$0xff]  ;;  %v1549_v17 = vpop.f32.mrb[30].mxu0  ;;  %v959_v24 = vpop.f32.mrb[29].mxu1 }
 0x120   : > { %v1000_v11 = vadd.f32 %v1578_v53, %v639_v9  ;;  %611 = vst.msk [vmem:[#allocation2 + $0xf0] sm:$0xff] %vm371_vm0, %v1548_v10  ;;  %v998_v15 = vadd.f32 %v943_v60, %v637_v12  ;;  %609 = vst.msk [vmem:[#allocation2 + $0xe0] sm:$0xff] %vm371_vm0, %v566_v13  ;;  %v569_v23 = vpop.f32.mrb[31].mxu0  ;;  %v1583_v28 = vpop.f32.mrb[30].mxu1 }
 0x121   : > { %1255 = vst.msk [vmem:[%s1782_s11 + $0x44] sm:$0xf] %vm1237_vm1, %v1467_v8  ;;  %v1060_v14 = vld [vmem:[#allocation2 + $0xb0] sm:$0xff]  ;;  %v640_v16 = vld [vmem:[#allocation2 + $0xd8] sm:$0xff]  ;;  %v962_v32 = vpop.f32.mrb[31].mxu1 }
 0x122   : > { %v1099_v19 = vadd.f32 %v1771_v58, %v1060_v14  ;;  %v1058_v20 = vld [vmem:[#allocation2 + $0xa0] sm:$0xff]  ;;  %1032 = vst.msk [vmem:[#allocation2 + $0xd0] sm:$0xff] %vm371_vm0, %v1000_v11  ;;  %v1001_v21 = vadd.f32 %v1579_v0, %v640_v16  ;;  %v638_v22 = vld [vmem:[#allocation2 + $0xc8] sm:$0xff]  ;;  %612 = vst.msk [vmem:[#allocation2 + $0xf8] sm:$0xff] %vm371_vm0, %v1549_v17 }
 0x123   : > { %v1097_v25 = vadd.f32 %v1771_v58, %v1058_v20  ;;  %v1061_v26 = vld [vmem:[#allocation2 + $0xb8] sm:$0xff]  ;;  %1030 = vst.msk [vmem:[#allocation2 + $0xc0] sm:$0xff] %vm371_vm0, %v998_v15  ;;  %v999_v27 = vadd.f32 %v946_v4, %v638_v22  ;;  %610 = vst.msk [vmem:[#allocation2 + $0xe8] sm:$0xff] %vm371_vm0, %v569_v23  ;;  %v1059_v31 = vld [vmem:[#allocation2 + $0xa8] sm:$0xff] }
 0x124   : > { %v1472_v29 = vpack.c.bf16 %v1099_v19, %v1099_v19  ;;  %v1100_v30 = vadd.f32 %v1771_v58, %v1061_v26  ;;  %1033 = vst.msk [vmem:[#allocation2 + $0xd8] sm:$0xff] %vm371_vm0, %v1001_v21  ;;  %v1098_v34 = vadd.f32 %v1771_v58, %v1059_v31 }
 0x125   : > { %v1470_v33 = vpack.c.bf16 %v1097_v25, %v1097_v25  ;;  %1031 = vst.msk [vmem:[#allocation2 + $0xc8] sm:$0xff] %vm371_vm0, %v999_v27 }
 0x126   : > { %1260 = vst.msk [vmem:[%s1782_s11 + $0x58] sm:$0xf] %vm1237_vm1, %v1472_v29  ;;  %v1473_v35 = vpack.c.bf16 %v1100_v30, %v1100_v30  ;;  %v1471_v36 = vpack.c.bf16 %v1098_v34, %v1098_v34 }
 0x127   : > { %1258 = vst.msk [vmem:[%s1782_s11 + $0x50] sm:$0xf] %vm1237_vm1, %v1470_v33  ;;  %v643_v37 = vld [vmem:[#allocation2 + $0xf0] sm:$0xff]  ;;  %v641_v39 = vld [vmem:[#allocation2 + $0xe0] sm:$0xff] }
 0x128   : > { %1261 = vst.msk [vmem:[%s1782_s11 + $0x5c] sm:$0xf] %vm1237_vm1, %v1473_v35  ;;  %v1004_v38 = vadd.f32 %v1582_v18, %v643_v37  ;;  %1259 = vst.msk [vmem:[%s1782_s11 + $0x54] sm:$0xf] %vm1237_vm1, %v1471_v36  ;;  %v1002_v41 = vadd.f32 %v959_v24, %v641_v39 }
 0x129   : > { %v1064_v40 = vld [vmem:[#allocation2 + $0xd0] sm:$0xff]  ;;  %v644_v42 = vld [vmem:[#allocation2 + $0xf8] sm:$0xff] }
 0x12a   : > { %v1103_v43 = vadd.f32 %v1771_v58, %v1064_v40  ;;  %v1062_v44 = vld [vmem:[#allocation2 + $0xc0] sm:$0xff]  ;;  %1036 = vst.msk [vmem:[#allocation2 + $0xf0] sm:$0xff] %vm371_vm0, %v1004_v38  ;;  %v1005_v45 = vadd.f32 %v1583_v28, %v644_v42  ;;  %v642_v46 = vld [vmem:[#allocation2 + $0xe8] sm:$0xff]  ;;  %1034 = vst.msk [vmem:[#allocation2 + $0xe0] sm:$0xff] %vm371_vm0, %v1002_v41 }
 0x12b   : > { %v1101_v47 = vadd.f32 %v1771_v58, %v1062_v44  ;;  %v1065_v48 = vld [vmem:[#allocation2 + $0xd8] sm:$0xff]  ;;  %v1003_v49 = vadd.f32 %v962_v32, %v642_v46 }
 0x12c   : > { %v1476_v50 = vpack.c.bf16 %v1103_v43, %v1103_v43  ;;  %v1104_v51 = vadd.f32 %v1771_v58, %v1065_v48  ;;  %v1063_v52 = vld [vmem:[#allocation2 + $0xc8] sm:$0xff]  ;;  %1037 = vst.msk [vmem:[#allocation2 + $0xf8] sm:$0xff] %vm371_vm0, %v1005_v45 }
 0x12d   : > { %v1474_v53 = vpack.c.bf16 %v1101_v47, %v1101_v47  ;;  %v1102_v54 = vadd.f32 %v1771_v58, %v1063_v52  ;;  %1035 = vst.msk [vmem:[#allocation2 + $0xe8] sm:$0xff] %vm371_vm0, %v1003_v49 }
 0x12e   : > { %1264 = vst.msk [vmem:[%s1782_s11 + $0x68] sm:$0xf] %vm1237_vm1, %v1476_v50  ;;  %v1477_v55 = vpack.c.bf16 %v1104_v51, %v1104_v51 }
 0x12f   : > { %1262 = vst.msk [vmem:[%s1782_s11 + $0x60] sm:$0xf] %vm1237_vm1, %v1474_v53  ;;  %v1475_v56 = vpack.c.bf16 %v1102_v54, %v1102_v54 }
 0x130   : > { %1265 = vst.msk [vmem:[%s1782_s11 + $0x6c] sm:$0xf] %vm1237_vm1, %v1477_v55 }
 0x131   : > { %1263 = vst.msk [vmem:[%s1782_s11 + $0x64] sm:$0xf] %vm1237_vm1, %v1475_v56  ;;  %v1068_v57 = vld [vmem:[#allocation2 + $0xf0] sm:$0xff]  ;;  %v1066_v60 = vld [vmem:[#allocation2 + $0xe0] sm:$0xff] }
 0x132   : > { %v1107_v59 = vadd.f32 %v1771_v58, %v1068_v57  ;;  %v1105_v61 = vadd.f32 %v1771_v58, %v1066_v60 }
 0x133   : > { %v1069_v62 = vld [vmem:[#allocation2 + $0xf8] sm:$0xff] }
 0x134   : > { %v1480_v63 = vpack.c.bf16 %v1107_v59, %v1107_v59  ;;  %v1108_v0 = vadd.f32 %v1771_v58, %v1069_v62  ;;  %v1067_v1 = vld [vmem:[#allocation2 + $0xe8] sm:$0xff]  ;;  %v1478_v2 = vpack.c.bf16 %v1105_v61, %v1105_v61 }
 0x135   : > { %v1106_v3 = vadd.f32 %v1771_v58, %v1067_v1 }
 0x136   : > { %1268 = vst.msk [vmem:[%s1782_s11 + $0x78] sm:$0xf] %vm1237_vm1, %v1480_v63  ;;  %v1481_v4 = vpack.c.bf16 %v1108_v0, %v1108_v0  ;;  %1266 = vst.msk [vmem:[%s1782_s11 + $0x70] sm:$0xf] %vm1237_vm1, %v1478_v2 }
 0x137   : > { %v1479_v5 = vpack.c.bf16 %v1106_v3, %v1106_v3 }
 0x138   : > { %1269 = vst.msk [vmem:[%s1782_s11 + $0x7c] sm:$0xf] %vm1237_vm1, %v1481_v4 }
 0x139   : > { %1267 = vst.msk [vmem:[%s1782_s11 + $0x74] sm:$0xf] %vm1237_vm1, %v1479_v5 }
 0x13a PF: > { %s15_s18 = sadd.s32 1, %s1632_s18  }
 0x13b   : > { %p12_p4 = scmp.ge.s32.totalorder %s15_s18, 4  }
 0x13d   :  { %14 = sbr.rel (!%p12_p4) target bundleno = 1 (0x1), region = 73 }

// kernel: scunicorn_forward.41
= control target key start
LH: loop header
LB: loop body
LE: loop exit
PB: predicated region body
PF: predicated region fallthrough
CT: control target
= control target key end

     0   :  { %s2292_s24 = smov 0   ;;  %s2631_s0 = inlined_call_operand.vmem [shape: bf16[512,16], index: 0, kind: input, shape index: {}]   ;;  %s2632_s1 = inlined_call_operand.vmem [shape: bf16[512,16], index: 1, kind: input, shape index: {}]   ;;  %s2633_s2 = inlined_call_operand.vmem [shape: bf16[512,16], index: 2, kind: input, shape index: {}]   ;;  %s2634_s3 = inlined_call_operand.vmem [shape: bf16[16,16], index: 3, kind: input, shape index: {}]   ;;  %s2635_s4 = inlined_call_operand.vmem [shape: bf16[16,16], index: 4, kind: input, shape index: {}]   ;;  %s2636_s5 = inlined_call_operand.vmem [shape: bf16[16,16], index: 5, kind: input, shape index: {}]   ;;  %s2637_s6 = inlined_call_operand.vmem [shape: f32[1,16], index: 6, kind: input, shape index: {}]   ;;  %s2638_s7 = inlined_call_operand.vmem [shape: bf16[512,16], index: 7, kind: output, shape index: {}]  }
   0x1 LB: > { %s1851_s25 = sadd.s32 4294967295, %s2250_s24   ;;  %p1855_p0 = scmp.ge.s32.totalorder %s2250_s24, 1  ;;  %s2250_s24 = sphi %s2292_s24, %s17_s24  }
   0x2   : > { %p260_p1 = scmp.lt.s32.totalorder %s2250_s24, 3 }
   0x4   : > { %p261_p2 = pnand %p1855_p0, %p260_p1 }
   0x5   : > { %v2193_v0 = vld [vmem:[%s2634_s3] sm:$0xff] (!%p261_p2)   ;;  %s1856_s28 = sshll.u32 (!%p261_p2), %s1851_s25, 5  ;;  %vm447_vm0 = vcmask (!%p261_p2), 130048   ;;  %vm1738_vm1 = vcmask (!%p261_p2), 125952  }
   0x6   : > { %264 = sbr.rel (%p261_p2) target bundleno = 348 (0x15c), region = 48  ;;  %p303_p3 = scmp.lt.s32.totalorder (!%p261_p2), %s1856_s28, 63  ;;  %2183 = vmatprep.subr.bf16.mxu1 (!%p261_p2), %v2193_v0  ;;  %v2195_v1 = vld [vmem:[%s2635_s4] sm:$0xff] (!%p261_p2)   ;;  %2081 = vmatprep.subr.bf16.mxu0 (!%p261_p2), %v2193_v0 }
   0x7   : > { %2184 = vmatpush3.bf16.msra.mxu1 (!%p261_p2), %v2193_v0  ;;  %2082 = vmatpush3.bf16.msra.mxu0 (!%p261_p2), %v2193_v0  ;;  %v2201_v2 = vld [vmem:[%s2636_s5] sm:$0xff] (!%p261_p2)  }
   0x8   : > { %2115 = vmatprep.subr.bf16.mxu1 (!%p261_p2), %v2195_v1  ;;  %2149 = vmatprep.subr.bf16.mxu0 (!%p261_p2), %v2201_v2 }
   0xd   : > { %s2640_s28 = smov (!%p303_p3, %s1856_s28), 63 }
   0xe   : > { %s2309_s10 = sshll.u32 %s2640_s28, 2 }
   0xf   : > { %s2315_s13 = scalar_lea.vmem %s2631_s0, %s2309_s10  ;;  %s2342_s16 = scalar_lea.vmem %s2632_s1, %s2309_s10 }
  0x10   : > { %v2194_v3 = vld [vmem:[%s2315_s13 + $0x40] sm:$0xff]   ;;  %v2196_v4 = vld [vmem:[%s2315_s13 + $0x48] sm:$0xff]   ;;  %v2199_v7 = vld [vmem:[%s2315_s13 + $0x50] sm:$0xff]   ;;  %s2350_s19 = scalar_lea.vmem %s2633_s2, %s2309_s10  ;;  %s2483_s25 = scalar_lea.vmem %s2638_s7, %s2309_s10 }
  0x11   : > { %2099 = vmatprep.mubr.msk.bf16.mxu1 %vm447_vm0, %v2194_v3  ;;  %v2197_v5 = vld [vmem:[%s2315_s13] sm:$0xff]   ;;  %v2198_v6 = vld [vmem:[%s2315_s13 + $0x8] sm:$0xff]   ;;  %v2202_v8 = vld [vmem:[%s2315_s13 + $0x10] sm:$0xff]  }
  0x12   : > { %2100 = vmatmul.mubr.msk.bf16.vlgmr.msra.gmra.mrb[0].mxu1 %vm447_vm0, %v2196_v4  ;;  %2083 = vmatprep.mubr.msk.bf16.mxu0 %vm447_vm0, %v2197_v5  ;;  %v2200_v9 = vld [vmem:[%s2315_s13 + $0x58] sm:$0xff]   ;;  %v2204_v10 = vld [vmem:[%s2315_s13 + $0x60] sm:$0xff]   ;;  %v2205_v13 = vld [vmem:[%s2315_s13 + $0x68] sm:$0xff]  }
  0x13   : > { %2116 = vmatpush3.bf16.msra.mxu1 %v2195_v1  ;;  %2084 = vmatmul.mubr.msk.bf16.vlgmr.msra.gmra.mrb[0].mxu0 %vm447_vm0, %v2198_v6  ;;  %v2203_v11 = vld [vmem:[%s2315_s13 + $0x18] sm:$0xff]   ;;  %v2206_v12 = vld [vmem:[%s2315_s13 + $0x20] sm:$0xff]   ;;  %v2208_v14 = vld [vmem:[%s2315_s13 + $0x70] sm:$0xff]  }
  0x14   : > { %2103 = vmatprep.mubr.msk.bf16.mxu1 %vm447_vm0, %v2199_v7  ;;  %2150 = vmatpush3.bf16.msra.mxu0 %v2201_v2  ;;  %v2207_v15 = vld [vmem:[%s2315_s13 + $0x28] sm:$0xff]   ;;  %v2210_v16 = vld [vmem:[%s2315_s13 + $0x30] sm:$0xff]   ;;  %v2209_v17 = vld [vmem:[%s2315_s13 + $0x78] sm:$0xff]  }
  0x15   : > { %2087 = vmatprep.mubr.msk.bf16.mxu0 %vm447_vm0, %v2202_v8  ;;  %v2212_v18 = vld [vmem:[%s2342_s16] sm:$0xff]   ;;  %v2211_v19 = vld [vmem:[%s2315_s13 + $0x38] sm:$0xff]   ;;  %v2213_v21 = vld [vmem:[%s2342_s16 + $0x8] sm:$0xff]  }
  0x16   : > { %v2214_v20 = vld [vmem:[%s2350_s19] sm:$0xff]   ;;  %v2215_v22 = vld [vmem:[%s2342_s16 + $0x10] sm:$0xff]   ;;  %v2216_v23 = vld [vmem:[%s2350_s19 + $0x8] sm:$0xff]  }
  0x17   : > { %v2218_v24 = vld [vmem:[%s2350_s19 + $0x10] sm:$0xff]   ;;  %v2217_v25 = vld [vmem:[%s2342_s16 + $0x18] sm:$0xff]   ;;  %v2219_v26 = vld [vmem:[%s2342_s16 + $0x20] sm:$0xff]  }
  0x18   : > { %v2220_v27 = vld [vmem:[%s2350_s19 + $0x18] sm:$0xff]   ;;  %v2222_v28 = vld [vmem:[%s2350_s19 + $0x20] sm:$0xff]   ;;  %v2221_v29 = vld [vmem:[%s2342_s16 + $0x28] sm:$0xff]  }
  0x19   : > { %v2223_v30 = vld [vmem:[%s2342_s16 + $0x30] sm:$0xff]   ;;  %v2224_v31 = vld [vmem:[%s2350_s19 + $0x28] sm:$0xff]   ;;  %v2225_v33 = vld [vmem:[%s2342_s16 + $0x38] sm:$0xff]  }
  0x1a   : > { %2104 = vmatmul.mubr.msk.bf16.gmra.mrb[4].mxu1 %vm447_vm0, %v2200_v9  ;;  %v2226_v32 = vld [vmem:[%s2350_s19 + $0x30] sm:$0xff]   ;;  %v2227_v34 = vld [vmem:[%s2342_s16 + $0x40] sm:$0xff]   ;;  %v2228_v35 = vld [vmem:[%s2350_s19 + $0x38] sm:$0xff]  }
  0x1b   : > { %2107 = vmatprep.mubr.msk.bf16.mxu1 %vm447_vm0, %v2204_v10  ;;  %2088 = vmatmul.mubr.msk.bf16.gmra.mrb[4].mxu0 %vm447_vm0, %v2203_v11  ;;  %v2230_v36 = vld [vmem:[%s2350_s19 + $0x40] sm:$0xff]   ;;  %v2229_v37 = vld [vmem:[%s2342_s16 + $0x48] sm:$0xff]   ;;  %v2231_v38 = vld [vmem:[%s2342_s16 + $0x50] sm:$0xff]  }
  0x1c   : > { %2091 = vmatprep.mubr.msk.bf16.mxu0 %vm447_vm0, %v2206_v12  ;;  %v2232_v39 = vld [vmem:[%s2350_s19 + $0x48] sm:$0xff]   ;;  %v2234_v40 = vld [vmem:[%s2350_s19 + $0x50] sm:$0xff]   ;;  %v2233_v41 = vld [vmem:[%s2342_s16 + $0x58] sm:$0xff]  }
  0x1d   : > { %v2235_v42 = vld [vmem:[%s2342_s16 + $0x60] sm:$0xff]   ;;  %v2236_v43 = vld [vmem:[%s2350_s19 + $0x58] sm:$0xff]   ;;  %v2237_v45 = vld [vmem:[%s2342_s16 + $0x68] sm:$0xff]  }
  0x1e   : > { %v2238_v44 = vld [vmem:[%s2350_s19 + $0x60] sm:$0xff]   ;;  %v2239_v46 = vld [vmem:[%s2342_s16 + $0x70] sm:$0xff]   ;;  %v2240_v47 = vld [vmem:[%s2350_s19 + $0x68] sm:$0xff]  }
  0x1f   : > { %v2242_v48 = vld [vmem:[%s2350_s19 + $0x70] sm:$0xff]   ;;  %v2241_v49 = vld [vmem:[%s2342_s16 + $0x78] sm:$0xff]  }
  0x20   : > { %v2243_v50 = vld [vmem:[%s2350_s19 + $0x78] sm:$0xff]  }
  0x22   : > { %2108 = vmatmul.mubr.msk.bf16.gmra.mrb[8].mxu1 %vm447_vm0, %v2205_v13 }
  0x23   : > { %2111 = vmatprep.mubr.msk.bf16.mxu1 %vm447_vm0, %v2208_v14  ;;  %2092 = vmatmul.mubr.msk.bf16.gmra.mrb[8].mxu0 %vm447_vm0, %v2207_v15 }
  0x24   : > { %2095 = vmatprep.mubr.msk.bf16.mxu0 %vm447_vm0, %v2210_v16 }
  0x2a   : > { %2112 = vmatmul.mubr.msk.bf16.gmra.mrb[12].mxu1 %vm447_vm0, %v2209_v17 }
  0x2b   : > { %2117 = vmatprep.mubr.msk.bf16.mxu1 %vm447_vm0, %v2212_v18  ;;  %2096 = vmatmul.mubr.msk.bf16.gmra.mrb[12].mxu0 %vm447_vm0, %v2211_v19 }
  0x2c   : > { %2151 = vmatprep.mubr.msk.bf16.mxu0 %vm447_vm0, %v2214_v20 }
  0x32   : > { %2118 = vmatmul.mubr.msk.bf16.vlgmr.msra.gmra.mrb[16].mxu1 %vm447_vm0, %v2213_v21 }
  0x33   : > { %2121 = vmatprep.mubr.msk.bf16.mxu1 %vm447_vm0, %v2215_v22  ;;  %2152 = vmatmul.mubr.msk.bf16.vlgmr.msra.gmra.mrb[16].mxu0 %vm447_vm0, %v2216_v23 }
  0x34   : > { %2155 = vmatprep.mubr.msk.bf16.mxu0 %vm447_vm0, %v2218_v24 }
  0x3a   : > { %2122 = vmatmul.mubr.msk.bf16.gmra.mrb[20].mxu1 %vm447_vm0, %v2217_v25 }
  0x3b   : > { %2125 = vmatprep.mubr.msk.bf16.mxu1 %vm447_vm0, %v2219_v26  ;;  %2156 = vmatmul.mubr.msk.bf16.gmra.mrb[20].mxu0 %vm447_vm0, %v2220_v27 }
  0x3c   : > { %2159 = vmatprep.mubr.msk.bf16.mxu0 %vm447_vm0, %v2222_v28 }
  0x42   : > { %2126 = vmatmul.mubr.msk.bf16.gmra.mrb[24].mxu1 %vm447_vm0, %v2221_v29 }
  0x43   : > { %2129 = vmatprep.mubr.msk.bf16.mxu1 %vm447_vm0, %v2223_v30  ;;  %2160 = vmatmul.mubr.msk.bf16.gmra.mrb[24].mxu0 %vm447_vm0, %v2224_v31 }
  0x44   : > { %2163 = vmatprep.mubr.msk.bf16.mxu0 %vm447_vm0, %v2226_v32 }
  0x4a   : > { %2130 = vmatmul.mubr.msk.bf16.gmra.mrb[28].mxu1 %vm447_vm0, %v2225_v33 }
  0x4b   : > { %2133 = vmatprep.mubr.msk.bf16.mxu1 %vm447_vm0, %v2227_v34  ;;  %2164 = vmatmul.mubr.msk.bf16.gmra.mrb[28].mxu0 %vm447_vm0, %v2228_v35 }
  0x4c   : > { %2167 = vmatprep.mubr.msk.bf16.mxu0 %vm447_vm0, %v2230_v36 }
  0x52   : > { %2134 = vmatmul.mubr.msk.bf16.gmra.mrb[32].mxu1 %vm447_vm0, %v2229_v37 }
  0x53   : > { %2137 = vmatprep.mubr.msk.bf16.mxu1 %vm447_vm0, %v2231_v38  ;;  %2168 = vmatmul.mubr.msk.bf16.gmra.mrb[32].mxu0 %vm447_vm0, %v2232_v39 }
  0x54   : > { %2171 = vmatprep.mubr.msk.bf16.mxu0 %vm447_vm0, %v2234_v40 }
  0x5a   : > { %2138 = vmatmul.mubr.msk.bf16.gmra.mrb[36].mxu1 %vm447_vm0, %v2233_v41 }
  0x5b   : > { %2141 = vmatprep.mubr.msk.bf16.mxu1 %vm447_vm0, %v2235_v42  ;;  %2172 = vmatmul.mubr.msk.bf16.gmra.mrb[36].mxu0 %vm447_vm0, %v2236_v43 }
  0x5c   : > { %2175 = vmatprep.mubr.msk.bf16.mxu0 %vm447_vm0, %v2238_v44 }
  0x62   : > { %2142 = vmatmul.mubr.msk.bf16.gmra.mrb[40].mxu1 %vm447_vm0, %v2237_v45 }
  0x63   : > { %2145 = vmatprep.mubr.msk.bf16.mxu1 %vm447_vm0, %v2239_v46  ;;  %2176 = vmatmul.mubr.msk.bf16.gmra.mrb[40].mxu0 %vm447_vm0, %v2240_v47 }
  0x64   : > { %2179 = vmatprep.mubr.msk.bf16.mxu0 %vm447_vm0, %v2242_v48 }
  0x6a   : > { %2146 = vmatmul.mubr.msk.bf16.gmra.mrb[44].mxu1 %vm447_vm0, %v2241_v49 }
  0x6b   : > { %2180 = vmatmul.mubr.msk.bf16.gmra.mrb[44].mxu0 %vm447_vm0, %v2243_v50 }
  0xe5   : > { %v2101_v51 = vpop.f32.mrb[0].mxu1 }
  0xe6   : > { %675 = vst.msk [vmem:[#allocation2 + $0x90] sm:$0xff] %vm447_vm0, %v2101_v51  ;;  %v594_v52 = vpop.f32.mrb[1].mxu1  ;;  %v2085_v54 = vpop.f32.mrb[0].mxu0 }
  0xe7   : > { %673 = vst.msk [vmem:[#allocation2 + $0x80] sm:$0xff] %vm447_vm0, %v594_v52  ;;  %v2102_v53 = vpop.f32.mrb[2].mxu1  ;;  %659 = vst.msk [vmem:[#allocation2 + $0x10] sm:$0xff] %vm447_vm0, %v2085_v54  ;;  %v530_v56 = vpop.f32.mrb[1].mxu0 }
  0xe8   : > { %676 = vst.msk [vmem:[#allocation2 + $0x98] sm:$0xff] %vm447_vm0, %v2102_v53  ;;  %v597_v55 = vpop.f32.mrb[3].mxu1  ;;  %657 = vst.msk [vmem:[#allocation2] sm:$0xff] %vm447_vm0, %v530_v56  ;;  %v2086_v57 = vpop.f32.mrb[2].mxu0 }
  0xe9   : > { %674 = vst.msk [vmem:[#allocation2 + $0x88] sm:$0xff] %vm447_vm0, %v597_v55  ;;  %660 = vst.msk [vmem:[#allocation2 + $0x18] sm:$0xff] %vm447_vm0, %v2086_v57  ;;  %v533_v58 = vpop.f32.mrb[3].mxu0 }
  0xea   : > { %658 = vst.msk [vmem:[#allocation2 + $0x8] sm:$0xff] %vm447_vm0, %v533_v58 }
  0xed   : > { %v2105_v59 = vpop.f32.mrb[4].mxu1 }
  0xee   : > { %679 = vst.msk [vmem:[#allocation2 + $0xb0] sm:$0xff] %vm447_vm0, %v2105_v59  ;;  %v610_v60 = vpop.f32.mrb[5].mxu1  ;;  %v2089_v62 = vpop.f32.mrb[4].mxu0  ;;  %v691_v19 = vld [vmem:[#allocation2 + $0x10] sm:$0xff] }
  0xef   : > { %677 = vst.msk [vmem:[#allocation2 + $0xa0] sm:$0xff] %vm447_vm0, %v610_v60  ;;  %v2106_v61 = vpop.f32.mrb[6].mxu1  ;;  %663 = vst.msk [vmem:[#allocation2 + $0x30] sm:$0xff] %vm447_vm0, %v2089_v62  ;;  %v546_v0 = vpop.f32.mrb[5].mxu0  ;;  %v689_v22 = vld [vmem:[#allocation2] sm:$0xff] }
  0xf0   : > { %680 = vst.msk [vmem:[#allocation2 + $0xb8] sm:$0xff] %vm447_vm0, %v2106_v61  ;;  %v613_v63 = vpop.f32.mrb[7].mxu1  ;;  %661 = vst.msk [vmem:[#allocation2 + $0x20] sm:$0xff] %vm447_vm0, %v546_v0  ;;  %v2090_v1 = vpop.f32.mrb[6].mxu0  ;;  %v692_v25 = vld [vmem:[#allocation2 + $0x18] sm:$0xff] }
  0xf1   : > { %678 = vst.msk [vmem:[#allocation2 + $0xa8] sm:$0xff] %vm447_vm0, %v613_v63  ;;  %664 = vst.msk [vmem:[#allocation2 + $0x38] sm:$0xff] %vm447_vm0, %v2090_v1  ;;  %v549_v2 = vpop.f32.mrb[7].mxu0  ;;  %v690_v29 = vld [vmem:[#allocation2 + $0x8] sm:$0xff]  ;;  %v2472_v0 = vld [vmem:[%s2637_s6] ss:$0 sm:$0xff] }
  0xf2   : > { %662 = vst.msk [vmem:[#allocation2 + $0x28] sm:$0xff] %vm447_vm0, %v549_v2 }
  0xf5   : > { %v2109_v3 = vpop.f32.mrb[8].mxu1 }
  0xf6   : > { %683 = vst.msk [vmem:[#allocation2 + $0xd0] sm:$0xff] %vm447_vm0, %v2109_v3  ;;  %v626_v4 = vpop.f32.mrb[9].mxu1  ;;  %v2093_v6 = vpop.f32.mrb[8].mxu0  ;;  %v695_v35 = vld [vmem:[#allocation2 + $0x30] sm:$0xff] }
  0xf7   : > { %681 = vst.msk [vmem:[#allocation2 + $0xc0] sm:$0xff] %vm447_vm0, %v626_v4  ;;  %v2110_v5 = vpop.f32.mrb[10].mxu1  ;;  %667 = vst.msk [vmem:[#allocation2 + $0x50] sm:$0xff] %vm447_vm0, %v2093_v6  ;;  %v562_v8 = vpop.f32.mrb[9].mxu0  ;;  %v693_v38 = vld [vmem:[#allocation2 + $0x20] sm:$0xff] }
  0xf8   : > { %684 = vst.msk [vmem:[#allocation2 + $0xd8] sm:$0xff] %vm447_vm0, %v2110_v5  ;;  %v629_v7 = vpop.f32.mrb[11].mxu1  ;;  %665 = vst.msk [vmem:[#allocation2 + $0x40] sm:$0xff] %vm447_vm0, %v562_v8  ;;  %v2094_v9 = vpop.f32.mrb[10].mxu0  ;;  %v696_v42 = vld [vmem:[#allocation2 + $0x38] sm:$0xff] }
  0xf9   : > { %682 = vst.msk [vmem:[#allocation2 + $0xc8] sm:$0xff] %vm447_vm0, %v629_v7  ;;  %668 = vst.msk [vmem:[#allocation2 + $0x58] sm:$0xff] %vm447_vm0, %v2094_v9  ;;  %v565_v10 = vpop.f32.mrb[11].mxu0  ;;  %v694_v48 = vld [vmem:[#allocation2 + $0x28] sm:$0xff] }
  0xfa   : > { %666 = vst.msk [vmem:[#allocation2 + $0x48] sm:$0xff] %vm447_vm0, %v565_v10 }
  0xfd   : > { %v2113_v11 = vpop.f32.mrb[12].mxu1 }
  0xfe   : > { %687 = vst.msk [vmem:[#allocation2 + $0xf0] sm:$0xff] %vm447_vm0, %v2113_v11  ;;  %v642_v12 = vpop.f32.mrb[13].mxu1  ;;  %v2097_v14 = vpop.f32.mrb[12].mxu0  ;;  %v699_v59 = vld [vmem:[#allocation2 + $0x50] sm:$0xff] }
  0xff   : > { %685 = vst.msk [vmem:[#allocation2 + $0xe0] sm:$0xff] %vm447_vm0, %v642_v12  ;;  %v2114_v13 = vpop.f32.mrb[14].mxu1  ;;  %671 = vst.msk [vmem:[#allocation2 + $0x70] sm:$0xff] %vm447_vm0, %v2097_v14  ;;  %v578_v16 = vpop.f32.mrb[13].mxu0  ;;  %v697_v62 = vld [vmem:[#allocation2 + $0x40] sm:$0xff] }
 0x100   : > { %688 = vst.msk [vmem:[#allocation2 + $0xf8] sm:$0xff] %vm447_vm0, %v2114_v13  ;;  %v645_v15 = vpop.f32.mrb[15].mxu1  ;;  %669 = vst.msk [vmem:[#allocation2 + $0x60] sm:$0xff] %vm447_vm0, %v578_v16  ;;  %v2098_v17 = vpop.f32.mrb[14].mxu0  ;;  %v700_v3 = vld [vmem:[#allocation2 + $0x58] sm:$0xff] }
 0x101   : > { %686 = vst.msk [vmem:[#allocation2 + $0xe8] sm:$0xff] %vm447_vm0, %v645_v15  ;;  %672 = vst.msk [vmem:[#allocation2 + $0x78] sm:$0xff] %vm447_vm0, %v2098_v17  ;;  %v581_v18 = vpop.f32.mrb[15].mxu0  ;;  %v698_v9 = vld [vmem:[#allocation2 + $0x48] sm:$0xff] }
 0x102   : > { %670 = vst.msk [vmem:[#allocation2 + $0x68] sm:$0xff] %vm447_vm0, %v581_v18 }
 0x105   : > { %v2119_v20 = vpop.f32.mrb[16].mxu1 }
 0x106   : > { %v1052_v21 = vadd.f32 %v2119_v20, %v691_v19  ;;  %v923_v23 = vpop.f32.mrb[17].mxu1  ;;  %v2153_v27 = vpop.f32.mrb[16].mxu0 }
 0x107   : > { %v1050_v24 = vadd.f32 %v923_v23, %v689_v22  ;;  %v2120_v26 = vpop.f32.mrb[18].mxu1  ;;  %v1348_v31 = vpop.f32.mrb[17].mxu0 }
 0x108   : > { %1084 = vst.msk [vmem:[#allocation2 + $0x10] sm:$0xff] %vm447_vm0, %v1052_v21  ;;  %v1053_v28 = vadd.f32 %v2120_v26, %v692_v25  ;;  %v926_v30 = vpop.f32.mrb[19].mxu1  ;;  %v2154_v33 = vpop.f32.mrb[18].mxu0 }
 0x109   : > { %1082 = vst.msk [vmem:[#allocation2] sm:$0xff] %vm447_vm0, %v1050_v24  ;;  %v1051_v32 = vadd.f32 %v926_v30, %v690_v29  ;;  %v1351_v34 = vpop.f32.mrb[19].mxu0  ;;  %v703_v30 = vld [vmem:[#allocation2 + $0x70] sm:$0xff] }
 0x10a   : > { %1085 = vst.msk [vmem:[#allocation2 + $0x18] sm:$0xff] %vm447_vm0, %v1053_v28 }
 0x10b   : > { %1083 = vst.msk [vmem:[#allocation2 + $0x8] sm:$0xff] %vm447_vm0, %v1051_v32 }
 0x10d   : > { %v2123_v36 = vpop.f32.mrb[20].mxu1 }
 0x10e   : > { %v1056_v37 = vadd.f32 %v2123_v36, %v695_v35  ;;  %v939_v39 = vpop.f32.mrb[21].mxu1  ;;  %v2157_v44 = vpop.f32.mrb[20].mxu0 }
 0x10f   : > { %v1116_v40 = vld [vmem:[#allocation2 + $0x10] sm:$0xff]  ;;  %v1054_v41 = vadd.f32 %v939_v39, %v693_v38  ;;  %v2124_v43 = vpop.f32.mrb[22].mxu1  ;;  %v1364_v50 = vpop.f32.mrb[21].mxu0  ;;  %v704_v39 = vld [vmem:[#allocation2 + $0x78] sm:$0xff] }
 0x110   : > { %v1477_v45 = vadd.f32 %v2153_v27, %v1116_v40  ;;  %1088 = vst.msk [vmem:[#allocation2 + $0x30] sm:$0xff] %vm447_vm0, %v1056_v37  ;;  %v1114_v46 = vld [vmem:[#allocation2] sm:$0xff]  ;;  %v1057_v47 = vadd.f32 %v2124_v43, %v696_v42  ;;  %v942_v49 = vpop.f32.mrb[23].mxu1  ;;  %v2158_v54 = vpop.f32.mrb[22].mxu0 }
 0x111   : > { %v1475_v51 = vadd.f32 %v1348_v31, %v1114_v46  ;;  %1086 = vst.msk [vmem:[#allocation2 + $0x20] sm:$0xff] %vm447_vm0, %v1054_v41  ;;  %v1117_v52 = vld [vmem:[#allocation2 + $0x18] sm:$0xff]  ;;  %v1055_v53 = vadd.f32 %v942_v49, %v694_v48  ;;  %v1367_v57 = vpop.f32.mrb[23].mxu0 }
 0x112   : > { %1509 = vst.msk [vmem:[#allocation2 + $0x10] sm:$0xff] %vm447_vm0, %v1477_v45  ;;  %v1478_v55 = vadd.f32 %v2154_v33, %v1117_v52  ;;  %1089 = vst.msk [vmem:[#allocation2 + $0x38] sm:$0xff] %vm447_vm0, %v1057_v47  ;;  %v1115_v56 = vld [vmem:[#allocation2 + $0x8] sm:$0xff] }
 0x113   : > { %1507 = vst.msk [vmem:[#allocation2] sm:$0xff] %vm447_vm0, %v1475_v51  ;;  %v1476_v58 = vadd.f32 %v1351_v34, %v1115_v56  ;;  %1087 = vst.msk [vmem:[#allocation2 + $0x28] sm:$0xff] %vm447_vm0, %v1055_v53  ;;  %v701_v34 = vld [vmem:[#allocation2 + $0x60] sm:$0xff]  ;;  %v702_v45 = vld [vmem:[#allocation2 + $0x68] sm:$0xff] }
 0x114   : > { %1510 = vst.msk [vmem:[#allocation2 + $0x18] sm:$0xff] %vm447_vm0, %v1478_v55 }
 0x115   : > { %1508 = vst.msk [vmem:[#allocation2 + $0x8] sm:$0xff] %vm447_vm0, %v1476_v58  ;;  %v2127_v60 = vpop.f32.mrb[24].mxu1 }
 0x116   : > { %v1060_v61 = vadd.f32 %v2127_v60, %v699_v59  ;;  %v955_v63 = vpop.f32.mrb[25].mxu1  ;;  %v2161_v5 = vpop.f32.mrb[24].mxu0 }
 0x117   : > { %v1120_v1 = vld [vmem:[#allocation2 + $0x30] sm:$0xff]  ;;  %v1058_v2 = vadd.f32 %v955_v63, %v697_v62  ;;  %v2128_v4 = vpop.f32.mrb[26].mxu1  ;;  %v1380_v11 = vpop.f32.mrb[25].mxu0 }
 0x118   : > { %v1481_v6 = vadd.f32 %v2157_v44, %v1120_v1  ;;  %1092 = vst.msk [vmem:[#allocation2 + $0x50] sm:$0xff] %vm447_vm0, %v1060_v61  ;;  %v1118_v7 = vld [vmem:[#allocation2 + $0x20] sm:$0xff]  ;;  %v1061_v8 = vadd.f32 %v2128_v4, %v700_v3  ;;  %v958_v10 = vpop.f32.mrb[27].mxu1  ;;  %v2162_v16 = vpop.f32.mrb[26].mxu0  ;;  %v707_v3 = vld [vmem:[#allocation2 + $0x90] sm:$0xff] }
 0x119   : > { %v1541_v12 = vld [vmem:[#allocation2 + $0x10] sm:$0xff]  ;;  %v1479_v13 = vadd.f32 %v1364_v50, %v1118_v7  ;;  %1090 = vst.msk [vmem:[#allocation2 + $0x40] sm:$0xff] %vm447_vm0, %v1058_v2  ;;  %v1121_v14 = vld [vmem:[#allocation2 + $0x38] sm:$0xff]  ;;  %v1059_v15 = vadd.f32 %v958_v10, %v698_v9  ;;  %v1383_v21 = vpop.f32.mrb[27].mxu0  ;;  %v705_v7 = vld [vmem:[#allocation2 + $0x80] sm:$0xff] }
 0x11a   : > { %v1580_v17 = vadd.f32 %v2472_v0, %v1541_v12  ;;  %v1539_v18 = vld [vmem:[#allocation2] sm:$0xff]  ;;  %1513 = vst.msk [vmem:[#allocation2 + $0x30] sm:$0xff] %vm447_vm0, %v1481_v6  ;;  %v1482_v19 = vadd.f32 %v2158_v54, %v1121_v14  ;;  %1093 = vst.msk [vmem:[#allocation2 + $0x58] sm:$0xff] %vm447_vm0, %v1061_v8  ;;  %v1119_v20 = vld [vmem:[#allocation2 + $0x28] sm:$0xff] }
 0x11b   : > { %v1578_v22 = vadd.f32 %v2472_v0, %v1539_v18  ;;  %v1542_v23 = vld [vmem:[#allocation2 + $0x18] sm:$0xff]  ;;  %1511 = vst.msk [vmem:[#allocation2 + $0x20] sm:$0xff] %vm447_vm0, %v1479_v13  ;;  %v1480_v24 = vadd.f32 %v1367_v57, %v1119_v20  ;;  %1091 = vst.msk [vmem:[#allocation2 + $0x48] sm:$0xff] %vm447_vm0, %v1059_v15  ;;  %v706_v18 = vld [vmem:[#allocation2 + $0x88] sm:$0xff] }
 0x11c   : > { %v2000_v25 = vpack.c.bf16 %v1580_v17, %v1580_v17  ;;  %v1581_v26 = vadd.f32 %v2472_v0, %v1542_v23  ;;  %v1540_v27 = vld [vmem:[#allocation2 + $0x8] sm:$0xff]  ;;  %1514 = vst.msk [vmem:[#allocation2 + $0x38] sm:$0xff] %vm447_vm0, %v1482_v19  ;;  %v708_v12 = vld [vmem:[#allocation2 + $0x98] sm:$0xff] }
 0x11d   : > { %v1998_v28 = vpack.c.bf16 %v1578_v22, %v1578_v22  ;;  %v1579_v29 = vadd.f32 %v2472_v0, %v1540_v27  ;;  %1512 = vst.msk [vmem:[#allocation2 + $0x28] sm:$0xff] %vm447_vm0, %v1480_v24  ;;  %v2131_v31 = vpop.f32.mrb[28].mxu1 }
 0x11e   : > { %1741 = vst.msk [vmem:[%s2483_s25 + $0x8] sm:$0xf] %vm1738_vm1, %v2000_v25  ;;  %v2001_v32 = vpack.c.bf16 %v1581_v26, %v1581_v26  ;;  %v1064_v33 = vadd.f32 %v2131_v31, %v703_v30  ;;  %v971_v35 = vpop.f32.mrb[29].mxu1  ;;  %v2165_v41 = vpop.f32.mrb[28].mxu0 }
 0x11f   : > { %1739 = vst.msk [vmem:[%s2483_s25] sm:$0xf] %vm1738_vm1, %v1998_v28  ;;  %v1999_v36 = vpack.c.bf16 %v1579_v29, %v1579_v29  ;;  %v1124_v37 = vld [vmem:[#allocation2 + $0x50] sm:$0xff]  ;;  %v1062_v38 = vadd.f32 %v971_v35, %v701_v34  ;;  %v2132_v40 = vpop.f32.mrb[30].mxu1  ;;  %v1396_v47 = vpop.f32.mrb[29].mxu0 }
 0x120   : > { %1742 = vst.msk [vmem:[%s2483_s25 + $0xc] sm:$0xf] %vm1738_vm1, %v2001_v32  ;;  %v1485_v42 = vadd.f32 %v2161_v5, %v1124_v37  ;;  %v1122_v43 = vld [vmem:[#allocation2 + $0x40] sm:$0xff]  ;;  %v1065_v44 = vadd.f32 %v2132_v40, %v704_v39  ;;  %v974_v46 = vpop.f32.mrb[31].mxu1  ;;  %v2166_v52 = vpop.f32.mrb[30].mxu0  ;;  %v711_v39 = vld [vmem:[#allocation2 + $0xb0] sm:$0xff] }
 0x121   : > { %1096 = vst.msk [vmem:[#allocation2 + $0x70] sm:$0xff] %vm447_vm0, %v1064_v33  ;;  %v1545_v48 = vld [vmem:[#allocation2 + $0x30] sm:$0xff]  ;;  %v1483_v49 = vadd.f32 %v1380_v11, %v1122_v43  ;;  %1094 = vst.msk [vmem:[#allocation2 + $0x60] sm:$0xff] %vm447_vm0, %v1062_v38  ;;  %v1125_v50 = vld [vmem:[#allocation2 + $0x58] sm:$0xff]  ;;  %v1063_v51 = vadd.f32 %v974_v46, %v702_v45  ;;  %v1399_v57 = vpop.f32.mrb[31].mxu0 }
 0x122   : > { %1740 = vst.msk [vmem:[%s2483_s25 + $0x4] sm:$0xf] %vm1738_vm1, %v1999_v36  ;;  %v1584_v53 = vadd.f32 %v2472_v0, %v1545_v48  ;;  %v1543_v54 = vld [vmem:[#allocation2 + $0x20] sm:$0xff]  ;;  %v1486_v55 = vadd.f32 %v2162_v16, %v1125_v50  ;;  %v1123_v56 = vld [vmem:[#allocation2 + $0x48] sm:$0xff]  ;;  %v712_v48 = vld [vmem:[#allocation2 + $0xb8] sm:$0xff] }
 0x123   : > { %1517 = vst.msk [vmem:[#allocation2 + $0x50] sm:$0xff] %vm447_vm0, %v1485_v42  ;;  %1097 = vst.msk [vmem:[#allocation2 + $0x78] sm:$0xff] %vm447_vm0, %v1065_v44  ;;  %v1582_v58 = vadd.f32 %v2472_v0, %v1543_v54  ;;  %v1546_v59 = vld [vmem:[#allocation2 + $0x38] sm:$0xff]  ;;  %v1484_v60 = vadd.f32 %v1383_v21, %v1123_v56  ;;  %v709_v43 = vld [vmem:[#allocation2 + $0xa0] sm:$0xff] }
 0x124   : > { %1515 = vst.msk [vmem:[#allocation2 + $0x40] sm:$0xff] %vm447_vm0, %v1483_v49  ;;  %1095 = vst.msk [vmem:[#allocation2 + $0x68] sm:$0xff] %vm447_vm0, %v1063_v51  ;;  %v2004_v61 = vpack.c.bf16 %v1584_v53, %v1584_v53  ;;  %v1585_v62 = vadd.f32 %v2472_v0, %v1546_v59  ;;  %v1544_v63 = vld [vmem:[#allocation2 + $0x28] sm:$0xff] }
 0x125   : > { %1518 = vst.msk [vmem:[#allocation2 + $0x58] sm:$0xff] %vm447_vm0, %v1486_v55  ;;  %v2002_v1 = vpack.c.bf16 %v1582_v58, %v1582_v58  ;;  %v1583_v2 = vadd.f32 %v2472_v0, %v1544_v63  ;;  %1516 = vst.msk [vmem:[#allocation2 + $0x48] sm:$0xff] %vm447_vm0, %v1484_v60  ;;  %v2135_v4 = vpop.f32.mrb[32].mxu1  ;;  %v710_v54 = vld [vmem:[#allocation2 + $0xa8] sm:$0xff] }
 0x126   : > { %1745 = vst.msk [vmem:[%s2483_s25 + $0x18] sm:$0xf] %vm1738_vm1, %v2004_v61  ;;  %v2005_v5 = vpack.c.bf16 %v1585_v62, %v1585_v62  ;;  %v1068_v6 = vadd.f32 %v2135_v4, %v707_v3  ;;  %v987_v8 = vpop.f32.mrb[33].mxu1  ;;  %v2169_v14 = vpop.f32.mrb[32].mxu0 }
 0x127   : > { %1743 = vst.msk [vmem:[%s2483_s25 + $0x10] sm:$0xf] %vm1738_vm1, %v2002_v1  ;;  %v2003_v9 = vpack.c.bf16 %v1583_v2, %v1583_v2  ;;  %v1066_v11 = vadd.f32 %v987_v8, %v705_v7  ;;  %v2136_v13 = vpop.f32.mrb[34].mxu1  ;;  %v1412_v20 = vpop.f32.mrb[33].mxu0 }
 0x128   : > { %v1128_v10 = vld [vmem:[#allocation2 + $0x70] sm:$0xff]  ;;  %1746 = vst.msk [vmem:[%s2483_s25 + $0x1c] sm:$0xf] %vm1738_vm1, %v2005_v5  ;;  %v1126_v16 = vld [vmem:[#allocation2 + $0x60] sm:$0xff]  ;;  %v1069_v17 = vadd.f32 %v2136_v13, %v708_v12  ;;  %v990_v19 = vpop.f32.mrb[35].mxu1  ;;  %v2170_v25 = vpop.f32.mrb[34].mxu0 }
 0x129   : > { %v1489_v15 = vadd.f32 %v2165_v41, %v1128_v10  ;;  %1100 = vst.msk [vmem:[#allocation2 + $0x90] sm:$0xff] %vm447_vm0, %v1068_v6  ;;  %v1487_v22 = vadd.f32 %v1396_v47, %v1126_v16  ;;  %1098 = vst.msk [vmem:[#allocation2 + $0x80] sm:$0xff] %vm447_vm0, %v1066_v11  ;;  %v1067_v24 = vadd.f32 %v990_v19, %v706_v18  ;;  %v1415_v30 = vpop.f32.mrb[35].mxu0  ;;  %v715_v12 = vld [vmem:[#allocation2 + $0xd0] sm:$0xff]  ;;  %v713_v16 = vld [vmem:[#allocation2 + $0xc0] sm:$0xff] }
 0x12a   : > { %1744 = vst.msk [vmem:[%s2483_s25 + $0x14] sm:$0xf] %vm1738_vm1, %v2003_v9  ;;  %v1549_v21 = vld [vmem:[#allocation2 + $0x50] sm:$0xff]  ;;  %v1129_v23 = vld [vmem:[#allocation2 + $0x78] sm:$0xff] }
 0x12b   : > { %v1588_v26 = vadd.f32 %v2472_v0, %v1549_v21  ;;  %v1547_v27 = vld [vmem:[#allocation2 + $0x40] sm:$0xff]  ;;  %1521 = vst.msk [vmem:[#allocation2 + $0x70] sm:$0xff] %vm447_vm0, %v1489_v15  ;;  %v1490_v28 = vadd.f32 %v2166_v52, %v1129_v23  ;;  %1101 = vst.msk [vmem:[#allocation2 + $0x98] sm:$0xff] %vm447_vm0, %v1069_v17  ;;  %v1127_v29 = vld [vmem:[#allocation2 + $0x68] sm:$0xff] }
 0x12c   : > { %v1586_v31 = vadd.f32 %v2472_v0, %v1547_v27  ;;  %v1550_v32 = vld [vmem:[#allocation2 + $0x58] sm:$0xff]  ;;  %1519 = vst.msk [vmem:[#allocation2 + $0x60] sm:$0xff] %vm447_vm0, %v1487_v22  ;;  %v1488_v33 = vadd.f32 %v1399_v57, %v1127_v29  ;;  %1099 = vst.msk [vmem:[#allocation2 + $0x88] sm:$0xff] %vm447_vm0, %v1067_v24  ;;  %v1548_v36 = vld [vmem:[#allocation2 + $0x48] sm:$0xff] }
 0x12d   : > { %v2008_v34 = vpack.c.bf16 %v1588_v26, %v1588_v26  ;;  %v1589_v35 = vadd.f32 %v2472_v0, %v1550_v32  ;;  %1522 = vst.msk [vmem:[#allocation2 + $0x78] sm:$0xff] %vm447_vm0, %v1490_v28  ;;  %v1587_v38 = vadd.f32 %v2472_v0, %v1548_v36  ;;  %v2139_v40 = vpop.f32.mrb[36].mxu1  ;;  %v716_v21 = vld [vmem:[#allocation2 + $0xd8] sm:$0xff]  ;;  %v714_v27 = vld [vmem:[#allocation2 + $0xc8] sm:$0xff] }
 0x12e   : > { %v2006_v37 = vpack.c.bf16 %v1586_v31, %v1586_v31  ;;  %1520 = vst.msk [vmem:[#allocation2 + $0x68] sm:$0xff] %vm447_vm0, %v1488_v33  ;;  %v1072_v42 = vadd.f32 %v2139_v40, %v711_v39  ;;  %v1003_v44 = vpop.f32.mrb[37].mxu1  ;;  %v2173_v50 = vpop.f32.mrb[36].mxu0 }
 0x12f   : > { %1749 = vst.msk [vmem:[%s2483_s25 + $0x28] sm:$0xf] %vm1738_vm1, %v2008_v34  ;;  %v2009_v41 = vpack.c.bf16 %v1589_v35, %v1589_v35  ;;  %v2007_v45 = vpack.c.bf16 %v1587_v38, %v1587_v38  ;;  %v1070_v47 = vadd.f32 %v1003_v44, %v709_v43  ;;  %v2140_v49 = vpop.f32.mrb[38].mxu1  ;;  %v1428_v56 = vpop.f32.mrb[37].mxu0 }
 0x130   : > { %1747 = vst.msk [vmem:[%s2483_s25 + $0x20] sm:$0xf] %vm1738_vm1, %v2006_v37  ;;  %v1132_v46 = vld [vmem:[#allocation2 + $0x90] sm:$0xff]  ;;  %v1130_v52 = vld [vmem:[#allocation2 + $0x80] sm:$0xff]  ;;  %v1073_v53 = vadd.f32 %v2140_v49, %v712_v48  ;;  %v1006_v55 = vpop.f32.mrb[39].mxu1  ;;  %v2174_v61 = vpop.f32.mrb[38].mxu0 }
 0x131   : > { %1750 = vst.msk [vmem:[%s2483_s25 + $0x2c] sm:$0xf] %vm1738_vm1, %v2009_v41  ;;  %v1493_v51 = vadd.f32 %v2169_v14, %v1132_v46  ;;  %1748 = vst.msk [vmem:[%s2483_s25 + $0x24] sm:$0xf] %vm1738_vm1, %v2007_v45  ;;  %v1491_v58 = vadd.f32 %v1412_v20, %v1130_v52  ;;  %v1071_v60 = vadd.f32 %v1006_v55, %v710_v54  ;;  %v1431_v3 = vpop.f32.mrb[39].mxu0  ;;  %v719_v48 = vld [vmem:[#allocation2 + $0xf0] sm:$0xff] }
 0x132   : > { %1104 = vst.msk [vmem:[#allocation2 + $0xb0] sm:$0xff] %vm447_vm0, %v1072_v42  ;;  %v1553_v57 = vld [vmem:[#allocation2 + $0x70] sm:$0xff]  ;;  %1102 = vst.msk [vmem:[#allocation2 + $0xa0] sm:$0xff] %vm447_vm0, %v1070_v47  ;;  %v1133_v59 = vld [vmem:[#allocation2 + $0x98] sm:$0xff] }
 0x133   : > { %v1592_v62 = vadd.f32 %v2472_v0, %v1553_v57  ;;  %v1551_v63 = vld [vmem:[#allocation2 + $0x60] sm:$0xff]  ;;  %1525 = vst.msk [vmem:[#allocation2 + $0x90] sm:$0xff] %vm447_vm0, %v1493_v51  ;;  %v1494_v1 = vadd.f32 %v2170_v25, %v1133_v59  ;;  %1105 = vst.msk [vmem:[#allocation2 + $0xb8] sm:$0xff] %vm447_vm0, %v1073_v53  ;;  %v1131_v2 = vld [vmem:[#allocation2 + $0x88] sm:$0xff] }
 0x134   : > { %v1590_v4 = vadd.f32 %v2472_v0, %v1551_v63  ;;  %v1554_v5 = vld [vmem:[#allocation2 + $0x78] sm:$0xff]  ;;  %1523 = vst.msk [vmem:[#allocation2 + $0x80] sm:$0xff] %vm447_vm0, %v1491_v58  ;;  %v1492_v6 = vadd.f32 %v1415_v30, %v1131_v2  ;;  %1103 = vst.msk [vmem:[#allocation2 + $0xa8] sm:$0xff] %vm447_vm0, %v1071_v60  ;;  %v717_v52 = vld [vmem:[#allocation2 + $0xe0] sm:$0xff] }
 0x135   : > { %v2012_v7 = vpack.c.bf16 %v1592_v62, %v1592_v62  ;;  %v1593_v8 = vadd.f32 %v2472_v0, %v1554_v5  ;;  %v1552_v9 = vld [vmem:[#allocation2 + $0x68] sm:$0xff]  ;;  %1526 = vst.msk [vmem:[#allocation2 + $0x98] sm:$0xff] %vm447_vm0, %v1494_v1  ;;  %v2143_v13 = vpop.f32.mrb[40].mxu1  ;;  %v720_v57 = vld [vmem:[#allocation2 + $0xf8] sm:$0xff] }
 0x136   : > { %v2010_v10 = vpack.c.bf16 %v1590_v4, %v1590_v4  ;;  %v1591_v11 = vadd.f32 %v2472_v0, %v1552_v9  ;;  %1524 = vst.msk [vmem:[#allocation2 + $0x88] sm:$0xff] %vm447_vm0, %v1492_v6  ;;  %v1076_v15 = vadd.f32 %v2143_v13, %v715_v12  ;;  %v1019_v17 = vpop.f32.mrb[41].mxu1  ;;  %v2177_v23 = vpop.f32.mrb[40].mxu0  ;;  %v718_v63 = vld [vmem:[#allocation2 + $0xe8] sm:$0xff] }
 0x137   : > { %1753 = vst.msk [vmem:[%s2483_s25 + $0x38] sm:$0xf] %vm1738_vm1, %v2012_v7  ;;  %v2013_v14 = vpack.c.bf16 %v1593_v8, %v1593_v8  ;;  %v1074_v20 = vadd.f32 %v1019_v17, %v713_v16  ;;  %v2144_v22 = vpop.f32.mrb[42].mxu1  ;;  %v1444_v29 = vpop.f32.mrb[41].mxu0 }
 0x138   : > { %1751 = vst.msk [vmem:[%s2483_s25 + $0x30] sm:$0xf] %vm1738_vm1, %v2010_v10  ;;  %v2011_v18 = vpack.c.bf16 %v1591_v11, %v1591_v11  ;;  %v1077_v26 = vadd.f32 %v2144_v22, %v716_v21  ;;  %v1022_v28 = vpop.f32.mrb[43].mxu1  ;;  %v2178_v34 = vpop.f32.mrb[42].mxu0 }
 0x139   : > { %v1136_v19 = vld [vmem:[#allocation2 + $0xb0] sm:$0xff]  ;;  %1754 = vst.msk [vmem:[%s2483_s25 + $0x3c] sm:$0xf] %vm1738_vm1, %v2013_v14  ;;  %v1134_v25 = vld [vmem:[#allocation2 + $0xa0] sm:$0xff]  ;;  %v1075_v33 = vadd.f32 %v1022_v28, %v714_v27  ;;  %v1447_v39 = vpop.f32.mrb[43].mxu0 }
 0x13a   : > { %v1497_v24 = vadd.f32 %v2173_v50, %v1136_v19  ;;  %1108 = vst.msk [vmem:[#allocation2 + $0xd0] sm:$0xff] %vm447_vm0, %v1076_v15  ;;  %v1557_v30 = vld [vmem:[#allocation2 + $0x90] sm:$0xff]  ;;  %v1495_v31 = vadd.f32 %v1428_v56, %v1134_v25  ;;  %1106 = vst.msk [vmem:[#allocation2 + $0xc0] sm:$0xff] %vm447_vm0, %v1074_v20  ;;  %v1137_v32 = vld [vmem:[#allocation2 + $0xb8] sm:$0xff] }
 0x13b   : > { %1752 = vst.msk [vmem:[%s2483_s25 + $0x34] sm:$0xf] %vm1738_vm1, %v2011_v18  ;;  %v1596_v35 = vadd.f32 %v2472_v0, %v1557_v30  ;;  %v1555_v36 = vld [vmem:[#allocation2 + $0x80] sm:$0xff]  ;;  %v1498_v37 = vadd.f32 %v2174_v61, %v1137_v32  ;;  %v1135_v38 = vld [vmem:[#allocation2 + $0xa8] sm:$0xff] }
 0x13c   : > { %1529 = vst.msk [vmem:[#allocation2 + $0xb0] sm:$0xff] %vm447_vm0, %v1497_v24  ;;  %1109 = vst.msk [vmem:[#allocation2 + $0xd8] sm:$0xff] %vm447_vm0, %v1077_v26  ;;  %v1594_v40 = vadd.f32 %v2472_v0, %v1555_v36  ;;  %v1558_v41 = vld [vmem:[#allocation2 + $0x98] sm:$0xff]  ;;  %v1496_v42 = vadd.f32 %v1431_v3, %v1135_v38 }
 0x13d   : > { %1527 = vst.msk [vmem:[#allocation2 + $0xa0] sm:$0xff] %vm447_vm0, %v1495_v31  ;;  %1107 = vst.msk [vmem:[#allocation2 + $0xc8] sm:$0xff] %vm447_vm0, %v1075_v33  ;;  %v2016_v43 = vpack.c.bf16 %v1596_v35, %v1596_v35  ;;  %v1597_v44 = vadd.f32 %v2472_v0, %v1558_v41  ;;  %v1556_v45 = vld [vmem:[#allocation2 + $0x88] sm:$0xff]  ;;  %v2147_v49 = vpop.f32.mrb[44].mxu1 }
 0x13e   : > { %1530 = vst.msk [vmem:[#allocation2 + $0xb8] sm:$0xff] %vm447_vm0, %v1498_v37  ;;  %v2014_v46 = vpack.c.bf16 %v1594_v40, %v1594_v40  ;;  %v1595_v47 = vadd.f32 %v2472_v0, %v1556_v45  ;;  %1528 = vst.msk [vmem:[#allocation2 + $0xa8] sm:$0xff] %vm447_vm0, %v1496_v42  ;;  %v1080_v51 = vadd.f32 %v2147_v49, %v719_v48  ;;  %v1035_v53 = vpop.f32.mrb[45].mxu1  ;;  %v2181_v59 = vpop.f32.mrb[44].mxu0 }
 0x13f   : > { %1757 = vst.msk [vmem:[%s2483_s25 + $0x48] sm:$0xf] %vm1738_vm1, %v2016_v43  ;;  %v2017_v50 = vpack.c.bf16 %v1597_v44, %v1597_v44  ;;  %v1078_v56 = vadd.f32 %v1035_v53, %v717_v52  ;;  %v2148_v58 = vpop.f32.mrb[46].mxu1  ;;  %v1460_v2 = vpop.f32.mrb[45].mxu0 }
 0x140   : > { %1755 = vst.msk [vmem:[%s2483_s25 + $0x40] sm:$0xf] %vm1738_vm1, %v2014_v46  ;;  %v2015_v54 = vpack.c.bf16 %v1595_v47, %v1595_v47  ;;  %v1081_v62 = vadd.f32 %v2148_v58, %v720_v57  ;;  %v1038_v1 = vpop.f32.mrb[47].mxu1  ;;  %v2182_v7 = vpop.f32.mrb[46].mxu0 }
 0x141   : > { %v1140_v55 = vld [vmem:[#allocation2 + $0xd0] sm:$0xff]  ;;  %1758 = vst.msk [vmem:[%s2483_s25 + $0x4c] sm:$0xf] %vm1738_vm1, %v2017_v50  ;;  %v1138_v61 = vld [vmem:[#allocation2 + $0xc0] sm:$0xff]  ;;  %v1079_v6 = vadd.f32 %v1038_v1, %v718_v63  ;;  %v1463_v12 = vpop.f32.mrb[47].mxu0 }
 0x142   : > { %v1501_v60 = vadd.f32 %v2177_v23, %v1140_v55  ;;  %1112 = vst.msk [vmem:[#allocation2 + $0xf0] sm:$0xff] %vm447_vm0, %v1080_v51  ;;  %v1499_v4 = vadd.f32 %v1444_v29, %v1138_v61  ;;  %1110 = vst.msk [vmem:[#allocation2 + $0xe0] sm:$0xff] %vm447_vm0, %v1078_v56 }
 0x143   : > { %1756 = vst.msk [vmem:[%s2483_s25 + $0x44] sm:$0xf] %vm1738_vm1, %v2015_v54  ;;  %v1561_v3 = vld [vmem:[#allocation2 + $0xb0] sm:$0xff]  ;;  %v1141_v5 = vld [vmem:[#allocation2 + $0xd8] sm:$0xff] }
 0x144   : > { %v1600_v8 = vadd.f32 %v2472_v0, %v1561_v3  ;;  %v1559_v9 = vld [vmem:[#allocation2 + $0xa0] sm:$0xff]  ;;  %1533 = vst.msk [vmem:[#allocation2 + $0xd0] sm:$0xff] %vm447_vm0, %v1501_v60  ;;  %v1502_v10 = vadd.f32 %v2178_v34, %v1141_v5  ;;  %1113 = vst.msk [vmem:[#allocation2 + $0xf8] sm:$0xff] %vm447_vm0, %v1081_v62  ;;  %v1139_v11 = vld [vmem:[#allocation2 + $0xc8] sm:$0xff] }
 0x145   : > { %v1598_v13 = vadd.f32 %v2472_v0, %v1559_v9  ;;  %v1562_v14 = vld [vmem:[#allocation2 + $0xb8] sm:$0xff]  ;;  %1531 = vst.msk [vmem:[#allocation2 + $0xc0] sm:$0xff] %vm447_vm0, %v1499_v4  ;;  %v1500_v15 = vadd.f32 %v1447_v39, %v1139_v11  ;;  %1111 = vst.msk [vmem:[#allocation2 + $0xe8] sm:$0xff] %vm447_vm0, %v1079_v6  ;;  %v1560_v18 = vld [vmem:[#allocation2 + $0xa8] sm:$0xff] }
 0x146   : > { %v2020_v16 = vpack.c.bf16 %v1600_v8, %v1600_v8  ;;  %v1601_v17 = vadd.f32 %v2472_v0, %v1562_v14  ;;  %1534 = vst.msk [vmem:[#allocation2 + $0xd8] sm:$0xff] %vm447_vm0, %v1502_v10  ;;  %v1599_v20 = vadd.f32 %v2472_v0, %v1560_v18 }
 0x147   : > { %v2018_v19 = vpack.c.bf16 %v1598_v13, %v1598_v13  ;;  %1532 = vst.msk [vmem:[#allocation2 + $0xc8] sm:$0xff] %vm447_vm0, %v1500_v15 }
 0x148   : > { %1761 = vst.msk [vmem:[%s2483_s25 + $0x58] sm:$0xf] %vm1738_vm1, %v2020_v16  ;;  %v2021_v21 = vpack.c.bf16 %v1601_v17, %v1601_v17  ;;  %v2019_v22 = vpack.c.bf16 %v1599_v20, %v1599_v20 }
 0x149   : > { %1759 = vst.msk [vmem:[%s2483_s25 + $0x50] sm:$0xf] %vm1738_vm1, %v2018_v19  ;;  %v1144_v23 = vld [vmem:[#allocation2 + $0xf0] sm:$0xff]  ;;  %v1142_v25 = vld [vmem:[#allocation2 + $0xe0] sm:$0xff] }
 0x14a   : > { %1762 = vst.msk [vmem:[%s2483_s25 + $0x5c] sm:$0xf] %vm1738_vm1, %v2021_v21  ;;  %v1505_v24 = vadd.f32 %v2181_v59, %v1144_v23  ;;  %1760 = vst.msk [vmem:[%s2483_s25 + $0x54] sm:$0xf] %vm1738_vm1, %v2019_v22  ;;  %v1503_v27 = vadd.f32 %v1460_v2, %v1142_v25 }
 0x14b   : > { %v1565_v26 = vld [vmem:[#allocation2 + $0xd0] sm:$0xff]  ;;  %v1145_v28 = vld [vmem:[#allocation2 + $0xf8] sm:$0xff] }
 0x14c   : > { %v1604_v29 = vadd.f32 %v2472_v0, %v1565_v26  ;;  %v1563_v30 = vld [vmem:[#allocation2 + $0xc0] sm:$0xff]  ;;  %1537 = vst.msk [vmem:[#allocation2 + $0xf0] sm:$0xff] %vm447_vm0, %v1505_v24  ;;  %v1506_v31 = vadd.f32 %v2182_v7, %v1145_v28  ;;  %v1143_v32 = vld [vmem:[#allocation2 + $0xe8] sm:$0xff]  ;;  %1535 = vst.msk [vmem:[#allocation2 + $0xe0] sm:$0xff] %vm447_vm0, %v1503_v27 }
 0x14d   : > { %v1602_v33 = vadd.f32 %v2472_v0, %v1563_v30  ;;  %v1566_v34 = vld [vmem:[#allocation2 + $0xd8] sm:$0xff]  ;;  %v1504_v35 = vadd.f32 %v1463_v12, %v1143_v32 }
 0x14e   : > { %v2024_v36 = vpack.c.bf16 %v1604_v29, %v1604_v29  ;;  %v1605_v37 = vadd.f32 %v2472_v0, %v1566_v34  ;;  %v1564_v38 = vld [vmem:[#allocation2 + $0xc8] sm:$0xff]  ;;  %1538 = vst.msk [vmem:[#allocation2 + $0xf8] sm:$0xff] %vm447_vm0, %v1506_v31 }
 0x14f   : > { %v2022_v39 = vpack.c.bf16 %v1602_v33, %v1602_v33  ;;  %v1603_v40 = vadd.f32 %v2472_v0, %v1564_v38  ;;  %1536 = vst.msk [vmem:[#allocation2 + $0xe8] sm:$0xff] %vm447_vm0, %v1504_v35 }
 0x150   : > { %1765 = vst.msk [vmem:[%s2483_s25 + $0x68] sm:$0xf] %vm1738_vm1, %v2024_v36  ;;  %v2025_v41 = vpack.c.bf16 %v1605_v37, %v1605_v37 }
 0x151   : > { %1763 = vst.msk [vmem:[%s2483_s25 + $0x60] sm:$0xf] %vm1738_vm1, %v2022_v39  ;;  %v2023_v42 = vpack.c.bf16 %v1603_v40, %v1603_v40 }
 0x152   : > { %1766 = vst.msk [vmem:[%s2483_s25 + $0x6c] sm:$0xf] %vm1738_vm1, %v2025_v41 }
 0x153   : > { %1764 = vst.msk [vmem:[%s2483_s25 + $0x64] sm:$0xf] %vm1738_vm1, %v2023_v42  ;;  %v1569_v43 = vld [vmem:[#allocation2 + $0xf0] sm:$0xff]  ;;  %v1567_v45 = vld [vmem:[#allocation2 + $0xe0] sm:$0xff] }
 0x154   : > { %v1608_v44 = vadd.f32 %v2472_v0, %v1569_v43  ;;  %v1606_v46 = vadd.f32 %v2472_v0, %v1567_v45 }
 0x155   : > { %v1570_v47 = vld [vmem:[#allocation2 + $0xf8] sm:$0xff] }
 0x156   : > { %v2028_v48 = vpack.c.bf16 %v1608_v44, %v1608_v44  ;;  %v1609_v49 = vadd.f32 %v2472_v0, %v1570_v47  ;;  %v1568_v50 = vld [vmem:[#allocation2 + $0xe8] sm:$0xff]  ;;  %v2026_v51 = vpack.c.bf16 %v1606_v46, %v1606_v46 }
 0x157   : > { %v1607_v52 = vadd.f32 %v2472_v0, %v1568_v50 }
 0x158   : > { %1769 = vst.msk [vmem:[%s2483_s25 + $0x78] sm:$0xf] %vm1738_vm1, %v2028_v48  ;;  %v2029_v53 = vpack.c.bf16 %v1609_v49, %v1609_v49  ;;  %1767 = vst.msk [vmem:[%s2483_s25 + $0x70] sm:$0xf] %vm1738_vm1, %v2026_v51 }
 0x159   : > { %v2027_v54 = vpack.c.bf16 %v1607_v52, %v1607_v52 }
 0x15a   : > { %1770 = vst.msk [vmem:[%s2483_s25 + $0x7c] sm:$0xf] %vm1738_vm1, %v2029_v53 }
 0x15b   : > { %1768 = vst.msk [vmem:[%s2483_s25 + $0x74] sm:$0xf] %vm1738_vm1, %v2027_v54 }
 0x15c PF: > { %s17_s24 = sadd.s32 1, %s2250_s24  }
 0x15d   : > { %p14_p4 = scmp.ge.s32.totalorder %s17_s24, 4  }
 0x15f   :  { %16 = sbr.rel (!%p14_p4) target bundleno = 1 (0x1), region = 84 }

// kernel: scunicorn_forward.38
= control target key start
LH: loop header
LB: loop body
LE: loop exit
PB: predicated region body
PF: predicated region fallthrough
CT: control target
= control target key end

     0   :  { %s3220_s24 = smov 0   ;;  %s3222_s25 = smov 0   ;;  %s3785_s0 = inlined_call_operand.vmem [shape: bf16[2,16,16,16], index: 0, kind: input, shape index: {}, may-alias: {0,1,2}]   ;;  %s3786_s1 = inlined_call_operand.vmem [shape: bf16[2,16,16,16], index: 1, kind: input, shape index: {}, may-alias: {0,1,2}]   ;;  %s3787_s2 = inlined_call_operand.vmem [shape: bf16[2,16,16,16], index: 2, kind: input, shape index: {}, may-alias: {0,1,2}]   ;;  %s3788_s3 = inlined_call_operand.vmem [shape: bf16[3,48,16], index: 3, kind: input, shape index: {}]   ;;  %s3789_s4 = inlined_call_operand.vmem [shape: f32[1,16], index: 4, kind: input, shape index: {}]   ;;  %s3790_s5 = inlined_call_operand.vmem [shape: bf16[3,48,16], index: 5, kind: input, shape index: {}]   ;;  %s3791_s6 = inlined_call_operand.vmem [shape: f32[1,16], index: 6, kind: input, shape index: {}]   ;;  %s3792_s7 = inlined_call_operand.vmem [shape: bf16[2,16,16,16], index: 7, kind: output, shape index: {}]  }
   0x1   :  { %s3224_s26 = smov 0   ;;  %s3226_s27 = smov 0  }
   0x2   :  { %s3228_s28 = smov 0  }
   0x3 LB: > { %s26_s29 = sadd.s32 1, %s3161_s26  ;;  %s29_s30 = sadd.s32 1, %s3165_s27  ;;  %s3169_s28 = sphi %s3228_s28, %s17_s28   ;;  %s3165_s27 = sphi %s3226_s27, %s3800_s27   ;;  %s3161_s26 = sphi %s3224_s26, %s3799_s26   ;;  %s3157_s25 = sphi %s3222_s25, %s3798_s25   ;;  %s3153_s24 = sphi %s3220_s24, %s3797_s24  }
   0x4   : > { %p27_p0 = scmp.ge.s32.totalorder %s26_s29, 2  ;;  %p2545_p1 = scmp.ge.s32.totalorder %s3169_s28, 1 }
   0x5   : > { %p327_p2 = scmp.lt.s32.totalorder %s3169_s28, 5 }
   0x6   : > { %s3802_s29 = smov (%p27_p0, %s26_s29), 0  ;;  %s3804_s30 = smov (!%p27_p0, %s29_s30), %s3165_s27 }
   0x7   : > { %p328_p3 = pnand %p2545_p1, %p327_p2  ;;  %p31_p4 = scmp.ge.s32.totalorder %s3804_s30, 2 }
   0x8   : > { %s2546_s8 = sshll.u32 (!%p328_p3), %s3153_s24, 3  ;;  %p398_p5 = scmp.lt.s32.totalorder (!%p328_p3), %s3157_s25, 1  ;;  %vm619_vm0 = vcmask (!%p328_p3), 1047552   ;;  %vm620_vm1 = vsmask.f32 (!%p328_p3), 7424  ;;  %vm458_vm3 = vcmask (!%p328_p3), 392192  }
   0x9   : > { %s3806_s30 = smov (%p31_p4, %s3804_s30), 0  ;;  %331 = sbr.rel (%p328_p3) target bundleno = 1106 (0x452), region = 48 }
   0xa   : > { %p400_p6 = scmp.lt.s32.totalorder (!%p328_p3), %s2546_s8, 15  ;;  %s2550_s9 = sshll.u32 (!%p328_p3), %s3153_s24, 2  ;;  %vm3322_vm2 = vmand (!%p328_p3), %vm619_vm0, %vm620_vm1  ;;  %v3173_v63 = vmov (!%p328_p3), 0   ;;  %vm584_vm4 = vcmask (!%p328_p3), 1040384   ;;  %vm585_vm5 = vsmask.f32 (!%p328_p3), 256 }
   0xb   : > { %s2551_s11 = sadd.s32 (!%p328_p3), 4294967295, %s2550_s9  ;;  %s2702_s14 = sadd.s32 (!%p328_p3), 4, %s2550_s9  ;;  %459 = vst.msk [vmem:[#allocation2] sm:$0xff] (!%p328_p3), %vm458_vm3, %v3173_v63  ;;  %460 = vst.msk [vmem:[#allocation2 + $0x8] sm:$0xff] (!%p328_p3), %vm458_vm3, %v3173_v63  ;;  %vm670_vm7 = vcmask (!%p328_p3), 130048   ;;  %vm695_vm8 = vcmask (!%p328_p3), 261120  }
   0xc   : > { %p410_p7 = scmp.gt.s32.totalorder (!%p328_p3), %s2551_s11, 0  ;;  %p429_p8 = scmp.lt.s32.totalorder (!%p328_p3), %s2702_s14, 7  ;;  %462 = vst.msk [vmem:[#allocation2 + $0x50] sm:$0xff] (!%p328_p3), %vm458_vm3, %v3173_v63  ;;  %463 = vst.msk [vmem:[#allocation2 + $0x58] sm:$0xff] (!%p328_p3), %vm458_vm3, %v3173_v63 }
   0xd   : > { %vm3363_vm6 = vmand (!%p328_p3), %vm584_vm4, %vm585_vm5  ;;  %p2573_p11 = scmp.le.s32.totalorder (!%p328_p3), %s3153_s24, 0 }
  0x10   : > { %s3808_s25 = smov (!%p398_p5, %s3157_s25), 1  ;;  %s3810_s8 = smov (!%p400_p6, %s2546_s8), 15 }
  0x11   : > { %s3254_s10 = sshll.u32 %s3808_s25, 5  ;;  %s2547_s12 = sshll.u32 %s3810_s8, 1 }
  0x12   : > { %s404_s13 = sadd.s32 %s3254_s10, %s2547_s12  ;;  %s3812_s11 = smov (!%p410_p7, %s2551_s11), 0 }
  0x13   : > { %s2549_s15 = sshll.u32 %s404_s13, 2  ;;  %s3814_s14 = smov (!%p429_p8, %s2702_s14), 7 }
  0x14   : > { %s3260_s18 = scalar_lea.vmem %s3785_s0, %s2549_s15  ;;  %s3265_s21 = scalar_lea.vmem %s3792_s7, %s2549_s15 }
  0x15   : > { %v3268_v0 = vld [vmem:[%s3260_s18 + $0x10] sm:$0xff]   ;;  %v3271_v1 = vld [vmem:[%s3260_s18] sm:$0xff]   ;;  %s2552_s22 = sshll.u32 %s3812_s11, 1  ;;  %s2557_s23 = sshll.u32 %s3814_s14, 1  ;;  %v3278_v2 = vld [vmem:[%s3260_s18 + $0x18] sm:$0xff]  }
  0x16   : > { %p415_p9 = scmp.lt.s32.totalorder %s2552_s22, 15  ;;  %s3171_s25 = smov 16   ;;  %v3281_v3 = vld [vmem:[%s3260_s18 + $0x8] sm:$0xff]   ;;  %v3291_v5 = vld [vmem:[%s3260_s18 + $0x20] sm:$0xff]   ;;  %v521_v9 = vshrl.u32 %v3271_v1, 16  ;;  %v524_v10 = vshll.u32 %v3271_v1, 16 }
  0x17   : > { %634 = vrot.lane.b32.xlu1 %v3268_v0, %s3171_s25  ;;  %630 = vrot.lane.b32.xlu0 %v3271_v1, %s3171_s25  ;;  %p434_p10 = scmp.lt.s32.totalorder %s2557_s23, 15  ;;  %v3284_v4 = vld [vmem:[%s3260_s18 + $0x28] sm:$0xff]   ;;  %v528_v6 = vshrl.u32 %v3281_v3, 16  ;;  %v531_v7 = vshll.u32 %v3281_v3, 16  ;;  %v542_v11 = vshrl.u32 %v3278_v2, 16  ;;  %v545_v12 = vshll.u32 %v3278_v2, 16 }
  0x18   : > { %s3816_s22 = smov (!%p415_p9, %s2552_s22), 15  ;;  %v538_v13 = vshll.u32 %v3268_v0, 16  ;;  %v3107_v14 = vld [vmem:[%s3260_s18 + $0x38] sm:$0xff]   ;;  %v3108_v15 = vld [vmem:[%s3260_s18 + $0x30] sm:$0xff]   ;;  %v595_v17 = vrot.slane %v524_v10, 1  ;;  %v535_v18 = vshrl.u32 %v3268_v0, 16 }
  0x19   : > { %s3818_s23 = smov (!%p434_p10, %s2557_s23), 15  ;;  %s2553_s8 = sshll.u32 %s3816_s22, 1  ;;  %v597_v8 = vrot.slane %v531_v7, 1  ;;  %v559_v19 = vshll.u32 %v3284_v4, 16  ;;  %v601_v21 = vrot.slane %v545_v12, 1  ;;  %v530_v23 = vrot.slane %v528_v6, 7 }
  0x1a   : > { %s419_s9 = sadd.s32 %s2553_s8, %s3254_s10  ;;  %s2558_s11 = sshll.u32 %s3818_s23, 1  ;;  %v599_v22 = vrot.slane %v538_v13, 1  ;;  %v596_v24 = vor.u32 %v595_v17, %v521_v9  ;;  %v556_v25 = vshrl.u32 %v3284_v4, 16  ;;  %v523_v27 = vrot.slane %v521_v9, 7 }
  0x1b   : > { %636 = vrot.lane.b32.xlu1 %v3278_v2, %s3171_s25  ;;  %632 = vrot.lane.b32.xlu0 %v3281_v3, %s3171_s25  ;;  %s2555_s12 = sshll.u32 %s419_s9, 2  ;;  %s438_s13 = sadd.s32 %s2558_s11, %s3254_s10  ;;  %v598_v16 = vor.u32 %v597_v8, %v528_v6  ;;  %v605_v26 = vrot.slane %v559_v19, 1  ;;  %v544_v28 = vrot.slane %v542_v11, 7  ;;  %v537_v29 = vrot.slane %v535_v18, 7 }
  0x1c   : > { %s3302_s16 = scalar_lea.vmem %s3786_s1, %s2555_s12  ;;  %s2560_s17 = sshll.u32 %s438_s13, 2  ;;  %v552_v30 = vshll.u32 %v3291_v5, 16  ;;  %v602_v32 = vor.u32 %v601_v21, %v542_v11  ;;  %v600_v33 = vor.u32 %v599_v22, %v535_v18  ;;  %v549_v34 = vshrl.u32 %v3291_v5, 16 }
  0x1d   : > { %s3310_s20 = scalar_lea.vmem %s3787_s2, %s2560_s17  ;;  %v623_v31 = vsel %vm3322_vm2, %v598_v16, 0  ;;  %v622_v35 = vsel %vm3322_vm2, %v596_v24, 0  ;;  %v570_v37 = vshrl.u32 %v3107_v14, 16  ;;  %v573_v38 = vshll.u32 %v3107_v14, 16  ;;  %s3172_s22 = smov 32  }
  0x1e   : > { %v603_v36 = vrot.slane %v552_v30, 1  ;;  %v558_v39 = vrot.slane %v556_v25, 7  ;;  %v606_v40 = vor.u32 %v605_v26, %v556_v25  ;;  %v551_v41 = vrot.slane %v549_v34, 7  ;;  %s3174_s23 = smov (!%p2573_p11), 16   ;;  %s3175_s8 = smov (!%p2573_p11), 32  }
  0x1f   : > { %640 = vrot.lane.b32.xlu1 %v3284_v4, %s3171_s25  ;;  %638 = vrot.lane.b32.xlu0 %v3291_v5, %s3171_s25  ;;  %v563_v42 = vshrl.u32 %v3108_v15, 16  ;;  %v572_v43 = vrot.slane %v570_v37, 7  ;;  %v566_v44 = vshll.u32 %v3108_v15, 16  ;;  %v540_v45 = vor.u32 %v538_v13, %v537_v29 }
  0x20   : > { %v526_v46 = vor.u32 %v524_v10, %v523_v27  ;;  %v625_v47 = vsel %vm3322_vm2, %v602_v32, 0  ;;  %v547_v49 = vor.u32 %v545_v12, %v544_v28  ;;  %v533_v50 = vor.u32 %v531_v7, %v530_v23 }
  0x21   : > { %v565_v48 = vrot.slane %v563_v42, 7  ;;  %v624_v51 = vsel %vm3322_vm2, %v600_v33, 0  ;;  %v604_v52 = vor.u32 %v603_v36, %v549_v34  ;;  %v609_v53 = vrot.slane %v573_v38, 1 }
  0x22   : > { %v607_v54 = vrot.slane %v566_v44, 1  ;;  %v561_v55 = vor.u32 %v559_v19, %v558_v39  ;;  %v554_v56 = vor.u32 %v552_v30, %v551_v41  ;;  %v3341_v57 = vor.u32 %v573_v38, %v572_v43 }
  0x23   : > { %644 = vrot.lane.b32.xlu1 %v3107_v14, %s3171_s25  ;;  %642 = vrot.lane.b32.xlu0 %v3108_v15, %s3171_s25  ;;  %v3343_v58 = vor.u32 %v566_v44, %v565_v48  ;;  %v627_v59 = vsel %vm3322_vm2, %v606_v40, 0  ;;  %v626_v60 = vsel %vm3322_vm2, %v604_v52, 0  ;;  %v610_v61 = vor.u32 %v609_v53, %v570_v37  ;;  %v3109_v44 = vld [vmem:[%s3302_s16] sm:$0xff] (!%p2573_p11)  }
  0x24   : > { %v608_v62 = vor.u32 %v607_v54, %v563_v42  ;;  %v587_v11 = vsel %vm3363_vm6, 0, %v526_v46  ;;  %v588_v12 = vsel %vm3363_vm6, 0, %v533_v50  ;;  %v589_v17 = vsel %vm3363_vm6, 0, %v540_v45  ;;  %v3110_v45 = vld [vmem:[%s3302_s16 + $0x8] sm:$0xff] (!%p2573_p11)  }
  0x25   : > { %v629_v0 = vsel %vm3322_vm2, %v610_v61, 0  ;;  %v590_v18 = vsel %vm3363_vm6, 0, %v547_v49  ;;  %v592_v26 = vsel %vm3363_vm6, 0, %v561_v55  ;;  %v591_v27 = vsel %vm3363_vm6, 0, %v554_v56 }
  0x26   : > { %v628_v1 = vsel %vm3322_vm2, %v608_v62, 0  ;;  %v594_v34 = vsel %vm3363_vm6, 0, %v3341_v57  ;;  %v748_v46 = vshrl.u32 (!%p2573_p11), %v3109_v44, 16  ;;  %v755_v48 = vshrl.u32 (!%p2573_p11), %v3110_v45, 16 }
  0x27   : > { %656 = vrot.lane.b32.xlu1 %v623_v31, %s3172_s22  ;;  %654 = vrot.lane.b32.xlu0 %v622_v35, %s3172_s22  ;;  %v593_v35 = vsel %vm3363_vm6, 0, %v3343_v58  ;;  %v758_v49 = vshll.u32 (!%p2573_p11), %v3110_v45, 16 }
  0x28   : > { %v757_v53 = vrot.slane (!%p2573_p11), %v755_v48, 7 }
  0x29   : > { %v767_v52 = vrot.slane (!%p2573_p11), %v758_v49, 1 }
  0x2a   : > { %v760_v57 = vor.u32 (!%p2573_p11), %v758_v49, %v757_v53 }
  0x2b   : > { %660 = vrot.lane.b32.xlu1 %v625_v47, %s3172_s22  ;;  %658 = vrot.lane.b32.xlu0 %v624_v51, %s3172_s22  ;;  %v751_v47 = vshll.u32 (!%p2573_p11), %v3109_v44, 16  ;;  %v750_v51 = vrot.slane (!%p2573_p11), %v748_v46, 7  ;;  %v768_v56 = vor.u32 (!%p2573_p11), %v767_v52, %v755_v48 }
  0x2c   : > { %v764_v63 = vsel (!%p2573_p11), %vm3363_vm6, 0, %v760_v57 }
  0x2d   : > { %v765_v50 = vrot.slane (!%p2573_p11), %v751_v47, 1  ;;  %v753_v55 = vor.u32 (!%p2573_p11), %v751_v47, %v750_v51 }
  0x2f   : > { %664 = vrot.lane.b32.xlu1 %v627_v59, %s3172_s22  ;;  %662 = vrot.lane.b32.xlu0 %v626_v60, %s3172_s22  ;;  %v766_v54 = vor.u32 (!%p2573_p11), %v765_v50, %v748_v46  ;;  %v772_v59 = vsel (!%p2573_p11), %vm3322_vm2, %v768_v56, 0  ;;  %v763_v61 = vsel (!%p2573_p11), %vm3363_vm6, 0, %v753_v55 }
  0x31   : > { %v771_v58 = vsel (!%p2573_p11), %vm3322_vm2, %v766_v54, 0 }
  0x33   : > { %668 = vrot.lane.b32.xlu1 %v629_v0, %s3172_s22  ;;  %666 = vrot.lane.b32.xlu0 %v628_v1, %s3172_s22 }
  0x37   : > { %773 = vrot.lane.b32.xlu0 (!%p2573_p11), %v3109_v44, %s3174_s23  ;;  %779 = vrot.lane.b32.xlu1 (!%p2573_p11), %v771_v58, %s3175_s8 }
  0x3b   : > { %775 = vrot.lane.b32.xlu0 (!%p2573_p11), %v3110_v45, %s3174_s23  ;;  %781 = vrot.lane.b32.xlu1 (!%p2573_p11), %v772_v59, %s3175_s8 }
  0x89   : > { %v635_v2 = vpop.permute.xlu1 %634  ;;  %v631_v3 = vpop.permute.xlu0 %630 }
  0x8a   : > { %v673_v13 = vsel %vm670_vm7, %v587_v11, %v631_v3  ;;  %v679_v22 = vsel %vm670_vm7, %v589_v17, %v635_v2 }
  0x8d   : > { %v637_v4 = vpop.permute.xlu1 %636  ;;  %v633_v5 = vpop.permute.xlu0 %632 }
  0x8e   : > { %v676_v14 = vsel %vm670_vm7, %v588_v12, %v633_v5  ;;  %v682_v23 = vsel %vm670_vm7, %v590_v18, %v637_v4 }
  0x91   : > { %v641_v6 = vpop.permute.xlu1 %640  ;;  %v639_v7 = vpop.permute.xlu0 %638 }
  0x92   : > { %v688_v30 = vsel %vm670_vm7, %v592_v26, %v641_v6  ;;  %v685_v31 = vsel %vm670_vm7, %v591_v27, %v639_v7 }
  0x95   : > { %v645_v9 = vpop.permute.xlu1 %644  ;;  %v643_v10 = vpop.permute.xlu0 %642 }
  0x96   : > { %v694_v38 = vsel %vm670_vm7, %v594_v34, %v645_v9  ;;  %v691_v39 = vsel %vm670_vm7, %v593_v35, %v643_v10 }
  0x99   : > { %v657_v15 = vpop.permute.xlu1 %656  ;;  %v655_v16 = vpop.permute.xlu0 %654 }
  0x9a   : > { %v700_v19 = vsel %vm695_vm8, %v676_v14, %v657_v15  ;;  %v697_v21 = vsel %vm695_vm8, %v673_v13, %v655_v16 }
  0x9b   : > { %722 = vst.msk [vmem:[#allocation2 + $0x18] sm:$0xff] %vm458_vm3, %v700_v19  ;;  %721 = vst.msk [vmem:[#allocation2 + $0x10] sm:$0xff] %vm458_vm3, %v697_v21 }
  0x9d   : > { %v661_v24 = vpop.permute.xlu1 %660  ;;  %v659_v25 = vpop.permute.xlu0 %658 }
  0x9e   : > { %v706_v28 = vsel %vm695_vm8, %v682_v23, %v661_v24  ;;  %v703_v29 = vsel %vm695_vm8, %v679_v22, %v659_v25 }
  0x9f   : > { %724 = vst.msk [vmem:[#allocation2 + $0x28] sm:$0xff] %vm458_vm3, %v706_v28  ;;  %723 = vst.msk [vmem:[#allocation2 + $0x20] sm:$0xff] %vm458_vm3, %v703_v29 }
  0xa1   : > { %v665_v32 = vpop.permute.xlu1 %664  ;;  %v663_v33 = vpop.permute.xlu0 %662  ;;  %732 = sbr.rel (%p2573_p11) target bundleno = 177 (0xb1), region = 52 }
  0xa2   : > { %v712_v36 = vsel %vm695_vm8, %v688_v30, %v665_v32  ;;  %v709_v37 = vsel %vm695_vm8, %v685_v31, %v663_v33 }
  0xa3   : > { %726 = vst.msk [vmem:[#allocation2 + $0x38] sm:$0xff] %vm458_vm3, %v712_v36  ;;  %725 = vst.msk [vmem:[#allocation2 + $0x30] sm:$0xff] %vm458_vm3, %v709_v37 }
  0xa5   : > { %v669_v40 = vpop.permute.xlu1 %668  ;;  %v667_v41 = vpop.permute.xlu0 %666 }
  0xa6   : > { %v718_v42 = vsel %vm695_vm8, %v694_v38, %v669_v40  ;;  %v715_v43 = vsel %vm695_vm8, %v691_v39, %v667_v41 }
  0xa7   : > { %728 = vst.msk [vmem:[#allocation2 + $0x48] sm:$0xff] %vm458_vm3, %v718_v42  ;;  %727 = vst.msk [vmem:[#allocation2 + $0x40] sm:$0xff] %vm458_vm3, %v715_v43 }
  0xa9   : > { %v774_v60 = vpop.permute.xlu0 %773  ;;  %v780_v1 = vpop.permute.xlu1 %779 }
  0xaa   : > { %v785_v62 = vsel %vm670_vm7, %v763_v61, %v774_v60 }
  0xab   : > { %v790_v2 = vsel %vm695_vm8, %v785_v62, %v780_v1 }
  0xac   : > { %795 = vst.msk [vmem:[#allocation2] sm:$0xff] %vm458_vm3, %v790_v2 }
  0xad   : > { %v776_v0 = vpop.permute.xlu0 %775  ;;  %v782_v4 = vpop.permute.xlu1 %781 }
  0xae   : > { %v788_v3 = vsel %vm670_vm7, %v764_v63, %v776_v0 }
  0xaf   : > { %v793_v5 = vsel %vm695_vm8, %v788_v3, %v782_v4 }
  0xb0   : > { %796 = vst.msk [vmem:[#allocation2 + $0x8] sm:$0xff] %vm458_vm3, %v793_v5 }
  0xb1 PF: > { %p2576_p12 = scmp.ge.s32.totalorder %s3153_s24, 1 }
  0xb2   : > { %v3111_v6 = vld [vmem:[%s3310_s20] sm:$0xff] (!%p2576_p12)   ;;  %v3112_v7 = vld [vmem:[%s3310_s20 + $0x8] sm:$0xff] (!%p2576_p12)   ;;  %s3176_s9 = smov (!%p2576_p12), 16   ;;  %s3177_s11 = smov (!%p2576_p12), 32  }
  0xb3   : > { %800 = sbr.rel (%p2576_p12) target bundleno = 307 (0x133), region = 56  ;;  %841 = vrot.lane.b32.xlu0 (!%p2576_p12), %v3111_v6, %s3176_s9  ;;  %v816_v9 = vshrl.u32 (!%p2576_p12), %v3111_v6, 16  ;;  %v819_v10 = vshll.u32 (!%p2576_p12), %v3111_v6, 16  ;;  %v823_v11 = vshrl.u32 (!%p2576_p12), %v3112_v7, 16  ;;  %v826_v12 = vshll.u32 (!%p2576_p12), %v3112_v7, 16 }
  0xb5   : > { %v833_v13 = vrot.slane (!%p2576_p12), %v819_v10, 1  ;;  %v818_v14 = vrot.slane (!%p2576_p12), %v816_v9, 7  ;;  %v835_v15 = vrot.slane (!%p2576_p12), %v826_v12, 1  ;;  %v825_v16 = vrot.slane (!%p2576_p12), %v823_v11, 7 }
  0xb7   : > { %v834_v17 = vor.u32 (!%p2576_p12), %v833_v13, %v816_v9  ;;  %843 = vrot.lane.b32.xlu0 (!%p2576_p12), %v3112_v7, %s3176_s9  ;;  %v821_v18 = vor.u32 (!%p2576_p12), %v819_v10, %v818_v14  ;;  %v836_v19 = vor.u32 (!%p2576_p12), %v835_v15, %v823_v11  ;;  %v828_v21 = vor.u32 (!%p2576_p12), %v826_v12, %v825_v16 }
  0xb9   : > { %v839_v22 = vsel (!%p2576_p12), %vm3322_vm2, %v834_v17, 0  ;;  %v840_v23 = vsel (!%p2576_p12), %vm3322_vm2, %v836_v19, 0  ;;  %v831_v25 = vsel (!%p2576_p12), %vm3363_vm6, 0, %v821_v18  ;;  %v832_v27 = vsel (!%p2576_p12), %vm3363_vm6, 0, %v828_v21 }
  0xba   : > { %847 = vrot.lane.b32.xlu1 %v839_v22, %s3177_s11 }
  0xbe   : > { %849 = vrot.lane.b32.xlu1 %v840_v23, %s3177_s11 }
 0x125   : > { %v842_v24 = vpop.permute.xlu0 %841 }
 0x126   : > { %v853_v26 = vsel %vm670_vm7, %v831_v25, %v842_v24 }
 0x129   : > { %v844_v28 = vpop.permute.xlu0 %843 }
 0x12a   : > { %v856_v31 = vsel %vm670_vm7, %v832_v27, %v844_v28 }
 0x12c   : > { %v848_v29 = vpop.permute.xlu1 %847 }
 0x12d   : > { %v858_v30 = vsel %vm695_vm8, %v853_v26, %v848_v29 }
 0x12e   : > { %863 = vst.msk [vmem:[#allocation2 + $0x50] sm:$0xff] %vm458_vm3, %v858_v30 }
 0x130   : > { %v850_v32 = vpop.permute.xlu1 %849 }
 0x131   : > { %v861_v33 = vsel %vm695_vm8, %v856_v31, %v850_v32 }
 0x132   : > { %864 = vst.msk [vmem:[#allocation2 + $0x58] sm:$0xff] %vm458_vm3, %v861_v33 }
 0x133 PF: > { %v3113_v34 = vld [vmem:[%s3788_s3 + $0x18] sm:$0xff]   ;;  %v3114_v35 = vld [vmem:[%s3788_s3 + $0x20] sm:$0xff]   ;;  %v882_v36 = vld [vmem:[#allocation2 + $0x8] sm:$0xff]  ;;  %p2631_p13 = scmp.ne.s32.totalorder %s3153_s24, 0 }
 0x134   : > { %2830 = vmatprep.subr.bf16.mxu0 %v3113_v34  ;;  %2974 = vmatprep.subr.bf16.mxu1 %v3113_v34  ;;  %v3115_v37 = vld [vmem:[%s3788_s3 + $0x28] sm:$0xff]   ;;  %v3116_v38 = vld [vmem:[%s3788_s3] sm:$0xff]   ;;  %v883_v39 = vld [vmem:[#allocation2 + $0x10] sm:$0xff] }
 0x135   : > { %2831 = vmatpush3.bf16.msra.mxu0 %v3113_v34  ;;  %2977 = vmatpush3.bf16.msra.mxu1 %v3113_v34  ;;  %v884_v40 = vld [vmem:[#allocation2 + $0x18] sm:$0xff]  ;;  %v3117_v41 = vld [vmem:[%s3788_s3 + $0x8] sm:$0xff]   ;;  %v891_v43 = vld [vmem:[#allocation2 + $0x50] sm:$0xff] }
 0x136   : > { %2832 = vmatprep.subr.bf16.mxu0 %v3114_v35  ;;  %2836 = vmatprep.mubr.msk.bf16.mxu0 %vm458_vm3, %v882_v36  ;;  %v874_v42 = vld [vmem:[#allocation2 + $0x48] sm:$0xff]  ;;  %v3118_v44 = vld [vmem:[%s3788_s3 + $0x10] sm:$0xff]   ;;  %v885_v45 = vld [vmem:[#allocation2 + $0x20] sm:$0xff] }
 0x137   : > { %2975 = vmatprep.subr.bf16.mxu1 %v3114_v35  ;;  %2852 = vmatprep.mubr.msk.bf16.mxu1 %vm458_vm3, %v874_v42  ;;  %v886_v46 = vld [vmem:[#allocation2 + $0x28] sm:$0xff]  ;;  %v3119_v47 = vld [vmem:[%s3788_s3 + $0x30] sm:$0xff]   ;;  %v888_v49 = vld [vmem:[#allocation2 + $0x38] sm:$0xff] }
 0x138   : > { %v887_v48 = vld [vmem:[#allocation2 + $0x30] sm:$0xff]  ;;  %v889_v50 = vld [vmem:[#allocation2 + $0x40] sm:$0xff]  ;;  %v3120_v52 = vld [vmem:[%s3788_s3 + $0x38] sm:$0xff]  }
 0x139   : > { %2833 = vmatpush3.bf16.msra.mxu0 %v3114_v35  ;;  %2978 = vmatpush3.bf16.msra.mxu1 %v3114_v35  ;;  %v865_v51 = vld [vmem:[#allocation2] sm:$0xff]  ;;  %v1230_v54 = vld [vmem:[#allocation2 + $0x58] sm:$0xff] }
 0x13a   : > { %2834 = vmatprep.subr.bf16.mxu0 %v3115_v37  ;;  %2976 = vmatprep.subr.bf16.mxu1 %v3115_v37  ;;  %v3121_v53 = vld [vmem:[%s3788_s3 + $0x40] sm:$0xff]  }
 0x13b   : > { %v3511_v59 = vld [vmem:[%s3789_s4] ss:$0 sm:$0xff] }
 0x13d   : > { %2835 = vmatpush3.bf16.msra.mxu0 %v3115_v37  ;;  %2979 = vmatpush3.bf16.msra.mxu1 %v3115_v37 }
 0x13e   : > { %2856 = vmatprep.subr.bf16.mxu0 %v3116_v38 }
 0x140   : > { %2837 = vmatmul.mubr.msk.bf16.vlgmr.msra.gmra.mrb[0].mxu0 %vm458_vm3, %v883_v39  ;;  %2853 = vmatmul.mubr.msk.bf16.vlgmr.msra.gmra.mrb[0].mxu1 %vm458_vm3, %v891_v43 }
 0x141   : > { %2857 = vmatpush3.bf16.msra.mxu0 %v3116_v38  ;;  %2840 = vmatprep.mubr.msk.bf16.mxu0 %vm458_vm3, %v884_v40 }
 0x142   : > { %2858 = vmatprep.subr.bf16.mxu0 %v3117_v41 }
 0x145   : > { %2859 = vmatpush3.bf16.msra.mxu0 %v3117_v41 }
 0x146   : > { %2860 = vmatprep.subr.bf16.mxu0 %v3118_v44 }
 0x148   : > { %2841 = vmatmul.mubr.msk.bf16.gmra.mrb[4].mxu0 %vm458_vm3, %v885_v45 }
 0x149   : > { %2844 = vmatprep.mubr.msk.bf16.mxu0 %vm458_vm3, %v886_v46  ;;  %2861 = vmatpush3.bf16.msra.mxu0 %v3118_v44 }
 0x14a   : > { %2882 = vmatprep.subr.bf16.mxu0 %v3119_v47 }
 0x150   : > { %2845 = vmatmul.mubr.msk.bf16.gmra.mrb[8].mxu0 %vm458_vm3, %v887_v48 }
 0x151   : > { %2848 = vmatprep.mubr.msk.bf16.mxu0 %vm458_vm3, %v888_v49 }
 0x158   : > { %2849 = vmatmul.mubr.msk.bf16.gmra.mrb[12].mxu0 %vm458_vm3, %v889_v50 }
 0x159   : > { %2862 = vmatprep.mubr.msk.bf16.mxu0 %vm458_vm3, %v865_v51 }
 0x160   : > { %2863 = vmatmul.mubr.msk.bf16.vlgmr.msra.gmra.mrb[0].mxu0 %vm458_vm3, %v882_v36 }
 0x161   : > { %2883 = vmatpush3.bf16.msra.mxu0 %v3119_v47  ;;  %2866 = vmatprep.mubr.msk.bf16.mxu0 %vm458_vm3, %v883_v39 }
 0x162   : > { %2884 = vmatprep.subr.bf16.mxu0 %v3120_v52 }
 0x165   : > { %2885 = vmatpush3.bf16.msra.mxu0 %v3120_v52 }
 0x166   : > { %2886 = vmatprep.subr.bf16.mxu0 %v3121_v53 }
 0x168   : > { %2867 = vmatmul.mubr.msk.bf16.gmra.mrb[4].mxu0 %vm458_vm3, %v884_v40 }
 0x169   : > { %2870 = vmatprep.mubr.msk.bf16.mxu0 %vm458_vm3, %v885_v45  ;;  %2887 = vmatpush3.bf16.msra.mxu0 %v3121_v53 }
 0x170   : > { %2871 = vmatmul.mubr.msk.bf16.gmra.mrb[8].mxu0 %vm458_vm3, %v886_v46 }
 0x171   : > { %2874 = vmatprep.mubr.msk.bf16.mxu0 %vm458_vm3, %v887_v48 }
 0x178   : > { %2875 = vmatmul.mubr.msk.bf16.gmra.mrb[12].mxu0 %vm458_vm3, %v888_v49 }
 0x179   : > { %2878 = vmatprep.mubr.msk.bf16.mxu0 %vm458_vm3, %v889_v50 }
 0x180   : > { %2879 = vmatmul.mubr.msk.bf16.gmra.mrb[16].mxu0 %vm458_vm3, %v874_v42 }
 0x181   : > { %2888 = vmatprep.mubr.msk.bf16.mxu0 %vm458_vm3, %v883_v39 }
 0x188   : > { %2889 = vmatmul.mubr.msk.bf16.vlgmr.msra.gmra.mrb[0].mxu0 %vm458_vm3, %v884_v40 }
 0x189   : > { %2892 = vmatprep.mubr.msk.bf16.mxu0 %vm458_vm3, %v885_v45 }
 0x190   : > { %2893 = vmatmul.mubr.msk.bf16.gmra.mrb[4].mxu0 %vm458_vm3, %v886_v46 }
 0x191   : > { %2896 = vmatprep.mubr.msk.bf16.mxu0 %vm458_vm3, %v887_v48 }
 0x198   : > { %2897 = vmatmul.mubr.msk.bf16.gmra.mrb[8].mxu0 %vm458_vm3, %v888_v49 }
 0x199   : > { %2900 = vmatprep.mubr.msk.bf16.mxu0 %vm458_vm3, %v889_v50 }
 0x1a0   : > { %2901 = vmatmul.mubr.msk.bf16.gmra.mrb[12].mxu0 %vm458_vm3, %v874_v42 }
 0x1a1   : > { %2904 = vmatprep.mubr.msk.bf16.mxu0 %vm458_vm3, %v891_v43 }
 0x1a8   : > { %2905 = vmatmul.mubr.msk.bf16.gmra.mrb[16].mxu0 %vm458_vm3, %v1230_v54 }
 0x213   : > { %v3500_v55 = vpop.f32.mrb[0].mxu1 }
 0x214   : > { %v3502_v56 = vpop.f32.mrb[1].mxu1 }
 0x215   : > { %v3504_v57 = vpop.f32.mrb[2].mxu1 }
 0x216   : > { %v3506_v58 = vpop.f32.mrb[3].mxu1 }
 0x25b   : > { %v2890_v60 = vpop.f32.mrb[0].mxu0 }
 0x25c   : > { %v1428_v61 = vadd.f32 %v2890_v60, %v3511_v59  ;;  %v1320_v62 = vpop.f32.mrb[1].mxu0 }
 0x25d   : > { %v1426_v63 = vadd.f32 %v3511_v59, %v1320_v62  ;;  %v2891_v0 = vpop.f32.mrb[2].mxu0 }
 0x25e   : > { %v1429_v1 = vadd.f32 %v2891_v0, %v3511_v59  ;;  %v1323_v2 = vpop.f32.mrb[3].mxu0  ;;  %v1448_v4 = vmax.f32 %v1428_v61, 0.0 }
 0x25f   : > { %v1427_v3 = vadd.f32 %v3511_v59, %v1323_v2  ;;  %v1446_v6 = vmax.f32 %v1426_v63, 0.0 }
 0x260   : > { %v1449_v5 = vmax.f32 %v1429_v1, 0.0 }
 0x261   : > { %v1447_v7 = vmax.f32 %v1427_v3, 0.0 }
 0x262   : > { %v1467_v9 = vpack.c.bf16 %v1449_v5, %v1448_v4 }
 0x263   : > { %v1466_v10 = vpack.c.bf16 %v1447_v7, %v1446_v6  ;;  %v2894_v11 = vpop.f32.mrb[4].mxu0 }
 0x264   : > { %v1432_v12 = vadd.f32 %v2894_v11, %v3511_v59  ;;  %1618 = vrot.lane.b32.xlu0 %v1467_v9, %s3171_s25  ;;  %v1336_v13 = vpop.f32.mrb[5].mxu0  ;;  %v1484_v14 = vshrl.u32 %v1467_v9, 16  ;;  %v1487_v15 = vshll.u32 %v1467_v9, 16 }
 0x265   : > { %v1430_v16 = vadd.f32 %v3511_v59, %v1336_v13  ;;  %v2895_v17 = vpop.f32.mrb[6].mxu0  ;;  %v1477_v18 = vshrl.u32 %v1466_v10, 16  ;;  %v1480_v19 = vshll.u32 %v1466_v10, 16 }
 0x266   : > { %v1433_v21 = vadd.f32 %v2895_v17, %v3511_v59  ;;  %v1339_v22 = vpop.f32.mrb[7].mxu0  ;;  %v1568_v23 = vrot.slane %v1487_v15, 1  ;;  %v1486_v24 = vrot.slane %v1484_v14, 7  ;;  %v1452_v28 = vmax.f32 %v1432_v12, 0.0 }
 0x267   : > { %v1431_v25 = vadd.f32 %v3511_v59, %v1339_v22  ;;  %v1566_v26 = vrot.slane %v1480_v19, 1  ;;  %v1479_v27 = vrot.slane %v1477_v18, 7  ;;  %v1450_v32 = vmax.f32 %v1430_v16, 0.0 }
 0x268   : > { %v1453_v29 = vmax.f32 %v1433_v21, 0.0  ;;  %1616 = vrot.lane.b32.xlu0 %v1466_v10, %s3171_s25  ;;  %v1569_v30 = vor.u32 %v1568_v23, %v1484_v14  ;;  %v3523_v31 = vor.u32 %v1487_v15, %v1486_v24 }
 0x269   : > { %v1451_v33 = vmax.f32 %v1431_v25, 0.0  ;;  %v1567_v34 = vor.u32 %v1566_v26, %v1477_v18  ;;  %v3525_v35 = vor.u32 %v1480_v19, %v1479_v27 }
 0x26a   : > { %v1469_v36 = vpack.c.bf16 %v1453_v29, %v1452_v28  ;;  %v1597_v37 = vsel %vm3322_vm2, %v1569_v30, 0 }
 0x26b   : > { %v1468_v38 = vpack.c.bf16 %v1451_v33, %v1450_v32  ;;  %1648 = vrot.lane.b32.xlu1 %v1597_v37, %s3172_s22  ;;  %v2898_v39 = vpop.f32.mrb[8].mxu0  ;;  %v1596_v40 = vsel %vm3322_vm2, %v1567_v34, 0 }
 0x26c   : > { %v1436_v41 = vadd.f32 %v2898_v39, %v3511_v59  ;;  %1646 = vrot.lane.b32.xlu0 %v1596_v40, %s3172_s22  ;;  %v1352_v42 = vpop.f32.mrb[9].mxu0  ;;  %v1498_v43 = vshrl.u32 %v1469_v36, 16  ;;  %v1501_v44 = vshll.u32 %v1469_v36, 16 }
 0x26d   : > { %v1434_v45 = vadd.f32 %v3511_v59, %v1352_v42  ;;  %v2899_v46 = vpop.f32.mrb[10].mxu0  ;;  %v1491_v47 = vshrl.u32 %v1468_v38, 16  ;;  %v1494_v48 = vshll.u32 %v1468_v38, 16 }
 0x26e   : > { %v1437_v49 = vadd.f32 %v2899_v46, %v3511_v59  ;;  %v1355_v50 = vpop.f32.mrb[11].mxu0  ;;  %v1572_v51 = vrot.slane %v1501_v44, 1  ;;  %v1500_v52 = vrot.slane %v1498_v43, 7  ;;  %v1456_v61 = vmax.f32 %v1436_v41, 0.0 }
 0x26f   : > { %v1435_v53 = vadd.f32 %v3511_v59, %v1355_v50  ;;  %1622 = vrot.lane.b32.xlu1 %v1469_v36, %s3171_s25  ;;  %v1570_v54 = vrot.slane %v1494_v48, 1  ;;  %v1493_v60 = vrot.slane %v1491_v47, 7  ;;  %v1454_v0 = vmax.f32 %v1434_v45, 0.0 }
 0x270   : > { %v1457_v62 = vmax.f32 %v1437_v49, 0.0  ;;  %v3538_v63 = vor.u32 %v1501_v44, %v1500_v52  ;;  %v1573_v5 = vor.u32 %v1572_v51, %v1498_v43 }
 0x271   : > { %v1455_v1 = vmax.f32 %v1435_v53, 0.0  ;;  %v1571_v2 = vor.u32 %v1570_v54, %v1491_v47  ;;  %v3540_v3 = vor.u32 %v1494_v48, %v1493_v60 }
 0x272   : > { %v1471_v4 = vpack.c.bf16 %v1457_v62, %v1456_v61  ;;  %v1599_v21 = vsel %vm3322_vm2, %v1573_v5, 0 }
 0x273   : > { %v1470_v6 = vpack.c.bf16 %v1455_v1, %v1454_v0  ;;  %1620 = vrot.lane.b32.xlu1 %v1468_v38, %s3171_s25  ;;  %v2902_v7 = vpop.f32.mrb[12].mxu0  ;;  %v1598_v9 = vsel %vm3322_vm2, %v1571_v2, 0 }
 0x274   : > { %v1440_v10 = vadd.f32 %v2902_v7, %v3511_v59  ;;  %1650 = vrot.lane.b32.xlu0 %v1598_v9, %s3172_s22  ;;  %v1368_v11 = vpop.f32.mrb[13].mxu0  ;;  %v1512_v12 = vshrl.u32 %v1471_v4, 16  ;;  %v1515_v13 = vshll.u32 %v1471_v4, 16 }
 0x275   : > { %v1438_v14 = vadd.f32 %v3511_v59, %v1368_v11  ;;  %v2903_v15 = vpop.f32.mrb[14].mxu0  ;;  %v1505_v16 = vshrl.u32 %v1470_v6, 16  ;;  %v1508_v17 = vshll.u32 %v1470_v6, 16 }
 0x276   : > { %v1441_v18 = vadd.f32 %v2903_v15, %v3511_v59  ;;  %v1371_v19 = vpop.f32.mrb[15].mxu0  ;;  %v1576_v22 = vrot.slane %v1515_v13, 1  ;;  %v1514_v23 = vrot.slane %v1512_v12, 7  ;;  %v1460_v27 = vmax.f32 %v1440_v10, 0.0 }
 0x277   : > { %v1439_v24 = vadd.f32 %v3511_v59, %v1371_v19  ;;  %1652 = vrot.lane.b32.xlu1 %v1599_v21, %s3172_s22  ;;  %v1574_v25 = vrot.slane %v1508_v17, 1  ;;  %v1507_v26 = vrot.slane %v1505_v16, 7  ;;  %v1458_v28 = vmax.f32 %v1438_v14, 0.0 }
 0x278   : > { %v1461_v29 = vmax.f32 %v1441_v18, 0.0  ;;  %1624 = vrot.lane.b32.xlu0 %v1470_v6, %s3171_s25  ;;  %v3554_v30 = vor.u32 %v1515_v13, %v1514_v23  ;;  %v1577_v34 = vor.u32 %v1576_v22, %v1512_v12 }
 0x279   : > { %v1459_v32 = vmax.f32 %v1439_v24, 0.0  ;;  %v1575_v33 = vor.u32 %v1574_v25, %v1505_v16  ;;  %v3556_v36 = vor.u32 %v1508_v17, %v1507_v26 }
 0x27a   : > { %v1473_v37 = vpack.c.bf16 %v1461_v29, %v1460_v27  ;;  %v1601_v47 = vsel %vm3322_vm2, %v1577_v34, 0  ;;  %v1557_v29 = vsel %vm3363_vm6, 0, %v3523_v31 }
 0x27b   : > { %v1472_v38 = vpack.c.bf16 %v1459_v32, %v1458_v28  ;;  %1626 = vrot.lane.b32.xlu1 %v1471_v4, %s3171_s25  ;;  %v2906_v39 = vpop.f32.mrb[16].mxu0  ;;  %v1600_v40 = vsel %vm3322_vm2, %v1575_v33, 0  ;;  %v1556_v33 = vsel %vm3363_vm6, 0, %v3525_v35 }
 0x27c   : > { %v2980_v41 = vadd.f32 %v2906_v39, %v3500_v55  ;;  %1654 = vrot.lane.b32.xlu0 %v1600_v40, %s3172_s22  ;;  %v1384_v42 = vpop.f32.mrb[17].mxu0  ;;  %v1526_v43 = vshrl.u32 %v1473_v37, 16  ;;  %v1529_v44 = vshll.u32 %v1473_v37, 16 }
 0x27d   : > { %v2981_v45 = vadd.f32 %v1384_v42, %v3502_v56  ;;  %v2907_v46 = vpop.f32.mrb[18].mxu0  ;;  %v1519_v48 = vshrl.u32 %v1472_v38, 16  ;;  %v1522_v49 = vshll.u32 %v1472_v38, 16 }
 0x27e   : > { %v1444_v50 = vadd.f32 %v2980_v41, %v3511_v59  ;;  %v2982_v51 = vadd.f32 %v2907_v46, %v3504_v57  ;;  %v1387_v52 = vpop.f32.mrb[19].mxu0  ;;  %v1580_v53 = vrot.slane %v1529_v44, 1  ;;  %v1528_v55 = vrot.slane %v1526_v43, 7 }
 0x27f   : > { %v1442_v54 = vadd.f32 %v2981_v45, %v3511_v59  ;;  %v2983_v60 = vadd.f32 %v1387_v52, %v3506_v58  ;;  %1656 = vrot.lane.b32.xlu1 %v1601_v47, %s3172_s22  ;;  %v1578_v56 = vrot.slane %v1522_v49, 1  ;;  %v1521_v61 = vrot.slane %v1519_v48, 7 }
 0x280   : > { %v1445_v62 = vadd.f32 %v2982_v51, %v3511_v59  ;;  %1628 = vrot.lane.b32.xlu0 %v1472_v38, %s3171_s25  ;;  %v3573_v0 = vor.u32 %v1529_v44, %v1528_v55  ;;  %v1464_v4 = vmax.f32 %v1444_v50, 0.0  ;;  %v1581_v6 = vor.u32 %v1580_v53, %v1526_v43 }
 0x281   : > { %v1443_v1 = vadd.f32 %v2983_v60, %v3511_v59  ;;  %v1579_v57 = vor.u32 %v1578_v56, %v1519_v48  ;;  %v3576_v2 = vor.u32 %v1522_v49, %v1521_v61  ;;  %v1462_v7 = vmax.f32 %v1442_v54, 0.0 }
 0x282   : > { %v1465_v5 = vmax.f32 %v1445_v62, 0.0  ;;  %v1603_v59 = vsel %vm3322_vm2, %v1581_v6, 0  ;;  %v1558_v41 = vsel %vm3363_vm6, 0, %v3540_v3  ;;  %v1559_v44 = vsel %vm3363_vm6, 0, %v3538_v63 }
 0x283   : > { %v1463_v58 = vmax.f32 %v1443_v1, 0.0  ;;  %1630 = vrot.lane.b32.xlu1 %v1473_v37, %s3171_s25  ;;  %v1602_v9 = vsel %vm3322_vm2, %v1579_v57, 0  ;;  %v1560_v3 = vsel %vm3363_vm6, 0, %v3556_v36  ;;  %v1561_v52 = vsel %vm3363_vm6, 0, %v3554_v30 }
 0x284   : > { %1658 = vrot.lane.b32.xlu0 %v1602_v9, %s3172_s22  ;;  %v1475_v10 = vpack.c.bf16 %v1465_v5, %v1464_v4  ;;  %v1562_v36 = vsel %vm3363_vm6, 0, %v3576_v2  ;;  %v1563_v1 = vsel %vm3363_vm6, 0, %v3573_v0 }
 0x285   : > { %v1474_v11 = vpack.c.bf16 %v1463_v58, %v1462_v7 }
 0x286   : > { %v1540_v12 = vshrl.u32 %v1475_v10, 16  ;;  %v1543_v13 = vshll.u32 %v1475_v10, 16 }
 0x287   : > { %1660 = vrot.lane.b32.xlu1 %v1603_v59, %s3172_s22  ;;  %v1533_v14 = vshrl.u32 %v1474_v11, 16  ;;  %v1536_v15 = vshll.u32 %v1474_v11, 16 }
 0x288   : > { %1632 = vrot.lane.b32.xlu0 %v1474_v11, %s3171_s25  ;;  %v1584_v16 = vrot.slane %v1543_v13, 1  ;;  %v1542_v17 = vrot.slane %v1540_v12, 7 }
 0x289   : > { %v1582_v18 = vrot.slane %v1536_v15, 1  ;;  %v1535_v19 = vrot.slane %v1533_v14, 7 }
 0x28a   : > { %v1585_v21 = vor.u32 %v1584_v16, %v1540_v12  ;;  %v3586_v22 = vor.u32 %v1543_v13, %v1542_v17  ;;  %v3178_v13 = vmov (!%p2631_p13), 0  }
 0x28b   : > { %1634 = vrot.lane.b32.xlu1 %v1475_v10, %s3171_s25  ;;  %v1583_v23 = vor.u32 %v1582_v18, %v1533_v14  ;;  %v1538_v24 = vor.u32 %v1536_v15, %v1535_v19 }
 0x28c   : > { %v1605_v26 = vsel %vm3322_vm2, %v1585_v21, 0  ;;  %v1565_v0 = vsel %vm3363_vm6, 0, %v3586_v22 }
 0x28d   : > { %v1604_v25 = vsel %vm3322_vm2, %v1583_v23, 0  ;;  %v1564_v7 = vsel %vm3363_vm6, 0, %v1538_v24 }
 0x28e   : > { %1662 = vrot.lane.b32.xlu0 %v1604_v25, %s3172_s22 }
 0x28f   : > { %1664 = vrot.lane.b32.xlu1 %v1605_v26, %s3172_s22 }
 0x2d6   : > { %v1619_v27 = vpop.permute.xlu0 %1618 }
 0x2d7   : > { %v1671_v32 = vsel %vm670_vm7, %v1557_v29, %v1619_v27 }
 0x2da   : > { %v1617_v28 = vpop.permute.xlu0 %1616 }
 0x2db   : > { %v1668_v37 = vsel %vm670_vm7, %v1556_v33, %v1617_v28 }
 0x2dd   : > { %v1649_v34 = vpop.permute.xlu1 %1648 }
 0x2de   : > { %v1700_v20 = vsel %vm695_vm8, %v1671_v32, %v1649_v34  ;;  %v1647_v38 = vpop.permute.xlu0 %1646 }
 0x2df   : > { %1727 = vst.msk [vmem:[#allocation3 + $0x8] sm:$0xff] %vm458_vm3, %v1700_v20  ;;  %v1697_v39 = vsel %vm695_vm8, %v1668_v37, %v1647_v38 }
 0x2e0   : > { %1726 = vst.msk [vmem:[#allocation3] sm:$0xff] %vm458_vm3, %v1697_v39 }
 0x2e1   : > { %v1623_v40 = vpop.permute.xlu1 %1622  ;;  %1740 = vst.msk [vmem:[#allocation3] sm:$0xff] (!%p2631_p13), %vm458_vm3, %v3178_v13 }
 0x2e2   : > { %v1677_v45 = vsel %vm670_vm7, %v1559_v44, %v1623_v40 }
 0x2e5   : > { %v1621_v31 = vpop.permute.xlu1 %1620 }
 0x2e6   : > { %v1674_v35 = vsel %vm670_vm7, %v1558_v41, %v1621_v31  ;;  %v1651_v42 = vpop.permute.xlu0 %1650 }
 0x2e7   : > { %v1703_v43 = vsel %vm695_vm8, %v1674_v35, %v1651_v42 }
 0x2e8   : > { %1728 = vst.msk [vmem:[#allocation3 + $0x10] sm:$0xff] %vm458_vm3, %v1703_v43 }
 0x2e9   : > { %v1653_v46 = vpop.permute.xlu1 %1652 }
 0x2ea   : > { %v1706_v47 = vsel %vm695_vm8, %v1677_v45, %v1653_v46  ;;  %v1625_v48 = vpop.permute.xlu0 %1624 }
 0x2eb   : > { %1729 = vst.msk [vmem:[#allocation3 + $0x18] sm:$0xff] %vm458_vm3, %v1706_v47  ;;  %v1680_v50 = vsel %vm670_vm7, %v1560_v3, %v1625_v48 }
 0x2ed   : > { %v1627_v49 = vpop.permute.xlu1 %1626 }
 0x2ee   : > { %v1655_v51 = vpop.permute.xlu0 %1654  ;;  %v1683_v53 = vsel %vm670_vm7, %v1561_v52, %v1627_v49 }
 0x2ef   : > { %v1709_v63 = vsel %vm695_vm8, %v1680_v50, %v1655_v51 }
 0x2f0   : > { %1730 = vst.msk [vmem:[#allocation3 + $0x20] sm:$0xff] %vm458_vm3, %v1709_v63 }
 0x2f1   : > { %v1657_v55 = vpop.permute.xlu1 %1656 }
 0x2f2   : > { %v1712_v54 = vsel %vm695_vm8, %v1683_v53, %v1657_v55  ;;  %v1629_v60 = vpop.permute.xlu0 %1628 }
 0x2f3   : > { %1731 = vst.msk [vmem:[#allocation3 + $0x28] sm:$0xff] %vm458_vm3, %v1712_v54  ;;  %v1686_v61 = vsel %vm670_vm7, %v1562_v36, %v1629_v60 }
 0x2f5   : > { %v1631_v56 = vpop.permute.xlu1 %1630 }
 0x2f6   : > { %v1659_v62 = vpop.permute.xlu0 %1658  ;;  %v1689_v57 = vsel %vm670_vm7, %v1563_v1, %v1631_v56 }
 0x2f7   : > { %v1715_v30 = vsel %vm695_vm8, %v1686_v61, %v1659_v62 }
 0x2f8   : > { %1732 = vst.msk [vmem:[#allocation3 + $0x30] sm:$0xff] %vm458_vm3, %v1715_v30 }
 0x2f9   : > { %v1661_v4 = vpop.permute.xlu1 %1660 }
 0x2fa   : > { %v1718_v5 = vsel %vm695_vm8, %v1689_v57, %v1661_v4  ;;  %v1633_v2 = vpop.permute.xlu0 %1632 }
 0x2fb   : > { %1733 = vst.msk [vmem:[#allocation3 + $0x38] sm:$0xff] %vm458_vm3, %v1718_v5  ;;  %v1692_v58 = vsel %vm670_vm7, %v1564_v7, %v1633_v2 }
 0x2fd   : > { %v1635_v6 = vpop.permute.xlu1 %1634  ;;  %1739 = sbr.rel (%p2631_p13) target bundleno = 772 (0x304), region = 60 }
 0x2fe   : > { %v1695_v10 = vsel %vm670_vm7, %v1565_v0, %v1635_v6 }
 0x300   : > { %v1663_v9 = vpop.permute.xlu0 %1662 }
 0x301   : > { %v1721_v11 = vsel %vm695_vm8, %v1692_v58, %v1663_v9  ;;  %v1665_v59 = vpop.permute.xlu1 %1664 }
 0x302   : > { %1734 = vst.msk [vmem:[#allocation3 + $0x40] sm:$0xff] %vm458_vm3, %v1721_v11  ;;  %v1724_v12 = vsel %vm695_vm8, %v1695_v10, %v1665_v59 }
 0x303   : > { %1735 = vst.msk [vmem:[#allocation3 + $0x48] sm:$0xff] %vm458_vm3, %v1724_v12 }
 0x304 PF: > { %p2632_p0 = scmp.ne.s32.totalorder %s3153_s24, 1 }
 0x305   : > { %v3179_v8 = vmov (!%p2632_p0), 0  }
 0x306   : > { %1744 = sbr.rel (%p2632_p0) target bundleno = 781 (0x30d), region = 64  ;;  %1746 = vst.msk [vmem:[#allocation3 + $0x48] sm:$0xff] (!%p2632_p0), %vm458_vm3, %v3179_v8 }
 0x30d PF: > { %v3122_v14 = vld [vmem:[%s3790_s5 + $0x18] sm:$0xff]   ;;  %v3123_v15 = vld [vmem:[%s3790_s5 + $0x20] sm:$0xff]   ;;  %v1762_v16 = vld [vmem:[#allocation3 + $0x8] sm:$0xff]  ;;  %vm2377_vm9 = vcmask 125952  }
 0x30e   : > { %2908 = vmatprep.subr.bf16.mxu1 %v3122_v14  ;;  %v3124_v17 = vld [vmem:[%s3790_s5 + $0x28] sm:$0xff]   ;;  %2914 = vmatprep.mubr.msk.bf16.mxu1 %vm458_vm3, %v1762_v16  ;;  %v3125_v18 = vld [vmem:[%s3790_s5] sm:$0xff]   ;;  %v1763_v19 = vld [vmem:[#allocation3 + $0x10] sm:$0xff] }
 0x30f   : > { %2909 = vmatpush3.bf16.msra.mxu1 %v3122_v14  ;;  %v1764_v21 = vld [vmem:[#allocation3 + $0x18] sm:$0xff]  ;;  %v3126_v22 = vld [vmem:[%s3790_s5 + $0x8] sm:$0xff]   ;;  %v3127_v23 = vld [vmem:[%s3790_s5 + $0x10] sm:$0xff]  }
 0x310   : > { %2910 = vmatprep.subr.bf16.mxu1 %v3123_v15  ;;  %v1765_v24 = vld [vmem:[#allocation3 + $0x20] sm:$0xff]  ;;  %v1766_v25 = vld [vmem:[#allocation3 + $0x28] sm:$0xff]  ;;  %v3128_v26 = vld [vmem:[%s3790_s5 + $0x30] sm:$0xff]  }
 0x311   : > { %v1767_v27 = vld [vmem:[#allocation3 + $0x30] sm:$0xff]  ;;  %v1768_v28 = vld [vmem:[#allocation3 + $0x38] sm:$0xff]  ;;  %v1769_v29 = vld [vmem:[#allocation3 + $0x40] sm:$0xff] }
 0x312   : > { %v1747_v32 = vld [vmem:[#allocation3] sm:$0xff]  ;;  %v3129_v33 = vld [vmem:[%s3790_s5 + $0x38] sm:$0xff]   ;;  %v2063_v37 = vld [vmem:[#allocation3 + $0x48] sm:$0xff] }
 0x313   : > { %2911 = vmatpush3.bf16.msra.mxu1 %v3123_v15  ;;  %v3130_v34 = vld [vmem:[%s3790_s5 + $0x40] sm:$0xff]   ;;  %v2751_v20 = vld [vmem:[%s3260_s18 + $0x8] sm:$0xff]   ;;  %v2753_v51 = vld [vmem:[%s3260_s18 + $0x18] sm:$0xff]  }
 0x314   : > { %2912 = vmatprep.subr.bf16.mxu1 %v3124_v17  ;;  %v2720_v38 = vld [vmem:[%s3260_s18] sm:$0xff]   ;;  %v2725_v40 = vunpack.c.l.bf16 %v2751_v20  ;;  %v2726_v43 = vunpack.c.h.bf16 %v2751_v20  ;;  %v2752_v53 = vld [vmem:[%s3260_s18 + $0x10] sm:$0xff]   ;;  %v2733_v56 = vunpack.c.l.bf16 %v2753_v51  ;;  %v2734_v2 = vunpack.c.h.bf16 %v2753_v51  ;;  %v2755_v13 = vld [vmem:[%s3260_s18 + $0x28] sm:$0xff]  }
 0x315   : > { %v3714_v39 = vld [vmem:[%s3791_s6] ss:$0 sm:$0xff]  ;;  %v2721_v41 = vunpack.c.l.bf16 %v2720_v38  ;;  %v2722_v46 = vunpack.c.h.bf16 %v2720_v38  ;;  %v2729_v1 = vunpack.c.l.bf16 %v2752_v53  ;;  %v2730_v0 = vunpack.c.h.bf16 %v2752_v53 }
 0x316   : > { %v2754_v15 = vld [vmem:[%s3260_s18 + $0x20] sm:$0xff]  }
 0x317   : > { %2913 = vmatpush3.bf16.msra.mxu1 %v3124_v17 }
 0x318   : > { %2930 = vmatprep.subr.bf16.mxu1 %v3125_v18 }
 0x31a   : > { %2915 = vmatmul.mubr.msk.bf16.vlgmr.msra.gmra.mrb[4].mxu1 %vm458_vm3, %v1763_v19 }
 0x31b   : > { %2931 = vmatpush3.bf16.msra.mxu1 %v3125_v18  ;;  %2918 = vmatprep.mubr.msk.bf16.mxu1 %vm458_vm3, %v1764_v21 }
 0x31c   : > { %2932 = vmatprep.subr.bf16.mxu1 %v3126_v22 }
 0x31f   : > { %2933 = vmatpush3.bf16.msra.mxu1 %v3126_v22 }
 0x320   : > { %2934 = vmatprep.subr.bf16.mxu1 %v3127_v23 }
 0x322   : > { %2919 = vmatmul.mubr.msk.bf16.gmra.mrb[8].mxu1 %vm458_vm3, %v1765_v24 }
 0x323   : > { %2922 = vmatprep.mubr.msk.bf16.mxu1 %vm458_vm3, %v1766_v25  ;;  %2935 = vmatpush3.bf16.msra.mxu1 %v3127_v23 }
 0x324   : > { %2952 = vmatprep.subr.bf16.mxu1 %v3128_v26 }
 0x32a   : > { %2923 = vmatmul.mubr.msk.bf16.gmra.mrb[12].mxu1 %vm458_vm3, %v1767_v27 }
 0x32b   : > { %2926 = vmatprep.mubr.msk.bf16.mxu1 %vm458_vm3, %v1768_v28 }
 0x332   : > { %2927 = vmatmul.mubr.msk.bf16.gmra.mrb[16].mxu1 %vm458_vm3, %v1769_v29 }
 0x333   : > { %2936 = vmatprep.mubr.msk.bf16.mxu1 %vm458_vm3, %v1747_v32 }
 0x33a   : > { %2937 = vmatmul.mubr.msk.bf16.vlgmr.msra.gmra.mrb[4].mxu1 %vm458_vm3, %v1762_v16 }
 0x33b   : > { %2953 = vmatpush3.bf16.msra.mxu1 %v3128_v26  ;;  %2940 = vmatprep.mubr.msk.bf16.mxu1 %vm458_vm3, %v1763_v19 }
 0x33c   : > { %2954 = vmatprep.subr.bf16.mxu1 %v3129_v33 }
 0x33f   : > { %2955 = vmatpush3.bf16.msra.mxu1 %v3129_v33 }
 0x340   : > { %2956 = vmatprep.subr.bf16.mxu1 %v3130_v34 }
 0x342   : > { %2941 = vmatmul.mubr.msk.bf16.gmra.mrb[8].mxu1 %vm458_vm3, %v1764_v21 }
 0x343   : > { %2944 = vmatprep.mubr.msk.bf16.mxu1 %vm458_vm3, %v1765_v24  ;;  %2957 = vmatpush3.bf16.msra.mxu1 %v3130_v34 }
 0x34a   : > { %2945 = vmatmul.mubr.msk.bf16.gmra.mrb[12].mxu1 %vm458_vm3, %v1766_v25 }
 0x34b   : > { %2948 = vmatprep.mubr.msk.bf16.mxu1 %vm458_vm3, %v1767_v27 }
 0x352   : > { %2949 = vmatmul.mubr.msk.bf16.gmra.mrb[16].mxu1 %vm458_vm3, %v1768_v28 }
 0x353   : > { %2958 = vmatprep.mubr.msk.bf16.mxu1 %vm458_vm3, %v1763_v19 }
 0x35a   : > { %2959 = vmatmul.mubr.msk.bf16.vlgmr.msra.gmra.mrb[4].mxu1 %vm458_vm3, %v1764_v21  ;;  %v2741_v21 = vunpack.c.l.bf16 %v2755_v13 }
 0x35b   : > { %2962 = vmatprep.mubr.msk.bf16.mxu1 %vm458_vm3, %v1765_v24 }
 0x362   : > { %2963 = vmatmul.mubr.msk.bf16.gmra.mrb[8].mxu1 %vm458_vm3, %v1766_v25  ;;  %v2737_v25 = vunpack.c.l.bf16 %v2754_v15 }
 0x363   : > { %2966 = vmatprep.mubr.msk.bf16.mxu1 %vm458_vm3, %v1767_v27 }
 0x36a   : > { %2967 = vmatmul.mubr.msk.bf16.gmra.mrb[12].mxu1 %vm458_vm3, %v1768_v28 }
 0x36b   : > { %2970 = vmatprep.mubr.msk.bf16.mxu1 %vm458_vm3, %v1769_v29  ;;  %v2742_v29 = vunpack.c.h.bf16 %v2755_v13 }
 0x372   : > { %2971 = vmatmul.mubr.msk.bf16.gmra.mrb[16].mxu1 %vm458_vm3, %v2063_v37  ;;  %v2738_v37 = vunpack.c.h.bf16 %v2754_v15 }
 0x42d   : > { %v2960_v31 = vpop.f32.mrb[4].mxu1 }
 0x42e   : > { %v2267_v35 = vadd.f32 %v2960_v31, %v3714_v39  ;;  %v2147_v42 = vpop.f32.mrb[5].mxu1 }
 0x42f   : > { %v2265_v44 = vadd.f32 %v3714_v39, %v2147_v42  ;;  %v2961_v45 = vpop.f32.mrb[6].mxu1 }
 0x430   : > { %v2283_v47 = vadd.f32 %v2725_v40, %v2267_v35  ;;  %v2268_v48 = vadd.f32 %v2961_v45, %v3714_v39  ;;  %v2150_v3 = vpop.f32.mrb[7].mxu1  ;;  %v2757_v35 = vld [vmem:[%s3260_s18 + $0x38] sm:$0xff]  }
 0x431   : > { %v2281_v49 = vadd.f32 %v2721_v41, %v2265_v44  ;;  %v2266_v50 = vadd.f32 %v3714_v39, %v2150_v3  ;;  %v2756_v44 = vld [vmem:[%s3260_s18 + $0x30] sm:$0xff]   ;;  %v2749_v3 = vunpack.c.l.bf16 %v2757_v35 }
 0x432   : > { %v2299_v63 = vmax.f32 %v2283_v47, 0.0  ;;  %v2284_v52 = vadd.f32 %v2726_v43, %v2268_v48 }
 0x433   : > { %v2297_v55 = vmax.f32 %v2281_v49, 0.0  ;;  %v2282_v54 = vadd.f32 %v2722_v46, %v2266_v50 }
 0x434   : > { %v2705_v60 = vpack.c.bf16 %v2299_v63, %v2299_v63  ;;  %v2300_v36 = vmax.f32 %v2284_v52, 0.0  ;;  %v2745_v63 = vunpack.c.l.bf16 %v2756_v44 }
 0x435   : > { %v2703_v61 = vpack.c.bf16 %v2297_v55, %v2297_v55  ;;  %v2298_v62 = vmax.f32 %v2282_v54, 0.0  ;;  %v2964_v30 = vpop.f32.mrb[8].mxu1  ;;  %v2750_v54 = vunpack.c.h.bf16 %v2757_v35 }
 0x436   : > { %2380 = vst.msk [vmem:[%s3265_s21 + $0x8] sm:$0xf] %vm2377_vm9, %v2705_v60  ;;  %v2706_v57 = vpack.c.bf16 %v2300_v36, %v2300_v36  ;;  %v2271_v4 = vadd.f32 %v2964_v30, %v3714_v39  ;;  %v2163_v5 = vpop.f32.mrb[9].mxu1 }
 0x437   : > { %2378 = vst.msk [vmem:[%s3265_s21] sm:$0xf] %vm2377_vm9, %v2703_v61  ;;  %v2704_v6 = vpack.c.bf16 %v2298_v62, %v2298_v62  ;;  %v2269_v7 = vadd.f32 %v3714_v39, %v2163_v5  ;;  %v2965_v58 = vpop.f32.mrb[10].mxu1  ;;  %v2746_v61 = vunpack.c.h.bf16 %v2756_v44 }
 0x438   : > { %2381 = vst.msk [vmem:[%s3265_s21 + $0xc] sm:$0xf] %vm2377_vm9, %v2706_v57  ;;  %v2287_v9 = vadd.f32 %v2733_v56, %v2271_v4  ;;  %v2272_v10 = vadd.f32 %v2965_v58, %v3714_v39  ;;  %v2166_v11 = vpop.f32.mrb[11].mxu1 }
 0x439   : > { %2379 = vst.msk [vmem:[%s3265_s21 + $0x4] sm:$0xf] %vm2377_vm9, %v2704_v6  ;;  %v2285_v59 = vadd.f32 %v2729_v1, %v2269_v7  ;;  %v2270_v12 = vadd.f32 %v3714_v39, %v2166_v11 }
 0x43a   : > { %v2303_v8 = vmax.f32 %v2287_v9, 0.0  ;;  %v2288_v14 = vadd.f32 %v2734_v2, %v2272_v10 }
 0x43b   : > { %v2301_v16 = vmax.f32 %v2285_v59, 0.0  ;;  %v2286_v17 = vadd.f32 %v2730_v0, %v2270_v12 }
 0x43c   : > { %v2709_v18 = vpack.c.bf16 %v2303_v8, %v2303_v8  ;;  %v2304_v19 = vmax.f32 %v2288_v14, 0.0 }
 0x43d   : > { %v2707_v22 = vpack.c.bf16 %v2301_v16, %v2301_v16  ;;  %v2302_v23 = vmax.f32 %v2286_v17, 0.0  ;;  %v2968_v24 = vpop.f32.mrb[12].mxu1 }
 0x43e   : > { %2384 = vst.msk [vmem:[%s3265_s21 + $0x18] sm:$0xf] %vm2377_vm9, %v2709_v18  ;;  %v2710_v26 = vpack.c.bf16 %v2304_v19, %v2304_v19  ;;  %v2275_v27 = vadd.f32 %v2968_v24, %v3714_v39  ;;  %v2179_v28 = vpop.f32.mrb[13].mxu1 }
 0x43f   : > { %2382 = vst.msk [vmem:[%s3265_s21 + $0x10] sm:$0xf] %vm2377_vm9, %v2707_v22  ;;  %v2708_v32 = vpack.c.bf16 %v2302_v23, %v2302_v23  ;;  %v2273_v33 = vadd.f32 %v3714_v39, %v2179_v28  ;;  %v2969_v34 = vpop.f32.mrb[14].mxu1 }
 0x440   : > { %2385 = vst.msk [vmem:[%s3265_s21 + $0x1c] sm:$0xf] %vm2377_vm9, %v2710_v26  ;;  %v2291_v20 = vadd.f32 %v2741_v21, %v2275_v27  ;;  %v2276_v38 = vadd.f32 %v2969_v34, %v3714_v39  ;;  %v2182_v40 = vpop.f32.mrb[15].mxu1 }
 0x441   : > { %2383 = vst.msk [vmem:[%s3265_s21 + $0x14] sm:$0xf] %vm2377_vm9, %v2708_v32  ;;  %v2289_v31 = vadd.f32 %v2737_v25, %v2273_v33  ;;  %v2274_v41 = vadd.f32 %v3714_v39, %v2182_v40 }
 0x442   : > { %v2307_v42 = vmax.f32 %v2291_v20, 0.0  ;;  %v2292_v43 = vadd.f32 %v2742_v29, %v2276_v38 }
 0x443   : > { %v2305_v45 = vmax.f32 %v2289_v31, 0.0  ;;  %v2290_v46 = vadd.f32 %v2738_v37, %v2274_v41 }
 0x444   : > { %v2713_v47 = vpack.c.bf16 %v2307_v42, %v2307_v42  ;;  %v2308_v48 = vmax.f32 %v2292_v43, 0.0 }
 0x445   : > { %v2711_v49 = vpack.c.bf16 %v2305_v45, %v2305_v45  ;;  %v2306_v50 = vmax.f32 %v2290_v46, 0.0  ;;  %v2972_v51 = vpop.f32.mrb[16].mxu1 }
 0x446   : > { %2388 = vst.msk [vmem:[%s3265_s21 + $0x28] sm:$0xf] %vm2377_vm9, %v2713_v47  ;;  %v2714_v52 = vpack.c.bf16 %v2308_v48, %v2308_v48  ;;  %v2279_v53 = vadd.f32 %v2972_v51, %v3714_v39  ;;  %v2195_v55 = vpop.f32.mrb[17].mxu1 }
 0x447   : > { %2386 = vst.msk [vmem:[%s3265_s21 + $0x20] sm:$0xf] %vm2377_vm9, %v2711_v49  ;;  %v2712_v60 = vpack.c.bf16 %v2306_v50, %v2306_v50  ;;  %v2277_v36 = vadd.f32 %v3714_v39, %v2195_v55  ;;  %v2973_v56 = vpop.f32.mrb[18].mxu1 }
 0x448   : > { %2389 = vst.msk [vmem:[%s3265_s21 + $0x2c] sm:$0xf] %vm2377_vm9, %v2714_v52  ;;  %v2295_v62 = vadd.f32 %v2749_v3, %v2279_v53  ;;  %v2280_v30 = vadd.f32 %v2973_v56, %v3714_v39  ;;  %v2198_v1 = vpop.f32.mrb[19].mxu1 }
 0x449   : > { %2387 = vst.msk [vmem:[%s3265_s21 + $0x24] sm:$0xf] %vm2377_vm9, %v2712_v60  ;;  %v2293_v57 = vadd.f32 %v2745_v63, %v2277_v36  ;;  %v2278_v4 = vadd.f32 %v3714_v39, %v2198_v1 }
 0x44a   : > { %v2311_v5 = vmax.f32 %v2295_v62, 0.0  ;;  %v2296_v2 = vadd.f32 %v2750_v54, %v2280_v30 }
 0x44b   : > { %v2309_v6 = vmax.f32 %v2293_v57, 0.0  ;;  %v2294_v7 = vadd.f32 %v2746_v61, %v2278_v4 }
 0x44c   : > { %v2717_v58 = vpack.c.bf16 %v2311_v5, %v2311_v5  ;;  %v2312_v0 = vmax.f32 %v2296_v2, 0.0 }
 0x44d   : > { %v2715_v9 = vpack.c.bf16 %v2309_v6, %v2309_v6  ;;  %v2310_v10 = vmax.f32 %v2294_v7, 0.0 }
 0x44e   : > { %2392 = vst.msk [vmem:[%s3265_s21 + $0x38] sm:$0xf] %vm2377_vm9, %v2717_v58  ;;  %v2718_v11 = vpack.c.bf16 %v2312_v0, %v2312_v0 }
 0x44f   : > { %2390 = vst.msk [vmem:[%s3265_s21 + $0x30] sm:$0xf] %vm2377_vm9, %v2715_v9  ;;  %v2716_v59 = vpack.c.bf16 %v2310_v10, %v2310_v10 }
 0x450   : > { %2393 = vst.msk [vmem:[%s3265_s21 + $0x3c] sm:$0xf] %vm2377_vm9, %v2718_v11 }
 0x451   : > { %2391 = vst.msk [vmem:[%s3265_s21 + $0x34] sm:$0xf] %vm2377_vm9, %v2716_v59 }
 0x452 PF: > { %s17_s28 = sadd.s32 1, %s3169_s28   ;;  %s3797_s24 = smov %s3161_s26 }
 0x453   : > { %p14_p1 = scmp.ge.s32.totalorder %s17_s28, 6   ;;  %s3798_s25 = smov %s3165_s27 }
 0x454   : > { %s3799_s26 = smov %s3802_s29  ;;  %s3800_s27 = smov %s3806_s30 }
 0x455   :  { %16 = sbr.rel (!%p14_p1) target bundleno = 3 (0x3), region = 110 }

// kernel: scunicorn_forward.73
= control target key start
LH: loop header
LB: loop body
LE: loop exit
PB: predicated region body
PF: predicated region fallthrough
CT: control target
= control target key end

     0   :  { %s1783_s20 = smov 0   ;;  %s1785_s21 = smov 0   ;;  %s2085_s0 = inlined_call_operand.vmem [shape: bf16[2,16,16,16], index: 0, kind: input, shape index: {}, may-alias: {0,1,2}]   ;;  %s2086_s1 = inlined_call_operand.vmem [shape: bf16[2,16,16,16], index: 1, kind: input, shape index: {}, may-alias: {0,1,2}]   ;;  %s2087_s2 = inlined_call_operand.vmem [shape: bf16[2,16,16,16], index: 2, kind: input, shape index: {}, may-alias: {0,1,2}]   ;;  %s2088_s3 = inlined_call_operand.vmem [shape: bf16[3,48,1], index: 3, kind: input, shape index: {}]   ;;  %s2089_s4 = inlined_call_operand.<no memory space> [shape: f32[1,1], index: 4, kind: input, shape index: {}]   ;;  %s2090_s5 = inlined_call_operand.vmem [shape: f32[2,16,16,1], index: 5, kind: output, shape index: {}]  }
   0x1   :  { %v10_v0 = vstv %s2089_s4  ;;  %s1787_s22 = smov 0   ;;  %s1789_s23 = smov 0  }
   0x2   :  { %11 = vst [vmem:[#allocation3] sm:$0x1] %v10_v0  ;;  %s1791_s24 = smov 0  }
   0x3 LB: > { %s26_s4 = sadd.s32 1, %s1733_s22  ;;  %s29_s25 = sadd.s32 1, %s1737_s23  ;;  %s1741_s24 = sphi %s1791_s24, %s17_s24   ;;  %s1737_s23 = sphi %s1789_s23, %s2098_s23   ;;  %s1733_s22 = sphi %s1787_s22, %s2097_s22   ;;  %s1729_s21 = sphi %s1785_s21, %s2096_s21   ;;  %s1725_s20 = sphi %s1783_s20, %s2095_s20  }
   0x4   : > { %p27_p0 = scmp.ge.s32.totalorder %s26_s4, 2  ;;  %p1406_p1 = scmp.ge.s32.totalorder %s1741_s24, 1 }
   0x5   : > { %p275_p2 = scmp.lt.s32.totalorder %s1741_s24, 5 }
   0x6   : > { %s2100_s4 = smov (%p27_p0, %s26_s4), 0  ;;  %s2102_s25 = smov (!%p27_p0, %s29_s25), %s1737_s23 }
   0x7   : > { %p276_p3 = pnand %p1406_p1, %p275_p2  ;;  %p31_p4 = scmp.ge.s32.totalorder %s2102_s25, 2 }
   0x8   : > { %s1407_s26 = sshll.u32 (!%p276_p3), %s1725_s20, 3  ;;  %p340_p5 = scmp.lt.s32.totalorder (!%p276_p3), %s1729_s21, 1  ;;  %vm555_vm0 = vcmask (!%p276_p3), 1047552   ;;  %vm556_vm1 = vsmask.f32 (!%p276_p3), 7424  ;;  %vm396_vm3 = vcmask (!%p276_p3), 392192  }
   0x9   : > { %s2104_s25 = smov (%p31_p4, %s2102_s25), 0  ;;  %279 = sbr.rel (%p276_p3) target bundleno = 579 (0x243), region = 40 }
   0xa   : > { %p342_p6 = scmp.lt.s32.totalorder (!%p276_p3), %s1407_s26, 15  ;;  %s1412_s27 = sadd.s32 (!%p276_p3), 4294967295, %s1407_s26  ;;  %vm1862_vm2 = vmand (!%p276_p3), %vm555_vm0, %vm556_vm1  ;;  %v1745_v56 = vmov (!%p276_p3), 0   ;;  %vm520_vm4 = vcmask (!%p276_p3), 1040384   ;;  %vm521_vm5 = vsmask.f32 (!%p276_p3), 256 }
   0xb   : > { %p352_p7 = scmp.gt.s32.totalorder (!%p276_p3), %s1412_s27, 0  ;;  %p1413_p8 = scmp.lt.s32.totalorder (!%p276_p3), %s1412_s27, 15  ;;  %397 = vst.msk [vmem:[#allocation2] sm:$0xff] (!%p276_p3), %vm396_vm3, %v1745_v56  ;;  %399 = vst.msk [vmem:[#allocation2 + $0x48] sm:$0xff] (!%p276_p3), %vm396_vm3, %v1745_v56  ;;  %vm606_vm7 = vcmask (!%p276_p3), 130048   ;;  %vm631_vm8 = vcmask (!%p276_p3), 261120  }
   0xc   : > { %s1499_s7 = sadd.s32 (!%p276_p3), 8, %s1407_s26  ;;  %vm1896_vm6 = vmand (!%p276_p3), %vm520_vm4, %vm521_vm5  ;;  %p1440_p10 = scmp.le.s32.totalorder (!%p276_p3), %s1725_s20, 0 }
   0xd   : > { %p369_p9 = scmp.lt.s32.totalorder (!%p276_p3), %s1499_s7, 15 }
  0x10   : > { %s2106_s21 = smov (!%p340_p5, %s1729_s21), 1  ;;  %s2108_s27 = smov (!%p352_p7, %s1412_s27), 0 }
  0x11   : > { %s343_s28 = scalar_select %p342_p6, %s1407_s26, 15 }
  0x12   : > { %s1409_s29 = sshll.u32 %s2106_s21, 5  ;;  %s2110_s7 = smov (!%p369_p9, %s1499_s7), 15 }
  0x13   : > { %s1408_s30 = sshll.u32 %s343_s28, 1  ;;  %s2112_s27 = smov (!%p1413_p8, %s2108_s27), 15 }
  0x14   : > { %s346_s6 = sadd.s32 %s1409_s29, %s1408_s30  ;;  %s2114_s7 = smov (!%p369_p9, %s2110_s7), 15 }
  0x15   : > { %s1410_s8 = sshll.u32 %s346_s6, 2  ;;  %s1431_s12 = sshll.u32 %s346_s6, 3 }
  0x16   : > { %s1819_s11 = scalar_lea.vmem %s2085_s0, %s1410_s8  ;;  %s1418_s13 = sshll.u32 %s2112_s27, 1 }
  0x17   : > { %s1824_s16 = scalar_lea.vmem %s2090_s5, %s1431_s12  ;;  %v1827_v1 = vld [vmem:[%s1819_s11 + $0x10] sm:$0xff]   ;;  %s360_s17 = sadd.s32 %s1418_s13, %s1409_s29  ;;  %v1685_v2 = vld [vmem:[%s1819_s11] sm:$0xff]   ;;  %v1687_v3 = vld [vmem:[%s1819_s11 + $0x8] sm:$0xff]  }
  0x18   : > { %s1425_s18 = sshll.u32 %s2114_s7, 1  ;;  %s1420_s19 = sshll.u32 %s360_s17, 2  ;;  %v467_v4 = vshll.u32 %v1687_v3, 16  ;;  %v1686_v5 = vld [vmem:[%s1819_s11 + $0x18] sm:$0xff]   ;;  %v460_v6 = vshll.u32 %v1685_v2, 16  ;;  %v457_v7 = vshrl.u32 %v1685_v2, 16 }
  0x19   : > { %s377_s21 = sadd.s32 %s1425_s18, %s1409_s29  ;;  %s1834_s30 = scalar_lea.vmem %s2086_s1, %s1420_s19  ;;  %v481_v8 = vshll.u32 %v1686_v5, 16  ;;  %v471_v9 = vshrl.u32 %v1827_v1, 16  ;;  %v1688_v10 = vld [vmem:[%s1819_s11 + $0x28] sm:$0xff]   ;;  %v464_v11 = vshrl.u32 %v1687_v3, 16  ;;  %v474_v13 = vshll.u32 %v1827_v1, 16  ;;  %v1689_v14 = vld [vmem:[%s1819_s11 + $0x20] sm:$0xff]  }
  0x1a   : > { %s1836_s27 = sshll.u32 %s377_s21, 2  ;;  %s1743_s7 = smov 16   ;;  %v533_v12 = vrot.slane %v467_v4, 1  ;;  %v459_v15 = vrot.slane %v457_v7, 7  ;;  %v478_v16 = vshrl.u32 %v1686_v5, 16  ;;  %v1690_v18 = vld [vmem:[%s1819_s11 + $0x38] sm:$0xff]  }
  0x1b   : > { %s379_s9 = scalar_lea.vmem %s2087_s2, %s1836_s27  ;;  %570 = vrot.lane.b32.xlu1 %v1827_v1, %s1743_s7  ;;  %566 = vrot.lane.b32.xlu0 %v1685_v2, %s1743_s7  ;;  %v473_v17 = vrot.slane %v471_v9, 7  ;;  %v531_v19 = vrot.slane %v460_v6, 1  ;;  %v492_v20 = vshrl.u32 %v1688_v10, 16  ;;  %v1691_v21 = vld [vmem:[%s1819_s11 + $0x30] sm:$0xff]   ;;  %v466_v22 = vrot.slane %v464_v11, 7  ;;  %s1744_s29 = smov 32  }
  0x1c   : > { %v480_v23 = vrot.slane %v478_v16, 7  ;;  %v537_v24 = vrot.slane %v481_v8, 1  ;;  %v485_v25 = vshrl.u32 %v1689_v14, 16  ;;  %v534_v26 = vor.u32 %v533_v12, %v464_v11  ;;  %s1746_s10 = smov (!%p1440_p10), 16   ;;  %s1747_s11 = smov (!%p1440_p10), 32  }
  0x1d   : > { %v535_v27 = vrot.slane %v474_v13, 1  ;;  %v494_v28 = vrot.slane %v492_v20, 7  ;;  %v506_v29 = vshrl.u32 %v1690_v18, 16  ;;  %v499_v31 = vshrl.u32 %v1691_v21, 16 }
  0x1e   : > { %v487_v30 = vrot.slane %v485_v25, 7  ;;  %v1856_v32 = vor.u32 %v474_v13, %v473_v17  ;;  %v1858_v33 = vor.u32 %v460_v6, %v459_v15  ;;  %v532_v34 = vor.u32 %v531_v19, %v457_v7 }
  0x1f   : > { %572 = vrot.lane.b32.xlu1 %v1686_v5, %s1743_s7  ;;  %568 = vrot.lane.b32.xlu0 %v1687_v3, %s1743_s7  ;;  %v495_v35 = vshll.u32 %v1688_v10, 16  ;;  %v488_v36 = vshll.u32 %v1689_v14, 16  ;;  %v508_v37 = vrot.slane %v506_v29, 7  ;;  %v509_v39 = vshll.u32 %v1690_v18, 16 }
  0x20   : > { %v501_v40 = vrot.slane %v499_v31, 7  ;;  %v538_v41 = vor.u32 %v537_v24, %v478_v16  ;;  %v1866_v42 = vor.u32 %v481_v8, %v480_v23  ;;  %v469_v43 = vor.u32 %v467_v4, %v466_v22 }
  0x21   : > { %v1868_v44 = vor.u32 %v495_v35, %v494_v28  ;;  %v536_v45 = vor.u32 %v535_v27, %v471_v9  ;;  %v502_v46 = vshll.u32 %v1691_v21, 16  ;;  %v1872_v47 = vor.u32 %v488_v36, %v487_v30 }
  0x22   : > { %v1874_v48 = vor.u32 %v509_v39, %v508_v37  ;;  %v559_v49 = vsel %vm1862_vm2, %v534_v26, 0  ;;  %v558_v50 = vsel %vm1862_vm2, %v532_v34, 0  ;;  %v541_v51 = vrot.slane %v495_v35, 1 }
  0x23   : > { %576 = vrot.lane.b32.xlu1 %v1688_v10, %s1743_s7  ;;  %574 = vrot.lane.b32.xlu0 %v1689_v14, %s1743_s7  ;;  %v539_v52 = vrot.slane %v488_v36, 1  ;;  %v1880_v53 = vor.u32 %v502_v46, %v501_v40  ;;  %v561_v54 = vsel %vm1862_vm2, %v538_v41, 0  ;;  %v560_v55 = vsel %vm1862_vm2, %v536_v45, 0  ;;  %v1692_v45 = vld [vmem:[%s1834_s30] sm:$0xff] (!%p1440_p10)  }
  0x24   : > { %v542_v57 = vor.u32 %v541_v51, %v492_v20  ;;  %v545_v59 = vrot.slane %v509_v39, 1  ;;  %v543_v60 = vrot.slane %v502_v46, 1  ;;  %v523_v12 = vsel %vm1896_vm6, 0, %v1858_v33 }
  0x25   : > { %v540_v58 = vor.u32 %v539_v52, %v485_v25  ;;  %v524_v13 = vsel %vm1896_vm6, 0, %v469_v43  ;;  %v526_v19 = vsel %vm1896_vm6, 0, %v1866_v42  ;;  %v528_v26 = vsel %vm1896_vm6, 0, %v1868_v44 }
  0x26   : > { %v563_v61 = vsel %vm1862_vm2, %v542_v57, 0  ;;  %v546_v63 = vor.u32 %v545_v59, %v506_v29  ;;  %v544_v0 = vor.u32 %v543_v60, %v499_v31  ;;  %v527_v27 = vsel %vm1896_vm6, 0, %v1872_v47 }
  0x27   : > { %580 = vrot.lane.b32.xlu1 %v1690_v18, %s1743_s7  ;;  %578 = vrot.lane.b32.xlu0 %v1691_v21, %s1743_s7  ;;  %v562_v62 = vsel %vm1862_vm2, %v540_v58, 0  ;;  %v525_v18 = vsel %vm1896_vm6, 0, %v1856_v32  ;;  %v530_v34 = vsel %vm1896_vm6, 0, %v1874_v48  ;;  %v529_v35 = vsel %vm1896_vm6, 0, %v1880_v53 }
  0x28   : > { %v565_v1 = vsel %vm1862_vm2, %v546_v63, 0  ;;  %v564_v2 = vsel %vm1862_vm2, %v544_v0, 0  ;;  %v677_v46 = vshrl.u32 (!%p1440_p10), %v1692_v45, 16  ;;  %v680_v47 = vshll.u32 (!%p1440_p10), %v1692_v45, 16 }
  0x2a   : > { %v685_v48 = vrot.slane (!%p1440_p10), %v680_v47, 1 }
  0x2b   : > { %592 = vrot.lane.b32.xlu1 %v559_v49, %s1744_s29  ;;  %590 = vrot.lane.b32.xlu0 %v558_v50, %s1744_s29  ;;  %v679_v49 = vrot.slane (!%p1440_p10), %v677_v46, 7 }
  0x2c   : > { %v686_v50 = vor.u32 (!%p1440_p10), %v685_v48, %v677_v46 }
  0x2d   : > { %v682_v51 = vor.u32 (!%p1440_p10), %v680_v47, %v679_v49 }
  0x2e   : > { %v688_v52 = vsel (!%p1440_p10), %vm1862_vm2, %v686_v50, 0 }
  0x2f   : > { %596 = vrot.lane.b32.xlu1 %v561_v54, %s1744_s29  ;;  %594 = vrot.lane.b32.xlu0 %v560_v55, %s1744_s29  ;;  %v684_v54 = vsel (!%p1440_p10), %vm1896_vm6, 0, %v682_v51 }
  0x33   : > { %600 = vrot.lane.b32.xlu1 %v563_v61, %s1744_s29  ;;  %598 = vrot.lane.b32.xlu0 %v562_v62, %s1744_s29 }
  0x37   : > { %604 = vrot.lane.b32.xlu1 %v565_v1, %s1744_s29  ;;  %602 = vrot.lane.b32.xlu0 %v564_v2, %s1744_s29 }
  0x3b   : > { %689 = vrot.lane.b32.xlu0 (!%p1440_p10), %v1692_v45, %s1746_s10 }
  0x3f   : > { %692 = vrot.lane.b32.xlu0 (!%p1440_p10), %v688_v52, %s1747_s11 }
  0x8d   : > { %v571_v3 = vpop.permute.xlu1 %570  ;;  %v567_v4 = vpop.permute.xlu0 %566 }
  0x8e   : > { %v609_v14 = vsel %vm606_vm7, %v523_v12, %v567_v4  ;;  %v615_v22 = vsel %vm606_vm7, %v525_v18, %v571_v3 }
  0x91   : > { %v573_v5 = vpop.permute.xlu1 %572  ;;  %v569_v6 = vpop.permute.xlu0 %568 }
  0x92   : > { %v612_v15 = vsel %vm606_vm7, %v524_v13, %v569_v6  ;;  %v618_v23 = vsel %vm606_vm7, %v526_v19, %v573_v5 }
  0x95   : > { %v577_v7 = vpop.permute.xlu1 %576  ;;  %v575_v8 = vpop.permute.xlu0 %574 }
  0x96   : > { %v624_v30 = vsel %vm606_vm7, %v528_v26, %v577_v7  ;;  %v621_v31 = vsel %vm606_vm7, %v527_v27, %v575_v8 }
  0x99   : > { %v581_v10 = vpop.permute.xlu1 %580  ;;  %v579_v11 = vpop.permute.xlu0 %578 }
  0x9a   : > { %v630_v39 = vsel %vm606_vm7, %v530_v34, %v581_v10  ;;  %v627_v40 = vsel %vm606_vm7, %v529_v35, %v579_v11 }
  0x9d   : > { %v593_v16 = vpop.permute.xlu1 %592  ;;  %v591_v17 = vpop.permute.xlu0 %590 }
  0x9e   : > { %v636_v20 = vsel %vm631_vm8, %v612_v15, %v593_v16  ;;  %v633_v21 = vsel %vm631_vm8, %v609_v14, %v591_v17 }
  0x9f   : > { %658 = vst.msk [vmem:[#allocation2 + $0x10] sm:$0xff] %vm396_vm3, %v636_v20  ;;  %657 = vst.msk [vmem:[#allocation2 + $0x8] sm:$0xff] %vm396_vm3, %v633_v21 }
  0xa1   : > { %v597_v24 = vpop.permute.xlu1 %596  ;;  %v595_v25 = vpop.permute.xlu0 %594 }
  0xa2   : > { %v642_v28 = vsel %vm631_vm8, %v618_v23, %v597_v24  ;;  %v639_v29 = vsel %vm631_vm8, %v615_v22, %v595_v25 }
  0xa3   : > { %660 = vst.msk [vmem:[#allocation2 + $0x20] sm:$0xff] %vm396_vm3, %v642_v28  ;;  %659 = vst.msk [vmem:[#allocation2 + $0x18] sm:$0xff] %vm396_vm3, %v639_v29 }
  0xa5   : > { %v601_v32 = vpop.permute.xlu1 %600  ;;  %v599_v33 = vpop.permute.xlu0 %598  ;;  %668 = sbr.rel (%p1440_p10) target bundleno = 180 (0xb4), region = 44 }
  0xa6   : > { %v648_v36 = vsel %vm631_vm8, %v624_v30, %v601_v32  ;;  %v645_v37 = vsel %vm631_vm8, %v621_v31, %v599_v33 }
  0xa7   : > { %662 = vst.msk [vmem:[#allocation2 + $0x30] sm:$0xff] %vm396_vm3, %v648_v36  ;;  %661 = vst.msk [vmem:[#allocation2 + $0x28] sm:$0xff] %vm396_vm3, %v645_v37 }
  0xa9   : > { %v605_v41 = vpop.permute.xlu1 %604  ;;  %v603_v42 = vpop.permute.xlu0 %602 }
  0xaa   : > { %v654_v43 = vsel %vm631_vm8, %v630_v39, %v605_v41  ;;  %v651_v44 = vsel %vm631_vm8, %v627_v40, %v603_v42 }
  0xab   : > { %664 = vst.msk [vmem:[#allocation2 + $0x40] sm:$0xff] %vm396_vm3, %v654_v43  ;;  %663 = vst.msk [vmem:[#allocation2 + $0x38] sm:$0xff] %vm396_vm3, %v651_v44 }
  0xad   : > { %v690_v53 = vpop.permute.xlu0 %689 }
  0xae   : > { %v696_v55 = vsel %vm606_vm7, %v684_v54, %v690_v53 }
  0xb1   : > { %v693_v56 = vpop.permute.xlu0 %692 }
  0xb2   : > { %v698_v57 = vsel %vm631_vm8, %v696_v55, %v693_v56 }
  0xb3   : > { %700 = vst.msk [vmem:[#allocation2] sm:$0xff] %vm396_vm3, %v698_v57 }
  0xb4 PF: > { %p1442_p11 = scmp.ge.s32.totalorder %s1725_s20, 1 }
  0xb5   : > { %v1693_v58 = vld [vmem:[%s379_s9] sm:$0xff] (!%p1442_p11)   ;;  %s1748_s14 = smov (!%p1442_p11), 16   ;;  %s1749_s15 = smov (!%p1442_p11), 32  }
  0xb6   : > { %704 = sbr.rel (%p1442_p11) target bundleno = 306 (0x132), region = 48  ;;  %725 = vrot.lane.b32.xlu0 (!%p1442_p11), %v1693_v58, %s1748_s14  ;;  %v713_v59 = vshrl.u32 (!%p1442_p11), %v1693_v58, 16  ;;  %v716_v60 = vshll.u32 (!%p1442_p11), %v1693_v58, 16 }
  0xb8   : > { %v721_v61 = vrot.slane (!%p1442_p11), %v716_v60, 1  ;;  %v715_v62 = vrot.slane (!%p1442_p11), %v713_v59, 7 }
  0xba   : > { %v722_v63 = vor.u32 (!%p1442_p11), %v721_v61, %v713_v59  ;;  %v718_v0 = vor.u32 (!%p1442_p11), %v716_v60, %v715_v62 }
  0xbc   : > { %v724_v1 = vsel (!%p1442_p11), %vm1862_vm2, %v722_v63, 0  ;;  %v720_v3 = vsel (!%p1442_p11), %vm1896_vm6, 0, %v718_v0 }
  0xbd   : > { %728 = vrot.lane.b32.xlu0 %v724_v1, %s1749_s15 }
 0x128   : > { %v726_v2 = vpop.permute.xlu0 %725 }
 0x129   : > { %v732_v4 = vsel %vm606_vm7, %v720_v3, %v726_v2 }
 0x12f   : > { %v729_v5 = vpop.permute.xlu0 %728 }
 0x130   : > { %v734_v6 = vsel %vm631_vm8, %v732_v4, %v729_v5 }
 0x131   : > { %736 = vst.msk [vmem:[#allocation2 + $0x48] sm:$0xff] %vm396_vm3, %v734_v6 }
 0x132 PF: > { %v1694_v7 = vld [vmem:[%s2088_s3 + $0x18] sm:$0xff]   ;;  %v1695_v38 = vld [vmem:[%s2088_s3] sm:$0xff]   ;;  %v1697_v9 = vld [vmem:[%s2088_s3 + $0x8] sm:$0xff]   ;;  %vm1238_vm9 = vcmask 7168  }
 0x133   : > { %1533 = vmatprep.subr.bf16.mxu1 %v1694_v7  ;;  %v1696_v8 = vld [vmem:[%s2088_s3 + $0x20] sm:$0xff]   ;;  %1555 = vmatprep.subr.bf16.mxu0 %v1695_v38  ;;  %v1698_v10 = vld [vmem:[%s2088_s3 + $0x28] sm:$0xff]   ;;  %v1699_v11 = vld [vmem:[%s2088_s3 + $0x10] sm:$0xff]  }
 0x134   : > { %1534 = vmatpush3.bf16.msra.mxu1 %v1694_v7  ;;  %1556 = vmatpush3.bf16.msra.mxu0 %v1695_v38  ;;  %v751_v12 = vld [vmem:[#allocation2 + $0x8] sm:$0xff]  ;;  %v737_v13 = vld [vmem:[#allocation2] sm:$0xff]  ;;  %v1700_v14 = vld [vmem:[%s2088_s3 + $0x30] sm:$0xff]  }
 0x135   : > { %1535 = vmatprep.subr.bf16.mxu1 %v1696_v8  ;;  %1557 = vmatprep.subr.bf16.mxu0 %v1697_v9  ;;  %v752_v15 = vld [vmem:[#allocation2 + $0x10] sm:$0xff]  ;;  %v1701_v16 = vld [vmem:[%s2088_s3 + $0x38] sm:$0xff]   ;;  %v1702_v18 = vld [vmem:[%s2088_s3 + $0x40] sm:$0xff]  }
 0x136   : > { %1539 = vmatprep.mubr.msk.bf16.mxu1 %vm396_vm3, %v751_v12  ;;  %1561 = vmatprep.mubr.msk.bf16.mxu0 %vm396_vm3, %v737_v13  ;;  %v753_v17 = vld [vmem:[#allocation2 + $0x18] sm:$0xff]  ;;  %v754_v19 = vld [vmem:[#allocation2 + $0x20] sm:$0xff]  ;;  %v755_v20 = vld [vmem:[#allocation2 + $0x28] sm:$0xff] }
 0x137   : > { %v756_v21 = vld [vmem:[#allocation2 + $0x30] sm:$0xff]  ;;  %v757_v22 = vld [vmem:[#allocation2 + $0x38] sm:$0xff]  ;;  %v758_v23 = vld [vmem:[#allocation2 + $0x40] sm:$0xff] }
 0x138   : > { %1536 = vmatpush3.bf16.msra.mxu1 %v1696_v8  ;;  %1558 = vmatpush3.bf16.msra.mxu0 %v1697_v9  ;;  %v1052_v24 = vld [vmem:[#allocation2 + $0x48] sm:$0xff]  ;;  %v2020_v34 = vld [vmem:[#allocation3] ss:$0 sm:$0xff] }
 0x139   : > { %1537 = vmatprep.subr.bf16.mxu1 %v1698_v10  ;;  %1559 = vmatprep.subr.bf16.mxu0 %v1699_v11 }
 0x13c   : > { %1538 = vmatpush3.bf16.msra.mxu1 %v1698_v10  ;;  %1560 = vmatpush3.bf16.msra.mxu0 %v1699_v11 }
 0x13d   : > { %1599 = vmatprep.subr.bf16.mxu1 %v1695_v38  ;;  %1577 = vmatprep.subr.bf16.mxu0 %v1700_v14 }
 0x13f   : > { %1540 = vmatmul.mubr.msk.bf16.vlgmr.msra.gmra.mrb[0].mxu1 %vm396_vm3, %v752_v15  ;;  %1562 = vmatmul.mubr.msk.bf16.vlgmr.msra.gmra.mrb[0].mxu0 %vm396_vm3, %v751_v12 }
 0x140   : > { %1602 = vmatpush3.bf16.msra.mxu1 %v1695_v38  ;;  %1578 = vmatpush3.bf16.msra.mxu0 %v1700_v14 }
 0x141   : > { %1543 = vmatprep.mubr.msk.bf16.mxu1 %vm396_vm3, %v753_v17  ;;  %1579 = vmatprep.subr.bf16.mxu0 %v1701_v16 }
 0x142   : > { %1565 = vmatprep.mubr.msk.bf16.mxu0 %vm396_vm3, %v752_v15  ;;  %1600 = vmatprep.subr.bf16.mxu1 %v1697_v9 }
 0x144   : > { %1603 = vmatpush3.bf16.msra.mxu1 %v1697_v9  ;;  %1580 = vmatpush3.bf16.msra.mxu0 %v1701_v16 }
 0x145   : > { %1601 = vmatprep.subr.bf16.mxu1 %v1699_v11  ;;  %1581 = vmatprep.subr.bf16.mxu0 %v1702_v18 }
 0x147   : > { %1544 = vmatmul.mubr.msk.bf16.gmra.mrb[4].mxu1 %vm396_vm3, %v754_v19  ;;  %1566 = vmatmul.mubr.msk.bf16.gmra.mrb[4].mxu0 %vm396_vm3, %v753_v17 }
 0x148   : > { %1547 = vmatprep.mubr.msk.bf16.mxu1 %vm396_vm3, %v755_v20  ;;  %1582 = vmatpush3.bf16.msra.mxu0 %v1702_v18 }
 0x149   : > { %1583 = vmatprep.mubr.msk.bf16.mxu0 %vm396_vm3, %v752_v15  ;;  %1604 = vmatpush3.bf16.msra.mxu1 %v1699_v11 }
 0x14f   : > { %1548 = vmatmul.mubr.msk.bf16.gmra.mrb[8].mxu1 %vm396_vm3, %v756_v21  ;;  %1584 = vmatmul.mubr.msk.bf16.vlgmr.msra.gmra.mrb[0].mxu0 %vm396_vm3, %v753_v17 }
 0x150   : > { %1551 = vmatprep.mubr.msk.bf16.mxu1 %vm396_vm3, %v757_v22  ;;  %1587 = vmatprep.mubr.msk.bf16.mxu0 %vm396_vm3, %v754_v19 }
 0x157   : > { %1552 = vmatmul.mubr.msk.bf16.gmra.mrb[12].mxu1 %vm396_vm3, %v758_v23  ;;  %1588 = vmatmul.mubr.msk.bf16.gmra.mrb[4].mxu0 %vm396_vm3, %v755_v20 }
 0x158   : > { %1569 = vmatprep.mubr.msk.bf16.mxu1 %vm396_vm3, %v754_v19  ;;  %1591 = vmatprep.mubr.msk.bf16.mxu0 %vm396_vm3, %v756_v21 }
 0x15f   : > { %1570 = vmatmul.mubr.msk.bf16.vlgmr.msra.gmra.mrb[8].mxu1 %vm396_vm3, %v755_v20  ;;  %1592 = vmatmul.mubr.msk.bf16.gmra.mrb[8].mxu0 %vm396_vm3, %v757_v22 }
 0x160   : > { %1573 = vmatprep.mubr.msk.bf16.mxu1 %vm396_vm3, %v756_v21  ;;  %1595 = vmatprep.mubr.msk.bf16.mxu0 %vm396_vm3, %v758_v23 }
 0x167   : > { %1574 = vmatmul.mubr.msk.bf16.gmra.mrb[12].mxu1 %vm396_vm3, %v757_v22  ;;  %1596 = vmatmul.mubr.msk.bf16.gmra.mrb[12].mxu0 %vm396_vm3, %v1052_v24 }
 0x212   : > { %v1541_v25 = vpop.f32.mrb[0].mxu1 }
 0x213   : > { %v842_v26 = vpop.f32.mrb[1].mxu1 }
 0x214   : > { %v1542_v27 = vpop.f32.mrb[2].mxu1 }
 0x215   : > { %v845_v28 = vpop.f32.mrb[3].mxu1 }
 0x21a   : > { %v1545_v29 = vpop.f32.mrb[4].mxu1 }
 0x21b   : > { %v858_v30 = vpop.f32.mrb[5].mxu1 }
 0x21c   : > { %v1546_v31 = vpop.f32.mrb[6].mxu1 }
 0x21d   : > { %v861_v32 = vpop.f32.mrb[7].mxu1 }
 0x222   : > { %v1585_v33 = vpop.f32.mrb[0].mxu0 }
 0x223   : > { %v1605_v35 = vadd.f32 %v1585_v33, %v1541_v25  ;;  %v1136_v36 = vpop.f32.mrb[1].mxu0 }
 0x224   : > { %v1606_v37 = vadd.f32 %v1136_v36, %v842_v26  ;;  %v1586_v39 = vpop.f32.mrb[2].mxu0 }
 0x225   : > { %v1224_v40 = vadd.f32 %v1605_v35, %v2020_v34  ;;  %v1607_v41 = vadd.f32 %v1586_v39, %v1542_v27  ;;  %v1139_v42 = vpop.f32.mrb[3].mxu0 }
 0x226   : > { %v1222_v43 = vadd.f32 %v1606_v37, %v2020_v34  ;;  %v1608_v44 = vadd.f32 %v1139_v42, %v845_v28 }
 0x227   : > { %1241 = vst.msk [vmem:[%s1824_s16 + $0x10] sm:$0xff] %vm1238_vm9, %v1224_v40  ;;  %v1225_v45 = vadd.f32 %v1607_v41, %v2020_v34 }
 0x228   : > { %1239 = vst.msk [vmem:[%s1824_s16] sm:$0xff] %vm1238_vm9, %v1222_v43  ;;  %v1223_v46 = vadd.f32 %v1608_v44, %v2020_v34 }
 0x229   : > { %1242 = vst.msk [vmem:[%s1824_s16 + $0x18] sm:$0xff] %vm1238_vm9, %v1225_v45 }
 0x22a   : > { %1240 = vst.msk [vmem:[%s1824_s16 + $0x8] sm:$0xff] %vm1238_vm9, %v1223_v46  ;;  %v1589_v47 = vpop.f32.mrb[4].mxu0 }
 0x22b   : > { %v1609_v48 = vadd.f32 %v1589_v47, %v1545_v29  ;;  %v1152_v49 = vpop.f32.mrb[5].mxu0 }
 0x22c   : > { %v1610_v50 = vadd.f32 %v1152_v49, %v858_v30  ;;  %v1590_v51 = vpop.f32.mrb[6].mxu0 }
 0x22d   : > { %v1228_v52 = vadd.f32 %v1609_v48, %v2020_v34  ;;  %v1611_v53 = vadd.f32 %v1590_v51, %v1546_v31  ;;  %v1155_v54 = vpop.f32.mrb[7].mxu0 }
 0x22e   : > { %v1226_v55 = vadd.f32 %v1610_v50, %v2020_v34  ;;  %v1612_v56 = vadd.f32 %v1155_v54, %v861_v32 }
 0x22f   : > { %1245 = vst.msk [vmem:[%s1824_s16 + $0x30] sm:$0xff] %vm1238_vm9, %v1228_v52  ;;  %v1229_v57 = vadd.f32 %v1611_v53, %v2020_v34 }
 0x230   : > { %1243 = vst.msk [vmem:[%s1824_s16 + $0x20] sm:$0xff] %vm1238_vm9, %v1226_v55  ;;  %v1227_v58 = vadd.f32 %v1612_v56, %v2020_v34 }
 0x231   : > { %1246 = vst.msk [vmem:[%s1824_s16 + $0x38] sm:$0xff] %vm1238_vm9, %v1229_v57 }
 0x232   : > { %v1571_v59 = vpop.f32.mrb[8].mxu1  ;;  %1244 = vst.msk [vmem:[%s1824_s16 + $0x28] sm:$0xff] %vm1238_vm9, %v1227_v58  ;;  %v1593_v60 = vpop.f32.mrb[8].mxu0 }
 0x233   : > { %v1013_v61 = vpop.f32.mrb[9].mxu1  ;;  %v1613_v62 = vadd.f32 %v1593_v60, %v1571_v59  ;;  %v1168_v63 = vpop.f32.mrb[9].mxu0 }
 0x234   : > { %v1572_v0 = vpop.f32.mrb[10].mxu1  ;;  %v1614_v1 = vadd.f32 %v1168_v63, %v1013_v61  ;;  %v1594_v2 = vpop.f32.mrb[10].mxu0 }
 0x235   : > { %v1016_v3 = vpop.f32.mrb[11].mxu1  ;;  %v1232_v4 = vadd.f32 %v1613_v62, %v2020_v34  ;;  %v1615_v5 = vadd.f32 %v1594_v2, %v1572_v0  ;;  %v1171_v6 = vpop.f32.mrb[11].mxu0 }
 0x236   : > { %v1230_v7 = vadd.f32 %v1614_v1, %v2020_v34  ;;  %v1616_v38 = vadd.f32 %v1171_v6, %v1016_v3 }
 0x237   : > { %1249 = vst.msk [vmem:[%s1824_s16 + $0x50] sm:$0xff] %vm1238_vm9, %v1232_v4  ;;  %v1233_v8 = vadd.f32 %v1615_v5, %v2020_v34 }
 0x238   : > { %1247 = vst.msk [vmem:[%s1824_s16 + $0x40] sm:$0xff] %vm1238_vm9, %v1230_v7  ;;  %v1231_v9 = vadd.f32 %v1616_v38, %v2020_v34 }
 0x239   : > { %1250 = vst.msk [vmem:[%s1824_s16 + $0x58] sm:$0xff] %vm1238_vm9, %v1233_v8 }
 0x23a   : > { %v1575_v10 = vpop.f32.mrb[12].mxu1  ;;  %1248 = vst.msk [vmem:[%s1824_s16 + $0x48] sm:$0xff] %vm1238_vm9, %v1231_v9  ;;  %v1597_v11 = vpop.f32.mrb[12].mxu0 }
 0x23b   : > { %v1029_v12 = vpop.f32.mrb[13].mxu1  ;;  %v1617_v13 = vadd.f32 %v1597_v11, %v1575_v10  ;;  %v1184_v14 = vpop.f32.mrb[13].mxu0 }
 0x23c   : > { %v1576_v15 = vpop.f32.mrb[14].mxu1  ;;  %v1618_v16 = vadd.f32 %v1184_v14, %v1029_v12  ;;  %v1598_v17 = vpop.f32.mrb[14].mxu0 }
 0x23d   : > { %v1032_v18 = vpop.f32.mrb[15].mxu1  ;;  %v1236_v19 = vadd.f32 %v1617_v13, %v2020_v34  ;;  %v1619_v20 = vadd.f32 %v1598_v17, %v1576_v15  ;;  %v1187_v21 = vpop.f32.mrb[15].mxu0 }
 0x23e   : > { %v1234_v22 = vadd.f32 %v1618_v16, %v2020_v34  ;;  %v1620_v23 = vadd.f32 %v1187_v21, %v1032_v18 }
 0x23f   : > { %1253 = vst.msk [vmem:[%s1824_s16 + $0x70] sm:$0xff] %vm1238_vm9, %v1236_v19  ;;  %v1237_v24 = vadd.f32 %v1619_v20, %v2020_v34 }
 0x240   : > { %1251 = vst.msk [vmem:[%s1824_s16 + $0x60] sm:$0xff] %vm1238_vm9, %v1234_v22  ;;  %v1235_v25 = vadd.f32 %v1620_v23, %v2020_v34 }
 0x241   : > { %1254 = vst.msk [vmem:[%s1824_s16 + $0x78] sm:$0xff] %vm1238_vm9, %v1237_v24 }
 0x242   : > { %1252 = vst.msk [vmem:[%s1824_s16 + $0x68] sm:$0xff] %vm1238_vm9, %v1235_v25 }
 0x243 PF: > { %s17_s24 = sadd.s32 1, %s1741_s24   ;;  %s2095_s20 = smov %s1733_s22 }
 0x244   : > { %p14_p12 = scmp.ge.s32.totalorder %s17_s24, 6   ;;  %s2096_s21 = smov %s1737_s23 }
 0x245   : > { %s2097_s22 = smov %s2100_s4  ;;  %s2098_s23 = smov %s2104_s25 }
 0x246   :  { %16 = sbr.rel (!%p14_p12) target bundleno = 3 (0x3), region = 89 }

// kernel: scunicorn_forward.43
= control target key start
LH: loop header
LB: loop body
LE: loop exit
PB: predicated region body
PF: predicated region fallthrough
CT: control target
= control target key end

     0   :  { %s2916_s30 = smov 0   ;;  %s3328_s0 = inlined_call_operand.vmem [shape: bf16[512,16], index: 0, kind: input, shape index: {}]   ;;  %s3329_s1 = inlined_call_operand.vmem [shape: bf16[512,16], index: 1, kind: input, shape index: {}]   ;;  %s3330_s2 = inlined_call_operand.vmem [shape: bf16[512,16], index: 2, kind: input, shape index: {}]   ;;  %s3331_s3 = inlined_call_operand.vmem [shape: bf16[512,16], index: 3, kind: input, shape index: {}]   ;;  %s3332_s4 = inlined_call_operand.vmem [shape: bf16[16,16], index: 4, kind: input, shape index: {}]   ;;  %s3333_s5 = inlined_call_operand.vmem [shape: bf16[16,16], index: 5, kind: input, shape index: {}]   ;;  %s3334_s6 = inlined_call_operand.vmem [shape: bf16[16,16], index: 6, kind: input, shape index: {}]   ;;  %s3335_s7 = inlined_call_operand.vmem [shape: bf16[16,16], index: 7, kind: input, shape index: {}]   ;;  %s3336_s8 = inlined_call_operand.vmem [shape: f32[1,16], index: 8, kind: input, shape index: {}]   ;;  %s3337_s9 = inlined_call_operand.vmem [shape: bf16[512,16], index: 9, kind: output, shape index: {}]  }
   0x1 LB: > { %s2364_s10 = sadd.s32 4294967295, %s2864_s30   ;;  %p2368_p0 = scmp.ge.s32.totalorder %s2864_s30, 1  ;;  %s2864_s30 = sphi %s2916_s30, %s19_s30  }
   0x2   : > { %p321_p1 = scmp.lt.s32.totalorder %s2864_s30, 3 }
   0x4   : > { %p322_p2 = pnand %p2368_p0, %p321_p1 }
   0x5   : > { %v2790_v0 = vld [vmem:[%s3332_s4] sm:$0xff] (!%p322_p2)   ;;  %s2369_s13 = sshll.u32 (!%p322_p2), %s2364_s10, 5  ;;  %vm523_vm0 = vcmask (!%p322_p2), 130048   ;;  %vm2239_vm1 = vcmask (!%p322_p2), 125952  }
   0x6   : > { %325 = sbr.rel (%p322_p2) target bundleno = 380 (0x17c), region = 56  ;;  %p373_p3 = scmp.lt.s32.totalorder (!%p322_p2), %s2369_s13, 63  ;;  %2646 = vmatprep.subr.bf16.mxu0 (!%p322_p2), %v2790_v0  ;;  %v2792_v1 = vld [vmem:[%s3334_s6] sm:$0xff] (!%p322_p2)  }
   0x7   : > { %2647 = vmatpush3.bf16.msra.mxu0 (!%p322_p2), %v2790_v0  ;;  %v2794_v2 = vld [vmem:[%s3333_s5] sm:$0xff] (!%p322_p2)  }
   0x8   : > { %2714 = vmatprep.subr.bf16.mxu0 (!%p322_p2), %v2792_v1  ;;  %v2799_v3 = vld [vmem:[%s3335_s7] sm:$0xff] (!%p322_p2)   ;;  %2680 = vmatprep.subr.bf16.mxu1 (!%p322_p2), %v2794_v2 }
   0x9   : > { %2681 = vmatpush3.bf16.msra.mxu1 (!%p322_p2), %v2794_v2 }
   0xa   : > { %2748 = vmatprep.subr.bf16.mxu1 (!%p322_p2), %v2799_v3 }
   0xd   : > { %s3339_s13 = smov (!%p373_p3, %s2369_s13), 63 }
   0xe   : > { %s2936_s20 = sshll.u32 %s3339_s13, 2 }
   0xf   : > { %s2942_s23 = scalar_lea.vmem %s3328_s0, %s2936_s20  ;;  %s2949_s26 = scalar_lea.vmem %s3329_s1, %s2936_s20 }
  0x10   : > { %v2791_v4 = vld [vmem:[%s2942_s23] sm:$0xff]   ;;  %v2793_v5 = vld [vmem:[%s2942_s23 + $0x8] sm:$0xff]   ;;  %v2796_v7 = vld [vmem:[%s2942_s23 + $0x10] sm:$0xff]   ;;  %s2991_s29 = scalar_lea.vmem %s3330_s2, %s2936_s20  ;;  %s2998_s12 = scalar_lea.vmem %s3331_s3, %s2936_s20 }
  0x11   : > { %2648 = vmatprep.mubr.msk.bf16.mxu0 %vm523_vm0, %v2791_v4  ;;  %v2795_v6 = vld [vmem:[%s2949_s26] sm:$0xff]   ;;  %v2797_v8 = vld [vmem:[%s2949_s26 + $0x8] sm:$0xff]   ;;  %v2800_v9 = vld [vmem:[%s2949_s26 + $0x10] sm:$0xff]   ;;  %s3180_s17 = scalar_lea.vmem %s3337_s9, %s2936_s20 }
  0x12   : > { %2649 = vmatmul.mubr.msk.bf16.vlgmr.msra.gmra.mrb[0].mxu0 %vm523_vm0, %v2793_v5  ;;  %2682 = vmatprep.mubr.msk.bf16.mxu1 %vm523_vm0, %v2795_v6  ;;  %v2798_v10 = vld [vmem:[%s2942_s23 + $0x18] sm:$0xff]   ;;  %v2801_v11 = vld [vmem:[%s2942_s23 + $0x20] sm:$0xff]   ;;  %v2803_v14 = vld [vmem:[%s2942_s23 + $0x28] sm:$0xff]  }
  0x13   : > { %2715 = vmatpush3.bf16.msra.mxu0 %v2792_v1  ;;  %2652 = vmatprep.mubr.msk.bf16.mxu0 %vm523_vm0, %v2796_v7  ;;  %v2802_v12 = vld [vmem:[%s2949_s26 + $0x18] sm:$0xff]   ;;  %v2804_v13 = vld [vmem:[%s2949_s26 + $0x20] sm:$0xff]   ;;  %v2805_v15 = vld [vmem:[%s2942_s23 + $0x30] sm:$0xff]  }
  0x14   : > { %2683 = vmatmul.mubr.msk.bf16.vlgmr.msra.gmra.mrb[0].mxu1 %vm523_vm0, %v2797_v8  ;;  %v2806_v16 = vld [vmem:[%s2949_s26 + $0x28] sm:$0xff]   ;;  %v2808_v17 = vld [vmem:[%s2949_s26 + $0x30] sm:$0xff]   ;;  %v2807_v18 = vld [vmem:[%s2942_s23 + $0x38] sm:$0xff]  }
  0x15   : > { %2749 = vmatpush3.bf16.msra.mxu1 %v2799_v3  ;;  %2686 = vmatprep.mubr.msk.bf16.mxu1 %vm523_vm0, %v2800_v9  ;;  %v2809_v19 = vld [vmem:[%s2942_s23 + $0x40] sm:$0xff]   ;;  %v2810_v20 = vld [vmem:[%s2949_s26 + $0x38] sm:$0xff]   ;;  %v2811_v22 = vld [vmem:[%s2942_s23 + $0x48] sm:$0xff]  }
  0x16   : > { %v2812_v21 = vld [vmem:[%s2949_s26 + $0x40] sm:$0xff]   ;;  %v2813_v23 = vld [vmem:[%s2942_s23 + $0x50] sm:$0xff]   ;;  %v2814_v24 = vld [vmem:[%s2949_s26 + $0x48] sm:$0xff]  }
  0x17   : > { %v2816_v25 = vld [vmem:[%s2949_s26 + $0x50] sm:$0xff]   ;;  %v2815_v26 = vld [vmem:[%s2942_s23 + $0x58] sm:$0xff]   ;;  %v2817_v27 = vld [vmem:[%s2942_s23 + $0x60] sm:$0xff]  }
  0x18   : > { %v2818_v28 = vld [vmem:[%s2949_s26 + $0x58] sm:$0xff]   ;;  %v2820_v29 = vld [vmem:[%s2949_s26 + $0x60] sm:$0xff]   ;;  %v2819_v30 = vld [vmem:[%s2942_s23 + $0x68] sm:$0xff]  }
  0x19   : > { %v2821_v31 = vld [vmem:[%s2942_s23 + $0x70] sm:$0xff]   ;;  %v2822_v32 = vld [vmem:[%s2949_s26 + $0x68] sm:$0xff]   ;;  %v2823_v34 = vld [vmem:[%s2942_s23 + $0x78] sm:$0xff]  }
  0x1a   : > { %2653 = vmatmul.mubr.msk.bf16.gmra.mrb[4].mxu0 %vm523_vm0, %v2798_v10  ;;  %v2824_v33 = vld [vmem:[%s2949_s26 + $0x70] sm:$0xff]   ;;  %v2826_v35 = vld [vmem:[%s2991_s29] sm:$0xff]   ;;  %v2825_v36 = vld [vmem:[%s2949_s26 + $0x78] sm:$0xff]  }
  0x1b   : > { %2656 = vmatprep.mubr.msk.bf16.mxu0 %vm523_vm0, %v2801_v11  ;;  %v2828_v37 = vld [vmem:[%s2998_s12] sm:$0xff]   ;;  %v2827_v38 = vld [vmem:[%s2991_s29 + $0x8] sm:$0xff]   ;;  %v2829_v39 = vld [vmem:[%s2991_s29 + $0x10] sm:$0xff]  }
  0x1c   : > { %2687 = vmatmul.mubr.msk.bf16.gmra.mrb[4].mxu1 %vm523_vm0, %v2802_v12  ;;  %v2830_v40 = vld [vmem:[%s2998_s12 + $0x8] sm:$0xff]   ;;  %v2832_v41 = vld [vmem:[%s2998_s12 + $0x10] sm:$0xff]   ;;  %v2831_v42 = vld [vmem:[%s2991_s29 + $0x18] sm:$0xff]  }
  0x1d   : > { %2690 = vmatprep.mubr.msk.bf16.mxu1 %vm523_vm0, %v2804_v13  ;;  %v2833_v43 = vld [vmem:[%s2991_s29 + $0x20] sm:$0xff]   ;;  %v2834_v44 = vld [vmem:[%s2998_s12 + $0x18] sm:$0xff]   ;;  %v2835_v46 = vld [vmem:[%s2991_s29 + $0x28] sm:$0xff]  }
  0x1e   : > { %v2836_v45 = vld [vmem:[%s2998_s12 + $0x20] sm:$0xff]   ;;  %v2837_v47 = vld [vmem:[%s2991_s29 + $0x30] sm:$0xff]   ;;  %v2838_v48 = vld [vmem:[%s2998_s12 + $0x28] sm:$0xff]  }
  0x1f   : > { %v2840_v49 = vld [vmem:[%s2998_s12 + $0x30] sm:$0xff]   ;;  %v2839_v50 = vld [vmem:[%s2991_s29 + $0x38] sm:$0xff]   ;;  %v2841_v51 = vld [vmem:[%s2991_s29 + $0x40] sm:$0xff]  }
  0x20   : > { %v2842_v52 = vld [vmem:[%s2998_s12 + $0x38] sm:$0xff]   ;;  %v2844_v53 = vld [vmem:[%s2998_s12 + $0x40] sm:$0xff]   ;;  %v2843_v54 = vld [vmem:[%s2991_s29 + $0x48] sm:$0xff]  }
  0x21   : > { %v2845_v55 = vld [vmem:[%s2991_s29 + $0x50] sm:$0xff]   ;;  %v2846_v56 = vld [vmem:[%s2998_s12 + $0x48] sm:$0xff]   ;;  %v2847_v58 = vld [vmem:[%s2991_s29 + $0x58] sm:$0xff]  }
  0x22   : > { %2657 = vmatmul.mubr.msk.bf16.gmra.mrb[8].mxu0 %vm523_vm0, %v2803_v14  ;;  %v2848_v57 = vld [vmem:[%s2998_s12 + $0x50] sm:$0xff]   ;;  %v2849_v59 = vld [vmem:[%s2991_s29 + $0x60] sm:$0xff]   ;;  %v2850_v60 = vld [vmem:[%s2998_s12 + $0x58] sm:$0xff]  }
  0x23   : > { %2660 = vmatprep.mubr.msk.bf16.mxu0 %vm523_vm0, %v2805_v15  ;;  %v2852_v61 = vld [vmem:[%s2998_s12 + $0x60] sm:$0xff]   ;;  %v2851_v62 = vld [vmem:[%s2991_s29 + $0x68] sm:$0xff]   ;;  %v2853_v63 = vld [vmem:[%s2991_s29 + $0x70] sm:$0xff]  }
  0x24   : > { %2691 = vmatmul.mubr.msk.bf16.gmra.mrb[8].mxu1 %vm523_vm0, %v2806_v16  ;;  %v2854_v0 = vld [vmem:[%s2998_s12 + $0x68] sm:$0xff]   ;;  %v2856_v1 = vld [vmem:[%s2998_s12 + $0x70] sm:$0xff]   ;;  %v2855_v2 = vld [vmem:[%s2991_s29 + $0x78] sm:$0xff]  }
  0x25   : > { %2694 = vmatprep.mubr.msk.bf16.mxu1 %vm523_vm0, %v2808_v17  ;;  %v2857_v3 = vld [vmem:[%s2998_s12 + $0x78] sm:$0xff]  }
  0x2a   : > { %2661 = vmatmul.mubr.msk.bf16.gmra.mrb[12].mxu0 %vm523_vm0, %v2807_v18 }
  0x2b   : > { %2664 = vmatprep.mubr.msk.bf16.mxu0 %vm523_vm0, %v2809_v19 }
  0x2c   : > { %2695 = vmatmul.mubr.msk.bf16.gmra.mrb[12].mxu1 %vm523_vm0, %v2810_v20 }
  0x2d   : > { %2698 = vmatprep.mubr.msk.bf16.mxu1 %vm523_vm0, %v2812_v21 }
  0x32   : > { %2665 = vmatmul.mubr.msk.bf16.gmra.mrb[16].mxu0 %vm523_vm0, %v2811_v22 }
  0x33   : > { %2668 = vmatprep.mubr.msk.bf16.mxu0 %vm523_vm0, %v2813_v23 }
  0x34   : > { %2699 = vmatmul.mubr.msk.bf16.gmra.mrb[16].mxu1 %vm523_vm0, %v2814_v24 }
  0x35   : > { %2702 = vmatprep.mubr.msk.bf16.mxu1 %vm523_vm0, %v2816_v25 }
  0x3a   : > { %2669 = vmatmul.mubr.msk.bf16.gmra.mrb[20].mxu0 %vm523_vm0, %v2815_v26 }
  0x3b   : > { %2672 = vmatprep.mubr.msk.bf16.mxu0 %vm523_vm0, %v2817_v27 }
  0x3c   : > { %2703 = vmatmul.mubr.msk.bf16.gmra.mrb[20].mxu1 %vm523_vm0, %v2818_v28 }
  0x3d   : > { %2706 = vmatprep.mubr.msk.bf16.mxu1 %vm523_vm0, %v2820_v29 }
  0x42   : > { %2673 = vmatmul.mubr.msk.bf16.gmra.mrb[24].mxu0 %vm523_vm0, %v2819_v30 }
  0x43   : > { %2676 = vmatprep.mubr.msk.bf16.mxu0 %vm523_vm0, %v2821_v31 }
  0x44   : > { %2707 = vmatmul.mubr.msk.bf16.gmra.mrb[24].mxu1 %vm523_vm0, %v2822_v32 }
  0x45   : > { %2710 = vmatprep.mubr.msk.bf16.mxu1 %vm523_vm0, %v2824_v33 }
  0x4a   : > { %2677 = vmatmul.mubr.msk.bf16.gmra.mrb[28].mxu0 %vm523_vm0, %v2823_v34 }
  0x4b   : > { %2716 = vmatprep.mubr.msk.bf16.mxu0 %vm523_vm0, %v2826_v35 }
  0x4c   : > { %2711 = vmatmul.mubr.msk.bf16.gmra.mrb[28].mxu1 %vm523_vm0, %v2825_v36 }
  0x4d   : > { %2750 = vmatprep.mubr.msk.bf16.mxu1 %vm523_vm0, %v2828_v37 }
  0x52   : > { %2717 = vmatmul.mubr.msk.bf16.vlgmr.msra.gmra.mrb[32].mxu0 %vm523_vm0, %v2827_v38 }
  0x53   : > { %2720 = vmatprep.mubr.msk.bf16.mxu0 %vm523_vm0, %v2829_v39 }
  0x54   : > { %2751 = vmatmul.mubr.msk.bf16.vlgmr.msra.gmra.mrb[32].mxu1 %vm523_vm0, %v2830_v40 }
  0x55   : > { %2754 = vmatprep.mubr.msk.bf16.mxu1 %vm523_vm0, %v2832_v41 }
  0x5a   : > { %2721 = vmatmul.mubr.msk.bf16.gmra.mrb[36].mxu0 %vm523_vm0, %v2831_v42 }
  0x5b   : > { %2724 = vmatprep.mubr.msk.bf16.mxu0 %vm523_vm0, %v2833_v43 }
  0x5c   : > { %2755 = vmatmul.mubr.msk.bf16.gmra.mrb[36].mxu1 %vm523_vm0, %v2834_v44 }
  0x5d   : > { %2758 = vmatprep.mubr.msk.bf16.mxu1 %vm523_vm0, %v2836_v45 }
  0x62   : > { %2725 = vmatmul.mubr.msk.bf16.gmra.mrb[40].mxu0 %vm523_vm0, %v2835_v46 }
  0x63   : > { %2728 = vmatprep.mubr.msk.bf16.mxu0 %vm523_vm0, %v2837_v47 }
  0x64   : > { %2759 = vmatmul.mubr.msk.bf16.gmra.mrb[40].mxu1 %vm523_vm0, %v2838_v48 }
  0x65   : > { %2762 = vmatprep.mubr.msk.bf16.mxu1 %vm523_vm0, %v2840_v49 }
  0x6a   : > { %2729 = vmatmul.mubr.msk.bf16.gmra.mrb[44].mxu0 %vm523_vm0, %v2839_v50 }
  0x6b   : > { %2732 = vmatprep.mubr.msk.bf16.mxu0 %vm523_vm0, %v2841_v51 }
  0x6c   : > { %2763 = vmatmul.mubr.msk.bf16.gmra.mrb[44].mxu1 %vm523_vm0, %v2842_v52 }
  0x6d   : > { %2766 = vmatprep.mubr.msk.bf16.mxu1 %vm523_vm0, %v2844_v53 }
  0x72   : > { %2733 = vmatmul.mubr.msk.bf16.gmra.mrb[48].mxu0 %vm523_vm0, %v2843_v54 }
  0x73   : > { %2736 = vmatprep.mubr.msk.bf16.mxu0 %vm523_vm0, %v2845_v55 }
  0x74   : > { %2767 = vmatmul.mubr.msk.bf16.gmra.mrb[48].mxu1 %vm523_vm0, %v2846_v56 }
  0x75   : > { %2770 = vmatprep.mubr.msk.bf16.mxu1 %vm523_vm0, %v2848_v57 }
  0x7a   : > { %2737 = vmatmul.mubr.msk.bf16.gmra.mrb[52].mxu0 %vm523_vm0, %v2847_v58 }
  0x7b   : > { %2740 = vmatprep.mubr.msk.bf16.mxu0 %vm523_vm0, %v2849_v59 }
  0x7c   : > { %2771 = vmatmul.mubr.msk.bf16.gmra.mrb[52].mxu1 %vm523_vm0, %v2850_v60 }
  0x7d   : > { %2774 = vmatprep.mubr.msk.bf16.mxu1 %vm523_vm0, %v2852_v61 }
  0x82   : > { %2741 = vmatmul.mubr.msk.bf16.gmra.mrb[56].mxu0 %vm523_vm0, %v2851_v62 }
  0x83   : > { %2744 = vmatprep.mubr.msk.bf16.mxu0 %vm523_vm0, %v2853_v63 }
  0x84   : > { %2775 = vmatmul.mubr.msk.bf16.gmra.mrb[56].mxu1 %vm523_vm0, %v2854_v0 }
  0x85   : > { %2778 = vmatprep.mubr.msk.bf16.mxu1 %vm523_vm0, %v2856_v1 }
  0x8a   : > { %2745 = vmatmul.mubr.msk.bf16.gmra.mrb[60].mxu0 %vm523_vm0, %v2855_v2 }
  0x8c   : > { %2779 = vmatmul.mubr.msk.bf16.gmra.mrb[60].mxu1 %vm523_vm0, %v2857_v3 }
  0xe5   : > { %v2650_v4 = vpop.f32.mrb[0].mxu0 }
  0xe6   : > { %735 = vst.msk [vmem:[#allocation2 + $0x10] sm:$0xff] %vm523_vm0, %v2650_v4  ;;  %v606_v5 = vpop.f32.mrb[1].mxu0 }
  0xe7   : > { %733 = vst.msk [vmem:[#allocation2] sm:$0xff] %vm523_vm0, %v606_v5  ;;  %v2651_v6 = vpop.f32.mrb[2].mxu0  ;;  %v2684_v8 = vpop.f32.mrb[0].mxu1 }
  0xe8   : > { %736 = vst.msk [vmem:[#allocation2 + $0x18] sm:$0xff] %vm523_vm0, %v2651_v6  ;;  %v609_v7 = vpop.f32.mrb[3].mxu0  ;;  %v999_v9 = vpop.f32.mrb[1].mxu1 }
  0xe9   : > { %734 = vst.msk [vmem:[#allocation2 + $0x8] sm:$0xff] %vm523_vm0, %v609_v7  ;;  %v2685_v10 = vpop.f32.mrb[2].mxu1 }
  0xea   : > { %v1002_v11 = vpop.f32.mrb[3].mxu1 }
  0xed   : > { %v767_v12 = vld [vmem:[#allocation2 + $0x10] sm:$0xff]  ;;  %v2654_v13 = vpop.f32.mrb[4].mxu0 }
  0xee   : > { %v1128_v14 = vadd.f32 %v2684_v8, %v767_v12  ;;  %739 = vst.msk [vmem:[#allocation2 + $0x30] sm:$0xff] %vm523_vm0, %v2654_v13  ;;  %v765_v15 = vld [vmem:[#allocation2] sm:$0xff]  ;;  %v622_v16 = vpop.f32.mrb[5].mxu0 }
  0xef   : > { %v1126_v17 = vadd.f32 %v999_v9, %v765_v15  ;;  %737 = vst.msk [vmem:[#allocation2 + $0x20] sm:$0xff] %vm523_vm0, %v622_v16  ;;  %v768_v18 = vld [vmem:[#allocation2 + $0x18] sm:$0xff]  ;;  %v2655_v19 = vpop.f32.mrb[6].mxu0  ;;  %v2688_v23 = vpop.f32.mrb[4].mxu1 }
  0xf0   : > { %1160 = vst.msk [vmem:[#allocation2 + $0x10] sm:$0xff] %vm523_vm0, %v1128_v14  ;;  %v1129_v20 = vadd.f32 %v2685_v10, %v768_v18  ;;  %740 = vst.msk [vmem:[#allocation2 + $0x38] sm:$0xff] %vm523_vm0, %v2655_v19  ;;  %v766_v21 = vld [vmem:[#allocation2 + $0x8] sm:$0xff]  ;;  %v625_v22 = vpop.f32.mrb[7].mxu0  ;;  %v1015_v25 = vpop.f32.mrb[5].mxu1 }
  0xf1   : > { %1158 = vst.msk [vmem:[#allocation2] sm:$0xff] %vm523_vm0, %v1126_v17  ;;  %v1127_v24 = vadd.f32 %v1002_v11, %v766_v21  ;;  %738 = vst.msk [vmem:[#allocation2 + $0x28] sm:$0xff] %vm523_vm0, %v625_v22  ;;  %v2689_v26 = vpop.f32.mrb[6].mxu1 }
  0xf2   : > { %1161 = vst.msk [vmem:[#allocation2 + $0x18] sm:$0xff] %vm523_vm0, %v1129_v20  ;;  %v1018_v27 = vpop.f32.mrb[7].mxu1 }
  0xf3   : > { %1159 = vst.msk [vmem:[#allocation2 + $0x8] sm:$0xff] %vm523_vm0, %v1127_v24 }
  0xf5   : > { %v771_v28 = vld [vmem:[#allocation2 + $0x30] sm:$0xff]  ;;  %v2658_v29 = vpop.f32.mrb[8].mxu0 }
  0xf6   : > { %v1132_v30 = vadd.f32 %v2688_v23, %v771_v28  ;;  %743 = vst.msk [vmem:[#allocation2 + $0x50] sm:$0xff] %vm523_vm0, %v2658_v29  ;;  %v769_v31 = vld [vmem:[#allocation2 + $0x20] sm:$0xff]  ;;  %v638_v32 = vpop.f32.mrb[9].mxu0 }
  0xf7   : > { %v1130_v33 = vadd.f32 %v1015_v25, %v769_v31  ;;  %741 = vst.msk [vmem:[#allocation2 + $0x40] sm:$0xff] %vm523_vm0, %v638_v32  ;;  %v772_v34 = vld [vmem:[#allocation2 + $0x38] sm:$0xff]  ;;  %v2659_v35 = vpop.f32.mrb[10].mxu0  ;;  %v2692_v39 = vpop.f32.mrb[8].mxu1 }
  0xf8   : > { %1164 = vst.msk [vmem:[#allocation2 + $0x30] sm:$0xff] %vm523_vm0, %v1132_v30  ;;  %v1133_v36 = vadd.f32 %v2689_v26, %v772_v34  ;;  %744 = vst.msk [vmem:[#allocation2 + $0x58] sm:$0xff] %vm523_vm0, %v2659_v35  ;;  %v770_v37 = vld [vmem:[#allocation2 + $0x28] sm:$0xff]  ;;  %v641_v38 = vpop.f32.mrb[11].mxu0  ;;  %v1031_v41 = vpop.f32.mrb[9].mxu1 }
  0xf9   : > { %1162 = vst.msk [vmem:[#allocation2 + $0x20] sm:$0xff] %vm523_vm0, %v1130_v33  ;;  %v1131_v40 = vadd.f32 %v1018_v27, %v770_v37  ;;  %742 = vst.msk [vmem:[#allocation2 + $0x48] sm:$0xff] %vm523_vm0, %v641_v38  ;;  %v2693_v42 = vpop.f32.mrb[10].mxu1 }
  0xfa   : > { %1165 = vst.msk [vmem:[#allocation2 + $0x38] sm:$0xff] %vm523_vm0, %v1133_v36  ;;  %v1034_v43 = vpop.f32.mrb[11].mxu1 }
  0xfb   : > { %1163 = vst.msk [vmem:[#allocation2 + $0x28] sm:$0xff] %vm523_vm0, %v1131_v40 }
  0xfd   : > { %v775_v44 = vld [vmem:[#allocation2 + $0x50] sm:$0xff]  ;;  %v2662_v45 = vpop.f32.mrb[12].mxu0 }
  0xfe   : > { %v1136_v46 = vadd.f32 %v2692_v39, %v775_v44  ;;  %747 = vst.msk [vmem:[#allocation2 + $0x70] sm:$0xff] %vm523_vm0, %v2662_v45  ;;  %v773_v47 = vld [vmem:[#allocation2 + $0x40] sm:$0xff]  ;;  %v654_v48 = vpop.f32.mrb[13].mxu0 }
  0xff   : > { %v1134_v49 = vadd.f32 %v1031_v41, %v773_v47  ;;  %745 = vst.msk [vmem:[#allocation2 + $0x60] sm:$0xff] %vm523_vm0, %v654_v48  ;;  %v776_v50 = vld [vmem:[#allocation2 + $0x58] sm:$0xff]  ;;  %v2663_v51 = vpop.f32.mrb[14].mxu0  ;;  %v2696_v55 = vpop.f32.mrb[12].mxu1 }
 0x100   : > { %1168 = vst.msk [vmem:[#allocation2 + $0x50] sm:$0xff] %vm523_vm0, %v1136_v46  ;;  %v1137_v52 = vadd.f32 %v2693_v42, %v776_v50  ;;  %748 = vst.msk [vmem:[#allocation2 + $0x78] sm:$0xff] %vm523_vm0, %v2663_v51  ;;  %v774_v53 = vld [vmem:[#allocation2 + $0x48] sm:$0xff]  ;;  %v657_v54 = vpop.f32.mrb[15].mxu0  ;;  %v1047_v57 = vpop.f32.mrb[13].mxu1 }
 0x101   : > { %1166 = vst.msk [vmem:[#allocation2 + $0x40] sm:$0xff] %vm523_vm0, %v1134_v49  ;;  %v1135_v56 = vadd.f32 %v1034_v43, %v774_v53  ;;  %746 = vst.msk [vmem:[#allocation2 + $0x68] sm:$0xff] %vm523_vm0, %v657_v54  ;;  %v2697_v58 = vpop.f32.mrb[14].mxu1 }
 0x102   : > { %1169 = vst.msk [vmem:[#allocation2 + $0x58] sm:$0xff] %vm523_vm0, %v1137_v52  ;;  %v1050_v59 = vpop.f32.mrb[15].mxu1 }
 0x103   : > { %1167 = vst.msk [vmem:[#allocation2 + $0x48] sm:$0xff] %vm523_vm0, %v1135_v56 }
 0x105   : > { %v779_v60 = vld [vmem:[#allocation2 + $0x70] sm:$0xff]  ;;  %v2666_v61 = vpop.f32.mrb[16].mxu0 }
 0x106   : > { %v1140_v62 = vadd.f32 %v2696_v55, %v779_v60  ;;  %751 = vst.msk [vmem:[#allocation2 + $0x90] sm:$0xff] %vm523_vm0, %v2666_v61  ;;  %v777_v63 = vld [vmem:[#allocation2 + $0x60] sm:$0xff]  ;;  %v670_v0 = vpop.f32.mrb[17].mxu0  ;;  %v1192_v61 = vld [vmem:[#allocation2 + $0x10] sm:$0xff] }
 0x107   : > { %v1138_v1 = vadd.f32 %v1047_v57, %v777_v63  ;;  %749 = vst.msk [vmem:[#allocation2 + $0x80] sm:$0xff] %vm523_vm0, %v670_v0  ;;  %v780_v2 = vld [vmem:[#allocation2 + $0x78] sm:$0xff]  ;;  %v2667_v3 = vpop.f32.mrb[18].mxu0  ;;  %v2700_v7 = vpop.f32.mrb[16].mxu1 }
 0x108   : > { %1172 = vst.msk [vmem:[#allocation2 + $0x70] sm:$0xff] %vm523_vm0, %v1140_v62  ;;  %v1141_v4 = vadd.f32 %v2697_v58, %v780_v2  ;;  %752 = vst.msk [vmem:[#allocation2 + $0x98] sm:$0xff] %vm523_vm0, %v2667_v3  ;;  %v778_v5 = vld [vmem:[#allocation2 + $0x68] sm:$0xff]  ;;  %v673_v6 = vpop.f32.mrb[19].mxu0  ;;  %v1063_v9 = vpop.f32.mrb[17].mxu1  ;;  %v1190_v2 = vld [vmem:[#allocation2] sm:$0xff] }
 0x109   : > { %1170 = vst.msk [vmem:[#allocation2 + $0x60] sm:$0xff] %vm523_vm0, %v1138_v1  ;;  %v1139_v8 = vadd.f32 %v1050_v59, %v778_v5  ;;  %750 = vst.msk [vmem:[#allocation2 + $0x88] sm:$0xff] %vm523_vm0, %v673_v6  ;;  %v2701_v10 = vpop.f32.mrb[18].mxu1 }
 0x10a   : > { %1173 = vst.msk [vmem:[#allocation2 + $0x78] sm:$0xff] %vm523_vm0, %v1141_v4  ;;  %v1066_v11 = vpop.f32.mrb[19].mxu1 }
 0x10b   : > { %1171 = vst.msk [vmem:[#allocation2 + $0x68] sm:$0xff] %vm523_vm0, %v1139_v8 }
 0x10d   : > { %v783_v12 = vld [vmem:[#allocation2 + $0x90] sm:$0xff]  ;;  %v2670_v13 = vpop.f32.mrb[20].mxu0 }
 0x10e   : > { %v1144_v14 = vadd.f32 %v2700_v7, %v783_v12  ;;  %755 = vst.msk [vmem:[#allocation2 + $0xb0] sm:$0xff] %vm523_vm0, %v2670_v13  ;;  %v781_v15 = vld [vmem:[#allocation2 + $0x80] sm:$0xff]  ;;  %v686_v16 = vpop.f32.mrb[21].mxu0  ;;  %v1193_v7 = vld [vmem:[#allocation2 + $0x18] sm:$0xff]  ;;  %v1191_v12 = vld [vmem:[#allocation2 + $0x8] sm:$0xff] }
 0x10f   : > { %v1142_v17 = vadd.f32 %v1063_v9, %v781_v15  ;;  %753 = vst.msk [vmem:[#allocation2 + $0xa0] sm:$0xff] %vm523_vm0, %v686_v16  ;;  %v784_v18 = vld [vmem:[#allocation2 + $0x98] sm:$0xff]  ;;  %v2671_v19 = vpop.f32.mrb[22].mxu0  ;;  %v2704_v23 = vpop.f32.mrb[20].mxu1 }
 0x110   : > { %1176 = vst.msk [vmem:[#allocation2 + $0x90] sm:$0xff] %vm523_vm0, %v1144_v14  ;;  %v1145_v20 = vadd.f32 %v2701_v10, %v784_v18  ;;  %756 = vst.msk [vmem:[#allocation2 + $0xb8] sm:$0xff] %vm523_vm0, %v2671_v19  ;;  %v782_v21 = vld [vmem:[#allocation2 + $0x88] sm:$0xff]  ;;  %v689_v22 = vpop.f32.mrb[23].mxu0  ;;  %v1079_v25 = vpop.f32.mrb[21].mxu1 }
 0x111   : > { %1174 = vst.msk [vmem:[#allocation2 + $0x80] sm:$0xff] %vm523_vm0, %v1142_v17  ;;  %v1143_v24 = vadd.f32 %v1066_v11, %v782_v21  ;;  %754 = vst.msk [vmem:[#allocation2 + $0xa8] sm:$0xff] %vm523_vm0, %v689_v22  ;;  %v2705_v26 = vpop.f32.mrb[22].mxu1 }
 0x112   : > { %1177 = vst.msk [vmem:[#allocation2 + $0x98] sm:$0xff] %vm523_vm0, %v1145_v20  ;;  %v1082_v27 = vpop.f32.mrb[23].mxu1  ;;  %v1196_v20 = vld [vmem:[#allocation2 + $0x30] sm:$0xff] }
 0x113   : > { %1175 = vst.msk [vmem:[#allocation2 + $0x88] sm:$0xff] %vm523_vm0, %v1143_v24 }
 0x115   : > { %v787_v28 = vld [vmem:[#allocation2 + $0xb0] sm:$0xff]  ;;  %v2674_v29 = vpop.f32.mrb[24].mxu0 }
 0x116   : > { %v1148_v30 = vadd.f32 %v2704_v23, %v787_v28  ;;  %759 = vst.msk [vmem:[#allocation2 + $0xd0] sm:$0xff] %vm523_vm0, %v2674_v29  ;;  %v785_v31 = vld [vmem:[#allocation2 + $0xa0] sm:$0xff]  ;;  %v702_v32 = vpop.f32.mrb[25].mxu0 }
 0x117   : > { %v1146_v33 = vadd.f32 %v1079_v25, %v785_v31  ;;  %757 = vst.msk [vmem:[#allocation2 + $0xc0] sm:$0xff] %vm523_vm0, %v702_v32  ;;  %v788_v34 = vld [vmem:[#allocation2 + $0xb8] sm:$0xff]  ;;  %v2675_v35 = vpop.f32.mrb[26].mxu0  ;;  %v2708_v39 = vpop.f32.mrb[24].mxu1  ;;  %v1194_v23 = vld [vmem:[#allocation2 + $0x20] sm:$0xff]  ;;  %v1195_v32 = vld [vmem:[#allocation2 + $0x28] sm:$0xff] }
 0x118   : > { %1180 = vst.msk [vmem:[#allocation2 + $0xb0] sm:$0xff] %vm523_vm0, %v1148_v30  ;;  %v1149_v36 = vadd.f32 %v2705_v26, %v788_v34  ;;  %760 = vst.msk [vmem:[#allocation2 + $0xd8] sm:$0xff] %vm523_vm0, %v2675_v35  ;;  %v786_v37 = vld [vmem:[#allocation2 + $0xa8] sm:$0xff]  ;;  %v705_v38 = vpop.f32.mrb[27].mxu0  ;;  %v1095_v41 = vpop.f32.mrb[25].mxu1 }
 0x119   : > { %1178 = vst.msk [vmem:[#allocation2 + $0xa0] sm:$0xff] %vm523_vm0, %v1146_v33  ;;  %v1147_v40 = vadd.f32 %v1082_v27, %v786_v37  ;;  %758 = vst.msk [vmem:[#allocation2 + $0xc8] sm:$0xff] %vm523_vm0, %v705_v38  ;;  %v2709_v42 = vpop.f32.mrb[26].mxu1  ;;  %v1197_v27 = vld [vmem:[#allocation2 + $0x38] sm:$0xff] }
 0x11a   : > { %1181 = vst.msk [vmem:[#allocation2 + $0xb8] sm:$0xff] %vm523_vm0, %v1149_v36  ;;  %v1098_v43 = vpop.f32.mrb[27].mxu1 }
 0x11b   : > { %1179 = vst.msk [vmem:[#allocation2 + $0xa8] sm:$0xff] %vm523_vm0, %v1147_v40 }
 0x11d   : > { %v791_v44 = vld [vmem:[#allocation2 + $0xd0] sm:$0xff]  ;;  %v2678_v45 = vpop.f32.mrb[28].mxu0 }
 0x11e   : > { %v1152_v46 = vadd.f32 %v2708_v39, %v791_v44  ;;  %763 = vst.msk [vmem:[#allocation2 + $0xf0] sm:$0xff] %vm523_vm0, %v2678_v45  ;;  %v789_v47 = vld [vmem:[#allocation2 + $0xc0] sm:$0xff]  ;;  %v718_v48 = vpop.f32.mrb[29].mxu0  ;;  %v1200_v44 = vld [vmem:[#allocation2 + $0x50] sm:$0xff] }
 0x11f   : > { %v1150_v49 = vadd.f32 %v1095_v41, %v789_v47  ;;  %761 = vst.msk [vmem:[#allocation2 + $0xe0] sm:$0xff] %vm523_vm0, %v718_v48  ;;  %v792_v50 = vld [vmem:[#allocation2 + $0xd8] sm:$0xff]  ;;  %v2679_v51 = vpop.f32.mrb[30].mxu0  ;;  %v2712_v55 = vpop.f32.mrb[28].mxu1  ;;  %v1198_v47 = vld [vmem:[#allocation2 + $0x40] sm:$0xff] }
 0x120   : > { %1184 = vst.msk [vmem:[#allocation2 + $0xd0] sm:$0xff] %vm523_vm0, %v1152_v46  ;;  %v1153_v52 = vadd.f32 %v2709_v42, %v792_v50  ;;  %764 = vst.msk [vmem:[#allocation2 + $0xf8] sm:$0xff] %vm523_vm0, %v2679_v51  ;;  %v790_v53 = vld [vmem:[#allocation2 + $0xc8] sm:$0xff]  ;;  %v721_v54 = vpop.f32.mrb[31].mxu0  ;;  %v1111_v57 = vpop.f32.mrb[29].mxu1 }
 0x121   : > { %1182 = vst.msk [vmem:[#allocation2 + $0xc0] sm:$0xff] %vm523_vm0, %v1150_v49  ;;  %v1151_v56 = vadd.f32 %v1098_v43, %v790_v53  ;;  %762 = vst.msk [vmem:[#allocation2 + $0xe8] sm:$0xff] %vm523_vm0, %v721_v54  ;;  %v2713_v58 = vpop.f32.mrb[30].mxu1  ;;  %v3169_v49 = vld [vmem:[%s3336_s8] ss:$0 sm:$0xff] }
 0x122   : > { %1185 = vst.msk [vmem:[#allocation2 + $0xd8] sm:$0xff] %vm523_vm0, %v1153_v52  ;;  %v1114_v59 = vpop.f32.mrb[31].mxu1  ;;  %v1201_v52 = vld [vmem:[#allocation2 + $0x58] sm:$0xff] }
 0x123   : > { %1183 = vst.msk [vmem:[#allocation2 + $0xc8] sm:$0xff] %vm523_vm0, %v1151_v56 }
 0x125   : > { %v795_v60 = vld [vmem:[#allocation2 + $0xf0] sm:$0xff]  ;;  %v2718_v62 = vpop.f32.mrb[32].mxu0 }
 0x126   : > { %v1156_v63 = vadd.f32 %v2712_v55, %v795_v60  ;;  %v793_v0 = vld [vmem:[#allocation2 + $0xe0] sm:$0xff]  ;;  %v1553_v1 = vadd.f32 %v2718_v62, %v1192_v61  ;;  %v1424_v3 = vpop.f32.mrb[33].mxu0 }
 0x127   : > { %v1154_v4 = vadd.f32 %v1111_v57, %v793_v0  ;;  %v796_v5 = vld [vmem:[#allocation2 + $0xf8] sm:$0xff]  ;;  %v1551_v6 = vadd.f32 %v1424_v3, %v1190_v2  ;;  %v2719_v8 = vpop.f32.mrb[34].mxu0  ;;  %v2752_v14 = vpop.f32.mrb[32].mxu1  ;;  %v1199_v57 = vld [vmem:[#allocation2 + $0x48] sm:$0xff] }
 0x128   : > { %1188 = vst.msk [vmem:[#allocation2 + $0xf0] sm:$0xff] %vm523_vm0, %v1156_v63  ;;  %1585 = vst.msk [vmem:[#allocation2 + $0x10] sm:$0xff] %vm523_vm0, %v1553_v1  ;;  %v1157_v9 = vadd.f32 %v2713_v58, %v796_v5  ;;  %v794_v10 = vld [vmem:[#allocation2 + $0xe8] sm:$0xff]  ;;  %v1554_v11 = vadd.f32 %v2719_v8, %v1193_v7  ;;  %v1427_v13 = vpop.f32.mrb[35].mxu0  ;;  %v1849_v17 = vpop.f32.mrb[33].mxu1 }
 0x129   : > { %1186 = vst.msk [vmem:[#allocation2 + $0xe0] sm:$0xff] %vm523_vm0, %v1154_v4  ;;  %1583 = vst.msk [vmem:[#allocation2] sm:$0xff] %vm523_vm0, %v1551_v6  ;;  %v1155_v15 = vadd.f32 %v1114_v59, %v794_v10  ;;  %v1552_v16 = vadd.f32 %v1427_v13, %v1191_v12  ;;  %v2753_v18 = vpop.f32.mrb[34].mxu1 }
 0x12a   : > { %1189 = vst.msk [vmem:[#allocation2 + $0xf8] sm:$0xff] %vm523_vm0, %v1157_v9  ;;  %1586 = vst.msk [vmem:[#allocation2 + $0x18] sm:$0xff] %vm523_vm0, %v1554_v11  ;;  %v1852_v19 = vpop.f32.mrb[35].mxu1 }
 0x12b   : > { %1187 = vst.msk [vmem:[#allocation2 + $0xe8] sm:$0xff] %vm523_vm0, %v1155_v15  ;;  %1584 = vst.msk [vmem:[#allocation2 + $0x8] sm:$0xff] %vm523_vm0, %v1552_v16  ;;  %v1204_v15 = vld [vmem:[#allocation2 + $0x70] sm:$0xff] }
 0x12d   : > { %v2722_v21 = vpop.f32.mrb[36].mxu0 }
 0x12e   : > { %v1557_v22 = vadd.f32 %v2722_v21, %v1196_v20  ;;  %v1440_v24 = vpop.f32.mrb[37].mxu0 }
 0x12f   : > { %v1617_v25 = vld [vmem:[#allocation2 + $0x10] sm:$0xff]  ;;  %v1555_v26 = vadd.f32 %v1440_v24, %v1194_v23  ;;  %v2723_v28 = vpop.f32.mrb[38].mxu0  ;;  %v2756_v34 = vpop.f32.mrb[36].mxu1  ;;  %v1205_v24 = vld [vmem:[#allocation2 + $0x78] sm:$0xff] }
 0x130   : > { %v1978_v29 = vadd.f32 %v2752_v14, %v1617_v25  ;;  %1589 = vst.msk [vmem:[#allocation2 + $0x30] sm:$0xff] %vm523_vm0, %v1557_v22  ;;  %v1615_v30 = vld [vmem:[#allocation2] sm:$0xff]  ;;  %v1558_v31 = vadd.f32 %v2723_v28, %v1197_v27  ;;  %v1443_v33 = vpop.f32.mrb[39].mxu0  ;;  %v1865_v38 = vpop.f32.mrb[37].mxu1 }
 0x131   : > { %v1976_v35 = vadd.f32 %v1849_v17, %v1615_v30  ;;  %1587 = vst.msk [vmem:[#allocation2 + $0x20] sm:$0xff] %vm523_vm0, %v1555_v26  ;;  %v1618_v36 = vld [vmem:[#allocation2 + $0x18] sm:$0xff]  ;;  %v1556_v37 = vadd.f32 %v1443_v33, %v1195_v32  ;;  %v2757_v41 = vpop.f32.mrb[38].mxu1 }
 0x132   : > { %2010 = vst.msk [vmem:[#allocation2 + $0x10] sm:$0xff] %vm523_vm0, %v1978_v29  ;;  %v1979_v39 = vadd.f32 %v2753_v18, %v1618_v36  ;;  %1590 = vst.msk [vmem:[#allocation2 + $0x38] sm:$0xff] %vm523_vm0, %v1558_v31  ;;  %v1616_v40 = vld [vmem:[#allocation2 + $0x8] sm:$0xff]  ;;  %v1868_v43 = vpop.f32.mrb[39].mxu1 }
 0x133   : > { %2008 = vst.msk [vmem:[#allocation2] sm:$0xff] %vm523_vm0, %v1976_v35  ;;  %v1977_v42 = vadd.f32 %v1852_v19, %v1616_v40  ;;  %1588 = vst.msk [vmem:[#allocation2 + $0x28] sm:$0xff] %vm523_vm0, %v1556_v37  ;;  %v1202_v19 = vld [vmem:[#allocation2 + $0x60] sm:$0xff]  ;;  %v1203_v29 = vld [vmem:[#allocation2 + $0x68] sm:$0xff] }
 0x134   : > { %2011 = vst.msk [vmem:[#allocation2 + $0x18] sm:$0xff] %vm523_vm0, %v1979_v39 }
 0x135   : > { %2009 = vst.msk [vmem:[#allocation2 + $0x8] sm:$0xff] %vm523_vm0, %v1977_v42  ;;  %v2726_v45 = vpop.f32.mrb[40].mxu0 }
 0x136   : > { %v1561_v46 = vadd.f32 %v2726_v45, %v1200_v44  ;;  %v1456_v48 = vpop.f32.mrb[41].mxu0 }
 0x137   : > { %v1621_v50 = vld [vmem:[#allocation2 + $0x30] sm:$0xff]  ;;  %v1559_v51 = vadd.f32 %v1456_v48, %v1198_v47  ;;  %v2727_v53 = vpop.f32.mrb[42].mxu0  ;;  %v2760_v59 = vpop.f32.mrb[40].mxu1 }
 0x138   : > { %v1982_v54 = vadd.f32 %v2756_v34, %v1621_v50  ;;  %1593 = vst.msk [vmem:[#allocation2 + $0x50] sm:$0xff] %vm523_vm0, %v1561_v46  ;;  %v1619_v55 = vld [vmem:[#allocation2 + $0x20] sm:$0xff]  ;;  %v1562_v56 = vadd.f32 %v2727_v53, %v1201_v52  ;;  %v1459_v58 = vpop.f32.mrb[43].mxu0  ;;  %v1881_v0 = vpop.f32.mrb[41].mxu1  ;;  %v1208_v52 = vld [vmem:[#allocation2 + $0x90] sm:$0xff] }
 0x139   : > { %v2042_v60 = vld [vmem:[#allocation2 + $0x10] sm:$0xff]  ;;  %v1980_v61 = vadd.f32 %v1865_v38, %v1619_v55  ;;  %1591 = vst.msk [vmem:[#allocation2 + $0x40] sm:$0xff] %vm523_vm0, %v1559_v51  ;;  %v1622_v62 = vld [vmem:[#allocation2 + $0x38] sm:$0xff]  ;;  %v1560_v63 = vadd.f32 %v1459_v58, %v1199_v57  ;;  %v2761_v5 = vpop.f32.mrb[42].mxu1 }
 0x13a   : > { %v2081_v1 = vadd.f32 %v3169_v49, %v2042_v60  ;;  %v2040_v2 = vld [vmem:[#allocation2] sm:$0xff]  ;;  %2014 = vst.msk [vmem:[#allocation2 + $0x30] sm:$0xff] %vm523_vm0, %v1982_v54  ;;  %v1983_v3 = vadd.f32 %v2757_v41, %v1622_v62  ;;  %1594 = vst.msk [vmem:[#allocation2 + $0x58] sm:$0xff] %vm523_vm0, %v1562_v56  ;;  %v1620_v4 = vld [vmem:[#allocation2 + $0x28] sm:$0xff]  ;;  %v1884_v9 = vpop.f32.mrb[43].mxu1 }
 0x13b   : > { %v2079_v6 = vadd.f32 %v3169_v49, %v2040_v2  ;;  %v2043_v7 = vld [vmem:[#allocation2 + $0x18] sm:$0xff]  ;;  %2012 = vst.msk [vmem:[#allocation2 + $0x20] sm:$0xff] %vm523_vm0, %v1980_v61  ;;  %v1981_v8 = vadd.f32 %v1868_v43, %v1620_v4  ;;  %1592 = vst.msk [vmem:[#allocation2 + $0x48] sm:$0xff] %vm523_vm0, %v1560_v63  ;;  %v1206_v56 = vld [vmem:[#allocation2 + $0x80] sm:$0xff] }
 0x13c   : > { %v2548_v10 = vpack.c.bf16 %v2081_v1, %v2081_v1  ;;  %v2082_v11 = vadd.f32 %v3169_v49, %v2043_v7  ;;  %v2041_v12 = vld [vmem:[#allocation2 + $0x8] sm:$0xff]  ;;  %2015 = vst.msk [vmem:[#allocation2 + $0x38] sm:$0xff] %vm523_vm0, %v1983_v3  ;;  %v1209_v61 = vld [vmem:[#allocation2 + $0x98] sm:$0xff] }
 0x13d   : > { %v2546_v13 = vpack.c.bf16 %v2079_v6, %v2079_v6  ;;  %v2080_v14 = vadd.f32 %v3169_v49, %v2041_v12  ;;  %2013 = vst.msk [vmem:[#allocation2 + $0x28] sm:$0xff] %vm523_vm0, %v1981_v8  ;;  %v2730_v16 = vpop.f32.mrb[44].mxu0  ;;  %v1207_v2 = vld [vmem:[#allocation2 + $0x88] sm:$0xff] }
 0x13e   : > { %2242 = vst.msk [vmem:[%s3180_s17 + $0x8] sm:$0xf] %vm2239_vm1, %v2548_v10  ;;  %v2549_v17 = vpack.c.bf16 %v2082_v11, %v2082_v11  ;;  %v1565_v18 = vadd.f32 %v2730_v16, %v1204_v15  ;;  %v1472_v20 = vpop.f32.mrb[45].mxu0 }
 0x13f   : > { %2240 = vst.msk [vmem:[%s3180_s17] sm:$0xf] %vm2239_vm1, %v2546_v13  ;;  %v2547_v21 = vpack.c.bf16 %v2080_v14, %v2080_v14  ;;  %v1625_v22 = vld [vmem:[#allocation2 + $0x50] sm:$0xff]  ;;  %v1563_v23 = vadd.f32 %v1472_v20, %v1202_v19  ;;  %v2731_v25 = vpop.f32.mrb[46].mxu0  ;;  %v2764_v31 = vpop.f32.mrb[44].mxu1 }
 0x140   : > { %2243 = vst.msk [vmem:[%s3180_s17 + $0xc] sm:$0xf] %vm2239_vm1, %v2549_v17  ;;  %v1986_v26 = vadd.f32 %v2760_v59, %v1625_v22  ;;  %v1623_v27 = vld [vmem:[#allocation2 + $0x40] sm:$0xff]  ;;  %v1566_v28 = vadd.f32 %v2731_v25, %v1205_v24  ;;  %v1475_v30 = vpop.f32.mrb[47].mxu0  ;;  %v1897_v36 = vpop.f32.mrb[45].mxu1  ;;  %v1212_v24 = vld [vmem:[#allocation2 + $0xb0] sm:$0xff] }
 0x141   : > { %1597 = vst.msk [vmem:[#allocation2 + $0x70] sm:$0xff] %vm523_vm0, %v1565_v18  ;;  %v2046_v32 = vld [vmem:[#allocation2 + $0x30] sm:$0xff]  ;;  %v1984_v33 = vadd.f32 %v1881_v0, %v1623_v27  ;;  %1595 = vst.msk [vmem:[#allocation2 + $0x60] sm:$0xff] %vm523_vm0, %v1563_v23  ;;  %v1626_v34 = vld [vmem:[#allocation2 + $0x58] sm:$0xff]  ;;  %v1564_v35 = vadd.f32 %v1475_v30, %v1203_v29  ;;  %v2765_v41 = vpop.f32.mrb[46].mxu1 }
 0x142   : > { %2241 = vst.msk [vmem:[%s3180_s17 + $0x4] sm:$0xf] %vm2239_vm1, %v2547_v21  ;;  %v2085_v37 = vadd.f32 %v3169_v49, %v2046_v32  ;;  %v2044_v38 = vld [vmem:[#allocation2 + $0x20] sm:$0xff]  ;;  %v1987_v39 = vadd.f32 %v2761_v5, %v1626_v34  ;;  %v1624_v40 = vld [vmem:[#allocation2 + $0x48] sm:$0xff]  ;;  %v1900_v45 = vpop.f32.mrb[47].mxu1 }
 0x143   : > { %2018 = vst.msk [vmem:[#allocation2 + $0x50] sm:$0xff] %vm523_vm0, %v1986_v26  ;;  %1598 = vst.msk [vmem:[#allocation2 + $0x78] sm:$0xff] %vm523_vm0, %v1566_v28  ;;  %v2083_v42 = vadd.f32 %v3169_v49, %v2044_v38  ;;  %v2047_v43 = vld [vmem:[#allocation2 + $0x38] sm:$0xff]  ;;  %v1985_v44 = vadd.f32 %v1884_v9, %v1624_v40  ;;  %v1210_v28 = vld [vmem:[#allocation2 + $0xa0] sm:$0xff] }
 0x144   : > { %2016 = vst.msk [vmem:[#allocation2 + $0x40] sm:$0xff] %vm523_vm0, %v1984_v33  ;;  %1596 = vst.msk [vmem:[#allocation2 + $0x68] sm:$0xff] %vm523_vm0, %v1564_v35  ;;  %v2552_v46 = vpack.c.bf16 %v2085_v37, %v2085_v37  ;;  %v2086_v47 = vadd.f32 %v3169_v49, %v2047_v43  ;;  %v2045_v48 = vld [vmem:[#allocation2 + $0x28] sm:$0xff]  ;;  %v1213_v33 = vld [vmem:[#allocation2 + $0xb8] sm:$0xff] }
 0x145   : > { %2019 = vst.msk [vmem:[#allocation2 + $0x58] sm:$0xff] %vm523_vm0, %v1987_v39  ;;  %v2550_v50 = vpack.c.bf16 %v2083_v42, %v2083_v42  ;;  %v2084_v51 = vadd.f32 %v3169_v49, %v2045_v48  ;;  %2017 = vst.msk [vmem:[#allocation2 + $0x48] sm:$0xff] %vm523_vm0, %v1985_v44  ;;  %v2734_v53 = vpop.f32.mrb[48].mxu0  ;;  %v1211_v38 = vld [vmem:[#allocation2 + $0xa8] sm:$0xff] }
 0x146   : > { %2246 = vst.msk [vmem:[%s3180_s17 + $0x18] sm:$0xf] %vm2239_vm1, %v2552_v46  ;;  %v2553_v54 = vpack.c.bf16 %v2086_v47, %v2086_v47  ;;  %v1569_v55 = vadd.f32 %v2734_v53, %v1208_v52  ;;  %v1488_v57 = vpop.f32.mrb[49].mxu0 }
 0x147   : > { %2244 = vst.msk [vmem:[%s3180_s17 + $0x10] sm:$0xf] %vm2239_vm1, %v2550_v50  ;;  %v2551_v58 = vpack.c.bf16 %v2084_v51, %v2084_v51  ;;  %v1567_v60 = vadd.f32 %v1488_v57, %v1206_v56  ;;  %v2735_v62 = vpop.f32.mrb[50].mxu0  ;;  %v2768_v4 = vpop.f32.mrb[48].mxu1 }
 0x148   : > { %v1629_v59 = vld [vmem:[#allocation2 + $0x70] sm:$0xff]  ;;  %2247 = vst.msk [vmem:[%s3180_s17 + $0x1c] sm:$0xf] %vm2239_vm1, %v2553_v54  ;;  %v1627_v0 = vld [vmem:[#allocation2 + $0x60] sm:$0xff]  ;;  %v1570_v1 = vadd.f32 %v2735_v62, %v1209_v61  ;;  %v1491_v3 = vpop.f32.mrb[51].mxu0  ;;  %v1913_v9 = vpop.f32.mrb[49].mxu1 }
 0x149   : > { %v1990_v63 = vadd.f32 %v2764_v31, %v1629_v59  ;;  %1601 = vst.msk [vmem:[#allocation2 + $0x90] sm:$0xff] %vm523_vm0, %v1569_v55  ;;  %v1988_v6 = vadd.f32 %v1897_v36, %v1627_v0  ;;  %1599 = vst.msk [vmem:[#allocation2 + $0x80] sm:$0xff] %vm523_vm0, %v1567_v60  ;;  %v1568_v8 = vadd.f32 %v1491_v3, %v1207_v2  ;;  %v2769_v14 = vpop.f32.mrb[50].mxu1  ;;  %v1216_v61 = vld [vmem:[#allocation2 + $0xd0] sm:$0xff] }
 0x14a   : > { %2245 = vst.msk [vmem:[%s3180_s17 + $0x14] sm:$0xf] %vm2239_vm1, %v2551_v58  ;;  %v2050_v5 = vld [vmem:[#allocation2 + $0x50] sm:$0xff]  ;;  %v1630_v7 = vld [vmem:[#allocation2 + $0x78] sm:$0xff]  ;;  %v1916_v18 = vpop.f32.mrb[51].mxu1 }
 0x14b   : > { %v2089_v10 = vadd.f32 %v3169_v49, %v2050_v5  ;;  %v2048_v11 = vld [vmem:[#allocation2 + $0x40] sm:$0xff]  ;;  %2022 = vst.msk [vmem:[#allocation2 + $0x70] sm:$0xff] %vm523_vm0, %v1990_v63  ;;  %v1991_v12 = vadd.f32 %v2765_v41, %v1630_v7  ;;  %1602 = vst.msk [vmem:[#allocation2 + $0x98] sm:$0xff] %vm523_vm0, %v1570_v1  ;;  %v1628_v13 = vld [vmem:[#allocation2 + $0x68] sm:$0xff] }
 0x14c   : > { %v2087_v15 = vadd.f32 %v3169_v49, %v2048_v11  ;;  %v2051_v16 = vld [vmem:[#allocation2 + $0x58] sm:$0xff]  ;;  %2020 = vst.msk [vmem:[#allocation2 + $0x60] sm:$0xff] %vm523_vm0, %v1988_v6  ;;  %v1989_v17 = vadd.f32 %v1900_v45, %v1628_v13  ;;  %1600 = vst.msk [vmem:[#allocation2 + $0x88] sm:$0xff] %vm523_vm0, %v1568_v8  ;;  %v2049_v21 = vld [vmem:[#allocation2 + $0x48] sm:$0xff] }
 0x14d   : > { %v2556_v19 = vpack.c.bf16 %v2089_v10, %v2089_v10  ;;  %v2090_v20 = vadd.f32 %v3169_v49, %v2051_v16  ;;  %2023 = vst.msk [vmem:[#allocation2 + $0x78] sm:$0xff] %vm523_vm0, %v1991_v12  ;;  %v2088_v23 = vadd.f32 %v3169_v49, %v2049_v21  ;;  %v2738_v25 = vpop.f32.mrb[52].mxu0  ;;  %v1214_v1 = vld [vmem:[#allocation2 + $0xc0] sm:$0xff]  ;;  %v1217_v6 = vld [vmem:[#allocation2 + $0xd8] sm:$0xff]  ;;  %v1215_v11 = vld [vmem:[#allocation2 + $0xc8] sm:$0xff] }
 0x14e   : > { %v2554_v22 = vpack.c.bf16 %v2087_v15, %v2087_v15  ;;  %2021 = vst.msk [vmem:[#allocation2 + $0x68] sm:$0xff] %vm523_vm0, %v1989_v17  ;;  %v1573_v27 = vadd.f32 %v2738_v25, %v1212_v24  ;;  %v1504_v29 = vpop.f32.mrb[53].mxu0 }
 0x14f   : > { %2250 = vst.msk [vmem:[%s3180_s17 + $0x28] sm:$0xf] %vm2239_vm1, %v2556_v19  ;;  %v2557_v26 = vpack.c.bf16 %v2090_v20, %v2090_v20  ;;  %v2555_v30 = vpack.c.bf16 %v2088_v23, %v2088_v23  ;;  %v1571_v32 = vadd.f32 %v1504_v29, %v1210_v28  ;;  %v2739_v34 = vpop.f32.mrb[54].mxu0  ;;  %v2772_v40 = vpop.f32.mrb[52].mxu1 }
 0x150   : > { %2248 = vst.msk [vmem:[%s3180_s17 + $0x20] sm:$0xf] %vm2239_vm1, %v2554_v22  ;;  %v1633_v31 = vld [vmem:[#allocation2 + $0x90] sm:$0xff]  ;;  %v1631_v36 = vld [vmem:[#allocation2 + $0x80] sm:$0xff]  ;;  %v1574_v37 = vadd.f32 %v2739_v34, %v1213_v33  ;;  %v1507_v39 = vpop.f32.mrb[55].mxu0  ;;  %v1929_v45 = vpop.f32.mrb[53].mxu1 }
 0x151   : > { %2251 = vst.msk [vmem:[%s3180_s17 + $0x2c] sm:$0xf] %vm2239_vm1, %v2557_v26  ;;  %v1994_v35 = vadd.f32 %v2768_v4, %v1633_v31  ;;  %2249 = vst.msk [vmem:[%s3180_s17 + $0x24] sm:$0xf] %vm2239_vm1, %v2555_v30  ;;  %v1992_v42 = vadd.f32 %v1913_v9, %v1631_v36  ;;  %v1572_v44 = vadd.f32 %v1507_v39, %v1211_v38  ;;  %v2773_v51 = vpop.f32.mrb[54].mxu1  ;;  %v1220_v33 = vld [vmem:[#allocation2 + $0xf0] sm:$0xff] }
 0x152   : > { %1605 = vst.msk [vmem:[#allocation2 + $0xb0] sm:$0xff] %vm523_vm0, %v1573_v27  ;;  %v2054_v41 = vld [vmem:[#allocation2 + $0x70] sm:$0xff]  ;;  %1603 = vst.msk [vmem:[#allocation2 + $0xa0] sm:$0xff] %vm523_vm0, %v1571_v32  ;;  %v1634_v43 = vld [vmem:[#allocation2 + $0x98] sm:$0xff]  ;;  %v1932_v55 = vpop.f32.mrb[55].mxu1 }
 0x153   : > { %v2093_v46 = vadd.f32 %v3169_v49, %v2054_v41  ;;  %v2052_v47 = vld [vmem:[#allocation2 + $0x60] sm:$0xff]  ;;  %2026 = vst.msk [vmem:[#allocation2 + $0x90] sm:$0xff] %vm523_vm0, %v1994_v35  ;;  %v1995_v48 = vadd.f32 %v2769_v14, %v1634_v43  ;;  %1606 = vst.msk [vmem:[#allocation2 + $0xb8] sm:$0xff] %vm523_vm0, %v1574_v37  ;;  %v1632_v50 = vld [vmem:[#allocation2 + $0x88] sm:$0xff] }
 0x154   : > { %v2091_v52 = vadd.f32 %v3169_v49, %v2052_v47  ;;  %v2055_v53 = vld [vmem:[#allocation2 + $0x78] sm:$0xff]  ;;  %2024 = vst.msk [vmem:[#allocation2 + $0x80] sm:$0xff] %vm523_vm0, %v1992_v42  ;;  %v1993_v54 = vadd.f32 %v1916_v18, %v1632_v50  ;;  %1604 = vst.msk [vmem:[#allocation2 + $0xa8] sm:$0xff] %vm523_vm0, %v1572_v44  ;;  %v1218_v37 = vld [vmem:[#allocation2 + $0xe0] sm:$0xff] }
 0x155   : > { %v2560_v56 = vpack.c.bf16 %v2093_v46, %v2093_v46  ;;  %v2094_v57 = vadd.f32 %v3169_v49, %v2055_v53  ;;  %v2053_v58 = vld [vmem:[#allocation2 + $0x68] sm:$0xff]  ;;  %2027 = vst.msk [vmem:[#allocation2 + $0x98] sm:$0xff] %vm523_vm0, %v1995_v48  ;;  %v2742_v62 = vpop.f32.mrb[56].mxu0  ;;  %v1221_v42 = vld [vmem:[#allocation2 + $0xf8] sm:$0xff] }
 0x156   : > { %v2558_v59 = vpack.c.bf16 %v2091_v52, %v2091_v52  ;;  %v2092_v60 = vadd.f32 %v3169_v49, %v2053_v58  ;;  %2025 = vst.msk [vmem:[#allocation2 + $0x88] sm:$0xff] %vm523_vm0, %v1993_v54  ;;  %v1577_v0 = vadd.f32 %v2742_v62, %v1216_v61  ;;  %v1520_v2 = vpop.f32.mrb[57].mxu0  ;;  %v1219_v47 = vld [vmem:[#allocation2 + $0xe8] sm:$0xff] }
 0x157   : > { %2254 = vst.msk [vmem:[%s3180_s17 + $0x38] sm:$0xf] %vm2239_vm1, %v2560_v56  ;;  %v2561_v63 = vpack.c.bf16 %v2094_v57, %v2094_v57  ;;  %v1575_v5 = vadd.f32 %v1520_v2, %v1214_v1  ;;  %v2743_v7 = vpop.f32.mrb[58].mxu0  ;;  %v2776_v13 = vpop.f32.mrb[56].mxu1 }
 0x158   : > { %2252 = vst.msk [vmem:[%s3180_s17 + $0x30] sm:$0xf] %vm2239_vm1, %v2558_v59  ;;  %v2559_v3 = vpack.c.bf16 %v2092_v60, %v2092_v60  ;;  %v1578_v10 = vadd.f32 %v2743_v7, %v1217_v6  ;;  %v1523_v12 = vpop.f32.mrb[59].mxu0  ;;  %v1945_v18 = vpop.f32.mrb[57].mxu1 }
 0x159   : > { %v1637_v4 = vld [vmem:[#allocation2 + $0xb0] sm:$0xff]  ;;  %2255 = vst.msk [vmem:[%s3180_s17 + $0x3c] sm:$0xf] %vm2239_vm1, %v2561_v63  ;;  %v1635_v9 = vld [vmem:[#allocation2 + $0xa0] sm:$0xff]  ;;  %v1576_v17 = vadd.f32 %v1523_v12, %v1215_v11  ;;  %v2777_v23 = vpop.f32.mrb[58].mxu1 }
 0x15a   : > { %v1998_v8 = vadd.f32 %v2772_v40, %v1637_v4  ;;  %1609 = vst.msk [vmem:[#allocation2 + $0xd0] sm:$0xff] %vm523_vm0, %v1577_v0  ;;  %v2058_v14 = vld [vmem:[#allocation2 + $0x90] sm:$0xff]  ;;  %v1996_v15 = vadd.f32 %v1929_v45, %v1635_v9  ;;  %1607 = vst.msk [vmem:[#allocation2 + $0xc0] sm:$0xff] %vm523_vm0, %v1575_v5  ;;  %v1638_v16 = vld [vmem:[#allocation2 + $0xb8] sm:$0xff]  ;;  %v1948_v27 = vpop.f32.mrb[59].mxu1 }
 0x15b   : > { %2253 = vst.msk [vmem:[%s3180_s17 + $0x34] sm:$0xf] %vm2239_vm1, %v2559_v3  ;;  %v2097_v19 = vadd.f32 %v3169_v49, %v2058_v14  ;;  %v2056_v20 = vld [vmem:[#allocation2 + $0x80] sm:$0xff]  ;;  %v1999_v21 = vadd.f32 %v2773_v51, %v1638_v16  ;;  %v1636_v22 = vld [vmem:[#allocation2 + $0xa8] sm:$0xff] }
 0x15c   : > { %2030 = vst.msk [vmem:[#allocation2 + $0xb0] sm:$0xff] %vm523_vm0, %v1998_v8  ;;  %1610 = vst.msk [vmem:[#allocation2 + $0xd8] sm:$0xff] %vm523_vm0, %v1578_v10  ;;  %v2095_v24 = vadd.f32 %v3169_v49, %v2056_v20  ;;  %v2059_v25 = vld [vmem:[#allocation2 + $0x98] sm:$0xff]  ;;  %v1997_v26 = vadd.f32 %v1932_v55, %v1636_v22 }
 0x15d   : > { %2028 = vst.msk [vmem:[#allocation2 + $0xa0] sm:$0xff] %vm523_vm0, %v1996_v15  ;;  %1608 = vst.msk [vmem:[#allocation2 + $0xc8] sm:$0xff] %vm523_vm0, %v1576_v17  ;;  %v2564_v28 = vpack.c.bf16 %v2097_v19, %v2097_v19  ;;  %v2098_v29 = vadd.f32 %v3169_v49, %v2059_v25  ;;  %v2057_v30 = vld [vmem:[#allocation2 + $0x88] sm:$0xff]  ;;  %v2746_v34 = vpop.f32.mrb[60].mxu0 }
 0x15e   : > { %2031 = vst.msk [vmem:[#allocation2 + $0xb8] sm:$0xff] %vm523_vm0, %v1999_v21  ;;  %v2562_v31 = vpack.c.bf16 %v2095_v24, %v2095_v24  ;;  %v2096_v32 = vadd.f32 %v3169_v49, %v2057_v30  ;;  %2029 = vst.msk [vmem:[#allocation2 + $0xa8] sm:$0xff] %vm523_vm0, %v1997_v26  ;;  %v1581_v36 = vadd.f32 %v2746_v34, %v1220_v33  ;;  %v1536_v38 = vpop.f32.mrb[61].mxu0 }
 0x15f   : > { %2258 = vst.msk [vmem:[%s3180_s17 + $0x48] sm:$0xf] %vm2239_vm1, %v2564_v28  ;;  %v2565_v35 = vpack.c.bf16 %v2098_v29, %v2098_v29  ;;  %v1579_v41 = vadd.f32 %v1536_v38, %v1218_v37  ;;  %v2747_v43 = vpop.f32.mrb[62].mxu0  ;;  %v2780_v50 = vpop.f32.mrb[60].mxu1 }
 0x160   : > { %2256 = vst.msk [vmem:[%s3180_s17 + $0x40] sm:$0xf] %vm2239_vm1, %v2562_v31  ;;  %v2563_v39 = vpack.c.bf16 %v2096_v32, %v2096_v32  ;;  %v1582_v46 = vadd.f32 %v2747_v43, %v1221_v42  ;;  %v1539_v48 = vpop.f32.mrb[63].mxu0  ;;  %v1961_v55 = vpop.f32.mrb[61].mxu1 }
 0x161   : > { %v1641_v40 = vld [vmem:[#allocation2 + $0xd0] sm:$0xff]  ;;  %2259 = vst.msk [vmem:[%s3180_s17 + $0x4c] sm:$0xf] %vm2239_vm1, %v2565_v35  ;;  %v1639_v45 = vld [vmem:[#allocation2 + $0xc0] sm:$0xff]  ;;  %v1580_v54 = vadd.f32 %v1539_v48, %v1219_v47  ;;  %v2781_v60 = vpop.f32.mrb[62].mxu1 }
 0x162   : > { %v2002_v44 = vadd.f32 %v2776_v13, %v1641_v40  ;;  %1613 = vst.msk [vmem:[#allocation2 + $0xf0] sm:$0xff] %vm523_vm0, %v1581_v36  ;;  %v2000_v52 = vadd.f32 %v1945_v18, %v1639_v45  ;;  %1611 = vst.msk [vmem:[#allocation2 + $0xe0] sm:$0xff] %vm523_vm0, %v1579_v41  ;;  %v1964_v0 = vpop.f32.mrb[63].mxu1 }
 0x163   : > { %2257 = vst.msk [vmem:[%s3180_s17 + $0x44] sm:$0xf] %vm2239_vm1, %v2563_v39  ;;  %v2062_v51 = vld [vmem:[#allocation2 + $0xb0] sm:$0xff]  ;;  %v1642_v53 = vld [vmem:[#allocation2 + $0xd8] sm:$0xff] }
 0x164   : > { %v2101_v56 = vadd.f32 %v3169_v49, %v2062_v51  ;;  %v2060_v57 = vld [vmem:[#allocation2 + $0xa0] sm:$0xff]  ;;  %2034 = vst.msk [vmem:[#allocation2 + $0xd0] sm:$0xff] %vm523_vm0, %v2002_v44  ;;  %v2003_v58 = vadd.f32 %v2777_v23, %v1642_v53  ;;  %1614 = vst.msk [vmem:[#allocation2 + $0xf8] sm:$0xff] %vm523_vm0, %v1582_v46  ;;  %v1640_v59 = vld [vmem:[#allocation2 + $0xc8] sm:$0xff] }
 0x165   : > { %v2099_v61 = vadd.f32 %v3169_v49, %v2060_v57  ;;  %v2063_v62 = vld [vmem:[#allocation2 + $0xb8] sm:$0xff]  ;;  %2032 = vst.msk [vmem:[#allocation2 + $0xc0] sm:$0xff] %vm523_vm0, %v2000_v52  ;;  %v2001_v63 = vadd.f32 %v1948_v27, %v1640_v59  ;;  %1612 = vst.msk [vmem:[#allocation2 + $0xe8] sm:$0xff] %vm523_vm0, %v1580_v54  ;;  %v2061_v3 = vld [vmem:[#allocation2 + $0xa8] sm:$0xff] }
 0x166   : > { %v2568_v1 = vpack.c.bf16 %v2101_v56, %v2101_v56  ;;  %v2102_v2 = vadd.f32 %v3169_v49, %v2063_v62  ;;  %2035 = vst.msk [vmem:[#allocation2 + $0xd8] sm:$0xff] %vm523_vm0, %v2003_v58  ;;  %v2100_v5 = vadd.f32 %v3169_v49, %v2061_v3 }
 0x167   : > { %v2566_v4 = vpack.c.bf16 %v2099_v61, %v2099_v61  ;;  %2033 = vst.msk [vmem:[#allocation2 + $0xc8] sm:$0xff] %vm523_vm0, %v2001_v63 }
 0x168   : > { %2262 = vst.msk [vmem:[%s3180_s17 + $0x58] sm:$0xf] %vm2239_vm1, %v2568_v1  ;;  %v2569_v6 = vpack.c.bf16 %v2102_v2, %v2102_v2  ;;  %v2567_v7 = vpack.c.bf16 %v2100_v5, %v2100_v5 }
 0x169   : > { %2260 = vst.msk [vmem:[%s3180_s17 + $0x50] sm:$0xf] %vm2239_vm1, %v2566_v4  ;;  %v1645_v8 = vld [vmem:[#allocation2 + $0xf0] sm:$0xff]  ;;  %v1643_v10 = vld [vmem:[#allocation2 + $0xe0] sm:$0xff] }
 0x16a   : > { %2263 = vst.msk [vmem:[%s3180_s17 + $0x5c] sm:$0xf] %vm2239_vm1, %v2569_v6  ;;  %v2006_v9 = vadd.f32 %v2780_v50, %v1645_v8  ;;  %2261 = vst.msk [vmem:[%s3180_s17 + $0x54] sm:$0xf] %vm2239_vm1, %v2567_v7  ;;  %v2004_v12 = vadd.f32 %v1961_v55, %v1643_v10 }
 0x16b   : > { %v2066_v11 = vld [vmem:[#allocation2 + $0xd0] sm:$0xff]  ;;  %v1646_v13 = vld [vmem:[#allocation2 + $0xf8] sm:$0xff] }
 0x16c   : > { %v2105_v14 = vadd.f32 %v3169_v49, %v2066_v11  ;;  %v2064_v15 = vld [vmem:[#allocation2 + $0xc0] sm:$0xff]  ;;  %2038 = vst.msk [vmem:[#allocation2 + $0xf0] sm:$0xff] %vm523_vm0, %v2006_v9  ;;  %v2007_v16 = vadd.f32 %v2781_v60, %v1646_v13  ;;  %v1644_v17 = vld [vmem:[#allocation2 + $0xe8] sm:$0xff]  ;;  %2036 = vst.msk [vmem:[#allocation2 + $0xe0] sm:$0xff] %vm523_vm0, %v2004_v12 }
 0x16d   : > { %v2103_v18 = vadd.f32 %v3169_v49, %v2064_v15  ;;  %v2067_v19 = vld [vmem:[#allocation2 + $0xd8] sm:$0xff]  ;;  %v2005_v20 = vadd.f32 %v1964_v0, %v1644_v17 }
 0x16e   : > { %v2572_v21 = vpack.c.bf16 %v2105_v14, %v2105_v14  ;;  %v2106_v22 = vadd.f32 %v3169_v49, %v2067_v19  ;;  %v2065_v23 = vld [vmem:[#allocation2 + $0xc8] sm:$0xff]  ;;  %2039 = vst.msk [vmem:[#allocation2 + $0xf8] sm:$0xff] %vm523_vm0, %v2007_v16 }
 0x16f   : > { %v2570_v24 = vpack.c.bf16 %v2103_v18, %v2103_v18  ;;  %v2104_v25 = vadd.f32 %v3169_v49, %v2065_v23  ;;  %2037 = vst.msk [vmem:[#allocation2 + $0xe8] sm:$0xff] %vm523_vm0, %v2005_v20 }
 0x170   : > { %2266 = vst.msk [vmem:[%s3180_s17 + $0x68] sm:$0xf] %vm2239_vm1, %v2572_v21  ;;  %v2573_v26 = vpack.c.bf16 %v2106_v22, %v2106_v22 }
 0x171   : > { %2264 = vst.msk [vmem:[%s3180_s17 + $0x60] sm:$0xf] %vm2239_vm1, %v2570_v24  ;;  %v2571_v27 = vpack.c.bf16 %v2104_v25, %v2104_v25 }
 0x172   : > { %2267 = vst.msk [vmem:[%s3180_s17 + $0x6c] sm:$0xf] %vm2239_vm1, %v2573_v26 }
 0x173   : > { %2265 = vst.msk [vmem:[%s3180_s17 + $0x64] sm:$0xf] %vm2239_vm1, %v2571_v27  ;;  %v2070_v28 = vld [vmem:[#allocation2 + $0xf0] sm:$0xff]  ;;  %v2068_v30 = vld [vmem:[#allocation2 + $0xe0] sm:$0xff] }
 0x174   : > { %v2109_v29 = vadd.f32 %v3169_v49, %v2070_v28  ;;  %v2107_v31 = vadd.f32 %v3169_v49, %v2068_v30 }
 0x175   : > { %v2071_v32 = vld [vmem:[#allocation2 + $0xf8] sm:$0xff] }
 0x176   : > { %v2576_v33 = vpack.c.bf16 %v2109_v29, %v2109_v29  ;;  %v2110_v34 = vadd.f32 %v3169_v49, %v2071_v32  ;;  %v2069_v35 = vld [vmem:[#allocation2 + $0xe8] sm:$0xff]  ;;  %v2574_v36 = vpack.c.bf16 %v2107_v31, %v2107_v31 }
 0x177   : > { %v2108_v37 = vadd.f32 %v3169_v49, %v2069_v35 }
 0x178   : > { %2270 = vst.msk [vmem:[%s3180_s17 + $0x78] sm:$0xf] %vm2239_vm1, %v2576_v33  ;;  %v2577_v38 = vpack.c.bf16 %v2110_v34, %v2110_v34  ;;  %2268 = vst.msk [vmem:[%s3180_s17 + $0x70] sm:$0xf] %vm2239_vm1, %v2574_v36 }
 0x179   : > { %v2575_v39 = vpack.c.bf16 %v2108_v37, %v2108_v37 }
 0x17a   : > { %2271 = vst.msk [vmem:[%s3180_s17 + $0x7c] sm:$0xf] %vm2239_vm1, %v2577_v38 }
 0x17b   : > { %2269 = vst.msk [vmem:[%s3180_s17 + $0x74] sm:$0xf] %vm2239_vm1, %v2575_v39 }
 0x17c PF: > { %s19_s30 = sadd.s32 1, %s2864_s30  }
 0x17d   : > { %p16_p4 = scmp.ge.s32.totalorder %s19_s30, 4  }
 0x17f   :  { %18 = sbr.rel (!%p16_p4) target bundleno = 1 (0x1), region = 95 }

// kernel: scunicorn_forward.65
= control target key start
LH: loop header
LB: loop body
LE: loop exit
PB: predicated region body
PF: predicated region fallthrough
CT: control target
= control target key end

     0   :  { %s3544_s17 = smov 0   ;;  %s4029_s0 = inlined_call_operand.vmem [shape: bf16[512,16], index: 0, kind: input, shape index: {}]   ;;  %s4030_s1 = inlined_call_operand.vmem [shape: bf16[512,16], index: 1, kind: input, shape index: {}]   ;;  %s4031_s2 = inlined_call_operand.vmem [shape: bf16[512,16], index: 2, kind: input, shape index: {}]   ;;  %s4032_s3 = inlined_call_operand.vmem [shape: bf16[512,16], index: 3, kind: input, shape index: {}]   ;;  %s4033_s4 = inlined_call_operand.vmem [shape: bf16[512,16], index: 4, kind: input, shape index: {}]   ;;  %s4034_s5 = inlined_call_operand.vmem [shape: bf16[16,16], index: 5, kind: input, shape index: {}]   ;;  %s4035_s6 = inlined_call_operand.vmem [shape: bf16[16,16], index: 6, kind: input, shape index: {}]   ;;  %s4036_s7 = inlined_call_operand.vmem [shape: bf16[16,16], index: 7, kind: input, shape index: {}]   ;;  %s4037_s8 = inlined_call_operand.vmem [shape: bf16[16,16], index: 8, kind: input, shape index: {}]   ;;  %s4038_s9 = inlined_call_operand.vmem [shape: bf16[16,16], index: 9, kind: input, shape index: {}]   ;;  %s4039_s10 = inlined_call_operand.vmem [shape: f32[1,16], index: 10, kind: input, shape index: {}]   ;;  %s4040_s11 = inlined_call_operand.vmem [shape: bf16[512,16], index: 11, kind: output, shape index: {}]  }
   0x1 LB: > { %s2877_s18 = sadd.s32 4294967295, %s3482_s17   ;;  %p2881_p0 = scmp.ge.s32.totalorder %s3482_s17, 1  ;;  %s3482_s17 = sphi %s3544_s17, %s21_s17  }
   0x2   : > { %p382_p1 = scmp.lt.s32.totalorder %s3482_s17, 3 }
   0x4   : > { %p383_p2 = pnand %p2881_p0, %p382_p1 }
   0x5   : > { %v3391_v0 = vld [vmem:[%s4034_s5] sm:$0xff] (!%p383_p2)   ;;  %s2882_s21 = sshll.u32 (!%p383_p2), %s2877_s18, 5  ;;  %vm599_vm0 = vcmask (!%p383_p2), 130048   ;;  %vm2740_vm1 = vcmask (!%p383_p2), 125952  }
   0x6   : > { %386 = sbr.rel (%p383_p2) target bundleno = 412 (0x19c), region = 64  ;;  %p443_p3 = scmp.lt.s32.totalorder (!%p383_p2), %s2882_s21, 63  ;;  %3381 = vmatprep.subr.bf16.mxu1 (!%p383_p2), %v3391_v0  ;;  %v3393_v1 = vld [vmem:[%s4035_s6] sm:$0xff] (!%p383_p2)   ;;  %3211 = vmatprep.subr.bf16.mxu0 (!%p383_p2), %v3391_v0 }
   0x7   : > { %3382 = vmatpush3.bf16.msra.mxu1 (!%p383_p2), %v3391_v0  ;;  %3212 = vmatpush3.bf16.msra.mxu0 (!%p383_p2), %v3391_v0  ;;  %v3399_v2 = vld [vmem:[%s4036_s7] sm:$0xff] (!%p383_p2)  }
   0x8   : > { %3245 = vmatprep.subr.bf16.mxu1 (!%p383_p2), %v3393_v1  ;;  %3279 = vmatprep.subr.bf16.mxu0 (!%p383_p2), %v3399_v2  ;;  %v3411_v3 = vld [vmem:[%s4037_s8] sm:$0xff] (!%p383_p2)  }
   0x9   : > { %v3417_v6 = vld [vmem:[%s4038_s9] sm:$0xff] (!%p383_p2)  }
   0xd   : > { %s4042_s21 = smov (!%p443_p3, %s2882_s21), 63 }
   0xe   : > { %s3561_s26 = sshll.u32 %s4042_s21, 2 }
   0xf   : > { %s3567_s29 = scalar_lea.vmem %s4029_s0, %s3561_s26  ;;  %s3600_s18 = scalar_lea.vmem %s4030_s1, %s3561_s26 }
  0x10   : > { %v3392_v4 = vld [vmem:[%s3567_s29 + $0x40] sm:$0xff]   ;;  %v3394_v5 = vld [vmem:[%s3567_s29 + $0x48] sm:$0xff]   ;;  %v3397_v9 = vld [vmem:[%s3567_s29 + $0x50] sm:$0xff]   ;;  %s3608_s21 = scalar_lea.vmem %s4031_s2, %s3561_s26  ;;  %s3644_s24 = scalar_lea.vmem %s4032_s3, %s3561_s26 }
  0x11   : > { %3229 = vmatprep.mubr.msk.bf16.mxu1 %vm599_vm0, %v3392_v4  ;;  %v3395_v7 = vld [vmem:[%s3567_s29] sm:$0xff]   ;;  %v3396_v8 = vld [vmem:[%s3567_s29 + $0x8] sm:$0xff]   ;;  %v3400_v10 = vld [vmem:[%s3567_s29 + $0x10] sm:$0xff]   ;;  %s3652_s28 = scalar_lea.vmem %s4033_s4, %s3561_s26  ;;  %s3881_s14 = scalar_lea.vmem %s4040_s11, %s3561_s26 }
  0x12   : > { %3230 = vmatmul.mubr.msk.bf16.vlgmr.msra.gmra.mrb[0].mxu1 %vm599_vm0, %v3394_v5  ;;  %3213 = vmatprep.mubr.msk.bf16.mxu0 %vm599_vm0, %v3395_v7  ;;  %v3398_v11 = vld [vmem:[%s3567_s29 + $0x58] sm:$0xff]   ;;  %v3402_v12 = vld [vmem:[%s3567_s29 + $0x60] sm:$0xff]   ;;  %v3403_v15 = vld [vmem:[%s3567_s29 + $0x68] sm:$0xff]  }
  0x13   : > { %3246 = vmatpush3.bf16.msra.mxu1 %v3393_v1  ;;  %3214 = vmatmul.mubr.msk.bf16.vlgmr.msra.gmra.mrb[0].mxu0 %vm599_vm0, %v3396_v8  ;;  %v3401_v13 = vld [vmem:[%s3567_s29 + $0x18] sm:$0xff]   ;;  %v3404_v14 = vld [vmem:[%s3567_s29 + $0x20] sm:$0xff]   ;;  %v3406_v16 = vld [vmem:[%s3567_s29 + $0x70] sm:$0xff]  }
  0x14   : > { %3313 = vmatprep.subr.bf16.mxu1 %v3411_v3  ;;  %3233 = vmatprep.mubr.msk.bf16.mxu1 %vm599_vm0, %v3397_v9  ;;  %v3405_v17 = vld [vmem:[%s3567_s29 + $0x28] sm:$0xff]   ;;  %v3408_v18 = vld [vmem:[%s3567_s29 + $0x30] sm:$0xff]   ;;  %v3407_v19 = vld [vmem:[%s3567_s29 + $0x78] sm:$0xff]  }
  0x15   : > { %3280 = vmatpush3.bf16.msra.mxu0 %v3399_v2  ;;  %3217 = vmatprep.mubr.msk.bf16.mxu0 %vm599_vm0, %v3400_v10  ;;  %v3410_v20 = vld [vmem:[%s3600_s18] sm:$0xff]   ;;  %v3409_v21 = vld [vmem:[%s3567_s29 + $0x38] sm:$0xff]   ;;  %v3412_v23 = vld [vmem:[%s3600_s18 + $0x8] sm:$0xff]  }
  0x16   : > { %3347 = vmatprep.subr.bf16.mxu0 %v3417_v6  ;;  %v3413_v22 = vld [vmem:[%s3608_s21] sm:$0xff]   ;;  %v3414_v24 = vld [vmem:[%s3600_s18 + $0x10] sm:$0xff]   ;;  %v3415_v25 = vld [vmem:[%s3608_s21 + $0x8] sm:$0xff]  }
  0x17   : > { %v3418_v26 = vld [vmem:[%s3608_s21 + $0x10] sm:$0xff]   ;;  %v3416_v27 = vld [vmem:[%s3600_s18 + $0x18] sm:$0xff]   ;;  %v3419_v28 = vld [vmem:[%s3600_s18 + $0x20] sm:$0xff]  }
  0x18   : > { %v3420_v29 = vld [vmem:[%s3608_s21 + $0x18] sm:$0xff]   ;;  %v3422_v30 = vld [vmem:[%s3608_s21 + $0x20] sm:$0xff]   ;;  %v3421_v31 = vld [vmem:[%s3600_s18 + $0x28] sm:$0xff]  }
  0x19   : > { %v3423_v32 = vld [vmem:[%s3600_s18 + $0x30] sm:$0xff]   ;;  %v3424_v33 = vld [vmem:[%s3608_s21 + $0x28] sm:$0xff]   ;;  %v3425_v35 = vld [vmem:[%s3600_s18 + $0x38] sm:$0xff]  }
  0x1a   : > { %3234 = vmatmul.mubr.msk.bf16.gmra.mrb[4].mxu1 %vm599_vm0, %v3398_v11  ;;  %v3426_v34 = vld [vmem:[%s3608_s21 + $0x30] sm:$0xff]   ;;  %v3427_v36 = vld [vmem:[%s3600_s18 + $0x40] sm:$0xff]   ;;  %v3428_v37 = vld [vmem:[%s3608_s21 + $0x38] sm:$0xff]  }
  0x1b   : > { %3237 = vmatprep.mubr.msk.bf16.mxu1 %vm599_vm0, %v3402_v12  ;;  %3218 = vmatmul.mubr.msk.bf16.gmra.mrb[4].mxu0 %vm599_vm0, %v3401_v13  ;;  %v3430_v38 = vld [vmem:[%s3608_s21 + $0x40] sm:$0xff]   ;;  %v3429_v39 = vld [vmem:[%s3600_s18 + $0x48] sm:$0xff]   ;;  %v3431_v40 = vld [vmem:[%s3600_s18 + $0x50] sm:$0xff]  }
  0x1c   : > { %3221 = vmatprep.mubr.msk.bf16.mxu0 %vm599_vm0, %v3404_v14  ;;  %v3432_v41 = vld [vmem:[%s3608_s21 + $0x48] sm:$0xff]   ;;  %v3434_v42 = vld [vmem:[%s3608_s21 + $0x50] sm:$0xff]   ;;  %v3433_v43 = vld [vmem:[%s3600_s18 + $0x58] sm:$0xff]  }
  0x1d   : > { %v3435_v44 = vld [vmem:[%s3600_s18 + $0x60] sm:$0xff]   ;;  %v3436_v45 = vld [vmem:[%s3608_s21 + $0x58] sm:$0xff]   ;;  %v3437_v47 = vld [vmem:[%s3600_s18 + $0x68] sm:$0xff]  }
  0x1e   : > { %v3438_v46 = vld [vmem:[%s3608_s21 + $0x60] sm:$0xff]   ;;  %v3439_v48 = vld [vmem:[%s3600_s18 + $0x70] sm:$0xff]   ;;  %v3440_v49 = vld [vmem:[%s3608_s21 + $0x68] sm:$0xff]  }
  0x1f   : > { %v3442_v50 = vld [vmem:[%s3608_s21 + $0x70] sm:$0xff]   ;;  %v3441_v51 = vld [vmem:[%s3600_s18 + $0x78] sm:$0xff]   ;;  %v3444_v52 = vld [vmem:[%s3644_s24] sm:$0xff]  }
  0x20   : > { %v3443_v53 = vld [vmem:[%s3608_s21 + $0x78] sm:$0xff]   ;;  %v3446_v54 = vld [vmem:[%s3652_s28] sm:$0xff]   ;;  %v3445_v55 = vld [vmem:[%s3644_s24 + $0x8] sm:$0xff]  }
  0x21   : > { %v3447_v56 = vld [vmem:[%s3644_s24 + $0x10] sm:$0xff]   ;;  %v3448_v57 = vld [vmem:[%s3652_s28 + $0x8] sm:$0xff]   ;;  %v3449_v59 = vld [vmem:[%s3644_s24 + $0x18] sm:$0xff]  }
  0x22   : > { %3238 = vmatmul.mubr.msk.bf16.gmra.mrb[8].mxu1 %vm599_vm0, %v3403_v15  ;;  %v3450_v58 = vld [vmem:[%s3652_s28 + $0x10] sm:$0xff]   ;;  %v3451_v60 = vld [vmem:[%s3644_s24 + $0x20] sm:$0xff]   ;;  %v3452_v61 = vld [vmem:[%s3652_s28 + $0x18] sm:$0xff]  }
  0x23   : > { %3241 = vmatprep.mubr.msk.bf16.mxu1 %vm599_vm0, %v3406_v16  ;;  %3222 = vmatmul.mubr.msk.bf16.gmra.mrb[8].mxu0 %vm599_vm0, %v3405_v17  ;;  %v3454_v62 = vld [vmem:[%s3652_s28 + $0x20] sm:$0xff]   ;;  %v3453_v63 = vld [vmem:[%s3644_s24 + $0x28] sm:$0xff]   ;;  %v3455_v0 = vld [vmem:[%s3644_s24 + $0x30] sm:$0xff]  }
  0x24   : > { %3225 = vmatprep.mubr.msk.bf16.mxu0 %vm599_vm0, %v3408_v18  ;;  %v3456_v1 = vld [vmem:[%s3652_s28 + $0x28] sm:$0xff]   ;;  %v3458_v2 = vld [vmem:[%s3652_s28 + $0x30] sm:$0xff]   ;;  %v3459_v4 = vld [vmem:[%s3644_s24 + $0x40] sm:$0xff]  }
  0x25   : > { %v3460_v5 = vld [vmem:[%s3652_s28 + $0x38] sm:$0xff]   ;;  %v3461_v7 = vld [vmem:[%s3644_s24 + $0x48] sm:$0xff]   ;;  %v3463_v8 = vld [vmem:[%s3644_s24 + $0x50] sm:$0xff]  }
  0x26   : > { %v3464_v9 = vld [vmem:[%s3652_s28 + $0x48] sm:$0xff]   ;;  %v3466_v10 = vld [vmem:[%s3652_s28 + $0x50] sm:$0xff]   ;;  %v3465_v11 = vld [vmem:[%s3644_s24 + $0x58] sm:$0xff]  }
  0x27   : > { %v3467_v12 = vld [vmem:[%s3644_s24 + $0x60] sm:$0xff]   ;;  %v3468_v13 = vld [vmem:[%s3652_s28 + $0x58] sm:$0xff]   ;;  %v3469_v15 = vld [vmem:[%s3644_s24 + $0x68] sm:$0xff]  }
  0x28   : > { %v3470_v14 = vld [vmem:[%s3652_s28 + $0x60] sm:$0xff]   ;;  %v3471_v16 = vld [vmem:[%s3644_s24 + $0x70] sm:$0xff]   ;;  %v3472_v17 = vld [vmem:[%s3652_s28 + $0x68] sm:$0xff]  }
  0x29   : > { %v3474_v18 = vld [vmem:[%s3652_s28 + $0x70] sm:$0xff]  }
  0x2a   : > { %3242 = vmatmul.mubr.msk.bf16.gmra.mrb[12].mxu1 %vm599_vm0, %v3407_v19  ;;  %v3473_v19 = vld [vmem:[%s3644_s24 + $0x78] sm:$0xff]  }
  0x2b   : > { %3247 = vmatprep.mubr.msk.bf16.mxu1 %vm599_vm0, %v3410_v20  ;;  %3226 = vmatmul.mubr.msk.bf16.gmra.mrb[12].mxu0 %vm599_vm0, %v3409_v21  ;;  %v3475_v20 = vld [vmem:[%s3652_s28 + $0x78] sm:$0xff]  }
  0x2c   : > { %3281 = vmatprep.mubr.msk.bf16.mxu0 %vm599_vm0, %v3413_v22 }
  0x32   : > { %3248 = vmatmul.mubr.msk.bf16.vlgmr.msra.gmra.mrb[16].mxu1 %vm599_vm0, %v3412_v23 }
  0x33   : > { %3314 = vmatpush3.bf16.msra.mxu1 %v3411_v3  ;;  %3251 = vmatprep.mubr.msk.bf16.mxu1 %vm599_vm0, %v3414_v24  ;;  %v3457_v3 = vld [vmem:[%s3644_s24 + $0x38] sm:$0xff]  }
  0x34   : > { %3282 = vmatmul.mubr.msk.bf16.vlgmr.msra.gmra.mrb[16].mxu0 %vm599_vm0, %v3415_v25 }
  0x35   : > { %3348 = vmatpush3.bf16.msra.mxu0 %v3417_v6  ;;  %3285 = vmatprep.mubr.msk.bf16.mxu0 %vm599_vm0, %v3418_v26  ;;  %v3462_v6 = vld [vmem:[%s3652_s28 + $0x40] sm:$0xff]  }
  0x3a   : > { %3252 = vmatmul.mubr.msk.bf16.gmra.mrb[20].mxu1 %vm599_vm0, %v3416_v27 }
  0x3b   : > { %3255 = vmatprep.mubr.msk.bf16.mxu1 %vm599_vm0, %v3419_v28 }
  0x3c   : > { %3286 = vmatmul.mubr.msk.bf16.gmra.mrb[20].mxu0 %vm599_vm0, %v3420_v29 }
  0x3d   : > { %3289 = vmatprep.mubr.msk.bf16.mxu0 %vm599_vm0, %v3422_v30 }
  0x42   : > { %3256 = vmatmul.mubr.msk.bf16.gmra.mrb[24].mxu1 %vm599_vm0, %v3421_v31 }
  0x43   : > { %3259 = vmatprep.mubr.msk.bf16.mxu1 %vm599_vm0, %v3423_v32 }
  0x44   : > { %3290 = vmatmul.mubr.msk.bf16.gmra.mrb[24].mxu0 %vm599_vm0, %v3424_v33 }
  0x45   : > { %3293 = vmatprep.mubr.msk.bf16.mxu0 %vm599_vm0, %v3426_v34 }
  0x4a   : > { %3260 = vmatmul.mubr.msk.bf16.gmra.mrb[28].mxu1 %vm599_vm0, %v3425_v35 }
  0x4b   : > { %3263 = vmatprep.mubr.msk.bf16.mxu1 %vm599_vm0, %v3427_v36 }
  0x4c   : > { %3294 = vmatmul.mubr.msk.bf16.gmra.mrb[28].mxu0 %vm599_vm0, %v3428_v37 }
  0x4d   : > { %3297 = vmatprep.mubr.msk.bf16.mxu0 %vm599_vm0, %v3430_v38 }
  0x52   : > { %3264 = vmatmul.mubr.msk.bf16.gmra.mrb[32].mxu1 %vm599_vm0, %v3429_v39 }
  0x53   : > { %3267 = vmatprep.mubr.msk.bf16.mxu1 %vm599_vm0, %v3431_v40 }
  0x54   : > { %3298 = vmatmul.mubr.msk.bf16.gmra.mrb[32].mxu0 %vm599_vm0, %v3432_v41 }
  0x55   : > { %3301 = vmatprep.mubr.msk.bf16.mxu0 %vm599_vm0, %v3434_v42 }
  0x5a   : > { %3268 = vmatmul.mubr.msk.bf16.gmra.mrb[36].mxu1 %vm599_vm0, %v3433_v43 }
  0x5b   : > { %3271 = vmatprep.mubr.msk.bf16.mxu1 %vm599_vm0, %v3435_v44 }
  0x5c   : > { %3302 = vmatmul.mubr.msk.bf16.gmra.mrb[36].mxu0 %vm599_vm0, %v3436_v45 }
  0x5d   : > { %3305 = vmatprep.mubr.msk.bf16.mxu0 %vm599_vm0, %v3438_v46 }
  0x62   : > { %3272 = vmatmul.mubr.msk.bf16.gmra.mrb[40].mxu1 %vm599_vm0, %v3437_v47 }
  0x63   : > { %3275 = vmatprep.mubr.msk.bf16.mxu1 %vm599_vm0, %v3439_v48 }
  0x64   : > { %3306 = vmatmul.mubr.msk.bf16.gmra.mrb[40].mxu0 %vm599_vm0, %v3440_v49 }
  0x65   : > { %3309 = vmatprep.mubr.msk.bf16.mxu0 %vm599_vm0, %v3442_v50 }
  0x6a   : > { %3276 = vmatmul.mubr.msk.bf16.gmra.mrb[44].mxu1 %vm599_vm0, %v3441_v51 }
  0x6b   : > { %3315 = vmatprep.mubr.msk.bf16.mxu1 %vm599_vm0, %v3444_v52 }
  0x6c   : > { %3310 = vmatmul.mubr.msk.bf16.gmra.mrb[44].mxu0 %vm599_vm0, %v3443_v53 }
  0x6d   : > { %3349 = vmatprep.mubr.msk.bf16.mxu0 %vm599_vm0, %v3446_v54 }
  0x72   : > { %3316 = vmatmul.mubr.msk.bf16.vlgmr.msra.gmra.mrb[48].mxu1 %vm599_vm0, %v3445_v55 }
  0x73   : > { %3319 = vmatprep.mubr.msk.bf16.mxu1 %vm599_vm0, %v3447_v56 }
  0x74   : > { %3350 = vmatmul.mubr.msk.bf16.vlgmr.msra.gmra.mrb[48].mxu0 %vm599_vm0, %v3448_v57 }
  0x75   : > { %3353 = vmatprep.mubr.msk.bf16.mxu0 %vm599_vm0, %v3450_v58 }
  0x7a   : > { %3320 = vmatmul.mubr.msk.bf16.gmra.mrb[52].mxu1 %vm599_vm0, %v3449_v59 }
  0x7b   : > { %3323 = vmatprep.mubr.msk.bf16.mxu1 %vm599_vm0, %v3451_v60 }
  0x7c   : > { %3354 = vmatmul.mubr.msk.bf16.gmra.mrb[52].mxu0 %vm599_vm0, %v3452_v61 }
  0x7d   : > { %3357 = vmatprep.mubr.msk.bf16.mxu0 %vm599_vm0, %v3454_v62 }
  0x82   : > { %3324 = vmatmul.mubr.msk.bf16.gmra.mrb[56].mxu1 %vm599_vm0, %v3453_v63 }
  0x83   : > { %3327 = vmatprep.mubr.msk.bf16.mxu1 %vm599_vm0, %v3455_v0 }
  0x84   : > { %3358 = vmatmul.mubr.msk.bf16.gmra.mrb[56].mxu0 %vm599_vm0, %v3456_v1 }
  0x85   : > { %3361 = vmatprep.mubr.msk.bf16.mxu0 %vm599_vm0, %v3458_v2 }
  0x8a   : > { %3328 = vmatmul.mubr.msk.bf16.gmra.mrb[60].mxu1 %vm599_vm0, %v3457_v3 }
  0x8b   : > { %3331 = vmatprep.mubr.msk.bf16.mxu1 %vm599_vm0, %v3459_v4 }
  0x8c   : > { %3362 = vmatmul.mubr.msk.bf16.gmra.mrb[60].mxu0 %vm599_vm0, %v3460_v5 }
  0x8d   : > { %3365 = vmatprep.mubr.msk.bf16.mxu0 %vm599_vm0, %v3462_v6 }
  0x92   : > { %3332 = vmatmul.mubr.msk.bf16.gmra.mrb[64].mxu1 %vm599_vm0, %v3461_v7 }
  0x93   : > { %3335 = vmatprep.mubr.msk.bf16.mxu1 %vm599_vm0, %v3463_v8 }
  0x94   : > { %3366 = vmatmul.mubr.msk.bf16.gmra.mrb[64].mxu0 %vm599_vm0, %v3464_v9 }
  0x95   : > { %3369 = vmatprep.mubr.msk.bf16.mxu0 %vm599_vm0, %v3466_v10 }
  0x9a   : > { %3336 = vmatmul.mubr.msk.bf16.gmra.mrb[68].mxu1 %vm599_vm0, %v3465_v11 }
  0x9b   : > { %3339 = vmatprep.mubr.msk.bf16.mxu1 %vm599_vm0, %v3467_v12 }
  0x9c   : > { %3370 = vmatmul.mubr.msk.bf16.gmra.mrb[68].mxu0 %vm599_vm0, %v3468_v13 }
  0x9d   : > { %3373 = vmatprep.mubr.msk.bf16.mxu0 %vm599_vm0, %v3470_v14 }
  0xa2   : > { %3340 = vmatmul.mubr.msk.bf16.gmra.mrb[72].mxu1 %vm599_vm0, %v3469_v15 }
  0xa3   : > { %3343 = vmatprep.mubr.msk.bf16.mxu1 %vm599_vm0, %v3471_v16 }
  0xa4   : > { %3374 = vmatmul.mubr.msk.bf16.gmra.mrb[72].mxu0 %vm599_vm0, %v3472_v17 }
  0xa5   : > { %3377 = vmatprep.mubr.msk.bf16.mxu0 %vm599_vm0, %v3474_v18 }
  0xaa   : > { %3344 = vmatmul.mubr.msk.bf16.gmra.mrb[76].mxu1 %vm599_vm0, %v3473_v19 }
  0xac   : > { %3378 = vmatmul.mubr.msk.bf16.gmra.mrb[76].mxu0 %vm599_vm0, %v3475_v20 }
  0xe5   : > { %v3231_v21 = vpop.f32.mrb[0].mxu1 }
  0xe6   : > { %827 = vst.msk [vmem:[#allocation2 + $0x90] sm:$0xff] %vm599_vm0, %v3231_v21  ;;  %v746_v22 = vpop.f32.mrb[1].mxu1  ;;  %v3215_v24 = vpop.f32.mrb[0].mxu0 }
  0xe7   : > { %825 = vst.msk [vmem:[#allocation2 + $0x80] sm:$0xff] %vm599_vm0, %v746_v22  ;;  %v3232_v23 = vpop.f32.mrb[2].mxu1  ;;  %811 = vst.msk [vmem:[#allocation2 + $0x10] sm:$0xff] %vm599_vm0, %v3215_v24  ;;  %v682_v26 = vpop.f32.mrb[1].mxu0 }
  0xe8   : > { %828 = vst.msk [vmem:[#allocation2 + $0x98] sm:$0xff] %vm599_vm0, %v3232_v23  ;;  %v749_v25 = vpop.f32.mrb[3].mxu1  ;;  %809 = vst.msk [vmem:[#allocation2] sm:$0xff] %vm599_vm0, %v682_v26  ;;  %v3216_v27 = vpop.f32.mrb[2].mxu0 }
  0xe9   : > { %826 = vst.msk [vmem:[#allocation2 + $0x88] sm:$0xff] %vm599_vm0, %v749_v25  ;;  %812 = vst.msk [vmem:[#allocation2 + $0x18] sm:$0xff] %vm599_vm0, %v3216_v27  ;;  %v685_v28 = vpop.f32.mrb[3].mxu0 }
  0xea   : > { %810 = vst.msk [vmem:[#allocation2 + $0x8] sm:$0xff] %vm599_vm0, %v685_v28 }
  0xed   : > { %v3235_v29 = vpop.f32.mrb[4].mxu1 }
  0xee   : > { %831 = vst.msk [vmem:[#allocation2 + $0xb0] sm:$0xff] %vm599_vm0, %v3235_v29  ;;  %v762_v30 = vpop.f32.mrb[5].mxu1  ;;  %v3219_v32 = vpop.f32.mrb[4].mxu0  ;;  %v843_v53 = vld [vmem:[#allocation2 + $0x10] sm:$0xff] }
  0xef   : > { %829 = vst.msk [vmem:[#allocation2 + $0xa0] sm:$0xff] %vm599_vm0, %v762_v30  ;;  %v3236_v31 = vpop.f32.mrb[6].mxu1  ;;  %815 = vst.msk [vmem:[#allocation2 + $0x30] sm:$0xff] %vm599_vm0, %v3219_v32  ;;  %v698_v34 = vpop.f32.mrb[5].mxu0  ;;  %v841_v56 = vld [vmem:[#allocation2] sm:$0xff] }
  0xf0   : > { %832 = vst.msk [vmem:[#allocation2 + $0xb8] sm:$0xff] %vm599_vm0, %v3236_v31  ;;  %v765_v33 = vpop.f32.mrb[7].mxu1  ;;  %813 = vst.msk [vmem:[#allocation2 + $0x20] sm:$0xff] %vm599_vm0, %v698_v34  ;;  %v3220_v35 = vpop.f32.mrb[6].mxu0  ;;  %v844_v59 = vld [vmem:[#allocation2 + $0x18] sm:$0xff] }
  0xf1   : > { %830 = vst.msk [vmem:[#allocation2 + $0xa8] sm:$0xff] %vm599_vm0, %v765_v33  ;;  %816 = vst.msk [vmem:[#allocation2 + $0x38] sm:$0xff] %vm599_vm0, %v3220_v35  ;;  %v701_v36 = vpop.f32.mrb[7].mxu0  ;;  %v842_v63 = vld [vmem:[#allocation2 + $0x8] sm:$0xff] }
  0xf2   : > { %814 = vst.msk [vmem:[#allocation2 + $0x28] sm:$0xff] %vm599_vm0, %v701_v36 }
  0xf5   : > { %v3239_v37 = vpop.f32.mrb[8].mxu1 }
  0xf6   : > { %835 = vst.msk [vmem:[#allocation2 + $0xd0] sm:$0xff] %vm599_vm0, %v3239_v37  ;;  %v778_v38 = vpop.f32.mrb[9].mxu1  ;;  %v3223_v40 = vpop.f32.mrb[8].mxu0  ;;  %v847_v5 = vld [vmem:[#allocation2 + $0x30] sm:$0xff] }
  0xf7   : > { %833 = vst.msk [vmem:[#allocation2 + $0xc0] sm:$0xff] %vm599_vm0, %v778_v38  ;;  %v3240_v39 = vpop.f32.mrb[10].mxu1  ;;  %819 = vst.msk [vmem:[#allocation2 + $0x50] sm:$0xff] %vm599_vm0, %v3223_v40  ;;  %v714_v42 = vpop.f32.mrb[9].mxu0  ;;  %v845_v8 = vld [vmem:[#allocation2 + $0x20] sm:$0xff] }
  0xf8   : > { %836 = vst.msk [vmem:[#allocation2 + $0xd8] sm:$0xff] %vm599_vm0, %v3240_v39  ;;  %v781_v41 = vpop.f32.mrb[11].mxu1  ;;  %817 = vst.msk [vmem:[#allocation2 + $0x40] sm:$0xff] %vm599_vm0, %v714_v42  ;;  %v3224_v43 = vpop.f32.mrb[10].mxu0  ;;  %v848_v12 = vld [vmem:[#allocation2 + $0x38] sm:$0xff] }
  0xf9   : > { %834 = vst.msk [vmem:[#allocation2 + $0xc8] sm:$0xff] %vm599_vm0, %v781_v41  ;;  %820 = vst.msk [vmem:[#allocation2 + $0x58] sm:$0xff] %vm599_vm0, %v3224_v43  ;;  %v717_v44 = vpop.f32.mrb[11].mxu0  ;;  %v846_v18 = vld [vmem:[#allocation2 + $0x28] sm:$0xff] }
  0xfa   : > { %818 = vst.msk [vmem:[#allocation2 + $0x48] sm:$0xff] %vm599_vm0, %v717_v44 }
  0xfd   : > { %v3243_v45 = vpop.f32.mrb[12].mxu1 }
  0xfe   : > { %839 = vst.msk [vmem:[#allocation2 + $0xf0] sm:$0xff] %vm599_vm0, %v3243_v45  ;;  %v794_v46 = vpop.f32.mrb[13].mxu1  ;;  %v3227_v48 = vpop.f32.mrb[12].mxu0  ;;  %v851_v29 = vld [vmem:[#allocation2 + $0x50] sm:$0xff] }
  0xff   : > { %837 = vst.msk [vmem:[#allocation2 + $0xe0] sm:$0xff] %vm599_vm0, %v794_v46  ;;  %v3244_v47 = vpop.f32.mrb[14].mxu1  ;;  %823 = vst.msk [vmem:[#allocation2 + $0x70] sm:$0xff] %vm599_vm0, %v3227_v48  ;;  %v730_v50 = vpop.f32.mrb[13].mxu0  ;;  %v849_v32 = vld [vmem:[#allocation2 + $0x40] sm:$0xff] }
 0x100   : > { %840 = vst.msk [vmem:[#allocation2 + $0xf8] sm:$0xff] %vm599_vm0, %v3244_v47  ;;  %v797_v49 = vpop.f32.mrb[15].mxu1  ;;  %821 = vst.msk [vmem:[#allocation2 + $0x60] sm:$0xff] %vm599_vm0, %v730_v50  ;;  %v3228_v51 = vpop.f32.mrb[14].mxu0  ;;  %v852_v36 = vld [vmem:[#allocation2 + $0x58] sm:$0xff] }
 0x101   : > { %838 = vst.msk [vmem:[#allocation2 + $0xe8] sm:$0xff] %vm599_vm0, %v797_v49  ;;  %824 = vst.msk [vmem:[#allocation2 + $0x78] sm:$0xff] %vm599_vm0, %v3228_v51  ;;  %v733_v52 = vpop.f32.mrb[15].mxu0  ;;  %v850_v42 = vld [vmem:[#allocation2 + $0x48] sm:$0xff] }
 0x102   : > { %822 = vst.msk [vmem:[#allocation2 + $0x68] sm:$0xff] %vm599_vm0, %v733_v52 }
 0x105   : > { %v3249_v54 = vpop.f32.mrb[16].mxu1 }
 0x106   : > { %v1204_v55 = vadd.f32 %v3249_v54, %v843_v53  ;;  %v1075_v57 = vpop.f32.mrb[17].mxu1  ;;  %v855_v53 = vld [vmem:[#allocation2 + $0x70] sm:$0xff] }
 0x107   : > { %v1202_v58 = vadd.f32 %v1075_v57, %v841_v56  ;;  %v3250_v60 = vpop.f32.mrb[18].mxu1  ;;  %v3283_v61 = vpop.f32.mrb[16].mxu0  ;;  %v853_v56 = vld [vmem:[#allocation2 + $0x60] sm:$0xff] }
 0x108   : > { %1236 = vst.msk [vmem:[#allocation2 + $0x10] sm:$0xff] %vm599_vm0, %v1204_v55  ;;  %v1205_v62 = vadd.f32 %v3250_v60, %v844_v59  ;;  %v1078_v0 = vpop.f32.mrb[19].mxu1  ;;  %v1500_v1 = vpop.f32.mrb[17].mxu0  ;;  %v856_v60 = vld [vmem:[#allocation2 + $0x78] sm:$0xff] }
 0x109   : > { %1234 = vst.msk [vmem:[#allocation2] sm:$0xff] %vm599_vm0, %v1202_v58  ;;  %v1203_v2 = vadd.f32 %v1078_v0, %v842_v63  ;;  %v3284_v3 = vpop.f32.mrb[18].mxu0 }
 0x10a   : > { %1237 = vst.msk [vmem:[#allocation2 + $0x18] sm:$0xff] %vm599_vm0, %v1205_v62  ;;  %v1503_v4 = vpop.f32.mrb[19].mxu0 }
 0x10b   : > { %1235 = vst.msk [vmem:[#allocation2 + $0x8] sm:$0xff] %vm599_vm0, %v1203_v2  ;;  %v854_v2 = vld [vmem:[#allocation2 + $0x68] sm:$0xff] }
 0x10d   : > { %v3253_v6 = vpop.f32.mrb[20].mxu1 }
 0x10e   : > { %v1208_v7 = vadd.f32 %v3253_v6, %v847_v5  ;;  %v1091_v9 = vpop.f32.mrb[21].mxu1 }
 0x10f   : > { %v1268_v10 = vld [vmem:[#allocation2 + $0x10] sm:$0xff]  ;;  %v1206_v11 = vadd.f32 %v1091_v9, %v845_v8  ;;  %v3254_v13 = vpop.f32.mrb[22].mxu1  ;;  %v3287_v14 = vpop.f32.mrb[20].mxu0 }
 0x110   : > { %v1629_v15 = vadd.f32 %v3283_v61, %v1268_v10  ;;  %1240 = vst.msk [vmem:[#allocation2 + $0x30] sm:$0xff] %vm599_vm0, %v1208_v7  ;;  %v1266_v16 = vld [vmem:[#allocation2] sm:$0xff]  ;;  %v1209_v17 = vadd.f32 %v3254_v13, %v848_v12  ;;  %v1094_v19 = vpop.f32.mrb[23].mxu1  ;;  %v1516_v20 = vpop.f32.mrb[21].mxu0  ;;  %v859_v13 = vld [vmem:[#allocation2 + $0x90] sm:$0xff] }
 0x111   : > { %v1627_v21 = vadd.f32 %v1500_v1, %v1266_v16  ;;  %1238 = vst.msk [vmem:[#allocation2 + $0x20] sm:$0xff] %vm599_vm0, %v1206_v11  ;;  %v1269_v22 = vld [vmem:[#allocation2 + $0x18] sm:$0xff]  ;;  %v1207_v23 = vadd.f32 %v1094_v19, %v846_v18  ;;  %v3288_v24 = vpop.f32.mrb[22].mxu0  ;;  %v857_v16 = vld [vmem:[#allocation2 + $0x80] sm:$0xff] }
 0x112   : > { %1661 = vst.msk [vmem:[#allocation2 + $0x10] sm:$0xff] %vm599_vm0, %v1629_v15  ;;  %v1630_v25 = vadd.f32 %v3284_v3, %v1269_v22  ;;  %1241 = vst.msk [vmem:[#allocation2 + $0x38] sm:$0xff] %vm599_vm0, %v1209_v17  ;;  %v1267_v26 = vld [vmem:[#allocation2 + $0x8] sm:$0xff]  ;;  %v1519_v27 = vpop.f32.mrb[23].mxu0 }
 0x113   : > { %1659 = vst.msk [vmem:[#allocation2] sm:$0xff] %vm599_vm0, %v1627_v21  ;;  %v1628_v28 = vadd.f32 %v1503_v4, %v1267_v26  ;;  %1239 = vst.msk [vmem:[#allocation2 + $0x28] sm:$0xff] %vm599_vm0, %v1207_v23  ;;  %v858_v26 = vld [vmem:[#allocation2 + $0x88] sm:$0xff] }
 0x114   : > { %1662 = vst.msk [vmem:[#allocation2 + $0x18] sm:$0xff] %vm599_vm0, %v1630_v25 }
 0x115   : > { %1660 = vst.msk [vmem:[#allocation2 + $0x8] sm:$0xff] %vm599_vm0, %v1628_v28  ;;  %v3257_v30 = vpop.f32.mrb[24].mxu1 }
 0x116   : > { %v1212_v31 = vadd.f32 %v3257_v30, %v851_v29  ;;  %v1107_v33 = vpop.f32.mrb[25].mxu1 }
 0x117   : > { %v1272_v34 = vld [vmem:[#allocation2 + $0x30] sm:$0xff]  ;;  %v1210_v35 = vadd.f32 %v1107_v33, %v849_v32  ;;  %v3258_v37 = vpop.f32.mrb[26].mxu1  ;;  %v3291_v38 = vpop.f32.mrb[24].mxu0 }
 0x118   : > { %v1633_v39 = vadd.f32 %v3287_v14, %v1272_v34  ;;  %1244 = vst.msk [vmem:[#allocation2 + $0x50] sm:$0xff] %vm599_vm0, %v1212_v31  ;;  %v1270_v40 = vld [vmem:[#allocation2 + $0x20] sm:$0xff]  ;;  %v1213_v41 = vadd.f32 %v3258_v37, %v852_v36  ;;  %v1110_v43 = vpop.f32.mrb[27].mxu1  ;;  %v1532_v44 = vpop.f32.mrb[25].mxu0  ;;  %v863_v37 = vld [vmem:[#allocation2 + $0xb0] sm:$0xff] }
 0x119   : > { %v1631_v45 = vadd.f32 %v1516_v20, %v1270_v40  ;;  %1242 = vst.msk [vmem:[#allocation2 + $0x40] sm:$0xff] %vm599_vm0, %v1210_v35  ;;  %v1273_v46 = vld [vmem:[#allocation2 + $0x38] sm:$0xff]  ;;  %v1211_v47 = vadd.f32 %v1110_v43, %v850_v42  ;;  %v3292_v48 = vpop.f32.mrb[26].mxu0  ;;  %v861_v40 = vld [vmem:[#allocation2 + $0xa0] sm:$0xff] }
 0x11a   : > { %1665 = vst.msk [vmem:[#allocation2 + $0x30] sm:$0xff] %vm599_vm0, %v1633_v39  ;;  %v1634_v49 = vadd.f32 %v3288_v24, %v1273_v46  ;;  %1245 = vst.msk [vmem:[#allocation2 + $0x58] sm:$0xff] %vm599_vm0, %v1213_v41  ;;  %v1271_v50 = vld [vmem:[#allocation2 + $0x28] sm:$0xff]  ;;  %v1535_v51 = vpop.f32.mrb[27].mxu0  ;;  %v860_v20 = vld [vmem:[#allocation2 + $0x98] sm:$0xff] }
 0x11b   : > { %1663 = vst.msk [vmem:[#allocation2 + $0x20] sm:$0xff] %vm599_vm0, %v1631_v45  ;;  %v1632_v52 = vadd.f32 %v1519_v27, %v1271_v50  ;;  %1243 = vst.msk [vmem:[#allocation2 + $0x48] sm:$0xff] %vm599_vm0, %v1211_v47  ;;  %v862_v50 = vld [vmem:[#allocation2 + $0xa8] sm:$0xff] }
 0x11c   : > { %1666 = vst.msk [vmem:[#allocation2 + $0x38] sm:$0xff] %vm599_vm0, %v1634_v49 }
 0x11d   : > { %1664 = vst.msk [vmem:[#allocation2 + $0x28] sm:$0xff] %vm599_vm0, %v1632_v52  ;;  %v3261_v54 = vpop.f32.mrb[28].mxu1 }
 0x11e   : > { %v1216_v55 = vadd.f32 %v3261_v54, %v855_v53  ;;  %v1123_v57 = vpop.f32.mrb[29].mxu1 }
 0x11f   : > { %v1276_v58 = vld [vmem:[#allocation2 + $0x50] sm:$0xff]  ;;  %v1214_v59 = vadd.f32 %v1123_v57, %v853_v56  ;;  %v3262_v61 = vpop.f32.mrb[30].mxu1  ;;  %v3295_v62 = vpop.f32.mrb[28].mxu0 }
 0x120   : > { %v1637_v63 = vadd.f32 %v3291_v38, %v1276_v58  ;;  %1248 = vst.msk [vmem:[#allocation2 + $0x70] sm:$0xff] %vm599_vm0, %v1216_v55  ;;  %v1274_v0 = vld [vmem:[#allocation2 + $0x40] sm:$0xff]  ;;  %v1217_v1 = vadd.f32 %v3262_v61, %v856_v60  ;;  %v1126_v3 = vpop.f32.mrb[31].mxu1  ;;  %v1548_v4 = vpop.f32.mrb[29].mxu0  ;;  %v867_v61 = vld [vmem:[#allocation2 + $0xd0] sm:$0xff] }
 0x121   : > { %v1635_v5 = vadd.f32 %v1532_v44, %v1274_v0  ;;  %1246 = vst.msk [vmem:[#allocation2 + $0x60] sm:$0xff] %vm599_vm0, %v1214_v59  ;;  %v1277_v6 = vld [vmem:[#allocation2 + $0x58] sm:$0xff]  ;;  %v1215_v7 = vadd.f32 %v1126_v3, %v854_v2  ;;  %v3296_v8 = vpop.f32.mrb[30].mxu0  ;;  %v865_v0 = vld [vmem:[#allocation2 + $0xc0] sm:$0xff] }
 0x122   : > { %1669 = vst.msk [vmem:[#allocation2 + $0x50] sm:$0xff] %vm599_vm0, %v1637_v63  ;;  %v1638_v9 = vadd.f32 %v3292_v48, %v1277_v6  ;;  %1249 = vst.msk [vmem:[#allocation2 + $0x78] sm:$0xff] %vm599_vm0, %v1217_v1  ;;  %v1275_v10 = vld [vmem:[#allocation2 + $0x48] sm:$0xff]  ;;  %v1551_v11 = vpop.f32.mrb[31].mxu0  ;;  %v864_v44 = vld [vmem:[#allocation2 + $0xb8] sm:$0xff] }
 0x123   : > { %1667 = vst.msk [vmem:[#allocation2 + $0x40] sm:$0xff] %vm599_vm0, %v1635_v5  ;;  %v1636_v12 = vadd.f32 %v1535_v51, %v1275_v10  ;;  %1247 = vst.msk [vmem:[#allocation2 + $0x68] sm:$0xff] %vm599_vm0, %v1215_v7  ;;  %v866_v10 = vld [vmem:[#allocation2 + $0xc8] sm:$0xff] }
 0x124   : > { %1670 = vst.msk [vmem:[#allocation2 + $0x58] sm:$0xff] %vm599_vm0, %v1638_v9 }
 0x125   : > { %1668 = vst.msk [vmem:[#allocation2 + $0x48] sm:$0xff] %vm599_vm0, %v1636_v12  ;;  %v3265_v14 = vpop.f32.mrb[32].mxu1 }
 0x126   : > { %v1220_v15 = vadd.f32 %v3265_v14, %v859_v13  ;;  %v1139_v17 = vpop.f32.mrb[33].mxu1 }
 0x127   : > { %v1280_v18 = vld [vmem:[#allocation2 + $0x70] sm:$0xff]  ;;  %v1218_v19 = vadd.f32 %v1139_v17, %v857_v16  ;;  %v3266_v21 = vpop.f32.mrb[34].mxu1  ;;  %v3299_v22 = vpop.f32.mrb[32].mxu0 }
 0x128   : > { %v1641_v23 = vadd.f32 %v3295_v62, %v1280_v18  ;;  %1252 = vst.msk [vmem:[#allocation2 + $0x90] sm:$0xff] %vm599_vm0, %v1220_v15  ;;  %v1278_v24 = vld [vmem:[#allocation2 + $0x60] sm:$0xff]  ;;  %v1221_v25 = vadd.f32 %v3266_v21, %v860_v20  ;;  %v1142_v27 = vpop.f32.mrb[35].mxu1  ;;  %v1564_v28 = vpop.f32.mrb[33].mxu0  ;;  %v871_v21 = vld [vmem:[#allocation2 + $0xf0] sm:$0xff] }
 0x129   : > { %v1639_v29 = vadd.f32 %v1548_v4, %v1278_v24  ;;  %1250 = vst.msk [vmem:[#allocation2 + $0x80] sm:$0xff] %vm599_vm0, %v1218_v19  ;;  %v1281_v30 = vld [vmem:[#allocation2 + $0x78] sm:$0xff]  ;;  %v1219_v31 = vadd.f32 %v1142_v27, %v858_v26  ;;  %v3300_v32 = vpop.f32.mrb[34].mxu0  ;;  %v869_v24 = vld [vmem:[#allocation2 + $0xe0] sm:$0xff] }
 0x12a   : > { %1673 = vst.msk [vmem:[#allocation2 + $0x70] sm:$0xff] %vm599_vm0, %v1641_v23  ;;  %v1642_v33 = vadd.f32 %v3296_v8, %v1281_v30  ;;  %1253 = vst.msk [vmem:[#allocation2 + $0x98] sm:$0xff] %vm599_vm0, %v1221_v25  ;;  %v1279_v34 = vld [vmem:[#allocation2 + $0x68] sm:$0xff]  ;;  %v1567_v35 = vpop.f32.mrb[35].mxu0  ;;  %v868_v4 = vld [vmem:[#allocation2 + $0xd8] sm:$0xff] }
 0x12b   : > { %1671 = vst.msk [vmem:[#allocation2 + $0x60] sm:$0xff] %vm599_vm0, %v1639_v29  ;;  %v1640_v36 = vadd.f32 %v1551_v11, %v1279_v34  ;;  %1251 = vst.msk [vmem:[#allocation2 + $0x88] sm:$0xff] %vm599_vm0, %v1219_v31  ;;  %v870_v34 = vld [vmem:[#allocation2 + $0xe8] sm:$0xff] }
 0x12c   : > { %1674 = vst.msk [vmem:[#allocation2 + $0x78] sm:$0xff] %vm599_vm0, %v1642_v33 }
 0x12d   : > { %1672 = vst.msk [vmem:[#allocation2 + $0x68] sm:$0xff] %vm599_vm0, %v1640_v36  ;;  %v3269_v38 = vpop.f32.mrb[36].mxu1 }
 0x12e   : > { %v1224_v39 = vadd.f32 %v3269_v38, %v863_v37  ;;  %v1155_v41 = vpop.f32.mrb[37].mxu1 }
 0x12f   : > { %v1284_v42 = vld [vmem:[#allocation2 + $0x90] sm:$0xff]  ;;  %v1222_v43 = vadd.f32 %v1155_v41, %v861_v40  ;;  %v3270_v45 = vpop.f32.mrb[38].mxu1  ;;  %v3303_v46 = vpop.f32.mrb[36].mxu0 }
 0x130   : > { %v1645_v47 = vadd.f32 %v3299_v22, %v1284_v42  ;;  %1256 = vst.msk [vmem:[#allocation2 + $0xb0] sm:$0xff] %vm599_vm0, %v1224_v39  ;;  %v1282_v48 = vld [vmem:[#allocation2 + $0x80] sm:$0xff]  ;;  %v1225_v49 = vadd.f32 %v3270_v45, %v864_v44  ;;  %v1158_v51 = vpop.f32.mrb[39].mxu1  ;;  %v1580_v52 = vpop.f32.mrb[37].mxu0  ;;  %v1693_v45 = vld [vmem:[#allocation2 + $0x10] sm:$0xff] }
 0x131   : > { %v1643_v53 = vadd.f32 %v1564_v28, %v1282_v48  ;;  %1254 = vst.msk [vmem:[#allocation2 + $0xa0] sm:$0xff] %vm599_vm0, %v1222_v43  ;;  %v1285_v54 = vld [vmem:[#allocation2 + $0x98] sm:$0xff]  ;;  %v1223_v55 = vadd.f32 %v1158_v51, %v862_v50  ;;  %v3304_v56 = vpop.f32.mrb[38].mxu0  ;;  %v1691_v48 = vld [vmem:[#allocation2] sm:$0xff] }
 0x132   : > { %1677 = vst.msk [vmem:[#allocation2 + $0x90] sm:$0xff] %vm599_vm0, %v1645_v47  ;;  %v1646_v57 = vadd.f32 %v3300_v32, %v1285_v54  ;;  %1257 = vst.msk [vmem:[#allocation2 + $0xb8] sm:$0xff] %vm599_vm0, %v1225_v49  ;;  %v1283_v58 = vld [vmem:[#allocation2 + $0x88] sm:$0xff]  ;;  %v1583_v59 = vpop.f32.mrb[39].mxu0  ;;  %v872_v28 = vld [vmem:[#allocation2 + $0xf8] sm:$0xff] }
 0x133   : > { %1675 = vst.msk [vmem:[#allocation2 + $0x80] sm:$0xff] %vm599_vm0, %v1643_v53  ;;  %v1644_v60 = vadd.f32 %v1567_v35, %v1283_v58  ;;  %1255 = vst.msk [vmem:[#allocation2 + $0xa8] sm:$0xff] %vm599_vm0, %v1223_v55  ;;  %v1692_v58 = vld [vmem:[#allocation2 + $0x8] sm:$0xff] }
 0x134   : > { %1678 = vst.msk [vmem:[#allocation2 + $0x98] sm:$0xff] %vm599_vm0, %v1646_v57 }
 0x135   : > { %1676 = vst.msk [vmem:[#allocation2 + $0x88] sm:$0xff] %vm599_vm0, %v1644_v60  ;;  %v3273_v62 = vpop.f32.mrb[40].mxu1 }
 0x136   : > { %v1228_v63 = vadd.f32 %v3273_v62, %v867_v61  ;;  %v1171_v1 = vpop.f32.mrb[41].mxu1 }
 0x137   : > { %v1288_v2 = vld [vmem:[#allocation2 + $0xb0] sm:$0xff]  ;;  %v1226_v3 = vadd.f32 %v1171_v1, %v865_v0  ;;  %v3274_v5 = vpop.f32.mrb[42].mxu1  ;;  %v3307_v6 = vpop.f32.mrb[40].mxu0 }
 0x138   : > { %v1649_v7 = vadd.f32 %v3303_v46, %v1288_v2  ;;  %1260 = vst.msk [vmem:[#allocation2 + $0xd0] sm:$0xff] %vm599_vm0, %v1228_v63  ;;  %v1286_v8 = vld [vmem:[#allocation2 + $0xa0] sm:$0xff]  ;;  %v1229_v9 = vadd.f32 %v3274_v5, %v868_v4  ;;  %v1174_v11 = vpop.f32.mrb[43].mxu1  ;;  %v1596_v12 = vpop.f32.mrb[41].mxu0  ;;  %v1697_v5 = vld [vmem:[#allocation2 + $0x30] sm:$0xff] }
 0x139   : > { %v1647_v13 = vadd.f32 %v1580_v52, %v1286_v8  ;;  %1258 = vst.msk [vmem:[#allocation2 + $0xc0] sm:$0xff] %vm599_vm0, %v1226_v3  ;;  %v1289_v14 = vld [vmem:[#allocation2 + $0xb8] sm:$0xff]  ;;  %v1227_v15 = vadd.f32 %v1174_v11, %v866_v10  ;;  %v3308_v16 = vpop.f32.mrb[42].mxu0  ;;  %v1695_v8 = vld [vmem:[#allocation2 + $0x20] sm:$0xff] }
 0x13a   : > { %1681 = vst.msk [vmem:[#allocation2 + $0xb0] sm:$0xff] %vm599_vm0, %v1649_v7  ;;  %v1650_v17 = vadd.f32 %v3304_v56, %v1289_v14  ;;  %1261 = vst.msk [vmem:[#allocation2 + $0xd8] sm:$0xff] %vm599_vm0, %v1229_v9  ;;  %v1287_v18 = vld [vmem:[#allocation2 + $0xa8] sm:$0xff]  ;;  %v1599_v19 = vpop.f32.mrb[43].mxu0  ;;  %v1694_v52 = vld [vmem:[#allocation2 + $0x18] sm:$0xff] }
 0x13b   : > { %1679 = vst.msk [vmem:[#allocation2 + $0xa0] sm:$0xff] %vm599_vm0, %v1647_v13  ;;  %v1648_v20 = vadd.f32 %v1583_v59, %v1287_v18  ;;  %1259 = vst.msk [vmem:[#allocation2 + $0xc8] sm:$0xff] %vm599_vm0, %v1227_v15  ;;  %v1696_v18 = vld [vmem:[#allocation2 + $0x28] sm:$0xff] }
 0x13c   : > { %1682 = vst.msk [vmem:[#allocation2 + $0xb8] sm:$0xff] %vm599_vm0, %v1650_v17 }
 0x13d   : > { %1680 = vst.msk [vmem:[#allocation2 + $0xa8] sm:$0xff] %vm599_vm0, %v1648_v20  ;;  %v3277_v22 = vpop.f32.mrb[44].mxu1 }
 0x13e   : > { %v1232_v23 = vadd.f32 %v3277_v22, %v871_v21  ;;  %v1187_v25 = vpop.f32.mrb[45].mxu1 }
 0x13f   : > { %v1292_v26 = vld [vmem:[#allocation2 + $0xd0] sm:$0xff]  ;;  %v1230_v27 = vadd.f32 %v1187_v25, %v869_v24  ;;  %v3278_v29 = vpop.f32.mrb[46].mxu1  ;;  %v3311_v30 = vpop.f32.mrb[44].mxu0 }
 0x140   : > { %v1653_v31 = vadd.f32 %v3307_v6, %v1292_v26  ;;  %1264 = vst.msk [vmem:[#allocation2 + $0xf0] sm:$0xff] %vm599_vm0, %v1232_v23  ;;  %v1290_v32 = vld [vmem:[#allocation2 + $0xc0] sm:$0xff]  ;;  %v1233_v33 = vadd.f32 %v3278_v29, %v872_v28  ;;  %v1190_v35 = vpop.f32.mrb[47].mxu1  ;;  %v1612_v36 = vpop.f32.mrb[45].mxu0  ;;  %v1701_v29 = vld [vmem:[#allocation2 + $0x50] sm:$0xff] }
 0x141   : > { %v1651_v37 = vadd.f32 %v1596_v12, %v1290_v32  ;;  %1262 = vst.msk [vmem:[#allocation2 + $0xe0] sm:$0xff] %vm599_vm0, %v1230_v27  ;;  %v1293_v38 = vld [vmem:[#allocation2 + $0xd8] sm:$0xff]  ;;  %v1231_v39 = vadd.f32 %v1190_v35, %v870_v34  ;;  %v3312_v40 = vpop.f32.mrb[46].mxu0  ;;  %v1699_v32 = vld [vmem:[#allocation2 + $0x40] sm:$0xff] }
 0x142   : > { %1685 = vst.msk [vmem:[#allocation2 + $0xd0] sm:$0xff] %vm599_vm0, %v1653_v31  ;;  %v1654_v41 = vadd.f32 %v3308_v16, %v1293_v38  ;;  %1265 = vst.msk [vmem:[#allocation2 + $0xf8] sm:$0xff] %vm599_vm0, %v1233_v33  ;;  %v1291_v42 = vld [vmem:[#allocation2 + $0xc8] sm:$0xff]  ;;  %v1615_v43 = vpop.f32.mrb[47].mxu0  ;;  %v1698_v12 = vld [vmem:[#allocation2 + $0x38] sm:$0xff] }
 0x143   : > { %1683 = vst.msk [vmem:[#allocation2 + $0xc0] sm:$0xff] %vm599_vm0, %v1651_v37  ;;  %v1652_v44 = vadd.f32 %v1599_v19, %v1291_v42  ;;  %1263 = vst.msk [vmem:[#allocation2 + $0xe8] sm:$0xff] %vm599_vm0, %v1231_v39  ;;  %v3870_v34 = vld [vmem:[%s4039_s10] ss:$0 sm:$0xff]  ;;  %v1702_v37 = vld [vmem:[#allocation2 + $0x58] sm:$0xff] }
 0x144   : > { %1686 = vst.msk [vmem:[#allocation2 + $0xd8] sm:$0xff] %vm599_vm0, %v1654_v41 }
 0x145   : > { %1684 = vst.msk [vmem:[#allocation2 + $0xc8] sm:$0xff] %vm599_vm0, %v1652_v44  ;;  %v3317_v46 = vpop.f32.mrb[48].mxu1 }
 0x146   : > { %v2054_v47 = vadd.f32 %v3317_v46, %v1693_v45  ;;  %v1925_v49 = vpop.f32.mrb[49].mxu1 }
 0x147   : > { %v1296_v50 = vld [vmem:[#allocation2 + $0xf0] sm:$0xff]  ;;  %v2052_v51 = vadd.f32 %v1925_v49, %v1691_v48  ;;  %v3318_v53 = vpop.f32.mrb[50].mxu1  ;;  %v3351_v54 = vpop.f32.mrb[48].mxu0 }
 0x148   : > { %v1657_v55 = vadd.f32 %v3311_v30, %v1296_v50  ;;  %v1294_v56 = vld [vmem:[#allocation2 + $0xe0] sm:$0xff]  ;;  %2086 = vst.msk [vmem:[#allocation2 + $0x10] sm:$0xff] %vm599_vm0, %v2054_v47  ;;  %v2055_v57 = vadd.f32 %v3318_v53, %v1694_v52  ;;  %v1928_v59 = vpop.f32.mrb[51].mxu1  ;;  %v2350_v60 = vpop.f32.mrb[49].mxu0 }
 0x149   : > { %v1655_v61 = vadd.f32 %v1612_v36, %v1294_v56  ;;  %v1297_v62 = vld [vmem:[#allocation2 + $0xf8] sm:$0xff]  ;;  %2084 = vst.msk [vmem:[#allocation2] sm:$0xff] %vm599_vm0, %v2052_v51  ;;  %v2053_v63 = vadd.f32 %v1928_v59, %v1692_v58  ;;  %v3352_v0 = vpop.f32.mrb[50].mxu0 }
 0x14a   : > { %1689 = vst.msk [vmem:[#allocation2 + $0xf0] sm:$0xff] %vm599_vm0, %v1657_v55  ;;  %v1658_v1 = vadd.f32 %v3312_v40, %v1297_v62  ;;  %v1295_v2 = vld [vmem:[#allocation2 + $0xe8] sm:$0xff]  ;;  %2087 = vst.msk [vmem:[#allocation2 + $0x18] sm:$0xff] %vm599_vm0, %v2055_v57  ;;  %v2353_v3 = vpop.f32.mrb[51].mxu0 }
 0x14b   : > { %1687 = vst.msk [vmem:[#allocation2 + $0xe0] sm:$0xff] %vm599_vm0, %v1655_v61  ;;  %v1656_v4 = vadd.f32 %v1615_v43, %v1295_v2  ;;  %2085 = vst.msk [vmem:[#allocation2 + $0x8] sm:$0xff] %vm599_vm0, %v2053_v63  ;;  %v1700_v43 = vld [vmem:[#allocation2 + $0x48] sm:$0xff] }
 0x14c   : > { %1690 = vst.msk [vmem:[#allocation2 + $0xf8] sm:$0xff] %vm599_vm0, %v1658_v1 }
 0x14d   : > { %1688 = vst.msk [vmem:[#allocation2 + $0xe8] sm:$0xff] %vm599_vm0, %v1656_v4  ;;  %v3321_v6 = vpop.f32.mrb[52].mxu1  ;;  %v1703_v4 = vld [vmem:[#allocation2 + $0x60] sm:$0xff] }
 0x14e   : > { %v2058_v7 = vadd.f32 %v3321_v6, %v1697_v5  ;;  %v1941_v9 = vpop.f32.mrb[53].mxu1 }
 0x14f   : > { %v2118_v10 = vld [vmem:[#allocation2 + $0x10] sm:$0xff]  ;;  %v2056_v11 = vadd.f32 %v1941_v9, %v1695_v8  ;;  %v3322_v13 = vpop.f32.mrb[54].mxu1  ;;  %v3355_v14 = vpop.f32.mrb[52].mxu0  ;;  %v1706_v9 = vld [vmem:[#allocation2 + $0x78] sm:$0xff] }
 0x150   : > { %v2479_v15 = vadd.f32 %v3351_v54, %v2118_v10  ;;  %2090 = vst.msk [vmem:[#allocation2 + $0x30] sm:$0xff] %vm599_vm0, %v2058_v7  ;;  %v2116_v16 = vld [vmem:[#allocation2] sm:$0xff]  ;;  %v2059_v17 = vadd.f32 %v3322_v13, %v1698_v12  ;;  %v1944_v19 = vpop.f32.mrb[55].mxu1  ;;  %v2366_v20 = vpop.f32.mrb[53].mxu0 }
 0x151   : > { %v2477_v21 = vadd.f32 %v2350_v60, %v2116_v16  ;;  %2088 = vst.msk [vmem:[#allocation2 + $0x20] sm:$0xff] %vm599_vm0, %v2056_v11  ;;  %v2119_v22 = vld [vmem:[#allocation2 + $0x18] sm:$0xff]  ;;  %v2057_v23 = vadd.f32 %v1944_v19, %v1696_v18  ;;  %v3356_v24 = vpop.f32.mrb[54].mxu0 }
 0x152   : > { %2511 = vst.msk [vmem:[#allocation2 + $0x10] sm:$0xff] %vm599_vm0, %v2479_v15  ;;  %v2480_v25 = vadd.f32 %v3352_v0, %v2119_v22  ;;  %2091 = vst.msk [vmem:[#allocation2 + $0x38] sm:$0xff] %vm599_vm0, %v2059_v17  ;;  %v2117_v26 = vld [vmem:[#allocation2 + $0x8] sm:$0xff]  ;;  %v2369_v27 = vpop.f32.mrb[55].mxu0  ;;  %v1705_v0 = vld [vmem:[#allocation2 + $0x70] sm:$0xff] }
 0x153   : > { %2509 = vst.msk [vmem:[#allocation2] sm:$0xff] %vm599_vm0, %v2477_v21  ;;  %v2478_v28 = vadd.f32 %v2353_v3, %v2117_v26  ;;  %2089 = vst.msk [vmem:[#allocation2 + $0x28] sm:$0xff] %vm599_vm0, %v2057_v23  ;;  %v1704_v15 = vld [vmem:[#allocation2 + $0x68] sm:$0xff] }
 0x154   : > { %2512 = vst.msk [vmem:[#allocation2 + $0x18] sm:$0xff] %vm599_vm0, %v2480_v25 }
 0x155   : > { %2510 = vst.msk [vmem:[#allocation2 + $0x8] sm:$0xff] %vm599_vm0, %v2478_v28  ;;  %v3325_v30 = vpop.f32.mrb[56].mxu1 }
 0x156   : > { %v2062_v31 = vadd.f32 %v3325_v30, %v1701_v29  ;;  %v1957_v33 = vpop.f32.mrb[57].mxu1 }
 0x157   : > { %v2122_v35 = vld [vmem:[#allocation2 + $0x30] sm:$0xff]  ;;  %v2060_v36 = vadd.f32 %v1957_v33, %v1699_v32  ;;  %v3326_v38 = vpop.f32.mrb[58].mxu1  ;;  %v3359_v39 = vpop.f32.mrb[56].mxu0 }
 0x158   : > { %v2483_v40 = vadd.f32 %v3355_v14, %v2122_v35  ;;  %2094 = vst.msk [vmem:[#allocation2 + $0x50] sm:$0xff] %vm599_vm0, %v2062_v31  ;;  %v2120_v41 = vld [vmem:[#allocation2 + $0x20] sm:$0xff]  ;;  %v2063_v42 = vadd.f32 %v3326_v38, %v1702_v37  ;;  %v1960_v44 = vpop.f32.mrb[59].mxu1  ;;  %v2382_v45 = vpop.f32.mrb[57].mxu0  ;;  %v1709_v37 = vld [vmem:[#allocation2 + $0x90] sm:$0xff] }
 0x159   : > { %v2543_v46 = vld [vmem:[#allocation2 + $0x10] sm:$0xff]  ;;  %v2481_v47 = vadd.f32 %v2366_v20, %v2120_v41  ;;  %2092 = vst.msk [vmem:[#allocation2 + $0x40] sm:$0xff] %vm599_vm0, %v2060_v36  ;;  %v2123_v48 = vld [vmem:[#allocation2 + $0x38] sm:$0xff]  ;;  %v2061_v49 = vadd.f32 %v1960_v44, %v1700_v43  ;;  %v3360_v50 = vpop.f32.mrb[58].mxu0  ;;  %v1707_v41 = vld [vmem:[#allocation2 + $0x80] sm:$0xff] }
 0x15a   : > { %v2582_v51 = vadd.f32 %v3870_v34, %v2543_v46  ;;  %v2541_v52 = vld [vmem:[#allocation2] sm:$0xff]  ;;  %2515 = vst.msk [vmem:[#allocation2 + $0x30] sm:$0xff] %vm599_vm0, %v2483_v40  ;;  %v2484_v53 = vadd.f32 %v3356_v24, %v2123_v48  ;;  %2095 = vst.msk [vmem:[#allocation2 + $0x58] sm:$0xff] %vm599_vm0, %v2063_v42  ;;  %v2121_v54 = vld [vmem:[#allocation2 + $0x28] sm:$0xff]  ;;  %v2385_v55 = vpop.f32.mrb[59].mxu0 }
 0x15b   : > { %v2580_v56 = vadd.f32 %v3870_v34, %v2541_v52  ;;  %v2544_v57 = vld [vmem:[#allocation2 + $0x18] sm:$0xff]  ;;  %2513 = vst.msk [vmem:[#allocation2 + $0x20] sm:$0xff] %vm599_vm0, %v2481_v47  ;;  %v2482_v58 = vadd.f32 %v2369_v27, %v2121_v54  ;;  %2093 = vst.msk [vmem:[#allocation2 + $0x48] sm:$0xff] %vm599_vm0, %v2061_v49  ;;  %v1708_v52 = vld [vmem:[#allocation2 + $0x88] sm:$0xff] }
 0x15c   : > { %v3096_v59 = vpack.c.bf16 %v2582_v51, %v2582_v51  ;;  %v2583_v60 = vadd.f32 %v3870_v34, %v2544_v57  ;;  %v2542_v61 = vld [vmem:[#allocation2 + $0x8] sm:$0xff]  ;;  %2516 = vst.msk [vmem:[#allocation2 + $0x38] sm:$0xff] %vm599_vm0, %v2484_v53  ;;  %v1710_v46 = vld [vmem:[#allocation2 + $0x98] sm:$0xff] }
 0x15d   : > { %v3094_v62 = vpack.c.bf16 %v2580_v56, %v2580_v56  ;;  %v2581_v63 = vadd.f32 %v3870_v34, %v2542_v61  ;;  %2514 = vst.msk [vmem:[#allocation2 + $0x28] sm:$0xff] %vm599_vm0, %v2482_v58  ;;  %v3329_v1 = vpop.f32.mrb[60].mxu1 }
 0x15e   : > { %2743 = vst.msk [vmem:[%s3881_s14 + $0x8] sm:$0xf] %vm2740_vm1, %v3096_v59  ;;  %v3097_v2 = vpack.c.bf16 %v2583_v60, %v2583_v60  ;;  %v2066_v3 = vadd.f32 %v3329_v1, %v1705_v0  ;;  %v1973_v5 = vpop.f32.mrb[61].mxu1 }
 0x15f   : > { %2741 = vst.msk [vmem:[%s3881_s14] sm:$0xf] %vm2740_vm1, %v3094_v62  ;;  %v3095_v6 = vpack.c.bf16 %v2581_v63, %v2581_v63  ;;  %v2126_v7 = vld [vmem:[#allocation2 + $0x50] sm:$0xff]  ;;  %v2064_v8 = vadd.f32 %v1973_v5, %v1703_v4  ;;  %v3330_v10 = vpop.f32.mrb[62].mxu1  ;;  %v3363_v11 = vpop.f32.mrb[60].mxu0 }
 0x160   : > { %2744 = vst.msk [vmem:[%s3881_s14 + $0xc] sm:$0xf] %vm2740_vm1, %v3097_v2  ;;  %v2487_v12 = vadd.f32 %v3359_v39, %v2126_v7  ;;  %v2124_v13 = vld [vmem:[#allocation2 + $0x40] sm:$0xff]  ;;  %v2067_v14 = vadd.f32 %v3330_v10, %v1706_v9  ;;  %v1976_v16 = vpop.f32.mrb[63].mxu1  ;;  %v2398_v17 = vpop.f32.mrb[61].mxu0  ;;  %v1713_v9 = vld [vmem:[#allocation2 + $0xb0] sm:$0xff] }
 0x161   : > { %2098 = vst.msk [vmem:[#allocation2 + $0x70] sm:$0xff] %vm599_vm0, %v2066_v3  ;;  %v2547_v18 = vld [vmem:[#allocation2 + $0x30] sm:$0xff]  ;;  %v2485_v19 = vadd.f32 %v2382_v45, %v2124_v13  ;;  %2096 = vst.msk [vmem:[#allocation2 + $0x60] sm:$0xff] %vm599_vm0, %v2064_v8  ;;  %v2127_v20 = vld [vmem:[#allocation2 + $0x58] sm:$0xff]  ;;  %v2065_v21 = vadd.f32 %v1976_v16, %v1704_v15  ;;  %v3364_v22 = vpop.f32.mrb[62].mxu0 }
 0x162   : > { %2742 = vst.msk [vmem:[%s3881_s14 + $0x4] sm:$0xf] %vm2740_vm1, %v3095_v6  ;;  %v2586_v23 = vadd.f32 %v3870_v34, %v2547_v18  ;;  %v2545_v24 = vld [vmem:[#allocation2 + $0x20] sm:$0xff]  ;;  %v2488_v25 = vadd.f32 %v3360_v50, %v2127_v20  ;;  %v2125_v26 = vld [vmem:[#allocation2 + $0x48] sm:$0xff]  ;;  %v2401_v27 = vpop.f32.mrb[63].mxu0  ;;  %v1714_v18 = vld [vmem:[#allocation2 + $0xb8] sm:$0xff] }
 0x163   : > { %2519 = vst.msk [vmem:[#allocation2 + $0x50] sm:$0xff] %vm599_vm0, %v2487_v12  ;;  %2099 = vst.msk [vmem:[#allocation2 + $0x78] sm:$0xff] %vm599_vm0, %v2067_v14  ;;  %v2584_v28 = vadd.f32 %v3870_v34, %v2545_v24  ;;  %v2548_v29 = vld [vmem:[#allocation2 + $0x38] sm:$0xff]  ;;  %v2486_v30 = vadd.f32 %v2385_v55, %v2125_v26  ;;  %v1711_v13 = vld [vmem:[#allocation2 + $0xa0] sm:$0xff] }
 0x164   : > { %2517 = vst.msk [vmem:[#allocation2 + $0x40] sm:$0xff] %vm599_vm0, %v2485_v19  ;;  %2097 = vst.msk [vmem:[#allocation2 + $0x68] sm:$0xff] %vm599_vm0, %v2065_v21  ;;  %v3100_v31 = vpack.c.bf16 %v2586_v23, %v2586_v23  ;;  %v2587_v32 = vadd.f32 %v3870_v34, %v2548_v29  ;;  %v2546_v33 = vld [vmem:[#allocation2 + $0x28] sm:$0xff] }
 0x165   : > { %2520 = vst.msk [vmem:[#allocation2 + $0x58] sm:$0xff] %vm599_vm0, %v2488_v25  ;;  %v3098_v35 = vpack.c.bf16 %v2584_v28, %v2584_v28  ;;  %v2585_v36 = vadd.f32 %v3870_v34, %v2546_v33  ;;  %2518 = vst.msk [vmem:[#allocation2 + $0x48] sm:$0xff] %vm599_vm0, %v2486_v30  ;;  %v3333_v38 = vpop.f32.mrb[64].mxu1  ;;  %v1712_v24 = vld [vmem:[#allocation2 + $0xa8] sm:$0xff] }
 0x166   : > { %2747 = vst.msk [vmem:[%s3881_s14 + $0x18] sm:$0xf] %vm2740_vm1, %v3100_v31  ;;  %v3101_v39 = vpack.c.bf16 %v2587_v32, %v2587_v32  ;;  %v2070_v40 = vadd.f32 %v3333_v38, %v1709_v37  ;;  %v1989_v42 = vpop.f32.mrb[65].mxu1 }
 0x167   : > { %2745 = vst.msk [vmem:[%s3881_s14 + $0x10] sm:$0xf] %vm2740_vm1, %v3098_v35  ;;  %v3099_v43 = vpack.c.bf16 %v2585_v36, %v2585_v36  ;;  %v2068_v45 = vadd.f32 %v1989_v42, %v1707_v41  ;;  %v3334_v47 = vpop.f32.mrb[66].mxu1  ;;  %v3367_v48 = vpop.f32.mrb[64].mxu0 }
 0x168   : > { %v2130_v44 = vld [vmem:[#allocation2 + $0x70] sm:$0xff]  ;;  %2748 = vst.msk [vmem:[%s3881_s14 + $0x1c] sm:$0xf] %vm2740_vm1, %v3101_v39  ;;  %v2128_v50 = vld [vmem:[#allocation2 + $0x60] sm:$0xff]  ;;  %v2071_v51 = vadd.f32 %v3334_v47, %v1710_v46  ;;  %v1992_v53 = vpop.f32.mrb[67].mxu1  ;;  %v2414_v54 = vpop.f32.mrb[65].mxu0 }
 0x169   : > { %v2491_v49 = vadd.f32 %v3363_v11, %v2130_v44  ;;  %2102 = vst.msk [vmem:[#allocation2 + $0x90] sm:$0xff] %vm599_vm0, %v2070_v40  ;;  %v2489_v56 = vadd.f32 %v2398_v17, %v2128_v50  ;;  %2100 = vst.msk [vmem:[#allocation2 + $0x80] sm:$0xff] %vm599_vm0, %v2068_v45  ;;  %v2069_v58 = vadd.f32 %v1992_v53, %v1708_v52  ;;  %v3368_v59 = vpop.f32.mrb[66].mxu0  ;;  %v1717_v46 = vld [vmem:[#allocation2 + $0xd0] sm:$0xff]  ;;  %v1715_v50 = vld [vmem:[#allocation2 + $0xc0] sm:$0xff] }
 0x16a   : > { %2746 = vst.msk [vmem:[%s3881_s14 + $0x14] sm:$0xf] %vm2740_vm1, %v3099_v43  ;;  %v2551_v55 = vld [vmem:[#allocation2 + $0x50] sm:$0xff]  ;;  %v2131_v57 = vld [vmem:[#allocation2 + $0x78] sm:$0xff]  ;;  %v2417_v0 = vpop.f32.mrb[67].mxu0 }
 0x16b   : > { %v2590_v60 = vadd.f32 %v3870_v34, %v2551_v55  ;;  %v2549_v61 = vld [vmem:[#allocation2 + $0x40] sm:$0xff]  ;;  %2523 = vst.msk [vmem:[#allocation2 + $0x70] sm:$0xff] %vm599_vm0, %v2491_v49  ;;  %v2492_v62 = vadd.f32 %v3364_v22, %v2131_v57  ;;  %2103 = vst.msk [vmem:[#allocation2 + $0x98] sm:$0xff] %vm599_vm0, %v2071_v51  ;;  %v2129_v63 = vld [vmem:[#allocation2 + $0x68] sm:$0xff] }
 0x16c   : > { %v2588_v1 = vadd.f32 %v3870_v34, %v2549_v61  ;;  %v2552_v2 = vld [vmem:[#allocation2 + $0x58] sm:$0xff]  ;;  %2521 = vst.msk [vmem:[#allocation2 + $0x60] sm:$0xff] %vm599_vm0, %v2489_v56  ;;  %v2490_v3 = vadd.f32 %v2401_v27, %v2129_v63  ;;  %2101 = vst.msk [vmem:[#allocation2 + $0x88] sm:$0xff] %vm599_vm0, %v2069_v58  ;;  %v2550_v6 = vld [vmem:[#allocation2 + $0x48] sm:$0xff] }
 0x16d   : > { %v3104_v4 = vpack.c.bf16 %v2590_v60, %v2590_v60  ;;  %v2591_v5 = vadd.f32 %v3870_v34, %v2552_v2  ;;  %2524 = vst.msk [vmem:[#allocation2 + $0x78] sm:$0xff] %vm599_vm0, %v2492_v62  ;;  %v2589_v8 = vadd.f32 %v3870_v34, %v2550_v6  ;;  %v3337_v10 = vpop.f32.mrb[68].mxu1  ;;  %v1718_v55 = vld [vmem:[#allocation2 + $0xd8] sm:$0xff]  ;;  %v1716_v61 = vld [vmem:[#allocation2 + $0xc8] sm:$0xff] }
 0x16e   : > { %v3102_v7 = vpack.c.bf16 %v2588_v1, %v2588_v1  ;;  %2522 = vst.msk [vmem:[#allocation2 + $0x68] sm:$0xff] %vm599_vm0, %v2490_v3  ;;  %v2074_v12 = vadd.f32 %v3337_v10, %v1713_v9  ;;  %v2005_v14 = vpop.f32.mrb[69].mxu1 }
 0x16f   : > { %2751 = vst.msk [vmem:[%s3881_s14 + $0x28] sm:$0xf] %vm2740_vm1, %v3104_v4  ;;  %v3105_v11 = vpack.c.bf16 %v2591_v5, %v2591_v5  ;;  %v3103_v15 = vpack.c.bf16 %v2589_v8, %v2589_v8  ;;  %v2072_v17 = vadd.f32 %v2005_v14, %v1711_v13  ;;  %v3338_v19 = vpop.f32.mrb[70].mxu1  ;;  %v3371_v20 = vpop.f32.mrb[68].mxu0 }
 0x170   : > { %2749 = vst.msk [vmem:[%s3881_s14 + $0x20] sm:$0xf] %vm2740_vm1, %v3102_v7  ;;  %v2134_v16 = vld [vmem:[#allocation2 + $0x90] sm:$0xff]  ;;  %v2132_v22 = vld [vmem:[#allocation2 + $0x80] sm:$0xff]  ;;  %v2075_v23 = vadd.f32 %v3338_v19, %v1714_v18  ;;  %v2008_v25 = vpop.f32.mrb[71].mxu1  ;;  %v2430_v26 = vpop.f32.mrb[69].mxu0 }
 0x171   : > { %2752 = vst.msk [vmem:[%s3881_s14 + $0x2c] sm:$0xf] %vm2740_vm1, %v3105_v11  ;;  %v2495_v21 = vadd.f32 %v3367_v48, %v2134_v16  ;;  %2750 = vst.msk [vmem:[%s3881_s14 + $0x24] sm:$0xf] %vm2740_vm1, %v3103_v15  ;;  %v2493_v28 = vadd.f32 %v2414_v54, %v2132_v22  ;;  %v2073_v30 = vadd.f32 %v2008_v25, %v1712_v24  ;;  %v3372_v31 = vpop.f32.mrb[70].mxu0  ;;  %v1721_v18 = vld [vmem:[#allocation2 + $0xf0] sm:$0xff] }
 0x172   : > { %2106 = vst.msk [vmem:[#allocation2 + $0xb0] sm:$0xff] %vm599_vm0, %v2074_v12  ;;  %v2555_v27 = vld [vmem:[#allocation2 + $0x70] sm:$0xff]  ;;  %2104 = vst.msk [vmem:[#allocation2 + $0xa0] sm:$0xff] %vm599_vm0, %v2072_v17  ;;  %v2135_v29 = vld [vmem:[#allocation2 + $0x98] sm:$0xff]  ;;  %v2433_v37 = vpop.f32.mrb[71].mxu0 }
 0x173   : > { %v2594_v32 = vadd.f32 %v3870_v34, %v2555_v27  ;;  %v2553_v33 = vld [vmem:[#allocation2 + $0x60] sm:$0xff]  ;;  %2527 = vst.msk [vmem:[#allocation2 + $0x90] sm:$0xff] %vm599_vm0, %v2495_v21  ;;  %v2496_v35 = vadd.f32 %v3368_v59, %v2135_v29  ;;  %2107 = vst.msk [vmem:[#allocation2 + $0xb8] sm:$0xff] %vm599_vm0, %v2075_v23  ;;  %v2133_v36 = vld [vmem:[#allocation2 + $0x88] sm:$0xff] }
 0x174   : > { %v2592_v38 = vadd.f32 %v3870_v34, %v2553_v33  ;;  %v2556_v39 = vld [vmem:[#allocation2 + $0x78] sm:$0xff]  ;;  %2525 = vst.msk [vmem:[#allocation2 + $0x80] sm:$0xff] %vm599_vm0, %v2493_v28  ;;  %v2494_v40 = vadd.f32 %v2417_v0, %v2133_v36  ;;  %2105 = vst.msk [vmem:[#allocation2 + $0xa8] sm:$0xff] %vm599_vm0, %v2073_v30  ;;  %v1719_v22 = vld [vmem:[#allocation2 + $0xe0] sm:$0xff] }
 0x175   : > { %v3108_v41 = vpack.c.bf16 %v2594_v32, %v2594_v32  ;;  %v2595_v42 = vadd.f32 %v3870_v34, %v2556_v39  ;;  %v2554_v43 = vld [vmem:[#allocation2 + $0x68] sm:$0xff]  ;;  %2528 = vst.msk [vmem:[#allocation2 + $0x98] sm:$0xff] %vm599_vm0, %v2496_v35  ;;  %v3341_v47 = vpop.f32.mrb[72].mxu1  ;;  %v1722_v27 = vld [vmem:[#allocation2 + $0xf8] sm:$0xff] }
 0x176   : > { %v3106_v44 = vpack.c.bf16 %v2592_v38, %v2592_v38  ;;  %v2593_v45 = vadd.f32 %v3870_v34, %v2554_v43  ;;  %2526 = vst.msk [vmem:[#allocation2 + $0x88] sm:$0xff] %vm599_vm0, %v2494_v40  ;;  %v2078_v49 = vadd.f32 %v3341_v47, %v1717_v46  ;;  %v2021_v51 = vpop.f32.mrb[73].mxu1  ;;  %v1720_v33 = vld [vmem:[#allocation2 + $0xe8] sm:$0xff] }
 0x177   : > { %2755 = vst.msk [vmem:[%s3881_s14 + $0x38] sm:$0xf] %vm2740_vm1, %v3108_v41  ;;  %v3109_v48 = vpack.c.bf16 %v2595_v42, %v2595_v42  ;;  %v2076_v54 = vadd.f32 %v2021_v51, %v1715_v50  ;;  %v3342_v56 = vpop.f32.mrb[74].mxu1  ;;  %v3375_v57 = vpop.f32.mrb[72].mxu0 }
 0x178   : > { %2753 = vst.msk [vmem:[%s3881_s14 + $0x30] sm:$0xf] %vm2740_vm1, %v3106_v44  ;;  %v3107_v52 = vpack.c.bf16 %v2593_v45, %v2593_v45  ;;  %v2079_v60 = vadd.f32 %v3342_v56, %v1718_v55  ;;  %v2024_v62 = vpop.f32.mrb[75].mxu1  ;;  %v2446_v63 = vpop.f32.mrb[73].mxu0 }
 0x179   : > { %v2138_v53 = vld [vmem:[#allocation2 + $0xb0] sm:$0xff]  ;;  %2756 = vst.msk [vmem:[%s3881_s14 + $0x3c] sm:$0xf] %vm2740_vm1, %v3109_v48  ;;  %v2136_v59 = vld [vmem:[#allocation2 + $0xa0] sm:$0xff]  ;;  %v2077_v3 = vadd.f32 %v2024_v62, %v1716_v61  ;;  %v3376_v4 = vpop.f32.mrb[74].mxu0 }
 0x17a   : > { %v2499_v58 = vadd.f32 %v3371_v20, %v2138_v53  ;;  %2110 = vst.msk [vmem:[#allocation2 + $0xd0] sm:$0xff] %vm599_vm0, %v2078_v49  ;;  %v2559_v0 = vld [vmem:[#allocation2 + $0x90] sm:$0xff]  ;;  %v2497_v1 = vadd.f32 %v2430_v26, %v2136_v59  ;;  %2108 = vst.msk [vmem:[#allocation2 + $0xc0] sm:$0xff] %vm599_vm0, %v2076_v54  ;;  %v2139_v2 = vld [vmem:[#allocation2 + $0xb8] sm:$0xff]  ;;  %v2449_v9 = vpop.f32.mrb[75].mxu0 }
 0x17b   : > { %2754 = vst.msk [vmem:[%s3881_s14 + $0x34] sm:$0xf] %vm2740_vm1, %v3107_v52  ;;  %v2598_v5 = vadd.f32 %v3870_v34, %v2559_v0  ;;  %v2557_v6 = vld [vmem:[#allocation2 + $0x80] sm:$0xff]  ;;  %v2500_v7 = vadd.f32 %v3372_v31, %v2139_v2  ;;  %v2137_v8 = vld [vmem:[#allocation2 + $0xa8] sm:$0xff] }
 0x17c   : > { %2531 = vst.msk [vmem:[#allocation2 + $0xb0] sm:$0xff] %vm599_vm0, %v2499_v58  ;;  %2111 = vst.msk [vmem:[#allocation2 + $0xd8] sm:$0xff] %vm599_vm0, %v2079_v60  ;;  %v2596_v10 = vadd.f32 %v3870_v34, %v2557_v6  ;;  %v2560_v11 = vld [vmem:[#allocation2 + $0x98] sm:$0xff]  ;;  %v2498_v12 = vadd.f32 %v2433_v37, %v2137_v8 }
 0x17d   : > { %2529 = vst.msk [vmem:[#allocation2 + $0xa0] sm:$0xff] %vm599_vm0, %v2497_v1  ;;  %2109 = vst.msk [vmem:[#allocation2 + $0xc8] sm:$0xff] %vm599_vm0, %v2077_v3  ;;  %v3112_v13 = vpack.c.bf16 %v2598_v5, %v2598_v5  ;;  %v2599_v14 = vadd.f32 %v3870_v34, %v2560_v11  ;;  %v2558_v15 = vld [vmem:[#allocation2 + $0x88] sm:$0xff]  ;;  %v3345_v19 = vpop.f32.mrb[76].mxu1 }
 0x17e   : > { %2532 = vst.msk [vmem:[#allocation2 + $0xb8] sm:$0xff] %vm599_vm0, %v2500_v7  ;;  %v3110_v16 = vpack.c.bf16 %v2596_v10, %v2596_v10  ;;  %v2597_v17 = vadd.f32 %v3870_v34, %v2558_v15  ;;  %2530 = vst.msk [vmem:[#allocation2 + $0xa8] sm:$0xff] %vm599_vm0, %v2498_v12  ;;  %v2082_v21 = vadd.f32 %v3345_v19, %v1721_v18  ;;  %v2037_v23 = vpop.f32.mrb[77].mxu1 }
 0x17f   : > { %2759 = vst.msk [vmem:[%s3881_s14 + $0x48] sm:$0xf] %vm2740_vm1, %v3112_v13  ;;  %v3113_v20 = vpack.c.bf16 %v2599_v14, %v2599_v14  ;;  %v2080_v26 = vadd.f32 %v2037_v23, %v1719_v22  ;;  %v3346_v28 = vpop.f32.mrb[78].mxu1  ;;  %v3379_v29 = vpop.f32.mrb[76].mxu0 }
 0x180   : > { %2757 = vst.msk [vmem:[%s3881_s14 + $0x40] sm:$0xf] %vm2740_vm1, %v3110_v16  ;;  %v3111_v24 = vpack.c.bf16 %v2597_v17, %v2597_v17  ;;  %v2083_v32 = vadd.f32 %v3346_v28, %v1722_v27  ;;  %v2040_v35 = vpop.f32.mrb[79].mxu1  ;;  %v2462_v36 = vpop.f32.mrb[77].mxu0 }
 0x181   : > { %v2142_v25 = vld [vmem:[#allocation2 + $0xd0] sm:$0xff]  ;;  %2760 = vst.msk [vmem:[%s3881_s14 + $0x4c] sm:$0xf] %vm2740_vm1, %v3113_v20  ;;  %v2140_v31 = vld [vmem:[#allocation2 + $0xc0] sm:$0xff]  ;;  %v2081_v40 = vadd.f32 %v2040_v35, %v1720_v33  ;;  %v3380_v41 = vpop.f32.mrb[78].mxu0 }
 0x182   : > { %v2503_v30 = vadd.f32 %v3375_v57, %v2142_v25  ;;  %2114 = vst.msk [vmem:[#allocation2 + $0xf0] sm:$0xff] %vm599_vm0, %v2082_v21  ;;  %v2501_v38 = vadd.f32 %v2446_v63, %v2140_v31  ;;  %2112 = vst.msk [vmem:[#allocation2 + $0xe0] sm:$0xff] %vm599_vm0, %v2080_v26  ;;  %v2465_v46 = vpop.f32.mrb[79].mxu0 }
 0x183   : > { %2758 = vst.msk [vmem:[%s3881_s14 + $0x44] sm:$0xf] %vm2740_vm1, %v3111_v24  ;;  %v2563_v37 = vld [vmem:[#allocation2 + $0xb0] sm:$0xff]  ;;  %v2143_v39 = vld [vmem:[#allocation2 + $0xd8] sm:$0xff] }
 0x184   : > { %v2602_v42 = vadd.f32 %v3870_v34, %v2563_v37  ;;  %v2561_v43 = vld [vmem:[#allocation2 + $0xa0] sm:$0xff]  ;;  %2535 = vst.msk [vmem:[#allocation2 + $0xd0] sm:$0xff] %vm599_vm0, %v2503_v30  ;;  %v2504_v44 = vadd.f32 %v3376_v4, %v2143_v39  ;;  %2115 = vst.msk [vmem:[#allocation2 + $0xf8] sm:$0xff] %vm599_vm0, %v2083_v32  ;;  %v2141_v45 = vld [vmem:[#allocation2 + $0xc8] sm:$0xff] }
 0x185   : > { %v2600_v47 = vadd.f32 %v3870_v34, %v2561_v43  ;;  %v2564_v48 = vld [vmem:[#allocation2 + $0xb8] sm:$0xff]  ;;  %2533 = vst.msk [vmem:[#allocation2 + $0xc0] sm:$0xff] %vm599_vm0, %v2501_v38  ;;  %v2502_v49 = vadd.f32 %v2449_v9, %v2141_v45  ;;  %2113 = vst.msk [vmem:[#allocation2 + $0xe8] sm:$0xff] %vm599_vm0, %v2081_v40  ;;  %v2562_v52 = vld [vmem:[#allocation2 + $0xa8] sm:$0xff] }
 0x186   : > { %v3116_v50 = vpack.c.bf16 %v2602_v42, %v2602_v42  ;;  %v2603_v51 = vadd.f32 %v3870_v34, %v2564_v48  ;;  %2536 = vst.msk [vmem:[#allocation2 + $0xd8] sm:$0xff] %vm599_vm0, %v2504_v44  ;;  %v2601_v54 = vadd.f32 %v3870_v34, %v2562_v52 }
 0x187   : > { %v3114_v53 = vpack.c.bf16 %v2600_v47, %v2600_v47  ;;  %2534 = vst.msk [vmem:[#allocation2 + $0xc8] sm:$0xff] %vm599_vm0, %v2502_v49 }
 0x188   : > { %2763 = vst.msk [vmem:[%s3881_s14 + $0x58] sm:$0xf] %vm2740_vm1, %v3116_v50  ;;  %v3117_v55 = vpack.c.bf16 %v2603_v51, %v2603_v51  ;;  %v3115_v56 = vpack.c.bf16 %v2601_v54, %v2601_v54 }
 0x189   : > { %2761 = vst.msk [vmem:[%s3881_s14 + $0x50] sm:$0xf] %vm2740_vm1, %v3114_v53  ;;  %v2146_v57 = vld [vmem:[#allocation2 + $0xf0] sm:$0xff]  ;;  %v2144_v59 = vld [vmem:[#allocation2 + $0xe0] sm:$0xff] }
 0x18a   : > { %2764 = vst.msk [vmem:[%s3881_s14 + $0x5c] sm:$0xf] %vm2740_vm1, %v3117_v55  ;;  %v2507_v58 = vadd.f32 %v3379_v29, %v2146_v57  ;;  %2762 = vst.msk [vmem:[%s3881_s14 + $0x54] sm:$0xf] %vm2740_vm1, %v3115_v56  ;;  %v2505_v61 = vadd.f32 %v2462_v36, %v2144_v59 }
 0x18b   : > { %v2567_v60 = vld [vmem:[#allocation2 + $0xd0] sm:$0xff]  ;;  %v2147_v62 = vld [vmem:[#allocation2 + $0xf8] sm:$0xff] }
 0x18c   : > { %v2606_v63 = vadd.f32 %v3870_v34, %v2567_v60  ;;  %v2565_v0 = vld [vmem:[#allocation2 + $0xc0] sm:$0xff]  ;;  %2539 = vst.msk [vmem:[#allocation2 + $0xf0] sm:$0xff] %vm599_vm0, %v2507_v58  ;;  %v2508_v1 = vadd.f32 %v3380_v41, %v2147_v62  ;;  %v2145_v2 = vld [vmem:[#allocation2 + $0xe8] sm:$0xff]  ;;  %2537 = vst.msk [vmem:[#allocation2 + $0xe0] sm:$0xff] %vm599_vm0, %v2505_v61 }
 0x18d   : > { %v2604_v3 = vadd.f32 %v3870_v34, %v2565_v0  ;;  %v2568_v4 = vld [vmem:[#allocation2 + $0xd8] sm:$0xff]  ;;  %v2506_v5 = vadd.f32 %v2465_v46, %v2145_v2 }
 0x18e   : > { %v3120_v6 = vpack.c.bf16 %v2606_v63, %v2606_v63  ;;  %v2607_v7 = vadd.f32 %v3870_v34, %v2568_v4  ;;  %v2566_v8 = vld [vmem:[#allocation2 + $0xc8] sm:$0xff]  ;;  %2540 = vst.msk [vmem:[#allocation2 + $0xf8] sm:$0xff] %vm599_vm0, %v2508_v1 }
 0x18f   : > { %v3118_v9 = vpack.c.bf16 %v2604_v3, %v2604_v3  ;;  %v2605_v10 = vadd.f32 %v3870_v34, %v2566_v8  ;;  %2538 = vst.msk [vmem:[#allocation2 + $0xe8] sm:$0xff] %vm599_vm0, %v2506_v5 }
 0x190   : > { %2767 = vst.msk [vmem:[%s3881_s14 + $0x68] sm:$0xf] %vm2740_vm1, %v3120_v6  ;;  %v3121_v11 = vpack.c.bf16 %v2607_v7, %v2607_v7 }
 0x191   : > { %2765 = vst.msk [vmem:[%s3881_s14 + $0x60] sm:$0xf] %vm2740_vm1, %v3118_v9  ;;  %v3119_v12 = vpack.c.bf16 %v2605_v10, %v2605_v10 }
 0x192   : > { %2768 = vst.msk [vmem:[%s3881_s14 + $0x6c] sm:$0xf] %vm2740_vm1, %v3121_v11 }
 0x193   : > { %2766 = vst.msk [vmem:[%s3881_s14 + $0x64] sm:$0xf] %vm2740_vm1, %v3119_v12  ;;  %v2571_v13 = vld [vmem:[#allocation2 + $0xf0] sm:$0xff]  ;;  %v2569_v15 = vld [vmem:[#allocation2 + $0xe0] sm:$0xff] }
 0x194   : > { %v2610_v14 = vadd.f32 %v3870_v34, %v2571_v13  ;;  %v2608_v16 = vadd.f32 %v3870_v34, %v2569_v15 }
 0x195   : > { %v2572_v17 = vld [vmem:[#allocation2 + $0xf8] sm:$0xff] }
 0x196   : > { %v3124_v18 = vpack.c.bf16 %v2610_v14, %v2610_v14  ;;  %v2611_v19 = vadd.f32 %v3870_v34, %v2572_v17  ;;  %v2570_v20 = vld [vmem:[#allocation2 + $0xe8] sm:$0xff]  ;;  %v3122_v21 = vpack.c.bf16 %v2608_v16, %v2608_v16 }
 0x197   : > { %v2609_v22 = vadd.f32 %v3870_v34, %v2570_v20 }
 0x198   : > { %2771 = vst.msk [vmem:[%s3881_s14 + $0x78] sm:$0xf] %vm2740_vm1, %v3124_v18  ;;  %v3125_v23 = vpack.c.bf16 %v2611_v19, %v2611_v19  ;;  %2769 = vst.msk [vmem:[%s3881_s14 + $0x70] sm:$0xf] %vm2740_vm1, %v3122_v21 }
 0x199   : > { %v3123_v24 = vpack.c.bf16 %v2609_v22, %v2609_v22 }
 0x19a   : > { %2772 = vst.msk [vmem:[%s3881_s14 + $0x7c] sm:$0xf] %vm2740_vm1, %v3125_v23 }
 0x19b   : > { %2770 = vst.msk [vmem:[%s3881_s14 + $0x74] sm:$0xf] %vm2740_vm1, %v3123_v24 }
 0x19c PF: > { %s21_s17 = sadd.s32 1, %s3482_s17  }
 0x19d   : > { %p18_p4 = scmp.ge.s32.totalorder %s21_s17, 4  }
 0x19f   :  { %20 = sbr.rel (!%p18_p4) target bundleno = 1 (0x1), region = 106 }

// kernel: scunicorn_forward.72
= control target key start
LH: loop header
LB: loop body
LE: loop exit
PB: predicated region body
PF: predicated region fallthrough
CT: control target
= control target key end

     0   :  { %s4168_s25 = smov 0   ;;  %s4734_s0 = inlined_call_operand.vmem [shape: bf16[512,16], index: 0, kind: input, shape index: {}]   ;;  %s4735_s1 = inlined_call_operand.vmem [shape: bf16[512,16], index: 1, kind: input, shape index: {}]   ;;  %s4736_s2 = inlined_call_operand.vmem [shape: bf16[512,16], index: 2, kind: input, shape index: {}]   ;;  %s4737_s3 = inlined_call_operand.vmem [shape: bf16[512,16], index: 3, kind: input, shape index: {}]   ;;  %s4738_s4 = inlined_call_operand.vmem [shape: bf16[512,16], index: 4, kind: input, shape index: {}]   ;;  %s4739_s5 = inlined_call_operand.vmem [shape: bf16[512,16], index: 5, kind: input, shape index: {}]   ;;  %s4740_s6 = inlined_call_operand.vmem [shape: bf16[16,16], index: 6, kind: input, shape index: {}]   ;;  %s4741_s7 = inlined_call_operand.vmem [shape: bf16[16,16], index: 7, kind: input, shape index: {}]   ;;  %s4742_s8 = inlined_call_operand.vmem [shape: bf16[16,16], index: 8, kind: input, shape index: {}]   ;;  %s4743_s9 = inlined_call_operand.vmem [shape: bf16[16,16], index: 9, kind: input, shape index: {}]   ;;  %s4744_s10 = inlined_call_operand.vmem [shape: bf16[16,16], index: 10, kind: input, shape index: {}]   ;;  %s4745_s11 = inlined_call_operand.vmem [shape: bf16[16,16], index: 11, kind: input, shape index: {}]   ;;  %s4746_s12 = inlined_call_operand.vmem [shape: f32[1,16], index: 12, kind: input, shape index: {}]   ;;  %s4747_s13 = inlined_call_operand.vmem [shape: bf16[512,16], index: 13, kind: output, shape index: {}]  }
   0x1 LB: > { %s3390_s26 = sadd.s32 4294967295, %s4096_s25   ;;  %p3394_p0 = scmp.ge.s32.totalorder %s4096_s25, 1  ;;  %s4096_s25 = sphi %s4168_s25, %s23_s25  }
   0x2   : > { %p443_p1 = scmp.lt.s32.totalorder %s4096_s25, 3 }
   0x4   : > { %p444_p2 = pnand %p3394_p0, %p443_p1 }
   0x5   : > { %v3988_v0 = vld [vmem:[%s4740_s6] sm:$0xff] (!%p444_p2)   ;;  %s3395_s29 = sshll.u32 (!%p444_p2), %s3390_s26, 5  ;;  %vm675_vm0 = vcmask (!%p444_p2), 130048   ;;  %vm3241_vm1 = vcmask (!%p444_p2), 125952  }
   0x6   : > { %447 = sbr.rel (%p444_p2) target bundleno = 444 (0x1bc), region = 72  ;;  %p513_p3 = scmp.lt.s32.totalorder (!%p444_p2), %s3395_s29, 63  ;;  %3776 = vmatprep.subr.bf16.mxu0 (!%p444_p2), %v3988_v0  ;;  %v3990_v1 = vld [vmem:[%s4742_s8] sm:$0xff] (!%p444_p2)  }
   0x7   : > { %3777 = vmatpush3.bf16.msra.mxu0 (!%p444_p2), %v3988_v0  ;;  %v3992_v2 = vld [vmem:[%s4741_s7] sm:$0xff] (!%p444_p2)  }
   0x8   : > { %3844 = vmatprep.subr.bf16.mxu0 (!%p444_p2), %v3990_v1  ;;  %v3997_v3 = vld [vmem:[%s4743_s9] sm:$0xff] (!%p444_p2)   ;;  %3810 = vmatprep.subr.bf16.mxu1 (!%p444_p2), %v3992_v2 }
   0x9   : > { %3811 = vmatpush3.bf16.msra.mxu1 (!%p444_p2), %v3992_v2  ;;  %v4199_v4 = vld [vmem:[%s4744_s10] sm:$0xff] (!%p444_p2)  }
   0xa   : > { %3878 = vmatprep.subr.bf16.mxu1 (!%p444_p2), %v3997_v3  ;;  %v4214_v8 = vld [vmem:[%s4745_s11] sm:$0xff] (!%p444_p2)  }
   0xd   : > { %s4749_s29 = smov (!%p513_p3, %s3395_s29), 63 }
   0xe   : > { %s4188_s19 = sshll.u32 %s4749_s29, 2 }
   0xf   : > { %s4194_s22 = scalar_lea.vmem %s4734_s0, %s4188_s19  ;;  %s4206_s28 = scalar_lea.vmem %s4735_s1, %s4188_s19 }
  0x10   : > { %v3989_v5 = vld [vmem:[%s4194_s22] sm:$0xff]   ;;  %v3991_v6 = vld [vmem:[%s4194_s22 + $0x8] sm:$0xff]   ;;  %v3994_v9 = vld [vmem:[%s4194_s22 + $0x10] sm:$0xff]   ;;  %s4255_s16 = scalar_lea.vmem %s4736_s2, %s4188_s19  ;;  %s4262_s20 = scalar_lea.vmem %s4737_s3, %s4188_s19 }
  0x11   : > { %3778 = vmatprep.mubr.msk.bf16.mxu0 %vm675_vm0, %v3989_v5  ;;  %v3993_v7 = vld [vmem:[%s4206_s28] sm:$0xff]   ;;  %v3995_v10 = vld [vmem:[%s4206_s28 + $0x8] sm:$0xff]   ;;  %v3998_v11 = vld [vmem:[%s4206_s28 + $0x10] sm:$0xff]   ;;  %s4306_s27 = scalar_lea.vmem %s4739_s5, %s4188_s19  ;;  %s4586_s15 = scalar_lea.vmem %s4747_s13, %s4188_s19 }
  0x12   : > { %3779 = vmatmul.mubr.msk.bf16.vlgmr.msra.gmra.mrb[0].mxu0 %vm675_vm0, %v3991_v6  ;;  %3812 = vmatprep.mubr.msk.bf16.mxu1 %vm675_vm0, %v3993_v7  ;;  %v3996_v12 = vld [vmem:[%s4194_s22 + $0x18] sm:$0xff]   ;;  %v3999_v13 = vld [vmem:[%s4194_s22 + $0x20] sm:$0xff]   ;;  %v4001_v16 = vld [vmem:[%s4194_s22 + $0x28] sm:$0xff]  }
  0x13   : > { %3845 = vmatpush3.bf16.msra.mxu0 %v3990_v1  ;;  %3782 = vmatprep.mubr.msk.bf16.mxu0 %vm675_vm0, %v3994_v9  ;;  %v4000_v14 = vld [vmem:[%s4206_s28 + $0x18] sm:$0xff]   ;;  %v4002_v15 = vld [vmem:[%s4206_s28 + $0x20] sm:$0xff]   ;;  %v4003_v17 = vld [vmem:[%s4194_s22 + $0x30] sm:$0xff]  }
  0x14   : > { %3912 = vmatprep.subr.bf16.mxu0 %v4199_v4  ;;  %3813 = vmatmul.mubr.msk.bf16.vlgmr.msra.gmra.mrb[0].mxu1 %vm675_vm0, %v3995_v10  ;;  %v4004_v18 = vld [vmem:[%s4206_s28 + $0x28] sm:$0xff]   ;;  %v4006_v19 = vld [vmem:[%s4206_s28 + $0x30] sm:$0xff]   ;;  %v4005_v20 = vld [vmem:[%s4194_s22 + $0x38] sm:$0xff]  }
  0x15   : > { %3879 = vmatpush3.bf16.msra.mxu1 %v3997_v3  ;;  %3816 = vmatprep.mubr.msk.bf16.mxu1 %vm675_vm0, %v3998_v11  ;;  %v4007_v21 = vld [vmem:[%s4194_s22 + $0x40] sm:$0xff]   ;;  %v4008_v22 = vld [vmem:[%s4206_s28 + $0x38] sm:$0xff]   ;;  %v4009_v24 = vld [vmem:[%s4194_s22 + $0x48] sm:$0xff]  }
  0x16   : > { %3946 = vmatprep.subr.bf16.mxu1 %v4214_v8  ;;  %v4010_v23 = vld [vmem:[%s4206_s28 + $0x40] sm:$0xff]   ;;  %v4011_v25 = vld [vmem:[%s4194_s22 + $0x50] sm:$0xff]   ;;  %v4012_v26 = vld [vmem:[%s4206_s28 + $0x48] sm:$0xff]  }
  0x17   : > { %v4014_v27 = vld [vmem:[%s4206_s28 + $0x50] sm:$0xff]   ;;  %v4013_v28 = vld [vmem:[%s4194_s22 + $0x58] sm:$0xff]   ;;  %v4015_v29 = vld [vmem:[%s4194_s22 + $0x60] sm:$0xff]  }
  0x18   : > { %v4016_v30 = vld [vmem:[%s4206_s28 + $0x58] sm:$0xff]   ;;  %v4018_v31 = vld [vmem:[%s4206_s28 + $0x60] sm:$0xff]   ;;  %v4017_v32 = vld [vmem:[%s4194_s22 + $0x68] sm:$0xff]  }
  0x19   : > { %v4019_v33 = vld [vmem:[%s4194_s22 + $0x70] sm:$0xff]   ;;  %v4020_v34 = vld [vmem:[%s4206_s28 + $0x68] sm:$0xff]   ;;  %v4021_v36 = vld [vmem:[%s4194_s22 + $0x78] sm:$0xff]   ;;  %s4299_s22 = scalar_lea.vmem %s4738_s4, %s4188_s19 }
  0x1a   : > { %3783 = vmatmul.mubr.msk.bf16.gmra.mrb[4].mxu0 %vm675_vm0, %v3996_v12  ;;  %v4022_v35 = vld [vmem:[%s4206_s28 + $0x70] sm:$0xff]   ;;  %v4024_v37 = vld [vmem:[%s4255_s16] sm:$0xff]   ;;  %v4023_v38 = vld [vmem:[%s4206_s28 + $0x78] sm:$0xff]  }
  0x1b   : > { %3786 = vmatprep.mubr.msk.bf16.mxu0 %vm675_vm0, %v3999_v13  ;;  %v4027_v39 = vld [vmem:[%s4262_s20] sm:$0xff]   ;;  %v4026_v40 = vld [vmem:[%s4255_s16 + $0x8] sm:$0xff]   ;;  %v4028_v41 = vld [vmem:[%s4255_s16 + $0x10] sm:$0xff]  }
  0x1c   : > { %3817 = vmatmul.mubr.msk.bf16.gmra.mrb[4].mxu1 %vm675_vm0, %v4000_v14  ;;  %v4029_v42 = vld [vmem:[%s4262_s20 + $0x8] sm:$0xff]   ;;  %v4032_v43 = vld [vmem:[%s4262_s20 + $0x10] sm:$0xff]   ;;  %v4030_v44 = vld [vmem:[%s4255_s16 + $0x18] sm:$0xff]  }
  0x1d   : > { %3820 = vmatprep.mubr.msk.bf16.mxu1 %vm675_vm0, %v4002_v15  ;;  %v4033_v45 = vld [vmem:[%s4255_s16 + $0x20] sm:$0xff]   ;;  %v4034_v46 = vld [vmem:[%s4262_s20 + $0x18] sm:$0xff]   ;;  %v4035_v48 = vld [vmem:[%s4255_s16 + $0x28] sm:$0xff]  }
  0x1e   : > { %v4036_v47 = vld [vmem:[%s4262_s20 + $0x20] sm:$0xff]   ;;  %v4037_v49 = vld [vmem:[%s4255_s16 + $0x30] sm:$0xff]   ;;  %v4038_v50 = vld [vmem:[%s4262_s20 + $0x28] sm:$0xff]  }
  0x1f   : > { %v4040_v51 = vld [vmem:[%s4262_s20 + $0x30] sm:$0xff]   ;;  %v4039_v52 = vld [vmem:[%s4255_s16 + $0x38] sm:$0xff]   ;;  %v4041_v53 = vld [vmem:[%s4255_s16 + $0x40] sm:$0xff]  }
  0x20   : > { %v4042_v54 = vld [vmem:[%s4262_s20 + $0x38] sm:$0xff]   ;;  %v4044_v55 = vld [vmem:[%s4262_s20 + $0x40] sm:$0xff]   ;;  %v4043_v56 = vld [vmem:[%s4255_s16 + $0x48] sm:$0xff]  }
  0x21   : > { %v4045_v57 = vld [vmem:[%s4255_s16 + $0x50] sm:$0xff]   ;;  %v4046_v58 = vld [vmem:[%s4262_s20 + $0x48] sm:$0xff]   ;;  %v4047_v60 = vld [vmem:[%s4255_s16 + $0x58] sm:$0xff]  }
  0x22   : > { %3787 = vmatmul.mubr.msk.bf16.gmra.mrb[8].mxu0 %vm675_vm0, %v4001_v16  ;;  %v4048_v59 = vld [vmem:[%s4262_s20 + $0x50] sm:$0xff]   ;;  %v4049_v61 = vld [vmem:[%s4255_s16 + $0x60] sm:$0xff]   ;;  %v4050_v62 = vld [vmem:[%s4262_s20 + $0x58] sm:$0xff]  }
  0x23   : > { %3790 = vmatprep.mubr.msk.bf16.mxu0 %vm675_vm0, %v4003_v17  ;;  %v4052_v63 = vld [vmem:[%s4262_s20 + $0x60] sm:$0xff]   ;;  %v4051_v0 = vld [vmem:[%s4255_s16 + $0x68] sm:$0xff]   ;;  %v4053_v1 = vld [vmem:[%s4255_s16 + $0x70] sm:$0xff]  }
  0x24   : > { %3821 = vmatmul.mubr.msk.bf16.gmra.mrb[8].mxu1 %vm675_vm0, %v4004_v18  ;;  %v4054_v2 = vld [vmem:[%s4262_s20 + $0x68] sm:$0xff]   ;;  %v4056_v3 = vld [vmem:[%s4262_s20 + $0x70] sm:$0xff]   ;;  %v4058_v5 = vld [vmem:[%s4299_s22] sm:$0xff]  }
  0x25   : > { %3824 = vmatprep.mubr.msk.bf16.mxu1 %vm675_vm0, %v4006_v19  ;;  %v4057_v6 = vld [vmem:[%s4262_s20 + $0x78] sm:$0xff]   ;;  %v4060_v7 = vld [vmem:[%s4306_s27] sm:$0xff]   ;;  %v4061_v9 = vld [vmem:[%s4299_s22 + $0x10] sm:$0xff]  }
  0x26   : > { %v4062_v10 = vld [vmem:[%s4306_s27 + $0x8] sm:$0xff]   ;;  %v4064_v11 = vld [vmem:[%s4306_s27 + $0x10] sm:$0xff]   ;;  %v4063_v12 = vld [vmem:[%s4299_s22 + $0x18] sm:$0xff]  }
  0x27   : > { %v4065_v13 = vld [vmem:[%s4299_s22 + $0x20] sm:$0xff]   ;;  %v4066_v14 = vld [vmem:[%s4306_s27 + $0x18] sm:$0xff]   ;;  %v4067_v16 = vld [vmem:[%s4299_s22 + $0x28] sm:$0xff]  }
  0x28   : > { %v4068_v15 = vld [vmem:[%s4306_s27 + $0x20] sm:$0xff]   ;;  %v4069_v17 = vld [vmem:[%s4299_s22 + $0x30] sm:$0xff]   ;;  %v4070_v18 = vld [vmem:[%s4306_s27 + $0x28] sm:$0xff]  }
  0x29   : > { %v4072_v19 = vld [vmem:[%s4306_s27 + $0x30] sm:$0xff]  }
  0x2a   : > { %3791 = vmatmul.mubr.msk.bf16.gmra.mrb[12].mxu0 %vm675_vm0, %v4005_v20  ;;  %v4071_v20 = vld [vmem:[%s4299_s22 + $0x38] sm:$0xff]  }
  0x2b   : > { %3794 = vmatprep.mubr.msk.bf16.mxu0 %vm675_vm0, %v4007_v21  ;;  %v4073_v21 = vld [vmem:[%s4299_s22 + $0x40] sm:$0xff]  }
  0x2c   : > { %3825 = vmatmul.mubr.msk.bf16.gmra.mrb[12].mxu1 %vm675_vm0, %v4008_v22  ;;  %v4074_v22 = vld [vmem:[%s4306_s27 + $0x38] sm:$0xff]  }
  0x2d   : > { %3828 = vmatprep.mubr.msk.bf16.mxu1 %vm675_vm0, %v4010_v23  ;;  %v4076_v23 = vld [vmem:[%s4306_s27 + $0x40] sm:$0xff]  }
  0x32   : > { %3795 = vmatmul.mubr.msk.bf16.gmra.mrb[16].mxu0 %vm675_vm0, %v4009_v24  ;;  %v4075_v24 = vld [vmem:[%s4299_s22 + $0x48] sm:$0xff]  }
  0x33   : > { %3798 = vmatprep.mubr.msk.bf16.mxu0 %vm675_vm0, %v4011_v25  ;;  %v4077_v25 = vld [vmem:[%s4299_s22 + $0x50] sm:$0xff]  }
  0x34   : > { %3829 = vmatmul.mubr.msk.bf16.gmra.mrb[16].mxu1 %vm675_vm0, %v4012_v26  ;;  %v4078_v26 = vld [vmem:[%s4306_s27 + $0x48] sm:$0xff]  }
  0x35   : > { %3832 = vmatprep.mubr.msk.bf16.mxu1 %vm675_vm0, %v4014_v27  ;;  %v4080_v27 = vld [vmem:[%s4306_s27 + $0x50] sm:$0xff]  }
  0x3a   : > { %3799 = vmatmul.mubr.msk.bf16.gmra.mrb[20].mxu0 %vm675_vm0, %v4013_v28  ;;  %v4079_v28 = vld [vmem:[%s4299_s22 + $0x58] sm:$0xff]  }
  0x3b   : > { %3802 = vmatprep.mubr.msk.bf16.mxu0 %vm675_vm0, %v4015_v29  ;;  %v4081_v29 = vld [vmem:[%s4299_s22 + $0x60] sm:$0xff]  }
  0x3c   : > { %3833 = vmatmul.mubr.msk.bf16.gmra.mrb[20].mxu1 %vm675_vm0, %v4016_v30  ;;  %v4082_v30 = vld [vmem:[%s4306_s27 + $0x58] sm:$0xff]  }
  0x3d   : > { %3836 = vmatprep.mubr.msk.bf16.mxu1 %vm675_vm0, %v4018_v31  ;;  %v4084_v31 = vld [vmem:[%s4306_s27 + $0x60] sm:$0xff]  }
  0x42   : > { %3803 = vmatmul.mubr.msk.bf16.gmra.mrb[24].mxu0 %vm675_vm0, %v4017_v32  ;;  %v4083_v32 = vld [vmem:[%s4299_s22 + $0x68] sm:$0xff]  }
  0x43   : > { %3806 = vmatprep.mubr.msk.bf16.mxu0 %vm675_vm0, %v4019_v33  ;;  %v4085_v33 = vld [vmem:[%s4299_s22 + $0x70] sm:$0xff]  }
  0x44   : > { %3837 = vmatmul.mubr.msk.bf16.gmra.mrb[24].mxu1 %vm675_vm0, %v4020_v34  ;;  %v4086_v34 = vld [vmem:[%s4306_s27 + $0x68] sm:$0xff]  }
  0x45   : > { %3840 = vmatprep.mubr.msk.bf16.mxu1 %vm675_vm0, %v4022_v35  ;;  %v4088_v35 = vld [vmem:[%s4306_s27 + $0x70] sm:$0xff]  }
  0x4a   : > { %3807 = vmatmul.mubr.msk.bf16.gmra.mrb[28].mxu0 %vm675_vm0, %v4021_v36  ;;  %v4087_v36 = vld [vmem:[%s4299_s22 + $0x78] sm:$0xff]  }
  0x4b   : > { %3846 = vmatprep.mubr.msk.bf16.mxu0 %vm675_vm0, %v4024_v37  ;;  %v4089_v37 = vld [vmem:[%s4306_s27 + $0x78] sm:$0xff]  }
  0x4c   : > { %3841 = vmatmul.mubr.msk.bf16.gmra.mrb[28].mxu1 %vm675_vm0, %v4023_v38 }
  0x4d   : > { %3880 = vmatprep.mubr.msk.bf16.mxu1 %vm675_vm0, %v4027_v39 }
  0x52   : > { %3847 = vmatmul.mubr.msk.bf16.vlgmr.msra.gmra.mrb[32].mxu0 %vm675_vm0, %v4026_v40 }
  0x53   : > { %3913 = vmatpush3.bf16.msra.mxu0 %v4199_v4  ;;  %3850 = vmatprep.mubr.msk.bf16.mxu0 %vm675_vm0, %v4028_v41  ;;  %v4055_v4 = vld [vmem:[%s4255_s16 + $0x78] sm:$0xff]  }
  0x54   : > { %3881 = vmatmul.mubr.msk.bf16.vlgmr.msra.gmra.mrb[32].mxu1 %vm675_vm0, %v4029_v42 }
  0x55   : > { %3947 = vmatpush3.bf16.msra.mxu1 %v4214_v8  ;;  %3884 = vmatprep.mubr.msk.bf16.mxu1 %vm675_vm0, %v4032_v43  ;;  %v4059_v8 = vld [vmem:[%s4299_s22 + $0x8] sm:$0xff]  }
  0x5a   : > { %3851 = vmatmul.mubr.msk.bf16.gmra.mrb[36].mxu0 %vm675_vm0, %v4030_v44 }
  0x5b   : > { %3854 = vmatprep.mubr.msk.bf16.mxu0 %vm675_vm0, %v4033_v45 }
  0x5c   : > { %3885 = vmatmul.mubr.msk.bf16.gmra.mrb[36].mxu1 %vm675_vm0, %v4034_v46 }
  0x5d   : > { %3888 = vmatprep.mubr.msk.bf16.mxu1 %vm675_vm0, %v4036_v47 }
  0x62   : > { %3855 = vmatmul.mubr.msk.bf16.gmra.mrb[40].mxu0 %vm675_vm0, %v4035_v48 }
  0x63   : > { %3858 = vmatprep.mubr.msk.bf16.mxu0 %vm675_vm0, %v4037_v49 }
  0x64   : > { %3889 = vmatmul.mubr.msk.bf16.gmra.mrb[40].mxu1 %vm675_vm0, %v4038_v50 }
  0x65   : > { %3892 = vmatprep.mubr.msk.bf16.mxu1 %vm675_vm0, %v4040_v51 }
  0x6a   : > { %3859 = vmatmul.mubr.msk.bf16.gmra.mrb[44].mxu0 %vm675_vm0, %v4039_v52 }
  0x6b   : > { %3862 = vmatprep.mubr.msk.bf16.mxu0 %vm675_vm0, %v4041_v53 }
  0x6c   : > { %3893 = vmatmul.mubr.msk.bf16.gmra.mrb[44].mxu1 %vm675_vm0, %v4042_v54 }
  0x6d   : > { %3896 = vmatprep.mubr.msk.bf16.mxu1 %vm675_vm0, %v4044_v55 }
  0x72   : > { %3863 = vmatmul.mubr.msk.bf16.gmra.mrb[48].mxu0 %vm675_vm0, %v4043_v56 }
  0x73   : > { %3866 = vmatprep.mubr.msk.bf16.mxu0 %vm675_vm0, %v4045_v57 }
  0x74   : > { %3897 = vmatmul.mubr.msk.bf16.gmra.mrb[48].mxu1 %vm675_vm0, %v4046_v58 }
  0x75   : > { %3900 = vmatprep.mubr.msk.bf16.mxu1 %vm675_vm0, %v4048_v59 }
  0x7a   : > { %3867 = vmatmul.mubr.msk.bf16.gmra.mrb[52].mxu0 %vm675_vm0, %v4047_v60 }
  0x7b   : > { %3870 = vmatprep.mubr.msk.bf16.mxu0 %vm675_vm0, %v4049_v61 }
  0x7c   : > { %3901 = vmatmul.mubr.msk.bf16.gmra.mrb[52].mxu1 %vm675_vm0, %v4050_v62 }
  0x7d   : > { %3904 = vmatprep.mubr.msk.bf16.mxu1 %vm675_vm0, %v4052_v63 }
  0x82   : > { %3871 = vmatmul.mubr.msk.bf16.gmra.mrb[56].mxu0 %vm675_vm0, %v4051_v0 }
  0x83   : > { %3874 = vmatprep.mubr.msk.bf16.mxu0 %vm675_vm0, %v4053_v1 }
  0x84   : > { %3905 = vmatmul.mubr.msk.bf16.gmra.mrb[56].mxu1 %vm675_vm0, %v4054_v2 }
  0x85   : > { %3908 = vmatprep.mubr.msk.bf16.mxu1 %vm675_vm0, %v4056_v3 }
  0x8a   : > { %3875 = vmatmul.mubr.msk.bf16.gmra.mrb[60].mxu0 %vm675_vm0, %v4055_v4 }
  0x8b   : > { %3914 = vmatprep.mubr.msk.bf16.mxu0 %vm675_vm0, %v4058_v5 }
  0x8c   : > { %3909 = vmatmul.mubr.msk.bf16.gmra.mrb[60].mxu1 %vm675_vm0, %v4057_v6 }
  0x8d   : > { %3948 = vmatprep.mubr.msk.bf16.mxu1 %vm675_vm0, %v4060_v7 }
  0x92   : > { %3915 = vmatmul.mubr.msk.bf16.vlgmr.msra.gmra.mrb[64].mxu0 %vm675_vm0, %v4059_v8 }
  0x93   : > { %3918 = vmatprep.mubr.msk.bf16.mxu0 %vm675_vm0, %v4061_v9 }
  0x94   : > { %3949 = vmatmul.mubr.msk.bf16.vlgmr.msra.gmra.mrb[64].mxu1 %vm675_vm0, %v4062_v10 }
  0x95   : > { %3952 = vmatprep.mubr.msk.bf16.mxu1 %vm675_vm0, %v4064_v11 }
  0x9a   : > { %3919 = vmatmul.mubr.msk.bf16.gmra.mrb[68].mxu0 %vm675_vm0, %v4063_v12 }
  0x9b   : > { %3922 = vmatprep.mubr.msk.bf16.mxu0 %vm675_vm0, %v4065_v13 }
  0x9c   : > { %3953 = vmatmul.mubr.msk.bf16.gmra.mrb[68].mxu1 %vm675_vm0, %v4066_v14 }
  0x9d   : > { %3956 = vmatprep.mubr.msk.bf16.mxu1 %vm675_vm0, %v4068_v15 }
  0xa2   : > { %3923 = vmatmul.mubr.msk.bf16.gmra.mrb[72].mxu0 %vm675_vm0, %v4067_v16 }
  0xa3   : > { %3926 = vmatprep.mubr.msk.bf16.mxu0 %vm675_vm0, %v4069_v17 }
  0xa4   : > { %3957 = vmatmul.mubr.msk.bf16.gmra.mrb[72].mxu1 %vm675_vm0, %v4070_v18 }
  0xa5   : > { %3960 = vmatprep.mubr.msk.bf16.mxu1 %vm675_vm0, %v4072_v19 }
  0xaa   : > { %3927 = vmatmul.mubr.msk.bf16.gmra.mrb[76].mxu0 %vm675_vm0, %v4071_v20 }
  0xab   : > { %3930 = vmatprep.mubr.msk.bf16.mxu0 %vm675_vm0, %v4073_v21 }
  0xac   : > { %3961 = vmatmul.mubr.msk.bf16.gmra.mrb[76].mxu1 %vm675_vm0, %v4074_v22 }
  0xad   : > { %3964 = vmatprep.mubr.msk.bf16.mxu1 %vm675_vm0, %v4076_v23 }
  0xb2   : > { %3931 = vmatmul.mubr.msk.bf16.gmra.mrb[80].mxu0 %vm675_vm0, %v4075_v24 }
  0xb3   : > { %3934 = vmatprep.mubr.msk.bf16.mxu0 %vm675_vm0, %v4077_v25 }
  0xb4   : > { %3965 = vmatmul.mubr.msk.bf16.gmra.mrb[80].mxu1 %vm675_vm0, %v4078_v26 }
  0xb5   : > { %3968 = vmatprep.mubr.msk.bf16.mxu1 %vm675_vm0, %v4080_v27 }
  0xba   : > { %3935 = vmatmul.mubr.msk.bf16.gmra.mrb[84].mxu0 %vm675_vm0, %v4079_v28 }
  0xbb   : > { %3938 = vmatprep.mubr.msk.bf16.mxu0 %vm675_vm0, %v4081_v29 }
  0xbc   : > { %3969 = vmatmul.mubr.msk.bf16.gmra.mrb[84].mxu1 %vm675_vm0, %v4082_v30 }
  0xbd   : > { %3972 = vmatprep.mubr.msk.bf16.mxu1 %vm675_vm0, %v4084_v31 }
  0xc2   : > { %3939 = vmatmul.mubr.msk.bf16.gmra.mrb[88].mxu0 %vm675_vm0, %v4083_v32 }
  0xc3   : > { %3942 = vmatprep.mubr.msk.bf16.mxu0 %vm675_vm0, %v4085_v33 }
  0xc4   : > { %3973 = vmatmul.mubr.msk.bf16.gmra.mrb[88].mxu1 %vm675_vm0, %v4086_v34 }
  0xc5   : > { %3976 = vmatprep.mubr.msk.bf16.mxu1 %vm675_vm0, %v4088_v35 }
  0xca   : > { %3943 = vmatmul.mubr.msk.bf16.gmra.mrb[92].mxu0 %vm675_vm0, %v4087_v36 }
  0xcc   : > { %3977 = vmatmul.mubr.msk.bf16.gmra.mrb[92].mxu1 %vm675_vm0, %v4089_v37 }
  0xe5   : > { %v3780_v38 = vpop.f32.mrb[0].mxu0 }
  0xe6   : > { %887 = vst.msk [vmem:[#allocation2 + $0x10] sm:$0xff] %vm675_vm0, %v3780_v38  ;;  %v758_v39 = vpop.f32.mrb[1].mxu0 }
  0xe7   : > { %885 = vst.msk [vmem:[#allocation2] sm:$0xff] %vm675_vm0, %v758_v39  ;;  %v3781_v40 = vpop.f32.mrb[2].mxu0  ;;  %v3814_v42 = vpop.f32.mrb[0].mxu1 }
  0xe8   : > { %888 = vst.msk [vmem:[#allocation2 + $0x18] sm:$0xff] %vm675_vm0, %v3781_v40  ;;  %v761_v41 = vpop.f32.mrb[3].mxu0  ;;  %v1151_v43 = vpop.f32.mrb[1].mxu1 }
  0xe9   : > { %886 = vst.msk [vmem:[#allocation2 + $0x8] sm:$0xff] %vm675_vm0, %v761_v41  ;;  %v3815_v44 = vpop.f32.mrb[2].mxu1 }
  0xea   : > { %v1154_v45 = vpop.f32.mrb[3].mxu1 }
  0xed   : > { %v919_v46 = vld [vmem:[#allocation2 + $0x10] sm:$0xff]  ;;  %v3784_v47 = vpop.f32.mrb[4].mxu0 }
  0xee   : > { %v1280_v48 = vadd.f32 %v3814_v42, %v919_v46  ;;  %891 = vst.msk [vmem:[#allocation2 + $0x30] sm:$0xff] %vm675_vm0, %v3784_v47  ;;  %v917_v49 = vld [vmem:[#allocation2] sm:$0xff]  ;;  %v774_v50 = vpop.f32.mrb[5].mxu0 }
  0xef   : > { %v1278_v51 = vadd.f32 %v1151_v43, %v917_v49  ;;  %889 = vst.msk [vmem:[#allocation2 + $0x20] sm:$0xff] %vm675_vm0, %v774_v50  ;;  %v920_v52 = vld [vmem:[#allocation2 + $0x18] sm:$0xff]  ;;  %v3785_v53 = vpop.f32.mrb[6].mxu0  ;;  %v3818_v57 = vpop.f32.mrb[4].mxu1 }
  0xf0   : > { %1312 = vst.msk [vmem:[#allocation2 + $0x10] sm:$0xff] %vm675_vm0, %v1280_v48  ;;  %v1281_v54 = vadd.f32 %v3815_v44, %v920_v52  ;;  %892 = vst.msk [vmem:[#allocation2 + $0x38] sm:$0xff] %vm675_vm0, %v3785_v53  ;;  %v918_v55 = vld [vmem:[#allocation2 + $0x8] sm:$0xff]  ;;  %v777_v56 = vpop.f32.mrb[7].mxu0  ;;  %v1167_v59 = vpop.f32.mrb[5].mxu1 }
  0xf1   : > { %1310 = vst.msk [vmem:[#allocation2] sm:$0xff] %vm675_vm0, %v1278_v51  ;;  %v1279_v58 = vadd.f32 %v1154_v45, %v918_v55  ;;  %890 = vst.msk [vmem:[#allocation2 + $0x28] sm:$0xff] %vm675_vm0, %v777_v56  ;;  %v3819_v60 = vpop.f32.mrb[6].mxu1 }
  0xf2   : > { %1313 = vst.msk [vmem:[#allocation2 + $0x18] sm:$0xff] %vm675_vm0, %v1281_v54  ;;  %v1170_v61 = vpop.f32.mrb[7].mxu1 }
  0xf3   : > { %1311 = vst.msk [vmem:[#allocation2 + $0x8] sm:$0xff] %vm675_vm0, %v1279_v58 }
  0xf5   : > { %v923_v62 = vld [vmem:[#allocation2 + $0x30] sm:$0xff]  ;;  %v3788_v63 = vpop.f32.mrb[8].mxu0 }
  0xf6   : > { %v1284_v0 = vadd.f32 %v3818_v57, %v923_v62  ;;  %895 = vst.msk [vmem:[#allocation2 + $0x50] sm:$0xff] %vm675_vm0, %v3788_v63  ;;  %v921_v1 = vld [vmem:[#allocation2 + $0x20] sm:$0xff]  ;;  %v790_v2 = vpop.f32.mrb[9].mxu0 }
  0xf7   : > { %v1282_v3 = vadd.f32 %v1167_v59, %v921_v1  ;;  %893 = vst.msk [vmem:[#allocation2 + $0x40] sm:$0xff] %vm675_vm0, %v790_v2  ;;  %v924_v4 = vld [vmem:[#allocation2 + $0x38] sm:$0xff]  ;;  %v3789_v5 = vpop.f32.mrb[10].mxu0  ;;  %v3822_v9 = vpop.f32.mrb[8].mxu1 }
  0xf8   : > { %1316 = vst.msk [vmem:[#allocation2 + $0x30] sm:$0xff] %vm675_vm0, %v1284_v0  ;;  %v1285_v6 = vadd.f32 %v3819_v60, %v924_v4  ;;  %896 = vst.msk [vmem:[#allocation2 + $0x58] sm:$0xff] %vm675_vm0, %v3789_v5  ;;  %v922_v7 = vld [vmem:[#allocation2 + $0x28] sm:$0xff]  ;;  %v793_v8 = vpop.f32.mrb[11].mxu0  ;;  %v1183_v11 = vpop.f32.mrb[9].mxu1 }
  0xf9   : > { %1314 = vst.msk [vmem:[#allocation2 + $0x20] sm:$0xff] %vm675_vm0, %v1282_v3  ;;  %v1283_v10 = vadd.f32 %v1170_v61, %v922_v7  ;;  %894 = vst.msk [vmem:[#allocation2 + $0x48] sm:$0xff] %vm675_vm0, %v793_v8  ;;  %v3823_v12 = vpop.f32.mrb[10].mxu1 }
  0xfa   : > { %1317 = vst.msk [vmem:[#allocation2 + $0x38] sm:$0xff] %vm675_vm0, %v1285_v6  ;;  %v1186_v13 = vpop.f32.mrb[11].mxu1 }
  0xfb   : > { %1315 = vst.msk [vmem:[#allocation2 + $0x28] sm:$0xff] %vm675_vm0, %v1283_v10 }
  0xfd   : > { %v927_v14 = vld [vmem:[#allocation2 + $0x50] sm:$0xff]  ;;  %v3792_v15 = vpop.f32.mrb[12].mxu0 }
  0xfe   : > { %v1288_v16 = vadd.f32 %v3822_v9, %v927_v14  ;;  %899 = vst.msk [vmem:[#allocation2 + $0x70] sm:$0xff] %vm675_vm0, %v3792_v15  ;;  %v925_v17 = vld [vmem:[#allocation2 + $0x40] sm:$0xff]  ;;  %v806_v18 = vpop.f32.mrb[13].mxu0 }
  0xff   : > { %v1286_v19 = vadd.f32 %v1183_v11, %v925_v17  ;;  %897 = vst.msk [vmem:[#allocation2 + $0x60] sm:$0xff] %vm675_vm0, %v806_v18  ;;  %v928_v20 = vld [vmem:[#allocation2 + $0x58] sm:$0xff]  ;;  %v3793_v21 = vpop.f32.mrb[14].mxu0  ;;  %v3826_v25 = vpop.f32.mrb[12].mxu1 }
 0x100   : > { %1320 = vst.msk [vmem:[#allocation2 + $0x50] sm:$0xff] %vm675_vm0, %v1288_v16  ;;  %v1289_v22 = vadd.f32 %v3823_v12, %v928_v20  ;;  %900 = vst.msk [vmem:[#allocation2 + $0x78] sm:$0xff] %vm675_vm0, %v3793_v21  ;;  %v926_v23 = vld [vmem:[#allocation2 + $0x48] sm:$0xff]  ;;  %v809_v24 = vpop.f32.mrb[15].mxu0  ;;  %v1199_v27 = vpop.f32.mrb[13].mxu1 }
 0x101   : > { %1318 = vst.msk [vmem:[#allocation2 + $0x40] sm:$0xff] %vm675_vm0, %v1286_v19  ;;  %v1287_v26 = vadd.f32 %v1186_v13, %v926_v23  ;;  %898 = vst.msk [vmem:[#allocation2 + $0x68] sm:$0xff] %vm675_vm0, %v809_v24  ;;  %v3827_v28 = vpop.f32.mrb[14].mxu1 }
 0x102   : > { %1321 = vst.msk [vmem:[#allocation2 + $0x58] sm:$0xff] %vm675_vm0, %v1289_v22  ;;  %v1202_v29 = vpop.f32.mrb[15].mxu1 }
 0x103   : > { %1319 = vst.msk [vmem:[#allocation2 + $0x48] sm:$0xff] %vm675_vm0, %v1287_v26 }
 0x105   : > { %v931_v30 = vld [vmem:[#allocation2 + $0x70] sm:$0xff]  ;;  %v3796_v31 = vpop.f32.mrb[16].mxu0 }
 0x106   : > { %v1292_v32 = vadd.f32 %v3826_v25, %v931_v30  ;;  %903 = vst.msk [vmem:[#allocation2 + $0x90] sm:$0xff] %vm675_vm0, %v3796_v31  ;;  %v929_v33 = vld [vmem:[#allocation2 + $0x60] sm:$0xff]  ;;  %v822_v34 = vpop.f32.mrb[17].mxu0  ;;  %v1344_v31 = vld [vmem:[#allocation2 + $0x10] sm:$0xff] }
 0x107   : > { %v1290_v35 = vadd.f32 %v1199_v27, %v929_v33  ;;  %901 = vst.msk [vmem:[#allocation2 + $0x80] sm:$0xff] %vm675_vm0, %v822_v34  ;;  %v932_v36 = vld [vmem:[#allocation2 + $0x78] sm:$0xff]  ;;  %v3797_v37 = vpop.f32.mrb[18].mxu0  ;;  %v3830_v41 = vpop.f32.mrb[16].mxu1 }
 0x108   : > { %1324 = vst.msk [vmem:[#allocation2 + $0x70] sm:$0xff] %vm675_vm0, %v1292_v32  ;;  %v1293_v38 = vadd.f32 %v3827_v28, %v932_v36  ;;  %904 = vst.msk [vmem:[#allocation2 + $0x98] sm:$0xff] %vm675_vm0, %v3797_v37  ;;  %v930_v39 = vld [vmem:[#allocation2 + $0x68] sm:$0xff]  ;;  %v825_v40 = vpop.f32.mrb[19].mxu0  ;;  %v1215_v43 = vpop.f32.mrb[17].mxu1  ;;  %v1342_v36 = vld [vmem:[#allocation2] sm:$0xff] }
 0x109   : > { %1322 = vst.msk [vmem:[#allocation2 + $0x60] sm:$0xff] %vm675_vm0, %v1290_v35  ;;  %v1291_v42 = vadd.f32 %v1202_v29, %v930_v39  ;;  %902 = vst.msk [vmem:[#allocation2 + $0x88] sm:$0xff] %vm675_vm0, %v825_v40  ;;  %v3831_v44 = vpop.f32.mrb[18].mxu1 }
 0x10a   : > { %1325 = vst.msk [vmem:[#allocation2 + $0x78] sm:$0xff] %vm675_vm0, %v1293_v38  ;;  %v1218_v45 = vpop.f32.mrb[19].mxu1 }
 0x10b   : > { %1323 = vst.msk [vmem:[#allocation2 + $0x68] sm:$0xff] %vm675_vm0, %v1291_v42 }
 0x10d   : > { %v935_v46 = vld [vmem:[#allocation2 + $0x90] sm:$0xff]  ;;  %v3800_v47 = vpop.f32.mrb[20].mxu0 }
 0x10e   : > { %v1296_v48 = vadd.f32 %v3830_v41, %v935_v46  ;;  %907 = vst.msk [vmem:[#allocation2 + $0xb0] sm:$0xff] %vm675_vm0, %v3800_v47  ;;  %v933_v49 = vld [vmem:[#allocation2 + $0x80] sm:$0xff]  ;;  %v838_v50 = vpop.f32.mrb[21].mxu0  ;;  %v1345_v41 = vld [vmem:[#allocation2 + $0x18] sm:$0xff]  ;;  %v1343_v46 = vld [vmem:[#allocation2 + $0x8] sm:$0xff] }
 0x10f   : > { %v1294_v51 = vadd.f32 %v1215_v43, %v933_v49  ;;  %905 = vst.msk [vmem:[#allocation2 + $0xa0] sm:$0xff] %vm675_vm0, %v838_v50  ;;  %v936_v52 = vld [vmem:[#allocation2 + $0x98] sm:$0xff]  ;;  %v3801_v53 = vpop.f32.mrb[22].mxu0  ;;  %v3834_v57 = vpop.f32.mrb[20].mxu1 }
 0x110   : > { %1328 = vst.msk [vmem:[#allocation2 + $0x90] sm:$0xff] %vm675_vm0, %v1296_v48  ;;  %v1297_v54 = vadd.f32 %v3831_v44, %v936_v52  ;;  %908 = vst.msk [vmem:[#allocation2 + $0xb8] sm:$0xff] %vm675_vm0, %v3801_v53  ;;  %v934_v55 = vld [vmem:[#allocation2 + $0x88] sm:$0xff]  ;;  %v841_v56 = vpop.f32.mrb[23].mxu0  ;;  %v1231_v59 = vpop.f32.mrb[21].mxu1 }
 0x111   : > { %1326 = vst.msk [vmem:[#allocation2 + $0x80] sm:$0xff] %vm675_vm0, %v1294_v51  ;;  %v1295_v58 = vadd.f32 %v1218_v45, %v934_v55  ;;  %906 = vst.msk [vmem:[#allocation2 + $0xa8] sm:$0xff] %vm675_vm0, %v841_v56  ;;  %v3835_v60 = vpop.f32.mrb[22].mxu1 }
 0x112   : > { %1329 = vst.msk [vmem:[#allocation2 + $0x98] sm:$0xff] %vm675_vm0, %v1297_v54  ;;  %v1234_v61 = vpop.f32.mrb[23].mxu1  ;;  %v1348_v54 = vld [vmem:[#allocation2 + $0x30] sm:$0xff] }
 0x113   : > { %1327 = vst.msk [vmem:[#allocation2 + $0x88] sm:$0xff] %vm675_vm0, %v1295_v58 }
 0x115   : > { %v939_v62 = vld [vmem:[#allocation2 + $0xb0] sm:$0xff]  ;;  %v3804_v63 = vpop.f32.mrb[24].mxu0 }
 0x116   : > { %v1300_v0 = vadd.f32 %v3834_v57, %v939_v62  ;;  %911 = vst.msk [vmem:[#allocation2 + $0xd0] sm:$0xff] %vm675_vm0, %v3804_v63  ;;  %v937_v1 = vld [vmem:[#allocation2 + $0xa0] sm:$0xff]  ;;  %v854_v2 = vpop.f32.mrb[25].mxu0 }
 0x117   : > { %v1298_v3 = vadd.f32 %v1231_v59, %v937_v1  ;;  %909 = vst.msk [vmem:[#allocation2 + $0xc0] sm:$0xff] %vm675_vm0, %v854_v2  ;;  %v940_v4 = vld [vmem:[#allocation2 + $0xb8] sm:$0xff]  ;;  %v3805_v5 = vpop.f32.mrb[26].mxu0  ;;  %v3838_v9 = vpop.f32.mrb[24].mxu1  ;;  %v1346_v57 = vld [vmem:[#allocation2 + $0x20] sm:$0xff]  ;;  %v1347_v2 = vld [vmem:[#allocation2 + $0x28] sm:$0xff] }
 0x118   : > { %1332 = vst.msk [vmem:[#allocation2 + $0xb0] sm:$0xff] %vm675_vm0, %v1300_v0  ;;  %v1301_v6 = vadd.f32 %v3835_v60, %v940_v4  ;;  %912 = vst.msk [vmem:[#allocation2 + $0xd8] sm:$0xff] %vm675_vm0, %v3805_v5  ;;  %v938_v7 = vld [vmem:[#allocation2 + $0xa8] sm:$0xff]  ;;  %v857_v8 = vpop.f32.mrb[27].mxu0  ;;  %v1247_v11 = vpop.f32.mrb[25].mxu1 }
 0x119   : > { %1330 = vst.msk [vmem:[#allocation2 + $0xa0] sm:$0xff] %vm675_vm0, %v1298_v3  ;;  %v1299_v10 = vadd.f32 %v1234_v61, %v938_v7  ;;  %910 = vst.msk [vmem:[#allocation2 + $0xc8] sm:$0xff] %vm675_vm0, %v857_v8  ;;  %v3839_v12 = vpop.f32.mrb[26].mxu1  ;;  %v1349_v61 = vld [vmem:[#allocation2 + $0x38] sm:$0xff] }
 0x11a   : > { %1333 = vst.msk [vmem:[#allocation2 + $0xb8] sm:$0xff] %vm675_vm0, %v1301_v6  ;;  %v1250_v13 = vpop.f32.mrb[27].mxu1 }
 0x11b   : > { %1331 = vst.msk [vmem:[#allocation2 + $0xa8] sm:$0xff] %vm675_vm0, %v1299_v10 }
 0x11d   : > { %v943_v14 = vld [vmem:[#allocation2 + $0xd0] sm:$0xff]  ;;  %v3808_v15 = vpop.f32.mrb[28].mxu0 }
 0x11e   : > { %v1304_v16 = vadd.f32 %v3838_v9, %v943_v14  ;;  %915 = vst.msk [vmem:[#allocation2 + $0xf0] sm:$0xff] %vm675_vm0, %v3808_v15  ;;  %v941_v17 = vld [vmem:[#allocation2 + $0xc0] sm:$0xff]  ;;  %v870_v18 = vpop.f32.mrb[29].mxu0  ;;  %v1352_v14 = vld [vmem:[#allocation2 + $0x50] sm:$0xff] }
 0x11f   : > { %v1302_v19 = vadd.f32 %v1247_v11, %v941_v17  ;;  %913 = vst.msk [vmem:[#allocation2 + $0xe0] sm:$0xff] %vm675_vm0, %v870_v18  ;;  %v944_v20 = vld [vmem:[#allocation2 + $0xd8] sm:$0xff]  ;;  %v3809_v21 = vpop.f32.mrb[30].mxu0  ;;  %v3842_v25 = vpop.f32.mrb[28].mxu1  ;;  %v1350_v17 = vld [vmem:[#allocation2 + $0x40] sm:$0xff] }
 0x120   : > { %1336 = vst.msk [vmem:[#allocation2 + $0xd0] sm:$0xff] %vm675_vm0, %v1304_v16  ;;  %v1305_v22 = vadd.f32 %v3839_v12, %v944_v20  ;;  %916 = vst.msk [vmem:[#allocation2 + $0xf8] sm:$0xff] %vm675_vm0, %v3809_v21  ;;  %v942_v23 = vld [vmem:[#allocation2 + $0xc8] sm:$0xff]  ;;  %v873_v24 = vpop.f32.mrb[31].mxu0  ;;  %v1263_v27 = vpop.f32.mrb[29].mxu1  ;;  %v1353_v21 = vld [vmem:[#allocation2 + $0x58] sm:$0xff] }
 0x121   : > { %1334 = vst.msk [vmem:[#allocation2 + $0xc0] sm:$0xff] %vm675_vm0, %v1302_v19  ;;  %v1303_v26 = vadd.f32 %v1250_v13, %v942_v23  ;;  %914 = vst.msk [vmem:[#allocation2 + $0xe8] sm:$0xff] %vm675_vm0, %v873_v24  ;;  %v3843_v28 = vpop.f32.mrb[30].mxu1 }
 0x122   : > { %1337 = vst.msk [vmem:[#allocation2 + $0xd8] sm:$0xff] %vm675_vm0, %v1305_v22  ;;  %v1266_v29 = vpop.f32.mrb[31].mxu1 }
 0x123   : > { %1335 = vst.msk [vmem:[#allocation2 + $0xc8] sm:$0xff] %vm675_vm0, %v1303_v26  ;;  %v1351_v26 = vld [vmem:[#allocation2 + $0x48] sm:$0xff] }
 0x125   : > { %v947_v30 = vld [vmem:[#allocation2 + $0xf0] sm:$0xff]  ;;  %v3848_v32 = vpop.f32.mrb[32].mxu0 }
 0x126   : > { %v1308_v33 = vadd.f32 %v3842_v25, %v947_v30  ;;  %v945_v34 = vld [vmem:[#allocation2 + $0xe0] sm:$0xff]  ;;  %v1705_v35 = vadd.f32 %v3848_v32, %v1344_v31  ;;  %v1576_v37 = vpop.f32.mrb[33].mxu0 }
 0x127   : > { %v1306_v38 = vadd.f32 %v1263_v27, %v945_v34  ;;  %v948_v39 = vld [vmem:[#allocation2 + $0xf8] sm:$0xff]  ;;  %v1703_v40 = vadd.f32 %v1576_v37, %v1342_v36  ;;  %v3849_v42 = vpop.f32.mrb[34].mxu0  ;;  %v3882_v48 = vpop.f32.mrb[32].mxu1 }
 0x128   : > { %1340 = vst.msk [vmem:[#allocation2 + $0xf0] sm:$0xff] %vm675_vm0, %v1308_v33  ;;  %1737 = vst.msk [vmem:[#allocation2 + $0x10] sm:$0xff] %vm675_vm0, %v1705_v35  ;;  %v1309_v43 = vadd.f32 %v3843_v28, %v948_v39  ;;  %v946_v44 = vld [vmem:[#allocation2 + $0xe8] sm:$0xff]  ;;  %v1706_v45 = vadd.f32 %v3849_v42, %v1345_v41  ;;  %v1579_v47 = vpop.f32.mrb[35].mxu0  ;;  %v2001_v51 = vpop.f32.mrb[33].mxu1  ;;  %v1354_v41 = vld [vmem:[#allocation2 + $0x60] sm:$0xff] }
 0x129   : > { %1338 = vst.msk [vmem:[#allocation2 + $0xe0] sm:$0xff] %vm675_vm0, %v1306_v38  ;;  %1735 = vst.msk [vmem:[#allocation2] sm:$0xff] %vm675_vm0, %v1703_v40  ;;  %v1307_v49 = vadd.f32 %v1266_v29, %v946_v44  ;;  %v1704_v50 = vadd.f32 %v1579_v47, %v1343_v46  ;;  %v3883_v52 = vpop.f32.mrb[34].mxu1  ;;  %v1356_v38 = vld [vmem:[#allocation2 + $0x70] sm:$0xff] }
 0x12a   : > { %1341 = vst.msk [vmem:[#allocation2 + $0xf8] sm:$0xff] %vm675_vm0, %v1309_v43  ;;  %1738 = vst.msk [vmem:[#allocation2 + $0x18] sm:$0xff] %vm675_vm0, %v1706_v45  ;;  %v2004_v53 = vpop.f32.mrb[35].mxu1  ;;  %v1357_v45 = vld [vmem:[#allocation2 + $0x78] sm:$0xff] }
 0x12b   : > { %1339 = vst.msk [vmem:[#allocation2 + $0xe8] sm:$0xff] %vm675_vm0, %v1307_v49  ;;  %1736 = vst.msk [vmem:[#allocation2 + $0x8] sm:$0xff] %vm675_vm0, %v1704_v50  ;;  %v1355_v50 = vld [vmem:[#allocation2 + $0x68] sm:$0xff] }
 0x12d   : > { %v3852_v55 = vpop.f32.mrb[36].mxu0 }
 0x12e   : > { %v1709_v56 = vadd.f32 %v3852_v55, %v1348_v54  ;;  %v1592_v58 = vpop.f32.mrb[37].mxu0 }
 0x12f   : > { %v1769_v59 = vld [vmem:[#allocation2 + $0x10] sm:$0xff]  ;;  %v1707_v60 = vadd.f32 %v1592_v58, %v1346_v57  ;;  %v3853_v62 = vpop.f32.mrb[38].mxu0  ;;  %v3886_v4 = vpop.f32.mrb[36].mxu1 }
 0x130   : > { %v2130_v63 = vadd.f32 %v3882_v48, %v1769_v59  ;;  %1741 = vst.msk [vmem:[#allocation2 + $0x30] sm:$0xff] %vm675_vm0, %v1709_v56  ;;  %v1767_v0 = vld [vmem:[#allocation2] sm:$0xff]  ;;  %v1710_v1 = vadd.f32 %v3853_v62, %v1349_v61  ;;  %v1595_v3 = vpop.f32.mrb[39].mxu0  ;;  %v2017_v8 = vpop.f32.mrb[37].mxu1  ;;  %v1360_v62 = vld [vmem:[#allocation2 + $0x90] sm:$0xff] }
 0x131   : > { %v2128_v5 = vadd.f32 %v2001_v51, %v1767_v0  ;;  %1739 = vst.msk [vmem:[#allocation2 + $0x20] sm:$0xff] %vm675_vm0, %v1707_v60  ;;  %v1770_v6 = vld [vmem:[#allocation2 + $0x18] sm:$0xff]  ;;  %v1708_v7 = vadd.f32 %v1595_v3, %v1347_v2  ;;  %v3887_v11 = vpop.f32.mrb[38].mxu1 }
 0x132   : > { %2162 = vst.msk [vmem:[#allocation2 + $0x10] sm:$0xff] %vm675_vm0, %v2130_v63  ;;  %v2131_v9 = vadd.f32 %v3883_v52, %v1770_v6  ;;  %1742 = vst.msk [vmem:[#allocation2 + $0x38] sm:$0xff] %vm675_vm0, %v1710_v1  ;;  %v1768_v10 = vld [vmem:[#allocation2 + $0x8] sm:$0xff]  ;;  %v2020_v13 = vpop.f32.mrb[39].mxu1  ;;  %v1358_v1 = vld [vmem:[#allocation2 + $0x80] sm:$0xff] }
 0x133   : > { %2160 = vst.msk [vmem:[#allocation2] sm:$0xff] %vm675_vm0, %v2128_v5  ;;  %v2129_v12 = vadd.f32 %v2004_v53, %v1768_v10  ;;  %1740 = vst.msk [vmem:[#allocation2 + $0x28] sm:$0xff] %vm675_vm0, %v1708_v7  ;;  %v1361_v5 = vld [vmem:[#allocation2 + $0x98] sm:$0xff]  ;;  %v1359_v10 = vld [vmem:[#allocation2 + $0x88] sm:$0xff] }
 0x134   : > { %2163 = vst.msk [vmem:[#allocation2 + $0x18] sm:$0xff] %vm675_vm0, %v2131_v9 }
 0x135   : > { %2161 = vst.msk [vmem:[#allocation2 + $0x8] sm:$0xff] %vm675_vm0, %v2129_v12  ;;  %v3856_v15 = vpop.f32.mrb[40].mxu0 }
 0x136   : > { %v1713_v16 = vadd.f32 %v3856_v15, %v1352_v14  ;;  %v1608_v18 = vpop.f32.mrb[41].mxu0 }
 0x137   : > { %v1773_v19 = vld [vmem:[#allocation2 + $0x30] sm:$0xff]  ;;  %v1711_v20 = vadd.f32 %v1608_v18, %v1350_v17  ;;  %v3857_v22 = vpop.f32.mrb[42].mxu0  ;;  %v3890_v28 = vpop.f32.mrb[40].mxu1 }
 0x138   : > { %v2134_v23 = vadd.f32 %v3886_v4, %v1773_v19  ;;  %1745 = vst.msk [vmem:[#allocation2 + $0x50] sm:$0xff] %vm675_vm0, %v1713_v16  ;;  %v1771_v24 = vld [vmem:[#allocation2 + $0x20] sm:$0xff]  ;;  %v1714_v25 = vadd.f32 %v3857_v22, %v1353_v21  ;;  %v1611_v27 = vpop.f32.mrb[43].mxu0  ;;  %v2033_v32 = vpop.f32.mrb[41].mxu1  ;;  %v1364_v22 = vld [vmem:[#allocation2 + $0xb0] sm:$0xff] }
 0x139   : > { %v2132_v29 = vadd.f32 %v2017_v8, %v1771_v24  ;;  %1743 = vst.msk [vmem:[#allocation2 + $0x40] sm:$0xff] %vm675_vm0, %v1711_v20  ;;  %v1774_v30 = vld [vmem:[#allocation2 + $0x38] sm:$0xff]  ;;  %v1712_v31 = vadd.f32 %v1611_v27, %v1351_v26  ;;  %v3891_v35 = vpop.f32.mrb[42].mxu1 }
 0x13a   : > { %2166 = vst.msk [vmem:[#allocation2 + $0x30] sm:$0xff] %vm675_vm0, %v2134_v23  ;;  %v2135_v33 = vadd.f32 %v3887_v11, %v1774_v30  ;;  %1746 = vst.msk [vmem:[#allocation2 + $0x58] sm:$0xff] %vm675_vm0, %v1714_v25  ;;  %v1772_v34 = vld [vmem:[#allocation2 + $0x28] sm:$0xff]  ;;  %v2036_v37 = vpop.f32.mrb[43].mxu1  ;;  %v1362_v25 = vld [vmem:[#allocation2 + $0xa0] sm:$0xff] }
 0x13b   : > { %2164 = vst.msk [vmem:[#allocation2 + $0x20] sm:$0xff] %vm675_vm0, %v2132_v29  ;;  %v2133_v36 = vadd.f32 %v2020_v13, %v1772_v34  ;;  %1744 = vst.msk [vmem:[#allocation2 + $0x48] sm:$0xff] %vm675_vm0, %v1712_v31  ;;  %v1365_v29 = vld [vmem:[#allocation2 + $0xb8] sm:$0xff]  ;;  %v1363_v34 = vld [vmem:[#allocation2 + $0xa8] sm:$0xff] }
 0x13c   : > { %2167 = vst.msk [vmem:[#allocation2 + $0x38] sm:$0xff] %vm675_vm0, %v2135_v33 }
 0x13d   : > { %2165 = vst.msk [vmem:[#allocation2 + $0x28] sm:$0xff] %vm675_vm0, %v2133_v36  ;;  %v3860_v39 = vpop.f32.mrb[44].mxu0 }
 0x13e   : > { %v1717_v40 = vadd.f32 %v3860_v39, %v1356_v38  ;;  %v1624_v42 = vpop.f32.mrb[45].mxu0 }
 0x13f   : > { %v1777_v43 = vld [vmem:[#allocation2 + $0x50] sm:$0xff]  ;;  %v1715_v44 = vadd.f32 %v1624_v42, %v1354_v41  ;;  %v3861_v46 = vpop.f32.mrb[46].mxu0  ;;  %v3894_v52 = vpop.f32.mrb[44].mxu1 }
 0x140   : > { %v2138_v47 = vadd.f32 %v3890_v28, %v1777_v43  ;;  %1749 = vst.msk [vmem:[#allocation2 + $0x70] sm:$0xff] %vm675_vm0, %v1717_v40  ;;  %v1775_v48 = vld [vmem:[#allocation2 + $0x40] sm:$0xff]  ;;  %v1718_v49 = vadd.f32 %v3861_v46, %v1357_v45  ;;  %v1627_v51 = vpop.f32.mrb[47].mxu0  ;;  %v2049_v56 = vpop.f32.mrb[45].mxu1  ;;  %v1368_v46 = vld [vmem:[#allocation2 + $0xd0] sm:$0xff] }
 0x141   : > { %v2136_v53 = vadd.f32 %v2033_v32, %v1775_v48  ;;  %1747 = vst.msk [vmem:[#allocation2 + $0x60] sm:$0xff] %vm675_vm0, %v1715_v44  ;;  %v1778_v54 = vld [vmem:[#allocation2 + $0x58] sm:$0xff]  ;;  %v1716_v55 = vadd.f32 %v1627_v51, %v1355_v50  ;;  %v3895_v59 = vpop.f32.mrb[46].mxu1 }
 0x142   : > { %2170 = vst.msk [vmem:[#allocation2 + $0x50] sm:$0xff] %vm675_vm0, %v2138_v47  ;;  %v2139_v57 = vadd.f32 %v3891_v35, %v1778_v54  ;;  %1750 = vst.msk [vmem:[#allocation2 + $0x78] sm:$0xff] %vm675_vm0, %v1718_v49  ;;  %v1776_v58 = vld [vmem:[#allocation2 + $0x48] sm:$0xff]  ;;  %v2052_v61 = vpop.f32.mrb[47].mxu1  ;;  %v1366_v49 = vld [vmem:[#allocation2 + $0xc0] sm:$0xff] }
 0x143   : > { %2168 = vst.msk [vmem:[#allocation2 + $0x40] sm:$0xff] %vm675_vm0, %v2136_v53  ;;  %v2137_v60 = vadd.f32 %v2036_v37, %v1776_v58  ;;  %1748 = vst.msk [vmem:[#allocation2 + $0x68] sm:$0xff] %vm675_vm0, %v1716_v55  ;;  %v1369_v53 = vld [vmem:[#allocation2 + $0xd8] sm:$0xff]  ;;  %v1367_v58 = vld [vmem:[#allocation2 + $0xc8] sm:$0xff] }
 0x144   : > { %2171 = vst.msk [vmem:[#allocation2 + $0x58] sm:$0xff] %vm675_vm0, %v2139_v57 }
 0x145   : > { %2169 = vst.msk [vmem:[#allocation2 + $0x48] sm:$0xff] %vm675_vm0, %v2137_v60  ;;  %v3864_v63 = vpop.f32.mrb[48].mxu0 }
 0x146   : > { %v1721_v0 = vadd.f32 %v3864_v63, %v1360_v62  ;;  %v1640_v2 = vpop.f32.mrb[49].mxu0 }
 0x147   : > { %v1781_v3 = vld [vmem:[#allocation2 + $0x70] sm:$0xff]  ;;  %v1719_v4 = vadd.f32 %v1640_v2, %v1358_v1  ;;  %v3865_v6 = vpop.f32.mrb[50].mxu0  ;;  %v3898_v12 = vpop.f32.mrb[48].mxu1 }
 0x148   : > { %v2142_v7 = vadd.f32 %v3894_v52, %v1781_v3  ;;  %1753 = vst.msk [vmem:[#allocation2 + $0x90] sm:$0xff] %vm675_vm0, %v1721_v0  ;;  %v1779_v8 = vld [vmem:[#allocation2 + $0x60] sm:$0xff]  ;;  %v1722_v9 = vadd.f32 %v3865_v6, %v1361_v5  ;;  %v1643_v11 = vpop.f32.mrb[51].mxu0  ;;  %v2065_v16 = vpop.f32.mrb[49].mxu1  ;;  %v1372_v6 = vld [vmem:[#allocation2 + $0xf0] sm:$0xff] }
 0x149   : > { %v2140_v13 = vadd.f32 %v2049_v56, %v1779_v8  ;;  %1751 = vst.msk [vmem:[#allocation2 + $0x80] sm:$0xff] %vm675_vm0, %v1719_v4  ;;  %v1782_v14 = vld [vmem:[#allocation2 + $0x78] sm:$0xff]  ;;  %v1720_v15 = vadd.f32 %v1643_v11, %v1359_v10  ;;  %v3899_v19 = vpop.f32.mrb[50].mxu1 }
 0x14a   : > { %2174 = vst.msk [vmem:[#allocation2 + $0x70] sm:$0xff] %vm675_vm0, %v2142_v7  ;;  %v2143_v17 = vadd.f32 %v3895_v59, %v1782_v14  ;;  %1754 = vst.msk [vmem:[#allocation2 + $0x98] sm:$0xff] %vm675_vm0, %v1722_v9  ;;  %v1780_v18 = vld [vmem:[#allocation2 + $0x68] sm:$0xff]  ;;  %v2068_v21 = vpop.f32.mrb[51].mxu1  ;;  %v1370_v9 = vld [vmem:[#allocation2 + $0xe0] sm:$0xff] }
 0x14b   : > { %2172 = vst.msk [vmem:[#allocation2 + $0x60] sm:$0xff] %vm675_vm0, %v2140_v13  ;;  %v2141_v20 = vadd.f32 %v2052_v61, %v1780_v18  ;;  %1752 = vst.msk [vmem:[#allocation2 + $0x88] sm:$0xff] %vm675_vm0, %v1720_v15  ;;  %v1373_v13 = vld [vmem:[#allocation2 + $0xf8] sm:$0xff]  ;;  %v1371_v18 = vld [vmem:[#allocation2 + $0xe8] sm:$0xff] }
 0x14c   : > { %2175 = vst.msk [vmem:[#allocation2 + $0x78] sm:$0xff] %vm675_vm0, %v2143_v17 }
 0x14d   : > { %2173 = vst.msk [vmem:[#allocation2 + $0x68] sm:$0xff] %vm675_vm0, %v2141_v20  ;;  %v3868_v23 = vpop.f32.mrb[52].mxu0 }
 0x14e   : > { %v1725_v24 = vadd.f32 %v3868_v23, %v1364_v22  ;;  %v1656_v26 = vpop.f32.mrb[53].mxu0 }
 0x14f   : > { %v1785_v27 = vld [vmem:[#allocation2 + $0x90] sm:$0xff]  ;;  %v1723_v28 = vadd.f32 %v1656_v26, %v1362_v25  ;;  %v3869_v30 = vpop.f32.mrb[54].mxu0  ;;  %v3902_v36 = vpop.f32.mrb[52].mxu1 }
 0x150   : > { %v2146_v31 = vadd.f32 %v3898_v12, %v1785_v27  ;;  %1757 = vst.msk [vmem:[#allocation2 + $0xb0] sm:$0xff] %vm675_vm0, %v1725_v24  ;;  %v1783_v32 = vld [vmem:[#allocation2 + $0x80] sm:$0xff]  ;;  %v1726_v33 = vadd.f32 %v3869_v30, %v1365_v29  ;;  %v1659_v35 = vpop.f32.mrb[55].mxu0  ;;  %v2081_v40 = vpop.f32.mrb[53].mxu1  ;;  %v2194_v30 = vld [vmem:[#allocation2 + $0x10] sm:$0xff] }
 0x151   : > { %v2144_v37 = vadd.f32 %v2065_v16, %v1783_v32  ;;  %1755 = vst.msk [vmem:[#allocation2 + $0xa0] sm:$0xff] %vm675_vm0, %v1723_v28  ;;  %v1786_v38 = vld [vmem:[#allocation2 + $0x98] sm:$0xff]  ;;  %v1724_v39 = vadd.f32 %v1659_v35, %v1363_v34  ;;  %v3903_v43 = vpop.f32.mrb[54].mxu1 }
 0x152   : > { %2178 = vst.msk [vmem:[#allocation2 + $0x90] sm:$0xff] %vm675_vm0, %v2146_v31  ;;  %v2147_v41 = vadd.f32 %v3899_v19, %v1786_v38  ;;  %1758 = vst.msk [vmem:[#allocation2 + $0xb8] sm:$0xff] %vm675_vm0, %v1726_v33  ;;  %v1784_v42 = vld [vmem:[#allocation2 + $0x88] sm:$0xff]  ;;  %v2084_v45 = vpop.f32.mrb[55].mxu1  ;;  %v2192_v33 = vld [vmem:[#allocation2] sm:$0xff] }
 0x153   : > { %2176 = vst.msk [vmem:[#allocation2 + $0x80] sm:$0xff] %vm675_vm0, %v2144_v37  ;;  %v2145_v44 = vadd.f32 %v2068_v21, %v1784_v42  ;;  %1756 = vst.msk [vmem:[#allocation2 + $0xa8] sm:$0xff] %vm675_vm0, %v1724_v39  ;;  %v2195_v37 = vld [vmem:[#allocation2 + $0x18] sm:$0xff]  ;;  %v2193_v42 = vld [vmem:[#allocation2 + $0x8] sm:$0xff] }
 0x154   : > { %2179 = vst.msk [vmem:[#allocation2 + $0x98] sm:$0xff] %vm675_vm0, %v2147_v41 }
 0x155   : > { %2177 = vst.msk [vmem:[#allocation2 + $0x88] sm:$0xff] %vm675_vm0, %v2145_v44  ;;  %v3872_v47 = vpop.f32.mrb[56].mxu0 }
 0x156   : > { %v1729_v48 = vadd.f32 %v3872_v47, %v1368_v46  ;;  %v1672_v50 = vpop.f32.mrb[57].mxu0 }
 0x157   : > { %v1789_v51 = vld [vmem:[#allocation2 + $0xb0] sm:$0xff]  ;;  %v1727_v52 = vadd.f32 %v1672_v50, %v1366_v49  ;;  %v3873_v54 = vpop.f32.mrb[58].mxu0  ;;  %v3906_v60 = vpop.f32.mrb[56].mxu1 }
 0x158   : > { %v2150_v55 = vadd.f32 %v3902_v36, %v1789_v51  ;;  %1761 = vst.msk [vmem:[#allocation2 + $0xd0] sm:$0xff] %vm675_vm0, %v1729_v48  ;;  %v1787_v56 = vld [vmem:[#allocation2 + $0xa0] sm:$0xff]  ;;  %v1730_v57 = vadd.f32 %v3873_v54, %v1369_v53  ;;  %v1675_v59 = vpop.f32.mrb[59].mxu0  ;;  %v2097_v0 = vpop.f32.mrb[57].mxu1  ;;  %v2198_v54 = vld [vmem:[#allocation2 + $0x30] sm:$0xff] }
 0x159   : > { %v2148_v61 = vadd.f32 %v2081_v40, %v1787_v56  ;;  %1759 = vst.msk [vmem:[#allocation2 + $0xc0] sm:$0xff] %vm675_vm0, %v1727_v52  ;;  %v1790_v62 = vld [vmem:[#allocation2 + $0xb8] sm:$0xff]  ;;  %v1728_v63 = vadd.f32 %v1675_v59, %v1367_v58  ;;  %v3907_v3 = vpop.f32.mrb[58].mxu1 }
 0x15a   : > { %2182 = vst.msk [vmem:[#allocation2 + $0xb0] sm:$0xff] %vm675_vm0, %v2150_v55  ;;  %v2151_v1 = vadd.f32 %v3903_v43, %v1790_v62  ;;  %1762 = vst.msk [vmem:[#allocation2 + $0xd8] sm:$0xff] %vm675_vm0, %v1730_v57  ;;  %v1788_v2 = vld [vmem:[#allocation2 + $0xa8] sm:$0xff]  ;;  %v2100_v5 = vpop.f32.mrb[59].mxu1  ;;  %v2196_v57 = vld [vmem:[#allocation2 + $0x20] sm:$0xff] }
 0x15b   : > { %2180 = vst.msk [vmem:[#allocation2 + $0xa0] sm:$0xff] %vm675_vm0, %v2148_v61  ;;  %v2149_v4 = vadd.f32 %v2084_v45, %v1788_v2  ;;  %1760 = vst.msk [vmem:[#allocation2 + $0xc8] sm:$0xff] %vm675_vm0, %v1728_v63  ;;  %v2199_v61 = vld [vmem:[#allocation2 + $0x38] sm:$0xff]  ;;  %v2197_v2 = vld [vmem:[#allocation2 + $0x28] sm:$0xff] }
 0x15c   : > { %2183 = vst.msk [vmem:[#allocation2 + $0xb8] sm:$0xff] %vm675_vm0, %v2151_v1 }
 0x15d   : > { %2181 = vst.msk [vmem:[#allocation2 + $0xa8] sm:$0xff] %vm675_vm0, %v2149_v4  ;;  %v3876_v7 = vpop.f32.mrb[60].mxu0 }
 0x15e   : > { %v1733_v8 = vadd.f32 %v3876_v7, %v1372_v6  ;;  %v1688_v10 = vpop.f32.mrb[61].mxu0 }
 0x15f   : > { %v1793_v11 = vld [vmem:[#allocation2 + $0xd0] sm:$0xff]  ;;  %v1731_v12 = vadd.f32 %v1688_v10, %v1370_v9  ;;  %v3877_v14 = vpop.f32.mrb[62].mxu0  ;;  %v3910_v20 = vpop.f32.mrb[60].mxu1 }
 0x160   : > { %v2154_v15 = vadd.f32 %v3906_v60, %v1793_v11  ;;  %1765 = vst.msk [vmem:[#allocation2 + $0xf0] sm:$0xff] %vm675_vm0, %v1733_v8  ;;  %v1791_v16 = vld [vmem:[#allocation2 + $0xc0] sm:$0xff]  ;;  %v1734_v17 = vadd.f32 %v3877_v14, %v1373_v13  ;;  %v1691_v19 = vpop.f32.mrb[63].mxu0  ;;  %v2113_v24 = vpop.f32.mrb[61].mxu1  ;;  %v2202_v14 = vld [vmem:[#allocation2 + $0x50] sm:$0xff] }
 0x161   : > { %v2152_v21 = vadd.f32 %v2097_v0, %v1791_v16  ;;  %1763 = vst.msk [vmem:[#allocation2 + $0xe0] sm:$0xff] %vm675_vm0, %v1731_v12  ;;  %v1794_v22 = vld [vmem:[#allocation2 + $0xd8] sm:$0xff]  ;;  %v1732_v23 = vadd.f32 %v1691_v19, %v1371_v18  ;;  %v3911_v27 = vpop.f32.mrb[62].mxu1  ;;  %v4575_v19 = vld [vmem:[%s4746_s12] ss:$0 sm:$0xff] }
 0x162   : > { %2186 = vst.msk [vmem:[#allocation2 + $0xd0] sm:$0xff] %vm675_vm0, %v2154_v15  ;;  %v2155_v25 = vadd.f32 %v3907_v3, %v1794_v22  ;;  %1766 = vst.msk [vmem:[#allocation2 + $0xf8] sm:$0xff] %vm675_vm0, %v1734_v17  ;;  %v1792_v26 = vld [vmem:[#allocation2 + $0xc8] sm:$0xff]  ;;  %v2116_v29 = vpop.f32.mrb[63].mxu1  ;;  %v2200_v17 = vld [vmem:[#allocation2 + $0x40] sm:$0xff] }
 0x163   : > { %2184 = vst.msk [vmem:[#allocation2 + $0xc0] sm:$0xff] %vm675_vm0, %v2152_v21  ;;  %v2153_v28 = vadd.f32 %v2100_v5, %v1792_v26  ;;  %1764 = vst.msk [vmem:[#allocation2 + $0xe8] sm:$0xff] %vm675_vm0, %v1732_v23  ;;  %v2203_v22 = vld [vmem:[#allocation2 + $0x58] sm:$0xff] }
 0x164   : > { %2187 = vst.msk [vmem:[#allocation2 + $0xd8] sm:$0xff] %vm675_vm0, %v2155_v25 }
 0x165   : > { %2185 = vst.msk [vmem:[#allocation2 + $0xc8] sm:$0xff] %vm675_vm0, %v2153_v28  ;;  %v3916_v31 = vpop.f32.mrb[64].mxu0 }
 0x166   : > { %v2555_v32 = vadd.f32 %v3916_v31, %v2194_v30  ;;  %v2426_v34 = vpop.f32.mrb[65].mxu0 }
 0x167   : > { %v1797_v35 = vld [vmem:[#allocation2 + $0xf0] sm:$0xff]  ;;  %v2553_v36 = vadd.f32 %v2426_v34, %v2192_v33  ;;  %v3917_v38 = vpop.f32.mrb[66].mxu0  ;;  %v3950_v44 = vpop.f32.mrb[64].mxu1 }
 0x168   : > { %v2158_v39 = vadd.f32 %v3910_v20, %v1797_v35  ;;  %v1795_v40 = vld [vmem:[#allocation2 + $0xe0] sm:$0xff]  ;;  %2587 = vst.msk [vmem:[#allocation2 + $0x10] sm:$0xff] %vm675_vm0, %v2555_v32  ;;  %v2556_v41 = vadd.f32 %v3917_v38, %v2195_v37  ;;  %v2429_v43 = vpop.f32.mrb[67].mxu0  ;;  %v2851_v48 = vpop.f32.mrb[65].mxu1 }
 0x169   : > { %v2156_v45 = vadd.f32 %v2113_v24, %v1795_v40  ;;  %v1798_v46 = vld [vmem:[#allocation2 + $0xf8] sm:$0xff]  ;;  %2585 = vst.msk [vmem:[#allocation2] sm:$0xff] %vm675_vm0, %v2553_v36  ;;  %v2554_v47 = vadd.f32 %v2429_v43, %v2193_v42  ;;  %v3951_v51 = vpop.f32.mrb[66].mxu1 }
 0x16a   : > { %2190 = vst.msk [vmem:[#allocation2 + $0xf0] sm:$0xff] %vm675_vm0, %v2158_v39  ;;  %v2159_v49 = vadd.f32 %v3911_v27, %v1798_v46  ;;  %v1796_v50 = vld [vmem:[#allocation2 + $0xe8] sm:$0xff]  ;;  %2588 = vst.msk [vmem:[#allocation2 + $0x18] sm:$0xff] %vm675_vm0, %v2556_v41  ;;  %v2854_v53 = vpop.f32.mrb[67].mxu1 }
 0x16b   : > { %2188 = vst.msk [vmem:[#allocation2 + $0xe0] sm:$0xff] %vm675_vm0, %v2156_v45  ;;  %v2157_v52 = vadd.f32 %v2116_v29, %v1796_v50  ;;  %2586 = vst.msk [vmem:[#allocation2 + $0x8] sm:$0xff] %vm675_vm0, %v2554_v47  ;;  %v2201_v27 = vld [vmem:[#allocation2 + $0x48] sm:$0xff] }
 0x16c   : > { %2191 = vst.msk [vmem:[#allocation2 + $0xf8] sm:$0xff] %vm675_vm0, %v2159_v49  ;;  %v2206_v49 = vld [vmem:[#allocation2 + $0x70] sm:$0xff] }
 0x16d   : > { %2189 = vst.msk [vmem:[#allocation2 + $0xe8] sm:$0xff] %vm675_vm0, %v2157_v52  ;;  %v3920_v55 = vpop.f32.mrb[68].mxu0 }
 0x16e   : > { %v2559_v56 = vadd.f32 %v3920_v55, %v2198_v54  ;;  %v2442_v58 = vpop.f32.mrb[69].mxu0 }
 0x16f   : > { %v2619_v59 = vld [vmem:[#allocation2 + $0x10] sm:$0xff]  ;;  %v2557_v60 = vadd.f32 %v2442_v58, %v2196_v57  ;;  %v3921_v62 = vpop.f32.mrb[70].mxu0  ;;  %v3954_v4 = vpop.f32.mrb[68].mxu1  ;;  %v2207_v58 = vld [vmem:[#allocation2 + $0x78] sm:$0xff] }
 0x170   : > { %v2980_v63 = vadd.f32 %v3950_v44, %v2619_v59  ;;  %2591 = vst.msk [vmem:[#allocation2 + $0x30] sm:$0xff] %vm675_vm0, %v2559_v56  ;;  %v2617_v0 = vld [vmem:[#allocation2] sm:$0xff]  ;;  %v2560_v1 = vadd.f32 %v3921_v62, %v2199_v61  ;;  %v2445_v3 = vpop.f32.mrb[71].mxu0  ;;  %v2867_v8 = vpop.f32.mrb[69].mxu1 }
 0x171   : > { %v2978_v5 = vadd.f32 %v2851_v48, %v2617_v0  ;;  %2589 = vst.msk [vmem:[#allocation2 + $0x20] sm:$0xff] %vm675_vm0, %v2557_v60  ;;  %v2620_v6 = vld [vmem:[#allocation2 + $0x18] sm:$0xff]  ;;  %v2558_v7 = vadd.f32 %v2445_v3, %v2197_v2  ;;  %v3955_v11 = vpop.f32.mrb[70].mxu1 }
 0x172   : > { %3012 = vst.msk [vmem:[#allocation2 + $0x10] sm:$0xff] %vm675_vm0, %v2980_v63  ;;  %v2981_v9 = vadd.f32 %v3951_v51, %v2620_v6  ;;  %2592 = vst.msk [vmem:[#allocation2 + $0x38] sm:$0xff] %vm675_vm0, %v2560_v1  ;;  %v2618_v10 = vld [vmem:[#allocation2 + $0x8] sm:$0xff]  ;;  %v2870_v13 = vpop.f32.mrb[71].mxu1 }
 0x173   : > { %3010 = vst.msk [vmem:[#allocation2] sm:$0xff] %vm675_vm0, %v2978_v5  ;;  %v2979_v12 = vadd.f32 %v2854_v53, %v2618_v10  ;;  %2590 = vst.msk [vmem:[#allocation2 + $0x28] sm:$0xff] %vm675_vm0, %v2558_v7  ;;  %v2204_v53 = vld [vmem:[#allocation2 + $0x60] sm:$0xff]  ;;  %v2205_v63 = vld [vmem:[#allocation2 + $0x68] sm:$0xff] }
 0x174   : > { %3013 = vst.msk [vmem:[#allocation2 + $0x18] sm:$0xff] %vm675_vm0, %v2981_v9 }
 0x175   : > { %3011 = vst.msk [vmem:[#allocation2 + $0x8] sm:$0xff] %vm675_vm0, %v2979_v12  ;;  %v3924_v15 = vpop.f32.mrb[72].mxu0 }
 0x176   : > { %v2563_v16 = vadd.f32 %v3924_v15, %v2202_v14  ;;  %v2458_v18 = vpop.f32.mrb[73].mxu0 }
 0x177   : > { %v2623_v20 = vld [vmem:[#allocation2 + $0x30] sm:$0xff]  ;;  %v2561_v21 = vadd.f32 %v2458_v18, %v2200_v17  ;;  %v3925_v23 = vpop.f32.mrb[74].mxu0  ;;  %v3958_v29 = vpop.f32.mrb[72].mxu1 }
 0x178   : > { %v2984_v24 = vadd.f32 %v3954_v4, %v2623_v20  ;;  %2595 = vst.msk [vmem:[#allocation2 + $0x50] sm:$0xff] %vm675_vm0, %v2563_v16  ;;  %v2621_v25 = vld [vmem:[#allocation2 + $0x20] sm:$0xff]  ;;  %v2564_v26 = vadd.f32 %v3925_v23, %v2203_v22  ;;  %v2461_v28 = vpop.f32.mrb[75].mxu0  ;;  %v2883_v34 = vpop.f32.mrb[73].mxu1  ;;  %v2210_v22 = vld [vmem:[#allocation2 + $0x90] sm:$0xff] }
 0x179   : > { %v3044_v30 = vld [vmem:[#allocation2 + $0x10] sm:$0xff]  ;;  %v2982_v31 = vadd.f32 %v2867_v8, %v2621_v25  ;;  %2593 = vst.msk [vmem:[#allocation2 + $0x40] sm:$0xff] %vm675_vm0, %v2561_v21  ;;  %v2624_v32 = vld [vmem:[#allocation2 + $0x38] sm:$0xff]  ;;  %v2562_v33 = vadd.f32 %v2461_v28, %v2201_v27  ;;  %v3959_v39 = vpop.f32.mrb[74].mxu1 }
 0x17a   : > { %v3083_v35 = vadd.f32 %v4575_v19, %v3044_v30  ;;  %v3042_v36 = vld [vmem:[#allocation2] sm:$0xff]  ;;  %3016 = vst.msk [vmem:[#allocation2 + $0x30] sm:$0xff] %vm675_vm0, %v2984_v24  ;;  %v2985_v37 = vadd.f32 %v3955_v11, %v2624_v32  ;;  %2596 = vst.msk [vmem:[#allocation2 + $0x58] sm:$0xff] %vm675_vm0, %v2564_v26  ;;  %v2622_v38 = vld [vmem:[#allocation2 + $0x28] sm:$0xff]  ;;  %v2886_v43 = vpop.f32.mrb[75].mxu1 }
 0x17b   : > { %v3081_v40 = vadd.f32 %v4575_v19, %v3042_v36  ;;  %v3045_v41 = vld [vmem:[#allocation2 + $0x18] sm:$0xff]  ;;  %3014 = vst.msk [vmem:[#allocation2 + $0x20] sm:$0xff] %vm675_vm0, %v2982_v31  ;;  %v2983_v42 = vadd.f32 %v2870_v13, %v2622_v38  ;;  %2594 = vst.msk [vmem:[#allocation2 + $0x48] sm:$0xff] %vm675_vm0, %v2562_v33  ;;  %v2208_v26 = vld [vmem:[#allocation2 + $0x80] sm:$0xff] }
 0x17c   : > { %v3644_v44 = vpack.c.bf16 %v3083_v35, %v3083_v35  ;;  %v3084_v45 = vadd.f32 %v4575_v19, %v3045_v41  ;;  %v3043_v46 = vld [vmem:[#allocation2 + $0x8] sm:$0xff]  ;;  %3017 = vst.msk [vmem:[#allocation2 + $0x38] sm:$0xff] %vm675_vm0, %v2985_v37  ;;  %v2211_v31 = vld [vmem:[#allocation2 + $0x98] sm:$0xff] }
 0x17d   : > { %v3642_v47 = vpack.c.bf16 %v3081_v40, %v3081_v40  ;;  %v3082_v48 = vadd.f32 %v4575_v19, %v3043_v46  ;;  %3015 = vst.msk [vmem:[#allocation2 + $0x28] sm:$0xff] %vm675_vm0, %v2983_v42  ;;  %v3928_v50 = vpop.f32.mrb[76].mxu0  ;;  %v2209_v36 = vld [vmem:[#allocation2 + $0x88] sm:$0xff] }
 0x17e   : > { %3244 = vst.msk [vmem:[%s4586_s15 + $0x8] sm:$0xf] %vm3241_vm1, %v3644_v44  ;;  %v3645_v51 = vpack.c.bf16 %v3084_v45, %v3084_v45  ;;  %v2567_v52 = vadd.f32 %v3928_v50, %v2206_v49  ;;  %v2474_v54 = vpop.f32.mrb[77].mxu0 }
 0x17f   : > { %3242 = vst.msk [vmem:[%s4586_s15] sm:$0xf] %vm3241_vm1, %v3642_v47  ;;  %v3643_v55 = vpack.c.bf16 %v3082_v48, %v3082_v48  ;;  %v2627_v56 = vld [vmem:[#allocation2 + $0x50] sm:$0xff]  ;;  %v2565_v57 = vadd.f32 %v2474_v54, %v2204_v53  ;;  %v3929_v59 = vpop.f32.mrb[78].mxu0  ;;  %v3962_v1 = vpop.f32.mrb[76].mxu1 }
 0x180   : > { %3245 = vst.msk [vmem:[%s4586_s15 + $0xc] sm:$0xf] %vm3241_vm1, %v3645_v51  ;;  %v2988_v60 = vadd.f32 %v3958_v29, %v2627_v56  ;;  %v2625_v61 = vld [vmem:[#allocation2 + $0x40] sm:$0xff]  ;;  %v2568_v62 = vadd.f32 %v3929_v59, %v2207_v58  ;;  %v2477_v0 = vpop.f32.mrb[79].mxu0  ;;  %v2899_v6 = vpop.f32.mrb[77].mxu1  ;;  %v2214_v58 = vld [vmem:[#allocation2 + $0xb0] sm:$0xff] }
 0x181   : > { %2599 = vst.msk [vmem:[#allocation2 + $0x70] sm:$0xff] %vm675_vm0, %v2567_v52  ;;  %v3048_v2 = vld [vmem:[#allocation2 + $0x30] sm:$0xff]  ;;  %v2986_v3 = vadd.f32 %v2883_v34, %v2625_v61  ;;  %2597 = vst.msk [vmem:[#allocation2 + $0x60] sm:$0xff] %vm675_vm0, %v2565_v57  ;;  %v2628_v4 = vld [vmem:[#allocation2 + $0x58] sm:$0xff]  ;;  %v2566_v5 = vadd.f32 %v2477_v0, %v2205_v63  ;;  %v3963_v11 = vpop.f32.mrb[78].mxu1 }
 0x182   : > { %3243 = vst.msk [vmem:[%s4586_s15 + $0x4] sm:$0xf] %vm3241_vm1, %v3643_v55  ;;  %v3087_v7 = vadd.f32 %v4575_v19, %v3048_v2  ;;  %v3046_v8 = vld [vmem:[#allocation2 + $0x20] sm:$0xff]  ;;  %v2989_v9 = vadd.f32 %v3959_v39, %v2628_v4  ;;  %v2626_v10 = vld [vmem:[#allocation2 + $0x48] sm:$0xff]  ;;  %v2902_v15 = vpop.f32.mrb[79].mxu1 }
 0x183   : > { %3020 = vst.msk [vmem:[#allocation2 + $0x50] sm:$0xff] %vm675_vm0, %v2988_v60  ;;  %2600 = vst.msk [vmem:[#allocation2 + $0x78] sm:$0xff] %vm675_vm0, %v2568_v62  ;;  %v3085_v12 = vadd.f32 %v4575_v19, %v3046_v8  ;;  %v3049_v13 = vld [vmem:[#allocation2 + $0x38] sm:$0xff]  ;;  %v2987_v14 = vadd.f32 %v2886_v43, %v2626_v10  ;;  %v2212_v62 = vld [vmem:[#allocation2 + $0xa0] sm:$0xff] }
 0x184   : > { %3018 = vst.msk [vmem:[#allocation2 + $0x40] sm:$0xff] %vm675_vm0, %v2986_v3  ;;  %2598 = vst.msk [vmem:[#allocation2 + $0x68] sm:$0xff] %vm675_vm0, %v2566_v5  ;;  %v3648_v16 = vpack.c.bf16 %v3087_v7, %v3087_v7  ;;  %v3088_v17 = vadd.f32 %v4575_v19, %v3049_v13  ;;  %v3047_v18 = vld [vmem:[#allocation2 + $0x28] sm:$0xff]  ;;  %v2215_v3 = vld [vmem:[#allocation2 + $0xb8] sm:$0xff] }
 0x185   : > { %3021 = vst.msk [vmem:[#allocation2 + $0x58] sm:$0xff] %vm675_vm0, %v2989_v9  ;;  %v3646_v20 = vpack.c.bf16 %v3085_v12, %v3085_v12  ;;  %v3086_v21 = vadd.f32 %v4575_v19, %v3047_v18  ;;  %3019 = vst.msk [vmem:[#allocation2 + $0x48] sm:$0xff] %vm675_vm0, %v2987_v14  ;;  %v3932_v23 = vpop.f32.mrb[80].mxu0  ;;  %v2213_v8 = vld [vmem:[#allocation2 + $0xa8] sm:$0xff] }
 0x186   : > { %3248 = vst.msk [vmem:[%s4586_s15 + $0x18] sm:$0xf] %vm3241_vm1, %v3648_v16  ;;  %v3649_v24 = vpack.c.bf16 %v3088_v17, %v3088_v17  ;;  %v2571_v25 = vadd.f32 %v3932_v23, %v2210_v22  ;;  %v2490_v27 = vpop.f32.mrb[81].mxu0 }
 0x187   : > { %3246 = vst.msk [vmem:[%s4586_s15 + $0x10] sm:$0xf] %vm3241_vm1, %v3646_v20  ;;  %v3647_v28 = vpack.c.bf16 %v3086_v21, %v3086_v21  ;;  %v2569_v30 = vadd.f32 %v2490_v27, %v2208_v26  ;;  %v3933_v32 = vpop.f32.mrb[82].mxu0  ;;  %v3966_v38 = vpop.f32.mrb[80].mxu1 }
 0x188   : > { %v2631_v29 = vld [vmem:[#allocation2 + $0x70] sm:$0xff]  ;;  %3249 = vst.msk [vmem:[%s4586_s15 + $0x1c] sm:$0xf] %vm3241_vm1, %v3649_v24  ;;  %v2629_v34 = vld [vmem:[#allocation2 + $0x60] sm:$0xff]  ;;  %v2572_v35 = vadd.f32 %v3933_v32, %v2211_v31  ;;  %v2493_v37 = vpop.f32.mrb[83].mxu0  ;;  %v2915_v43 = vpop.f32.mrb[81].mxu1 }
 0x189   : > { %v2992_v33 = vadd.f32 %v3962_v1, %v2631_v29  ;;  %2603 = vst.msk [vmem:[#allocation2 + $0x90] sm:$0xff] %vm675_vm0, %v2571_v25  ;;  %v2990_v40 = vadd.f32 %v2899_v6, %v2629_v34  ;;  %2601 = vst.msk [vmem:[#allocation2 + $0x80] sm:$0xff] %vm675_vm0, %v2569_v30  ;;  %v2570_v42 = vadd.f32 %v2493_v37, %v2209_v36  ;;  %v3967_v48 = vpop.f32.mrb[82].mxu1  ;;  %v2218_v31 = vld [vmem:[#allocation2 + $0xd0] sm:$0xff] }
 0x18a   : > { %3247 = vst.msk [vmem:[%s4586_s15 + $0x14] sm:$0xf] %vm3241_vm1, %v3647_v28  ;;  %v3052_v39 = vld [vmem:[#allocation2 + $0x50] sm:$0xff]  ;;  %v2632_v41 = vld [vmem:[#allocation2 + $0x78] sm:$0xff]  ;;  %v2918_v52 = vpop.f32.mrb[83].mxu1 }
 0x18b   : > { %v3091_v44 = vadd.f32 %v4575_v19, %v3052_v39  ;;  %v3050_v45 = vld [vmem:[#allocation2 + $0x40] sm:$0xff]  ;;  %3024 = vst.msk [vmem:[#allocation2 + $0x70] sm:$0xff] %vm675_vm0, %v2992_v33  ;;  %v2993_v46 = vadd.f32 %v3963_v11, %v2632_v41  ;;  %2604 = vst.msk [vmem:[#allocation2 + $0x98] sm:$0xff] %vm675_vm0, %v2572_v35  ;;  %v2630_v47 = vld [vmem:[#allocation2 + $0x68] sm:$0xff] }
 0x18c   : > { %v3089_v49 = vadd.f32 %v4575_v19, %v3050_v45  ;;  %v3053_v50 = vld [vmem:[#allocation2 + $0x58] sm:$0xff]  ;;  %3022 = vst.msk [vmem:[#allocation2 + $0x60] sm:$0xff] %vm675_vm0, %v2990_v40  ;;  %v2991_v51 = vadd.f32 %v2902_v15, %v2630_v47  ;;  %2602 = vst.msk [vmem:[#allocation2 + $0x88] sm:$0xff] %vm675_vm0, %v2570_v42  ;;  %v3051_v55 = vld [vmem:[#allocation2 + $0x48] sm:$0xff] }
 0x18d   : > { %v3652_v53 = vpack.c.bf16 %v3091_v44, %v3091_v44  ;;  %v3092_v54 = vadd.f32 %v4575_v19, %v3053_v50  ;;  %3025 = vst.msk [vmem:[#allocation2 + $0x78] sm:$0xff] %vm675_vm0, %v2993_v46  ;;  %v3090_v57 = vadd.f32 %v4575_v19, %v3051_v55  ;;  %v3936_v59 = vpop.f32.mrb[84].mxu0  ;;  %v2216_v35 = vld [vmem:[#allocation2 + $0xc0] sm:$0xff]  ;;  %v2219_v40 = vld [vmem:[#allocation2 + $0xd8] sm:$0xff]  ;;  %v2217_v45 = vld [vmem:[#allocation2 + $0xc8] sm:$0xff] }
 0x18e   : > { %v3650_v56 = vpack.c.bf16 %v3089_v49, %v3089_v49  ;;  %3023 = vst.msk [vmem:[#allocation2 + $0x68] sm:$0xff] %vm675_vm0, %v2991_v51  ;;  %v2575_v61 = vadd.f32 %v3936_v59, %v2214_v58  ;;  %v2506_v63 = vpop.f32.mrb[85].mxu0 }
 0x18f   : > { %3252 = vst.msk [vmem:[%s4586_s15 + $0x28] sm:$0xf] %vm3241_vm1, %v3652_v53  ;;  %v3653_v60 = vpack.c.bf16 %v3092_v54, %v3092_v54  ;;  %v3651_v0 = vpack.c.bf16 %v3090_v57, %v3090_v57  ;;  %v2573_v2 = vadd.f32 %v2506_v63, %v2212_v62  ;;  %v3937_v4 = vpop.f32.mrb[86].mxu0  ;;  %v3970_v10 = vpop.f32.mrb[84].mxu1 }
 0x190   : > { %3250 = vst.msk [vmem:[%s4586_s15 + $0x20] sm:$0xf] %vm3241_vm1, %v3650_v56  ;;  %v2635_v1 = vld [vmem:[#allocation2 + $0x90] sm:$0xff]  ;;  %v2633_v6 = vld [vmem:[#allocation2 + $0x80] sm:$0xff]  ;;  %v2576_v7 = vadd.f32 %v3937_v4, %v2215_v3  ;;  %v2509_v9 = vpop.f32.mrb[87].mxu0  ;;  %v2931_v15 = vpop.f32.mrb[85].mxu1 }
 0x191   : > { %3253 = vst.msk [vmem:[%s4586_s15 + $0x2c] sm:$0xf] %vm3241_vm1, %v3653_v60  ;;  %v2996_v5 = vadd.f32 %v3966_v38, %v2635_v1  ;;  %3251 = vst.msk [vmem:[%s4586_s15 + $0x24] sm:$0xf] %vm3241_vm1, %v3651_v0  ;;  %v2994_v12 = vadd.f32 %v2915_v43, %v2633_v6  ;;  %v2574_v14 = vadd.f32 %v2509_v9, %v2213_v8  ;;  %v3971_v21 = vpop.f32.mrb[86].mxu1  ;;  %v2222_v3 = vld [vmem:[#allocation2 + $0xf0] sm:$0xff] }
 0x192   : > { %2607 = vst.msk [vmem:[#allocation2 + $0xb0] sm:$0xff] %vm675_vm0, %v2575_v61  ;;  %v3056_v11 = vld [vmem:[#allocation2 + $0x70] sm:$0xff]  ;;  %2605 = vst.msk [vmem:[#allocation2 + $0xa0] sm:$0xff] %vm675_vm0, %v2573_v2  ;;  %v2636_v13 = vld [vmem:[#allocation2 + $0x98] sm:$0xff]  ;;  %v2934_v25 = vpop.f32.mrb[87].mxu1 }
 0x193   : > { %v3095_v16 = vadd.f32 %v4575_v19, %v3056_v11  ;;  %v3054_v17 = vld [vmem:[#allocation2 + $0x60] sm:$0xff]  ;;  %3028 = vst.msk [vmem:[#allocation2 + $0x90] sm:$0xff] %vm675_vm0, %v2996_v5  ;;  %v2997_v18 = vadd.f32 %v3967_v48, %v2636_v13  ;;  %2608 = vst.msk [vmem:[#allocation2 + $0xb8] sm:$0xff] %vm675_vm0, %v2576_v7  ;;  %v2634_v20 = vld [vmem:[#allocation2 + $0x88] sm:$0xff] }
 0x194   : > { %v3093_v22 = vadd.f32 %v4575_v19, %v3054_v17  ;;  %v3057_v23 = vld [vmem:[#allocation2 + $0x78] sm:$0xff]  ;;  %3026 = vst.msk [vmem:[#allocation2 + $0x80] sm:$0xff] %vm675_vm0, %v2994_v12  ;;  %v2995_v24 = vadd.f32 %v2918_v52, %v2634_v20  ;;  %2606 = vst.msk [vmem:[#allocation2 + $0xa8] sm:$0xff] %vm675_vm0, %v2574_v14  ;;  %v2220_v7 = vld [vmem:[#allocation2 + $0xe0] sm:$0xff] }
 0x195   : > { %v3656_v26 = vpack.c.bf16 %v3095_v16, %v3095_v16  ;;  %v3096_v27 = vadd.f32 %v4575_v19, %v3057_v23  ;;  %v3055_v28 = vld [vmem:[#allocation2 + $0x68] sm:$0xff]  ;;  %3029 = vst.msk [vmem:[#allocation2 + $0x98] sm:$0xff] %vm675_vm0, %v2997_v18  ;;  %v3940_v32 = vpop.f32.mrb[88].mxu0  ;;  %v2223_v12 = vld [vmem:[#allocation2 + $0xf8] sm:$0xff] }
 0x196   : > { %v3654_v29 = vpack.c.bf16 %v3093_v22, %v3093_v22  ;;  %v3094_v30 = vadd.f32 %v4575_v19, %v3055_v28  ;;  %3027 = vst.msk [vmem:[#allocation2 + $0x88] sm:$0xff] %vm675_vm0, %v2995_v24  ;;  %v2579_v34 = vadd.f32 %v3940_v32, %v2218_v31  ;;  %v2522_v36 = vpop.f32.mrb[89].mxu0  ;;  %v2221_v17 = vld [vmem:[#allocation2 + $0xe8] sm:$0xff] }
 0x197   : > { %3256 = vst.msk [vmem:[%s4586_s15 + $0x38] sm:$0xf] %vm3241_vm1, %v3656_v26  ;;  %v3657_v33 = vpack.c.bf16 %v3096_v27, %v3096_v27  ;;  %v2577_v39 = vadd.f32 %v2522_v36, %v2216_v35  ;;  %v3941_v41 = vpop.f32.mrb[90].mxu0  ;;  %v3974_v47 = vpop.f32.mrb[88].mxu1 }
 0x198   : > { %3254 = vst.msk [vmem:[%s4586_s15 + $0x30] sm:$0xf] %vm3241_vm1, %v3654_v29  ;;  %v3655_v37 = vpack.c.bf16 %v3094_v30, %v3094_v30  ;;  %v2580_v44 = vadd.f32 %v3941_v41, %v2219_v40  ;;  %v2525_v46 = vpop.f32.mrb[91].mxu0  ;;  %v2947_v52 = vpop.f32.mrb[89].mxu1 }
 0x199   : > { %v2639_v38 = vld [vmem:[#allocation2 + $0xb0] sm:$0xff]  ;;  %3257 = vst.msk [vmem:[%s4586_s15 + $0x3c] sm:$0xf] %vm3241_vm1, %v3657_v33  ;;  %v2637_v43 = vld [vmem:[#allocation2 + $0xa0] sm:$0xff]  ;;  %v2578_v51 = vadd.f32 %v2525_v46, %v2217_v45  ;;  %v3975_v57 = vpop.f32.mrb[90].mxu1 }
 0x19a   : > { %v3000_v42 = vadd.f32 %v3970_v10, %v2639_v38  ;;  %2611 = vst.msk [vmem:[#allocation2 + $0xd0] sm:$0xff] %vm675_vm0, %v2579_v34  ;;  %v3060_v48 = vld [vmem:[#allocation2 + $0x90] sm:$0xff]  ;;  %v2998_v49 = vadd.f32 %v2931_v15, %v2637_v43  ;;  %2609 = vst.msk [vmem:[#allocation2 + $0xc0] sm:$0xff] %vm675_vm0, %v2577_v39  ;;  %v2640_v50 = vld [vmem:[#allocation2 + $0xb8] sm:$0xff]  ;;  %v2950_v61 = vpop.f32.mrb[91].mxu1 }
 0x19b   : > { %3255 = vst.msk [vmem:[%s4586_s15 + $0x34] sm:$0xf] %vm3241_vm1, %v3655_v37  ;;  %v3099_v53 = vadd.f32 %v4575_v19, %v3060_v48  ;;  %v3058_v54 = vld [vmem:[#allocation2 + $0x80] sm:$0xff]  ;;  %v3001_v55 = vadd.f32 %v3971_v21, %v2640_v50  ;;  %v2638_v56 = vld [vmem:[#allocation2 + $0xa8] sm:$0xff] }
 0x19c   : > { %3032 = vst.msk [vmem:[#allocation2 + $0xb0] sm:$0xff] %vm675_vm0, %v3000_v42  ;;  %2612 = vst.msk [vmem:[#allocation2 + $0xd8] sm:$0xff] %vm675_vm0, %v2580_v44  ;;  %v3097_v58 = vadd.f32 %v4575_v19, %v3058_v54  ;;  %v3061_v59 = vld [vmem:[#allocation2 + $0x98] sm:$0xff]  ;;  %v2999_v60 = vadd.f32 %v2934_v25, %v2638_v56 }
 0x19d   : > { %3030 = vst.msk [vmem:[#allocation2 + $0xa0] sm:$0xff] %vm675_vm0, %v2998_v49  ;;  %2610 = vst.msk [vmem:[#allocation2 + $0xc8] sm:$0xff] %vm675_vm0, %v2578_v51  ;;  %v3660_v62 = vpack.c.bf16 %v3099_v53, %v3099_v53  ;;  %v3100_v63 = vadd.f32 %v4575_v19, %v3061_v59  ;;  %v3059_v0 = vld [vmem:[#allocation2 + $0x88] sm:$0xff]  ;;  %v3944_v4 = vpop.f32.mrb[92].mxu0 }
 0x19e   : > { %3033 = vst.msk [vmem:[#allocation2 + $0xb8] sm:$0xff] %vm675_vm0, %v3001_v55  ;;  %v3658_v1 = vpack.c.bf16 %v3097_v58, %v3097_v58  ;;  %v3098_v2 = vadd.f32 %v4575_v19, %v3059_v0  ;;  %3031 = vst.msk [vmem:[#allocation2 + $0xa8] sm:$0xff] %vm675_vm0, %v2999_v60  ;;  %v2583_v6 = vadd.f32 %v3944_v4, %v2222_v3  ;;  %v2538_v8 = vpop.f32.mrb[93].mxu0 }
 0x19f   : > { %3260 = vst.msk [vmem:[%s4586_s15 + $0x48] sm:$0xf] %vm3241_vm1, %v3660_v62  ;;  %v3661_v5 = vpack.c.bf16 %v3100_v63, %v3100_v63  ;;  %v2581_v11 = vadd.f32 %v2538_v8, %v2220_v7  ;;  %v3945_v13 = vpop.f32.mrb[94].mxu0  ;;  %v3978_v20 = vpop.f32.mrb[92].mxu1 }
 0x1a0   : > { %3258 = vst.msk [vmem:[%s4586_s15 + $0x40] sm:$0xf] %vm3241_vm1, %v3658_v1  ;;  %v3659_v9 = vpack.c.bf16 %v3098_v2, %v3098_v2  ;;  %v2584_v16 = vadd.f32 %v3945_v13, %v2223_v12  ;;  %v2541_v18 = vpop.f32.mrb[95].mxu0  ;;  %v2963_v25 = vpop.f32.mrb[93].mxu1 }
 0x1a1   : > { %v2643_v10 = vld [vmem:[#allocation2 + $0xd0] sm:$0xff]  ;;  %3261 = vst.msk [vmem:[%s4586_s15 + $0x4c] sm:$0xf] %vm3241_vm1, %v3661_v5  ;;  %v2641_v15 = vld [vmem:[#allocation2 + $0xc0] sm:$0xff]  ;;  %v2582_v24 = vadd.f32 %v2541_v18, %v2221_v17  ;;  %v3979_v30 = vpop.f32.mrb[94].mxu1 }
 0x1a2   : > { %v3004_v14 = vadd.f32 %v3974_v47, %v2643_v10  ;;  %2615 = vst.msk [vmem:[#allocation2 + $0xf0] sm:$0xff] %vm675_vm0, %v2583_v6  ;;  %v3002_v22 = vadd.f32 %v2947_v52, %v2641_v15  ;;  %2613 = vst.msk [vmem:[#allocation2 + $0xe0] sm:$0xff] %vm675_vm0, %v2581_v11  ;;  %v2966_v34 = vpop.f32.mrb[95].mxu1 }
 0x1a3   : > { %3259 = vst.msk [vmem:[%s4586_s15 + $0x44] sm:$0xf] %vm3241_vm1, %v3659_v9  ;;  %v3064_v21 = vld [vmem:[#allocation2 + $0xb0] sm:$0xff]  ;;  %v2644_v23 = vld [vmem:[#allocation2 + $0xd8] sm:$0xff] }
 0x1a4   : > { %v3103_v26 = vadd.f32 %v4575_v19, %v3064_v21  ;;  %v3062_v27 = vld [vmem:[#allocation2 + $0xa0] sm:$0xff]  ;;  %3036 = vst.msk [vmem:[#allocation2 + $0xd0] sm:$0xff] %vm675_vm0, %v3004_v14  ;;  %v3005_v28 = vadd.f32 %v3975_v57, %v2644_v23  ;;  %2616 = vst.msk [vmem:[#allocation2 + $0xf8] sm:$0xff] %vm675_vm0, %v2584_v16  ;;  %v2642_v29 = vld [vmem:[#allocation2 + $0xc8] sm:$0xff] }
 0x1a5   : > { %v3101_v31 = vadd.f32 %v4575_v19, %v3062_v27  ;;  %v3065_v32 = vld [vmem:[#allocation2 + $0xb8] sm:$0xff]  ;;  %3034 = vst.msk [vmem:[#allocation2 + $0xc0] sm:$0xff] %vm675_vm0, %v3002_v22  ;;  %v3003_v33 = vadd.f32 %v2950_v61, %v2642_v29  ;;  %2614 = vst.msk [vmem:[#allocation2 + $0xe8] sm:$0xff] %vm675_vm0, %v2582_v24  ;;  %v3063_v37 = vld [vmem:[#allocation2 + $0xa8] sm:$0xff] }
 0x1a6   : > { %v3664_v35 = vpack.c.bf16 %v3103_v26, %v3103_v26  ;;  %v3104_v36 = vadd.f32 %v4575_v19, %v3065_v32  ;;  %3037 = vst.msk [vmem:[#allocation2 + $0xd8] sm:$0xff] %vm675_vm0, %v3005_v28  ;;  %v3102_v39 = vadd.f32 %v4575_v19, %v3063_v37 }
 0x1a7   : > { %v3662_v38 = vpack.c.bf16 %v3101_v31, %v3101_v31  ;;  %3035 = vst.msk [vmem:[#allocation2 + $0xc8] sm:$0xff] %vm675_vm0, %v3003_v33 }
 0x1a8   : > { %3264 = vst.msk [vmem:[%s4586_s15 + $0x58] sm:$0xf] %vm3241_vm1, %v3664_v35  ;;  %v3665_v40 = vpack.c.bf16 %v3104_v36, %v3104_v36  ;;  %v3663_v41 = vpack.c.bf16 %v3102_v39, %v3102_v39 }
 0x1a9   : > { %3262 = vst.msk [vmem:[%s4586_s15 + $0x50] sm:$0xf] %vm3241_vm1, %v3662_v38  ;;  %v2647_v42 = vld [vmem:[#allocation2 + $0xf0] sm:$0xff]  ;;  %v2645_v44 = vld [vmem:[#allocation2 + $0xe0] sm:$0xff] }
 0x1aa   : > { %3265 = vst.msk [vmem:[%s4586_s15 + $0x5c] sm:$0xf] %vm3241_vm1, %v3665_v40  ;;  %v3008_v43 = vadd.f32 %v3978_v20, %v2647_v42  ;;  %3263 = vst.msk [vmem:[%s4586_s15 + $0x54] sm:$0xf] %vm3241_vm1, %v3663_v41  ;;  %v3006_v46 = vadd.f32 %v2963_v25, %v2645_v44 }
 0x1ab   : > { %v3068_v45 = vld [vmem:[#allocation2 + $0xd0] sm:$0xff]  ;;  %v2648_v47 = vld [vmem:[#allocation2 + $0xf8] sm:$0xff] }
 0x1ac   : > { %v3107_v48 = vadd.f32 %v4575_v19, %v3068_v45  ;;  %v3066_v49 = vld [vmem:[#allocation2 + $0xc0] sm:$0xff]  ;;  %3040 = vst.msk [vmem:[#allocation2 + $0xf0] sm:$0xff] %vm675_vm0, %v3008_v43  ;;  %v3009_v50 = vadd.f32 %v3979_v30, %v2648_v47  ;;  %v2646_v51 = vld [vmem:[#allocation2 + $0xe8] sm:$0xff]  ;;  %3038 = vst.msk [vmem:[#allocation2 + $0xe0] sm:$0xff] %vm675_vm0, %v3006_v46 }
 0x1ad   : > { %v3105_v52 = vadd.f32 %v4575_v19, %v3066_v49  ;;  %v3069_v53 = vld [vmem:[#allocation2 + $0xd8] sm:$0xff]  ;;  %v3007_v54 = vadd.f32 %v2966_v34, %v2646_v51 }
 0x1ae   : > { %v3668_v55 = vpack.c.bf16 %v3107_v48, %v3107_v48  ;;  %v3108_v56 = vadd.f32 %v4575_v19, %v3069_v53  ;;  %v3067_v57 = vld [vmem:[#allocation2 + $0xc8] sm:$0xff]  ;;  %3041 = vst.msk [vmem:[#allocation2 + $0xf8] sm:$0xff] %vm675_vm0, %v3009_v50 }
 0x1af   : > { %v3666_v58 = vpack.c.bf16 %v3105_v52, %v3105_v52  ;;  %v3106_v59 = vadd.f32 %v4575_v19, %v3067_v57  ;;  %3039 = vst.msk [vmem:[#allocation2 + $0xe8] sm:$0xff] %vm675_vm0, %v3007_v54 }
 0x1b0   : > { %3268 = vst.msk [vmem:[%s4586_s15 + $0x68] sm:$0xf] %vm3241_vm1, %v3668_v55  ;;  %v3669_v60 = vpack.c.bf16 %v3108_v56, %v3108_v56 }
 0x1b1   : > { %3266 = vst.msk [vmem:[%s4586_s15 + $0x60] sm:$0xf] %vm3241_vm1, %v3666_v58  ;;  %v3667_v61 = vpack.c.bf16 %v3106_v59, %v3106_v59 }
 0x1b2   : > { %3269 = vst.msk [vmem:[%s4586_s15 + $0x6c] sm:$0xf] %vm3241_vm1, %v3669_v60 }
 0x1b3   : > { %3267 = vst.msk [vmem:[%s4586_s15 + $0x64] sm:$0xf] %vm3241_vm1, %v3667_v61  ;;  %v3072_v62 = vld [vmem:[#allocation2 + $0xf0] sm:$0xff]  ;;  %v3070_v0 = vld [vmem:[#allocation2 + $0xe0] sm:$0xff] }
 0x1b4   : > { %v3111_v63 = vadd.f32 %v4575_v19, %v3072_v62  ;;  %v3109_v1 = vadd.f32 %v4575_v19, %v3070_v0 }
 0x1b5   : > { %v3073_v2 = vld [vmem:[#allocation2 + $0xf8] sm:$0xff] }
 0x1b6   : > { %v3672_v3 = vpack.c.bf16 %v3111_v63, %v3111_v63  ;;  %v3112_v4 = vadd.f32 %v4575_v19, %v3073_v2  ;;  %v3071_v5 = vld [vmem:[#allocation2 + $0xe8] sm:$0xff]  ;;  %v3670_v6 = vpack.c.bf16 %v3109_v1, %v3109_v1 }
 0x1b7   : > { %v3110_v7 = vadd.f32 %v4575_v19, %v3071_v5 }
 0x1b8   : > { %3272 = vst.msk [vmem:[%s4586_s15 + $0x78] sm:$0xf] %vm3241_vm1, %v3672_v3  ;;  %v3673_v8 = vpack.c.bf16 %v3112_v4, %v3112_v4  ;;  %3270 = vst.msk [vmem:[%s4586_s15 + $0x70] sm:$0xf] %vm3241_vm1, %v3670_v6 }
 0x1b9   : > { %v3671_v9 = vpack.c.bf16 %v3110_v7, %v3110_v7 }
 0x1ba   : > { %3273 = vst.msk [vmem:[%s4586_s15 + $0x7c] sm:$0xf] %vm3241_vm1, %v3673_v8 }
 0x1bb   : > { %3271 = vst.msk [vmem:[%s4586_s15 + $0x74] sm:$0xf] %vm3241_vm1, %v3671_v9 }
 0x1bc PF: > { %s23_s25 = sadd.s32 1, %s4096_s25  }
 0x1bd   : > { %p20_p4 = scmp.ge.s32.totalorder %s23_s25, 4  }
 0x1bf   :  { %22 = sbr.rel (!%p20_p4) target bundleno = 1 (0x1), region = 117 }

</bundles_post_ra>
